<compile_context>
chip_gen: v6e
topology: v6e:2x2x1
jax: 0.10.0
libtpu: 0.0.40
codegen_flags: <defaults>
</compile_context>

<pallas_src>
import jax
import jax.numpy as jnp
from jax import lax
from jax.experimental import pallas as pl
from jax.experimental.pallas import tpu as pltpu


def _stacked_cde_kernel(steps_ref,                       # SMEM scalar prefetch: steps/chunk
                        dxb_ref, x0_ref,
                        wi1_ref, bi1_ref,
                        wd1_ref, bd1_ref, wd2_ref, bd2_ref,
                        wi2_ref, bi2_ref,
                        eb_ref, r_ref,
                        wr_ref, br_ref,
                        out_ref,
                        zcat_sc, z1p_sc):
    i = pl.program_id(0)
    B, two_h = zcat_sc.shape
    H = two_h // 2
    CH = dxb_ref.shape[2]                                # C * H (pre-broadcast data path)

    @pl.when(i == 0)
    def _init():
        x0 = x0_ref[...]                                                    # X.evaluate(t0)
        z1_0 = jnp.dot(x0, wi1_ref[...], preferred_element_type=jnp.float32) + bi1_ref[...]
        z2_0 = jnp.dot(z1_0, wi2_ref[...], preferred_element_type=jnp.float32) + bi2_ref[...]
        zcat_sc[:, :H] = z1_0                            # chain A state  (first CDE)
        zcat_sc[:, H:] = z2_0                            # chain B state  (second CDE)
        z1p_sc[...] = z1_0                               # z1_prev == z1_cur -> first B step
                                                         # of the pipeline is an identity.

    # Small tensors hoisted once per chunk; the big ones (wd2, r) are consumed straight
    # from VMEM at the dot to avoid vreg pressure across the time loop.
    wd1 = wd1_ref[...]
    bd1 = bd1_ref[...]
    bd2 = bd2_ref[...]

    def fused_step(z_cat, z1_prev, dxb_t):
        """One pipelined step: chain A advances over dX_t while chain B advances over the
        previous interval's dZ = z1_cur - z1_prev. Both RK4s share block-diagonal matmuls."""
        z1_cur = z_cat[:, :H]
        dZ = z1_cur - z1_prev
        # Broadcast dZ over the hidden axis with a 0/1 matrix on the (idle) MXU:
        #   dzb[b, c*H + h] = dZ[b, c]
        dzb = jnp.dot(dZ, eb_ref[...], preferred_element_type=jnp.float32)   # (B, H*H)
        dpath = jnp.concatenate([dxb_t, dzb], axis=-1)                       # (B, C*H + H*H)

        def stage(z):
            m = jnp.maximum(
                jnp.dot(z.astype(wd1.dtype), wd1,
                        preferred_element_type=jnp.float32) + bd1, 0.0)      # (B, 2Hf)
            g = jnp.tanh(
                jnp.dot(m.astype(wd1.dtype), wd2_ref[...],
                        preferred_element_type=jnp.float32) + bd2)           # (B, CH+H*H)
            # Channel contraction of BOTH vector fields as one MXU matmul against the
            # constant 0/1 reduction matrix (replaces ~10^2 sub-vreg VPU/XLU ops per stage).
            return jnp.dot(g * dpath, r_ref[...],
                           preferred_element_type=jnp.float32)               # (B, 2H)

        k1 = stage(z_cat)
        k2 = stage(z_cat + 0.5 * k1)
        k3 = stage(z_cat + 0.5 * k2)
        k4 = stage(z_cat + k3)
        z_new = z_cat + (k1 + 2.0 * (k2 + k3) + k4) * (1.0 / 6.0)
        return z_new, z1_cur

    def body(t, carry):
        z_cat, z1_prev = carry
        return fused_step(z_cat, z1_prev, dxb_ref[t])

    n_t = steps_ref[i]                 # true steps in this chunk (zero-padded tail skipped)
    z_cat, z1_prev = lax.fori_loop(0, n_t, body, (zcat_sc[...], z1p_sc[...]))
    zcat_sc[...] = z_cat
    z1p_sc[...] = z1_prev

    @pl.when(i == pl.num_programs(0) - 1)
    def _finalize():
        # Drain the software pipeline: chain B still owes one step over the last interval
        # (dX := 0 makes the chain-A half an exact identity step).
        z_fin, _ = fused_step(z_cat, z1_prev, jnp.zeros((B, CH), jnp.float32))
        z2 = z_fin[:, H:]
        out_ref[...] = (jnp.dot(z2, wr_ref[...], preferred_element_type=jnp.float32)
                        + br_ref[...])                                       # readout(z_T)


def make_params(key, input_channels, hidden_channels, output_channels, hidden_field):
    """Deterministic torch.nn.Linear-style init: U(-1/sqrt(fan_in), 1/sqrt(fan_in)).

    Second linears of the vector fields are stored flattened / lane-dense:
      func1 linear2: (Hf, C*H), bias (1, C*H)   [column c*H + h]
      func2 linear2: (Hf, H*H), bias (1, H*H)
    (a permutation of torch's h*C + c layout; equivalent under random init)."""
    C, H, O, Hf = input_channels, hidden_channels, output_channels, hidden_field
    ks = jax.random.split(key, 14)

    def lin(kw, kb, fan_in, shape_w, shape_b):
        bound = 1.0 / float(fan_in) ** 0.5
        w = jax.random.uniform(kw, shape_w, jnp.float32, -bound, bound)
        b = jax.random.uniform(kb, shape_b, jnp.float32, -bound, bound)
        return w, b

    wi1, bi1 = lin(ks[0], ks[1], C, (C, H), (1, H))               # initial1
    w1a, b1a = lin(ks[2], ks[3], H, (H, Hf), (1, Hf))             # func1 linear1
    w2a, b2a = lin(ks[4], ks[5], Hf, (Hf, C * H), (1, C * H))     # func1 linear2 (flat)
    wi2, bi2 = lin(ks[6], ks[7], H, (H, H), (1, H))               # initial2
    w1b, b1b = lin(ks[8], ks[9], H, (H, Hf), (1, Hf))             # func2 linear1
    w2b, b2b = lin(ks[10], ks[11], Hf, (Hf, H * H), (1, H * H))   # func2 linear2 (flat)
    wr, br = lin(ks[12], ks[13], H, (H, O), (1, O))               # readout
    return (wi1, bi1, w1a, b1a, w2a, b2a, wi2, bi2, w1b, b1b, w2b, b2b, wr, br)


def neural_cde_stacked(coeffs, times, params, *, t_chunk=512, matmul_dtype=jnp.bfloat16):
    """coeffs: (B, T, C) linear-interpolation coefficients (== data), times: (T,)."""
    del times  # linear path + one step per interval: invariant to time reparametrization
    B, T, C = coeffs.shape
    if T < 2:
        raise ValueError("NeuralCDE_stacked needs at least two time points (T >= 2).")

    (wi1, bi1, w1a, b1a, w2a, b2a, wi2, bi2,
     w1b, b1b, w2b, b2b, wr, br) = params
    H = wi2.shape[0]
    O = wr.shape[1]
    Hf = w1a.shape[1]
    f32 = jnp.float32

    # ---- fused block-diagonal vector-field weights (wrapper-side layout plumbing) ----
    zz = lambda r, c: jnp.zeros((r, c), f32)
    wd1 = jnp.block([[w1a, zz(H, Hf)], [zz(H, Hf), w1b]]).astype(matmul_dtype)  # (2H, 2Hf)
    bd1 = jnp.concatenate([b1a, b1b], axis=-1)                                   # (1, 2Hf)
    wd2 = jnp.block([[w2a, zz(Hf, H * H)],
                     [zz(Hf, C * H), w2b]]).astype(matmul_dtype)      # (2Hf, C*H + H*H)
    bd2 = jnp.concatenate([b2a, b2b], axis=-1)                        # (1, C*H + H*H)

    # ---- structural 0/1 broadcast / reduction operators (exact; kept f32) ----
    eye_h = jnp.eye(H, dtype=f32)
    eb = jnp.kron(eye_h, jnp.ones((1, H), f32))                       # (H, H*H) broadcast dZ
    ra = jnp.kron(jnp.ones((C, 1), f32), eye_h)                       # (C*H, H)
    rb = jnp.kron(jnp.ones((H, 1), f32), eye_h)                       # (H*H, H)
    r_blk = jnp.block([[ra, zz(C * H, H)], [zz(H * H, H), rb]])       # (C*H + H*H, 2H)

    # ---- data-path increments, pre-broadcast over the hidden axis (time-major) ----
    x_tbc = jnp.transpose(coeffs.astype(f32), (1, 0, 2))              # (T, B, C)
    dx = x_tbc[1:] - x_tbc[:-1]                                       # (T-1, B, C)
    dxb = jnp.repeat(dx, H, axis=-1)                                  # (T-1, B, C*H) lane-dense
    x0 = x_tbc[0]                                                     # (B, C)

    n_steps = T - 1
    t_chunk = max(1, min(t_chunk, n_steps))
    n_chunks = pl.cdiv(n_steps, t_chunk)
    pad = n_chunks * t_chunk - n_steps
    if pad:
        dxb = jnp.concatenate([dxb, jnp.zeros((pad, B, C * H), f32)], axis=0)
    steps = jnp.asarray([min(t_chunk, n_steps - j * t_chunk) for j in range(n_chunks)],
                        dtype=jnp.int32)

    tensor_args = (dxb, x0, wi1, bi1, wd1, bd1, wd2, bd2, wi2, bi2, eb, r_blk, wr, br)

    def const_spec(a):
        nd = a.ndim
        return pl.BlockSpec(a.shape, lambda i, steps_r, _nd=nd: (0,) * _nd)

    in_specs = ([pl.BlockSpec((t_chunk, B, C * H), lambda i, steps_r: (i, 0, 0))]
                + [const_spec(a) for a in tensor_args[1:]])

    out = pl.pallas_call(
        _stacked_cde_kernel,
        out_shape=jax.ShapeDtypeStruct((B, O), jnp.float32),
        grid_spec=pltpu.PrefetchScalarGridSpec(
            num_scalar_prefetch=1,                       # per-chunk true step counts (SMEM)
            grid=(n_chunks,),
            in_specs=in_specs,
            out_specs=pl.BlockSpec((B, O), lambda i, steps_r: (0, 0)),
            scratch_shapes=[pltpu.VMEM((B, 2 * H), jnp.float32),   # [z1 | z2] fused state
                            pltpu.VMEM((B, H), jnp.float32)],      # z1_prev (pipeline lag)
        ),
        compiler_params=pltpu.CompilerParams(
            dimension_semantics=("arbitrary",),          # strictly serial time recurrence
            vmem_limit_bytes=32 * 1024 * 1024),
    )(steps, *tensor_args)
    return out


def neural_cde_stacked_reference(coeffs, times, params):
    """Pure-JAX reference: same fixed per-interval RK4 algorithm, unfused, f32."""
    del times
    (wi1, bi1, w1a, b1a, w2a, b2a, wi2, bi2, w1b, b1b, w2b, b2b, wr, br) = params
    H = wi2.shape[0]
    C = coeffs.shape[-1]
    x = jnp.transpose(coeffs.astype(jnp.float32), (1, 0, 2))          # (T, B, C)
    dx = x[1:] - x[:-1]

    def vf(z, w1, b1, w2, b2, dpath, n_ch):
        m = jnp.maximum(z @ w1 + b1, 0.0)
        g = jnp.tanh(m @ w2 + b2).reshape(z.shape[0], n_ch, H)        # column c*H + h
        return jnp.einsum('bch,bc->bh', g, dpath)

    def rk4(f, z, d):
        k1 = f(z, d); k2 = f(z + 0.5 * k1, d); k3 = f(z + 0.5 * k2, d); k4 = f(z + k3, d)
        return z + (k1 + 2.0 * (k2 + k3) + k4) * (1.0 / 6.0)

    f1 = lambda z, d: vf(z, w1a, b1a, w2a, b2a, d, C)
    f2 = lambda z, d: vf(z, w1b, b1b, w2b, b2b, d, H)

    z1 = x[0] @ wi1 + bi1
    z2 = z1 @ wi2 + bi2

    def step(carry, dx_t):
        z1, z2 = carry
        z1n = rk4(f1, z1, dx_t)
        z2n = rk4(f2, z2, z1n - z1)
        return (z1n, z2n), None

    (z1, z2), _ = lax.scan(step, (z1, z2), dx)
    return z2 @ wr + br


if __name__ == "__main__":
    B, T, C, H, O, Hf = 2, 8, 4, 32, 8, 64

    key = jax.random.PRNGKey(0)
    k_params, k_x = jax.random.split(key)
    params = make_params(k_params, C, H, O, Hf)

    coeffs = jax.random.normal(k_x, (B, T, C), jnp.float32)
    times = jnp.linspace(0.0, 1.0, T, dtype=jnp.float32)

    # Tight check of the fused/pipelined kernel math against the pure-JAX reference (f32).
    out_f32 = jax.block_until_ready(
        neural_cde_stacked(coeffs, times, params, matmul_dtype=jnp.float32))
    ref = jax.block_until_ready(neural_cde_stacked_reference(coeffs, times, params))
    assert out_f32.shape == (B, O), out_f32.shape
    assert bool(jnp.allclose(out_f32, ref, rtol=1e-3, atol=1e-4)), (out_f32, ref)

    # Default (bf16 vector-field weights) path.
    pred_y = jax.block_until_ready(neural_cde_stacked(coeffs, times, params))
    assert pred_y.shape == (B, O), pred_y.shape
    assert bool(jnp.all(jnp.isfinite(pred_y)))
    print("KERNEL_OK")
</pallas_src>

<mosaic_0001>
module attributes {stable_mosaic.version = 11 : i64} {
  func.func @_stacked_cde_kernel(%arg0: i32, %arg1: memref<1xi32, #tpu.memory_space<smem>>, %arg2: memref<7x2x128xf32, #tpu.memory_space<vmem>>, %arg3: memref<2x4xf32, #tpu.memory_space<vmem>>, %arg4: memref<4x32xf32, #tpu.memory_space<vmem>>, %arg5: memref<1x32xf32, #tpu.memory_space<vmem>>, %arg6: memref<64x128xf32, #tpu.memory_space<vmem>>, %arg7: memref<1x128xf32, #tpu.memory_space<vmem>>, %arg8: memref<128x1152xf32, #tpu.memory_space<vmem>>, %arg9: memref<1x1152xf32, #tpu.memory_space<vmem>>, %arg10: memref<32x32xf32, #tpu.memory_space<vmem>>, %arg11: memref<1x32xf32, #tpu.memory_space<vmem>>, %arg12: memref<32x1024xf32, #tpu.memory_space<vmem>>, %arg13: memref<1152x64xf32, #tpu.memory_space<vmem>>, %arg14: memref<32x8xf32, #tpu.memory_space<vmem>>, %arg15: memref<1x8xf32, #tpu.memory_space<vmem>>, %arg16: memref<2x8xf32, #tpu.memory_space<vmem>>, %arg17: memref<2x64xf32, #tpu.memory_space<vmem>>, %arg18: memref<2x32xf32, #tpu.memory_space<vmem>>) attributes {dimension_semantics = [#tpu.dimension_semantics<arbitrary>], iteration_bounds = array<i64: 1>, scalar_prefetch = 1 : i64, scratch_operands = 2 : i64, tpu.core_type = #tpu.core_type<tc>, window_params = [{transform_indices = @transform_0, window_bounds = array<i64: 7, 2, 128>}, {pipeline_mode = #tpu.pipeline_mode<synchronous>, transform_indices = @transform_1, window_bounds = array<i64: 2, 4>}, {pipeline_mode = #tpu.pipeline_mode<synchronous>, transform_indices = @transform_2, window_bounds = array<i64: 4, 32>}, {pipeline_mode = #tpu.pipeline_mode<synchronous>, transform_indices = @transform_3, window_bounds = array<i64: 1, 32>}, {pipeline_mode = #tpu.pipeline_mode<synchronous>, transform_indices = @transform_4, window_bounds = array<i64: 64, 128>}, {pipeline_mode = #tpu.pipeline_mode<synchronous>, transform_indices = @transform_5, window_bounds = array<i64: 1, 128>}, {pipeline_mode = #tpu.pipeline_mode<synchronous>, transform_indices = @transform_6, window_bounds = array<i64: 128, 1152>}, {pipeline_mode = #tpu.pipeline_mode<synchronous>, transform_indices = @transform_7, window_bounds = array<i64: 1, 1152>}, {pipeline_mode = #tpu.pipeline_mode<synchronous>, transform_indices = @transform_8, window_bounds = array<i64: 32, 32>}, {pipeline_mode = #tpu.pipeline_mode<synchronous>, transform_indices = @transform_9, window_bounds = array<i64: 1, 32>}, {pipeline_mode = #tpu.pipeline_mode<synchronous>, transform_indices = @transform_10, window_bounds = array<i64: 32, 1024>}, {pipeline_mode = #tpu.pipeline_mode<synchronous>, transform_indices = @transform_11, window_bounds = array<i64: 1152, 64>}, {pipeline_mode = #tpu.pipeline_mode<synchronous>, transform_indices = @transform_12, window_bounds = array<i64: 32, 8>}, {pipeline_mode = #tpu.pipeline_mode<synchronous>, transform_indices = @transform_13, window_bounds = array<i64: 1, 8>}, {pipeline_mode = #tpu.pipeline_mode<synchronous>, transform_indices = @transform_14, window_bounds = array<i64: 2, 8>}]} {
    %c0_i32 = arith.constant 0 : i32
    %0 = arith.cmpi eq, %arg0, %c0_i32 : i32
    %1 = arith.extui %0 : i1 to i32
    %c0_i32_0 = arith.constant 0 : i32
    %2 = arith.cmpi ne, %1, %c0_i32_0 : i32
    scf.if %2 {
      %c0_17 = arith.constant 0 : index
      %c0_18 = arith.constant 0 : index
      %18 = vector.load %arg3[%c0_17, %c0_18] : memref<2x4xf32, #tpu.memory_space<vmem>>, vector<2x4xf32>
      %c0_19 = arith.constant 0 : index
      %c0_20 = arith.constant 0 : index
      %19 = vector.load %arg4[%c0_19, %c0_20] : memref<4x32xf32, #tpu.memory_space<vmem>>, vector<4x32xf32>
      %cst = arith.constant dense<0.000000e+00> : vector<2x32xf32>
      %20 = tpu.matmul %18, %19, %cst {dimension_numbers = #tpu.dot_dimension_numbers<[1], [0], [0], [1], [0, 0, 1, 1], [], []>} : vector<2x4xf32>, vector<4x32xf32>, vector<2x32xf32> -> vector<2x32xf32>
      %c0_21 = arith.constant 0 : index
      %c0_22 = arith.constant 0 : index
      %21 = vector.load %arg5[%c0_21, %c0_22] : memref<1x32xf32, #tpu.memory_space<vmem>>, vector<1x32xf32>
      %22 = vector.broadcast %21 : vector<1x32xf32> to vector<2x32xf32>
      %23 = arith.addf %20, %22 : vector<2x32xf32>
      %c0_23 = arith.constant 0 : index
      %c0_24 = arith.constant 0 : index
      %24 = vector.load %arg10[%c0_23, %c0_24] : memref<32x32xf32, #tpu.memory_space<vmem>>, vector<32x32xf32>
      %cst_25 = arith.constant dense<0.000000e+00> : vector<2x32xf32>
      %25 = tpu.matmul %23, %24, %cst_25 {dimension_numbers = #tpu.dot_dimension_numbers<[1], [0], [0], [1], [0, 0, 1, 1], [], []>} : vector<2x32xf32>, vector<32x32xf32>, vector<2x32xf32> -> vector<2x32xf32>
      %c0_26 = arith.constant 0 : index
      %c0_27 = arith.constant 0 : index
      %26 = vector.load %arg11[%c0_26, %c0_27] : memref<1x32xf32, #tpu.memory_space<vmem>>, vector<1x32xf32>
      %27 = vector.broadcast %26 : vector<1x32xf32> to vector<2x32xf32>
      %28 = arith.addf %25, %27 : vector<2x32xf32>
      %c0_28 = arith.constant 0 : index
      %c0_29 = arith.constant 0 : index
      %29 = vector.load %arg17[%c0_28, %c0_29] : memref<2x64xf32, #tpu.memory_space<vmem>>, vector<2x32xf32>
      tpu.vector_store %arg17[%c0_28, %c0_29], %23 {strides = array<i32>} : memref<2x64xf32, #tpu.memory_space<vmem>>, vector<2x32xf32>,
      %c0_30 = arith.constant 0 : index
      %c32 = arith.constant 32 : index
      %30 = vector.load %arg17[%c0_30, %c32] : memref<2x64xf32, #tpu.memory_space<vmem>>, vector<2x32xf32>
      tpu.vector_store %arg17[%c0_30, %c32], %28 {strides = array<i32>} : memref<2x64xf32, #tpu.memory_space<vmem>>, vector<2x32xf32>,
      %c0_31 = arith.constant 0 : index
      %c0_32 = arith.constant 0 : index
      %31 = vector.load %arg18[%c0_31, %c0_32] : memref<2x32xf32, #tpu.memory_space<vmem>>, vector<2x32xf32>
      tpu.vector_store %arg18[%c0_31, %c0_32], %23 {strides = array<i32>} : memref<2x32xf32, #tpu.memory_space<vmem>>, vector<2x32xf32>,
    } else {
    }
    %c0 = arith.constant 0 : index
    %c0_1 = arith.constant 0 : index
    %3 = vector.load %arg6[%c0, %c0_1] : memref<64x128xf32, #tpu.memory_space<vmem>>, vector<64x128xf32>
    %c0_2 = arith.constant 0 : index
    %c0_3 = arith.constant 0 : index
    %4 = vector.load %arg7[%c0_2, %c0_3] : memref<1x128xf32, #tpu.memory_space<vmem>>, vector<1x128xf32>
    %c0_4 = arith.constant 0 : index
    %c0_5 = arith.constant 0 : index
    %5 = vector.load %arg9[%c0_4, %c0_5] : memref<1x1152xf32, #tpu.memory_space<vmem>>, vector<1x1152xf32>
    %6 = arith.index_cast %arg0 : i32 to index
    %7 = memref.load %arg1[%6] : memref<1xi32, #tpu.memory_space<smem>>
    %c0_6 = arith.constant 0 : index
    %c0_7 = arith.constant 0 : index
    %8 = vector.load %arg17[%c0_6, %c0_7] : memref<2x64xf32, #tpu.memory_space<vmem>>, vector<2x64xf32>
    %c0_8 = arith.constant 0 : index
    %c0_9 = arith.constant 0 : index
    %9 = vector.load %arg18[%c0_8, %c0_9] : memref<2x32xf32, #tpu.memory_space<vmem>>, vector<2x32xf32>
    %c0_i32_10 = arith.constant 0 : i32
    %10 = arith.subi %7, %c0_i32_10 : i32
    %11 = arith.addi %c0_i32_10, %10 : i32
    %c1_i32 = arith.constant 1 : i32
    %12:2 = scf.for %arg19 = %c0_i32_10 to %11 step %c1_i32 iter_args(%arg20 = %8, %arg21 = %9) -> (vector<2x64xf32>, vector<2x32xf32>)  : i32 {
      %18 = arith.index_cast %arg19 : i32 to index
      %c0_17 = arith.constant 0 : index
      %c0_18 = arith.constant 0 : index
      %19 = vector.load %arg2[%18, %c0_17, %c0_18] : memref<7x2x128xf32, #tpu.memory_space<vmem>>, vector<1x2x128xf32>
      %20 = vector.shape_cast %19 : vector<1x2x128xf32> to vector<2x128xf32>
      %21 = vector.extract_strided_slice %arg20 {offsets = [0, 0], sizes = [2, 32], strides = [1, 1]} : vector<2x64xf32> to vector<2x32xf32>
      %22 = arith.subf %21, %arg21 : vector<2x32xf32>
      %c0_19 = arith.constant 0 : index
      %c0_20 = arith.constant 0 : index
      %23 = vector.load %arg12[%c0_19, %c0_20] : memref<32x1024xf32, #tpu.memory_space<vmem>>, vector<32x1024xf32>
      %cst = arith.constant dense<0.000000e+00> : vector<2x1024xf32>
      %24 = tpu.matmul %22, %23, %cst {dimension_numbers = #tpu.dot_dimension_numbers<[1], [0], [0], [1], [0, 0, 1, 1], [], []>} : vector<2x32xf32>, vector<32x1024xf32>, vector<2x1024xf32> -> vector<2x1024xf32>
      %25 = tpu.concatenate %20, %24 in 1 : vector<2x128xf32>, vector<2x1024xf32> -> vector<2x1152xf32>
      %cst_21 = arith.constant dense<0.000000e+00> : vector<2x128xf32>
      %26 = tpu.matmul %arg20, %3, %cst_21 {dimension_numbers = #tpu.dot_dimension_numbers<[1], [0], [0], [1], [0, 0, 1, 1], [], []>} : vector<2x64xf32>, vector<64x128xf32>, vector<2x128xf32> -> vector<2x128xf32>
      %27 = vector.broadcast %4 : vector<1x128xf32> to vector<2x128xf32>
      %28 = arith.addf %26, %27 : vector<2x128xf32>
      %cst_22 = arith.constant 0.000000e+00 : f32
      %29 = vector.broadcast %cst_22 : f32 to vector<2x128xf32>
      %30 = arith.maximumf %28, %29 : vector<2x128xf32>
      %c0_23 = arith.constant 0 : index
      %c0_24 = arith.constant 0 : index
      %31 = vector.load %arg8[%c0_23, %c0_24] : memref<128x1152xf32, #tpu.memory_space<vmem>>, vector<128x1152xf32>
      %cst_25 = arith.constant dense<0.000000e+00> : vector<2x1152xf32>
      %32 = tpu.matmul %30, %31, %cst_25 {dimension_numbers = #tpu.dot_dimension_numbers<[1], [0], [0], [1], [0, 0, 1, 1], [], []>} : vector<2x128xf32>, vector<128x1152xf32>, vector<2x1152xf32> -> vector<2x1152xf32>
      %33 = vector.broadcast %5 : vector<1x1152xf32> to vector<2x1152xf32>
      %34 = arith.addf %32, %33 : vector<2x1152xf32>
      %35 = math.tanh %34 : vector<2x1152xf32>
      %36 = arith.mulf %35, %25 : vector<2x1152xf32>
      %c0_26 = arith.constant 0 : index
      %c0_27 = arith.constant 0 : index
      %37 = vector.load %arg13[%c0_26, %c0_27] : memref<1152x64xf32, #tpu.memory_space<vmem>>, vector<1152x64xf32>
      %cst_28 = arith.constant dense<0.000000e+00> : vector<2x64xf32>
      %38 = tpu.matmul %36, %37, %cst_28 {dimension_numbers = #tpu.dot_dimension_numbers<[1], [0], [0], [1], [0, 0, 1, 1], [], []>} : vector<2x1152xf32>, vector<1152x64xf32>, vector<2x64xf32> -> vector<2x64xf32>
      %cst_29 = arith.constant 5.000000e-01 : f32
      %39 = vector.broadcast %cst_29 : f32 to vector<2x64xf32>
      %40 = arith.mulf %39, %38 : vector<2x64xf32>
      %41 = arith.addf %arg20, %40 : vector<2x64xf32>
      %cst_30 = arith.constant dense<0.000000e+00> : vector<2x128xf32>
      %42 = tpu.matmul %41, %3, %cst_30 {dimension_numbers = #tpu.dot_dimension_numbers<[1], [0], [0], [1], [0, 0, 1, 1], [], []>} : vector<2x64xf32>, vector<64x128xf32>, vector<2x128xf32> -> vector<2x128xf32>
      %43 = vector.broadcast %4 : vector<1x128xf32> to vector<2x128xf32>
      %44 = arith.addf %42, %43 : vector<2x128xf32>
      %cst_31 = arith.constant 0.000000e+00 : f32
      %45 = vector.broadcast %cst_31 : f32 to vector<2x128xf32>
      %46 = arith.maximumf %44, %45 : vector<2x128xf32>
      %c0_32 = arith.constant 0 : index
      %c0_33 = arith.constant 0 : index
      %47 = vector.load %arg8[%c0_32, %c0_33] : memref<128x1152xf32, #tpu.memory_space<vmem>>, vector<128x1152xf32>
      %cst_34 = arith.constant dense<0.000000e+00> : vector<2x1152xf32>
      %48 = tpu.matmul %46, %47, %cst_34 {dimension_numbers = #tpu.dot_dimension_numbers<[1], [0], [0], [1], [0, 0, 1, 1], [], []>} : vector<2x128xf32>, vector<128x1152xf32>, vector<2x1152xf32> -> vector<2x1152xf32>
      %49 = vector.broadcast %5 : vector<1x1152xf32> to vector<2x1152xf32>
      %50 = arith.addf %48, %49 : vector<2x1152xf32>
      %51 = math.tanh %50 : vector<2x1152xf32>
      %52 = arith.mulf %51, %25 : vector<2x1152xf32>
      %c0_35 = arith.constant 0 : index
      %c0_36 = arith.constant 0 : index
      %53 = vector.load %arg13[%c0_35, %c0_36] : memref<1152x64xf32, #tpu.memory_space<vmem>>, vector<1152x64xf32>
      %cst_37 = arith.constant dense<0.000000e+00> : vector<2x64xf32>
      %54 = tpu.matmul %52, %53, %cst_37 {dimension_numbers = #tpu.dot_dimension_numbers<[1], [0], [0], [1], [0, 0, 1, 1], [], []>} : vector<2x1152xf32>, vector<1152x64xf32>, vector<2x64xf32> -> vector<2x64xf32>
      %cst_38 = arith.constant 5.000000e-01 : f32
      %55 = vector.broadcast %cst_38 : f32 to vector<2x64xf32>
      %56 = arith.mulf %55, %54 : vector<2x64xf32>
      %57 = arith.addf %arg20, %56 : vector<2x64xf32>
      %cst_39 = arith.constant dense<0.000000e+00> : vector<2x128xf32>
      %58 = tpu.matmul %57, %3, %cst_39 {dimension_numbers = #tpu.dot_dimension_numbers<[1], [0], [0], [1], [0, 0, 1, 1], [], []>} : vector<2x64xf32>, vector<64x128xf32>, vector<2x128xf32> -> vector<2x128xf32>
      %59 = vector.broadcast %4 : vector<1x128xf32> to vector<2x128xf32>
      %60 = arith.addf %58, %59 : vector<2x128xf32>
      %cst_40 = arith.constant 0.000000e+00 : f32
      %61 = vector.broadcast %cst_40 : f32 to vector<2x128xf32>
      %62 = arith.maximumf %60, %61 : vector<2x128xf32>
      %c0_41 = arith.constant 0 : index
      %c0_42 = arith.constant 0 : index
      %63 = vector.load %arg8[%c0_41, %c0_42] : memref<128x1152xf32, #tpu.memory_space<vmem>>, vector<128x1152xf32>
      %cst_43 = arith.constant dense<0.000000e+00> : vector<2x1152xf32>
      %64 = tpu.matmul %62, %63, %cst_43 {dimension_numbers = #tpu.dot_dimension_numbers<[1], [0], [0], [1], [0, 0, 1, 1], [], []>} : vector<2x128xf32>, vector<128x1152xf32>, vector<2x1152xf32> -> vector<2x1152xf32>
      %65 = vector.broadcast %5 : vector<1x1152xf32> to vector<2x1152xf32>
      %66 = arith.addf %64, %65 : vector<2x1152xf32>
      %67 = math.tanh %66 : vector<2x1152xf32>
      %68 = arith.mulf %67, %25 : vector<2x1152xf32>
      %c0_44 = arith.constant 0 : index
      %c0_45 = arith.constant 0 : index
      %69 = vector.load %arg13[%c0_44, %c0_45] : memref<1152x64xf32, #tpu.memory_space<vmem>>, vector<1152x64xf32>
      %cst_46 = arith.constant dense<0.000000e+00> : vector<2x64xf32>
      %70 = tpu.matmul %68, %69, %cst_46 {dimension_numbers = #tpu.dot_dimension_numbers<[1], [0], [0], [1], [0, 0, 1, 1], [], []>} : vector<2x1152xf32>, vector<1152x64xf32>, vector<2x64xf32> -> vector<2x64xf32>
      %71 = arith.addf %arg20, %70 : vector<2x64xf32>
      %cst_47 = arith.constant dense<0.000000e+00> : vector<2x128xf32>
      %72 = tpu.matmul %71, %3, %cst_47 {dimension_numbers = #tpu.dot_dimension_numbers<[1], [0], [0], [1], [0, 0, 1, 1], [], []>} : vector<2x64xf32>, vector<64x128xf32>, vector<2x128xf32> -> vector<2x128xf32>
      %73 = vector.broadcast %4 : vector<1x128xf32> to vector<2x128xf32>
      %74 = arith.addf %72, %73 : vector<2x128xf32>
      %cst_48 = arith.constant 0.000000e+00 : f32
      %75 = vector.broadcast %cst_48 : f32 to vector<2x128xf32>
      %76 = arith.maximumf %74, %75 : vector<2x128xf32>
      %c0_49 = arith.constant 0 : index
      %c0_50 = arith.constant 0 : index
      %77 = vector.load %arg8[%c0_49, %c0_50] : memref<128x1152xf32, #tpu.memory_space<vmem>>, vector<128x1152xf32>
      %cst_51 = arith.constant dense<0.000000e+00> : vector<2x1152xf32>
      %78 = tpu.matmul %76, %77, %cst_51 {dimension_numbers = #tpu.dot_dimension_numbers<[1], [0], [0], [1], [0, 0, 1, 1], [], []>} : vector<2x128xf32>, vector<128x1152xf32>, vector<2x1152xf32> -> vector<2x1152xf32>
      %79 = vector.broadcast %5 : vector<1x1152xf32> to vector<2x1152xf32>
      %80 = arith.addf %78, %79 : vector<2x1152xf32>
      %81 = math.tanh %80 : vector<2x1152xf32>
      %82 = arith.mulf %81, %25 : vector<2x1152xf32>
      %c0_52 = arith.constant 0 : index
      %c0_53 = arith.constant 0 : index
      %83 = vector.load %arg13[%c0_52, %c0_53] : memref<1152x64xf32, #tpu.memory_space<vmem>>, vector<1152x64xf32>
      %cst_54 = arith.constant dense<0.000000e+00> : vector<2x64xf32>
      %84 = tpu.matmul %82, %83, %cst_54 {dimension_numbers = #tpu.dot_dimension_numbers<[1], [0], [0], [1], [0, 0, 1, 1], [], []>} : vector<2x1152xf32>, vector<1152x64xf32>, vector<2x64xf32> -> vector<2x64xf32>
      %85 = arith.addf %54, %70 : vector<2x64xf32>
      %cst_55 = arith.constant 2.000000e+00 : f32
      %86 = vector.broadcast %cst_55 : f32 to vector<2x64xf32>
      %87 = arith.mulf %86, %85 : vector<2x64xf32>
      %88 = arith.addf %38, %87 : vector<2x64xf32>
      %89 = arith.addf %88, %84 : vector<2x64xf32>
      %cst_56 = arith.constant 0.166666672 : f32
      %90 = vector.broadcast %cst_56 : f32 to vector<2x64xf32>
      %91 = arith.mulf %89, %90 : vector<2x64xf32>
      %92 = arith.addf %arg20, %91 : vector<2x64xf32>
      scf.yield %92, %21 : vector<2x64xf32>, vector<2x32xf32>
    }
    %c0_11 = arith.constant 0 : index
    %c0_12 = arith.constant 0 : index
    %13 = vector.load %arg17[%c0_11, %c0_12] : memref<2x64xf32, #tpu.memory_space<vmem>>, vector<2x64xf32>
    tpu.vector_store %arg17[%c0_11, %c0_12], %12#0 {strides = array<i32>} : memref<2x64xf32, #tpu.memory_space<vmem>>, vector<2x64xf32>,
    %c0_13 = arith.constant 0 : index
    %c0_14 = arith.constant 0 : index
    %14 = vector.load %arg18[%c0_13, %c0_14] : memref<2x32xf32, #tpu.memory_space<vmem>>, vector<2x32xf32>
    tpu.vector_store %arg18[%c0_13, %c0_14], %12#1 {strides = array<i32>} : memref<2x32xf32, #tpu.memory_space<vmem>>, vector<2x32xf32>,
    %c0_i32_15 = arith.constant 0 : i32
    %15 = arith.cmpi eq, %arg0, %c0_i32_15 : i32
    %16 = arith.extui %15 : i1 to i32
    %c0_i32_16 = arith.constant 0 : i32
    %17 = arith.cmpi ne, %16, %c0_i32_16 : i32
    scf.if %17 {
      %cst = arith.constant 0.000000e+00 : f32
      %18 = vector.broadcast %cst : f32 to vector<2x128xf32>
      %19 = vector.extract_strided_slice %12#0 {offsets = [0, 0], sizes = [2, 32], strides = [1, 1]} : vector<2x64xf32> to vector<2x32xf32>
      %20 = arith.subf %19, %12#1 : vector<2x32xf32>
      %c0_17 = arith.constant 0 : index
      %c0_18 = arith.constant 0 : index
      %21 = vector.load %arg12[%c0_17, %c0_18] : memref<32x1024xf32, #tpu.memory_space<vmem>>, vector<32x1024xf32>
      %cst_19 = arith.constant dense<0.000000e+00> : vector<2x1024xf32>
      %22 = tpu.matmul %20, %21, %cst_19 {dimension_numbers = #tpu.dot_dimension_numbers<[1], [0], [0], [1], [0, 0, 1, 1], [], []>} : vector<2x32xf32>, vector<32x1024xf32>, vector<2x1024xf32> -> vector<2x1024xf32>
      %23 = tpu.concatenate %18, %22 in 1 : vector<2x128xf32>, vector<2x1024xf32> -> vector<2x1152xf32>
      %cst_20 = arith.constant dense<0.000000e+00> : vector<2x128xf32>
      %24 = tpu.matmul %12#0, %3, %cst_20 {dimension_numbers = #tpu.dot_dimension_numbers<[1], [0], [0], [1], [0, 0, 1, 1], [], []>} : vector<2x64xf32>, vector<64x128xf32>, vector<2x128xf32> -> vector<2x128xf32>
      %25 = vector.broadcast %4 : vector<1x128xf32> to vector<2x128xf32>
      %26 = arith.addf %24, %25 : vector<2x128xf32>
      %cst_21 = arith.constant 0.000000e+00 : f32
      %27 = vector.broadcast %cst_21 : f32 to vector<2x128xf32>
      %28 = arith.maximumf %26, %27 : vector<2x128xf32>
      %c0_22 = arith.constant 0 : index
      %c0_23 = arith.constant 0 : index
      %29 = vector.load %arg8[%c0_22, %c0_23] : memref<128x1152xf32, #tpu.memory_space<vmem>>, vector<128x1152xf32>
      %cst_24 = arith.constant dense<0.000000e+00> : vector<2x1152xf32>
      %30 = tpu.matmul %28, %29, %cst_24 {dimension_numbers = #tpu.dot_dimension_numbers<[1], [0], [0], [1], [0, 0, 1, 1], [], []>} : vector<2x128xf32>, vector<128x1152xf32>, vector<2x1152xf32> -> vector<2x1152xf32>
      %31 = vector.broadcast %5 : vector<1x1152xf32> to vector<2x1152xf32>
      %32 = arith.addf %30, %31 : vector<2x1152xf32>
      %33 = math.tanh %32 : vector<2x1152xf32>
      %34 = arith.mulf %33, %23 : vector<2x1152xf32>
      %c0_25 = arith.constant 0 : index
      %c0_26 = arith.constant 0 : index
      %35 = vector.load %arg13[%c0_25, %c0_26] : memref<1152x64xf32, #tpu.memory_space<vmem>>, vector<1152x64xf32>
      %cst_27 = arith.constant dense<0.000000e+00> : vector<2x64xf32>
      %36 = tpu.matmul %34, %35, %cst_27 {dimension_numbers = #tpu.dot_dimension_numbers<[1], [0], [0], [1], [0, 0, 1, 1], [], []>} : vector<2x1152xf32>, vector<1152x64xf32>, vector<2x64xf32> -> vector<2x64xf32>
      %cst_28 = arith.constant 5.000000e-01 : f32
      %37 = vector.broadcast %cst_28 : f32 to vector<2x64xf32>
      %38 = arith.mulf %37, %36 : vector<2x64xf32>
      %39 = arith.addf %12#0, %38 : vector<2x64xf32>
      %cst_29 = arith.constant dense<0.000000e+00> : vector<2x128xf32>
      %40 = tpu.matmul %39, %3, %cst_29 {dimension_numbers = #tpu.dot_dimension_numbers<[1], [0], [0], [1], [0, 0, 1, 1], [], []>} : vector<2x64xf32>, vector<64x128xf32>, vector<2x128xf32> -> vector<2x128xf32>
      %41 = vector.broadcast %4 : vector<1x128xf32> to vector<2x128xf32>
      %42 = arith.addf %40, %41 : vector<2x128xf32>
      %cst_30 = arith.constant 0.000000e+00 : f32
      %43 = vector.broadcast %cst_30 : f32 to vector<2x128xf32>
      %44 = arith.maximumf %42, %43 : vector<2x128xf32>
      %c0_31 = arith.constant 0 : index
      %c0_32 = arith.constant 0 : index
      %45 = vector.load %arg8[%c0_31, %c0_32] : memref<128x1152xf32, #tpu.memory_space<vmem>>, vector<128x1152xf32>
      %cst_33 = arith.constant dense<0.000000e+00> : vector<2x1152xf32>
      %46 = tpu.matmul %44, %45, %cst_33 {dimension_numbers = #tpu.dot_dimension_numbers<[1], [0], [0], [1], [0, 0, 1, 1], [], []>} : vector<2x128xf32>, vector<128x1152xf32>, vector<2x1152xf32> -> vector<2x1152xf32>
      %47 = vector.broadcast %5 : vector<1x1152xf32> to vector<2x1152xf32>
      %48 = arith.addf %46, %47 : vector<2x1152xf32>
      %49 = math.tanh %48 : vector<2x1152xf32>
      %50 = arith.mulf %49, %23 : vector<2x1152xf32>
      %c0_34 = arith.constant 0 : index
      %c0_35 = arith.constant 0 : index
      %51 = vector.load %arg13[%c0_34, %c0_35] : memref<1152x64xf32, #tpu.memory_space<vmem>>, vector<1152x64xf32>
      %cst_36 = arith.constant dense<0.000000e+00> : vector<2x64xf32>
      %52 = tpu.matmul %50, %51, %cst_36 {dimension_numbers = #tpu.dot_dimension_numbers<[1], [0], [0], [1], [0, 0, 1, 1], [], []>} : vector<2x1152xf32>, vector<1152x64xf32>, vector<2x64xf32> -> vector<2x64xf32>
      %cst_37 = arith.constant 5.000000e-01 : f32
      %53 = vector.broadcast %cst_37 : f32 to vector<2x64xf32>
      %54 = arith.mulf %53, %52 : vector<2x64xf32>
      %55 = arith.addf %12#0, %54 : vector<2x64xf32>
      %cst_38 = arith.constant dense<0.000000e+00> : vector<2x128xf32>
      %56 = tpu.matmul %55, %3, %cst_38 {dimension_numbers = #tpu.dot_dimension_numbers<[1], [0], [0], [1], [0, 0, 1, 1], [], []>} : vector<2x64xf32>, vector<64x128xf32>, vector<2x128xf32> -> vector<2x128xf32>
      %57 = vector.broadcast %4 : vector<1x128xf32> to vector<2x128xf32>
      %58 = arith.addf %56, %57 : vector<2x128xf32>
      %cst_39 = arith.constant 0.000000e+00 : f32
      %59 = vector.broadcast %cst_39 : f32 to vector<2x128xf32>
      %60 = arith.maximumf %58, %59 : vector<2x128xf32>
      %c0_40 = arith.constant 0 : index
      %c0_41 = arith.constant 0 : index
      %61 = vector.load %arg8[%c0_40, %c0_41] : memref<128x1152xf32, #tpu.memory_space<vmem>>, vector<128x1152xf32>
      %cst_42 = arith.constant dense<0.000000e+00> : vector<2x1152xf32>
      %62 = tpu.matmul %60, %61, %cst_42 {dimension_numbers = #tpu.dot_dimension_numbers<[1], [0], [0], [1], [0, 0, 1, 1], [], []>} : vector<2x128xf32>, vector<128x1152xf32>, vector<2x1152xf32> -> vector<2x1152xf32>
      %63 = vector.broadcast %5 : vector<1x1152xf32> to vector<2x1152xf32>
      %64 = arith.addf %62, %63 : vector<2x1152xf32>
      %65 = math.tanh %64 : vector<2x1152xf32>
      %66 = arith.mulf %65, %23 : vector<2x1152xf32>
      %c0_43 = arith.constant 0 : index
      %c0_44 = arith.constant 0 : index
      %67 = vector.load %arg13[%c0_43, %c0_44] : memref<1152x64xf32, #tpu.memory_space<vmem>>, vector<1152x64xf32>
      %cst_45 = arith.constant dense<0.000000e+00> : vector<2x64xf32>
      %68 = tpu.matmul %66, %67, %cst_45 {dimension_numbers = #tpu.dot_dimension_numbers<[1], [0], [0], [1], [0, 0, 1, 1], [], []>} : vector<2x1152xf32>, vector<1152x64xf32>, vector<2x64xf32> -> vector<2x64xf32>
      %69 = arith.addf %12#0, %68 : vector<2x64xf32>
      %cst_46 = arith.constant dense<0.000000e+00> : vector<2x128xf32>
      %70 = tpu.matmul %69, %3, %cst_46 {dimension_numbers = #tpu.dot_dimension_numbers<[1], [0], [0], [1], [0, 0, 1, 1], [], []>} : vector<2x64xf32>, vector<64x128xf32>, vector<2x128xf32> -> vector<2x128xf32>
      %71 = vector.broadcast %4 : vector<1x128xf32> to vector<2x128xf32>
      %72 = arith.addf %70, %71 : vector<2x128xf32>
      %cst_47 = arith.constant 0.000000e+00 : f32
      %73 = vector.broadcast %cst_47 : f32 to vector<2x128xf32>
      %74 = arith.maximumf %72, %73 : vector<2x128xf32>
      %c0_48 = arith.constant 0 : index
      %c0_49 = arith.constant 0 : index
      %75 = vector.load %arg8[%c0_48, %c0_49] : memref<128x1152xf32, #tpu.memory_space<vmem>>, vector<128x1152xf32>
      %cst_50 = arith.constant dense<0.000000e+00> : vector<2x1152xf32>
      %76 = tpu.matmul %74, %75, %cst_50 {dimension_numbers = #tpu.dot_dimension_numbers<[1], [0], [0], [1], [0, 0, 1, 1], [], []>} : vector<2x128xf32>, vector<128x1152xf32>, vector<2x1152xf32> -> vector<2x1152xf32>
      %77 = vector.broadcast %5 : vector<1x1152xf32> to vector<2x1152xf32>
      %78 = arith.addf %76, %77 : vector<2x1152xf32>
      %79 = math.tanh %78 : vector<2x1152xf32>
      %80 = arith.mulf %79, %23 : vector<2x1152xf32>
      %c0_51 = arith.constant 0 : index
      %c0_52 = arith.constant 0 : index
      %81 = vector.load %arg13[%c0_51, %c0_52] : memref<1152x64xf32, #tpu.memory_space<vmem>>, vector<1152x64xf32>
      %cst_53 = arith.constant dense<0.000000e+00> : vector<2x64xf32>
      %82 = tpu.matmul %80, %81, %cst_53 {dimension_numbers = #tpu.dot_dimension_numbers<[1], [0], [0], [1], [0, 0, 1, 1], [], []>} : vector<2x1152xf32>, vector<1152x64xf32>, vector<2x64xf32> -> vector<2x64xf32>
      %83 = arith.addf %52, %68 : vector<2x64xf32>
      %cst_54 = arith.constant 2.000000e+00 : f32
      %84 = vector.broadcast %cst_54 : f32 to vector<2x64xf32>
      %85 = arith.mulf %84, %83 : vector<2x64xf32>
      %86 = arith.addf %36, %85 : vector<2x64xf32>
      %87 = arith.addf %86, %82 : vector<2x64xf32>
      %cst_55 = arith.constant 0.166666672 : f32
      %88 = vector.broadcast %cst_55 : f32 to vector<2x64xf32>
      %89 = arith.mulf %87, %88 : vector<2x64xf32>
      %90 = arith.addf %12#0, %89 : vector<2x64xf32>
      %91 = vector.extract_strided_slice %90 {offsets = [0, 32], sizes = [2, 32], strides = [1, 1]} : vector<2x64xf32> to vector<2x32xf32>
      %c0_56 = arith.constant 0 : index
      %c0_57 = arith.constant 0 : index
      %92 = vector.load %arg14[%c0_56, %c0_57] : memref<32x8xf32, #tpu.memory_space<vmem>>, vector<32x8xf32>
      %cst_58 = arith.constant dense<0.000000e+00> : vector<2x8xf32>
      %93 = tpu.matmul %91, %92, %cst_58 {dimension_numbers = #tpu.dot_dimension_numbers<[1], [0], [0], [1], [0, 0, 1, 1], [], []>} : vector<2x32xf32>, vector<32x8xf32>, vector<2x8xf32> -> vector<2x8xf32>
      %c0_59 = arith.constant 0 : index
      %c0_60 = arith.constant 0 : index
      %94 = vector.load %arg15[%c0_59, %c0_60] : memref<1x8xf32, #tpu.memory_space<vmem>>, vector<1x8xf32>
      %95 = vector.broadcast %94 : vector<1x8xf32> to vector<2x8xf32>
      %96 = arith.addf %93, %95 : vector<2x8xf32>
      %c0_61 = arith.constant 0 : index
      %c0_62 = arith.constant 0 : index
      %97 = vector.load %arg16[%c0_61, %c0_62] : memref<2x8xf32, #tpu.memory_space<vmem>>, vector<2x8xf32>
      tpu.vector_store %arg16[%c0_61, %c0_62], %96 {strides = array<i32>} : memref<2x8xf32, #tpu.memory_space<vmem>>, vector<2x8xf32>,
    } else {
    }
    return
  }
  func.func @transform_0(%arg0: i32, %arg1: memref<1xi32, #tpu.memory_space<smem>>) -> (i32, i32, i32) {
    %c0_i32 = arith.constant 0 : i32
    %c0_i32_0 = arith.constant 0 : i32
    %c0_i32_1 = arith.constant 0 : i32
    return %arg0, %c0_i32, %c0_i32_0 : i32, i32, i32
  }
  func.func @transform_1(%arg0: i32, %arg1: memref<1xi32, #tpu.memory_space<smem>>) -> (i32, i32) {
    %c0_i32 = arith.constant 0 : i32
    %c0_i32_0 = arith.constant 0 : i32
    %c0_i32_1 = arith.constant 0 : i32
    return %c0_i32, %c0_i32_0 : i32, i32
  }
  func.func @transform_2(%arg0: i32, %arg1: memref<1xi32, #tpu.memory_space<smem>>) -> (i32, i32) {
    %c0_i32 = arith.constant 0 : i32
    %c0_i32_0 = arith.constant 0 : i32
    %c0_i32_1 = arith.constant 0 : i32
    return %c0_i32, %c0_i32_0 : i32, i32
  }
  func.func @transform_3(%arg0: i32, %arg1: memref<1xi32, #tpu.memory_space<smem>>) -> (i32, i32) {
    %c0_i32 = arith.constant 0 : i32
    %c0_i32_0 = arith.constant 0 : i32
    %c0_i32_1 = arith.constant 0 : i32
    return %c0_i32, %c0_i32_0 : i32, i32
  }
  func.func @transform_4(%arg0: i32, %arg1: memref<1xi32, #tpu.memory_space<smem>>) -> (i32, i32) {
    %c0_i32 = arith.constant 0 : i32
    %c0_i32_0 = arith.constant 0 : i32
    %c0_i32_1 = arith.constant 0 : i32
    return %c0_i32, %c0_i32_0 : i32, i32
  }
  func.func @transform_5(%arg0: i32, %arg1: memref<1xi32, #tpu.memory_space<smem>>) -> (i32, i32) {
    %c0_i32 = arith.constant 0 : i32
    %c0_i32_0 = arith.constant 0 : i32
    %c0_i32_1 = arith.constant 0 : i32
    return %c0_i32, %c0_i32_0 : i32, i32
  }
  func.func @transform_6(%arg0: i32, %arg1: memref<1xi32, #tpu.memory_space<smem>>) -> (i32, i32) {
    %c0_i32 = arith.constant 0 : i32
    %c0_i32_0 = arith.constant 0 : i32
    %c0_i32_1 = arith.constant 0 : i32
    return %c0_i32, %c0_i32_0 : i32, i32
  }
  func.func @transform_7(%arg0: i32, %arg1: memref<1xi32, #tpu.memory_space<smem>>) -> (i32, i32) {
    %c0_i32 = arith.constant 0 : i32
    %c0_i32_0 = arith.constant 0 : i32
    %c0_i32_1 = arith.constant 0 : i32
    return %c0_i32, %c0_i32_0 : i32, i32
  }
  func.func @transform_8(%arg0: i32, %arg1: memref<1xi32, #tpu.memory_space<smem>>) -> (i32, i32) {
    %c0_i32 = arith.constant 0 : i32
    %c0_i32_0 = arith.constant 0 : i32
    %c0_i32_1 = arith.constant 0 : i32
    return %c0_i32, %c0_i32_0 : i32, i32
  }
  func.func @transform_9(%arg0: i32, %arg1: memref<1xi32, #tpu.memory_space<smem>>) -> (i32, i32) {
    %c0_i32 = arith.constant 0 : i32
    %c0_i32_0 = arith.constant 0 : i32
    %c0_i32_1 = arith.constant 0 : i32
    return %c0_i32, %c0_i32_0 : i32, i32
  }
  func.func @transform_10(%arg0: i32, %arg1: memref<1xi32, #tpu.memory_space<smem>>) -> (i32, i32) {
    %c0_i32 = arith.constant 0 : i32
    %c0_i32_0 = arith.constant 0 : i32
    %c0_i32_1 = arith.constant 0 : i32
    return %c0_i32, %c0_i32_0 : i32, i32
  }
  func.func @transform_11(%arg0: i32, %arg1: memref<1xi32, #tpu.memory_space<smem>>) -> (i32, i32) {
    %c0_i32 = arith.constant 0 : i32
    %c0_i32_0 = arith.constant 0 : i32
    %c0_i32_1 = arith.constant 0 : i32
    return %c0_i32, %c0_i32_0 : i32, i32
  }
  func.func @transform_12(%arg0: i32, %arg1: memref<1xi32, #tpu.memory_space<smem>>) -> (i32, i32) {
    %c0_i32 = arith.constant 0 : i32
    %c0_i32_0 = arith.constant 0 : i32
    %c0_i32_1 = arith.constant 0 : i32
    return %c0_i32, %c0_i32_0 : i32, i32
  }
  func.func @transform_13(%arg0: i32, %arg1: memref<1xi32, #tpu.memory_space<smem>>) -> (i32, i32) {
    %c0_i32 = arith.constant 0 : i32
    %c0_i32_0 = arith.constant 0 : i32
    %c0_i32_1 = arith.constant 0 : i32
    return %c0_i32, %c0_i32_0 : i32, i32
  }
  func.func @transform_14(%arg0: i32, %arg1: memref<1xi32, #tpu.memory_space<smem>>) -> (i32, i32) {
    %c0_i32 = arith.constant 0 : i32
    %c0_i32_0 = arith.constant 0 : i32
    %c0_i32_1 = arith.constant 0 : i32
    return %c0_i32, %c0_i32_0 : i32, i32
  }
}

</mosaic_0001>

<bundles_post_ra>
// kernel: tpu_custom_call.1
= control target key start
LH: loop header
LB: loop body
LE: loop exit
PB: predicated region body
PF: predicated region fallthrough
CT: control target
= control target key end

     0   :  { %21 = vsyncpa [#allocation7], 0  ;;  %vm67_vm0 = vcmask 1043456   ;;  %v20557_v1 = vmov 0.0   ;;  %vm63_vm1 = vcmask 31744   ;;  %vm11608_vm2 = vmmov 0   ;;  %s20541_s0 = inlined_call_operand.<no memory space> [shape: s32[1], index: 0, kind: input, shape index: {}]   ;;  %s20542_s1 = inlined_call_operand.vmem [shape: f32[7,2,128], index: 1, kind: input, shape index: {}]   ;;  %s20543_s2 = inlined_call_operand.vmem [shape: f32[2,4], index: 2, kind: input, shape index: {}]   ;;  %s20544_s3 = inlined_call_operand.vmem [shape: f32[4,32], index: 3, kind: input, shape index: {}]   ;;  %s20545_s4 = inlined_call_operand.vmem [shape: f32[1,32], index: 4, kind: input, shape index: {}]   ;;  %s20546_s5 = inlined_call_operand.vmem [shape: f32[64,128], index: 5, kind: input, shape index: {}]   ;;  %s20547_s6 = inlined_call_operand.vmem [shape: f32[1,128], index: 6, kind: input, shape index: {}]   ;;  %s20548_s7 = inlined_call_operand.vmem [shape: f32[128,1152], index: 7, kind: input, shape index: {}]   ;;  %s20549_s8 = inlined_call_operand.vmem [shape: f32[1,1152], index: 8, kind: input, shape index: {}]   ;;  %s20550_s9 = inlined_call_operand.vmem [shape: f32[32,32], index: 9, kind: input, shape index: {}]   ;;  %s20551_s10 = inlined_call_operand.vmem [shape: f32[1,32], index: 10, kind: input, shape index: {}]   ;;  %s20552_s11 = inlined_call_operand.vmem [shape: f32[32,1024], index: 11, kind: input, shape index: {}]   ;;  %s20553_s12 = inlined_call_operand.vmem [shape: f32[1152,64], index: 12, kind: input, shape index: {}]   ;;  %s20554_s13 = inlined_call_operand.vmem [shape: f32[32,8], index: 13, kind: input, shape index: {}]   ;;  %s20555_s14 = inlined_call_operand.vmem [shape: f32[1,8], index: 14, kind: input, shape index: {}]   ;;  %s20556_s15 = inlined_call_operand.hbm [shape: f32[2,8], index: 15, kind: output, shape index: {}]  }
   0x1   :  { %v55_v0 = vld [vmem:[%s20544_s3] sm:$0xf]  ;;  %9599 = vmatprep.subr.mxu0 %v20557_v1  ;;  %9604 = vmatprep.subr.mxu1 %v20557_v1  ;;  %v144_v3 = vld [vmem:[%s20550_s9 + $0x18] sm:$0xff]  ;;  %v143_v4 = vld [vmem:[%s20550_s9 + $0x10] sm:$0xff]  ;;  %vm226_vm3 = vcmask 254976   ;;  %vm152_vm4 = vcmask 261120  }
   0x2   :  { %v54_v2 = vld [vmem:[%s20543_s2] sm:$0x3]  ;;  %9600 = vmatpush3.msk.msra.mxu0 %vm67_vm0, %v55_v0  ;;  %9601 = vmatprep.mubr.msk.f32.mxu0 %vm11608_vm2, %v20557_v1  ;;  %v142_v5 = vld [vmem:[%s20550_s9 + $0x8] sm:$0xff]  ;;  %v11743_v15 = vld [vmem:[%s20546_s5 + $0x10] sm:$0xff]  ;;  %vm232_vm5 = vcmask 517376   ;;  %p8103_p0 = scmp.le.s32.totalorder %s20541_s0, 0 }
   0x3   :  { %9602 = vmatmul.mubr.msk.f32.vlgmr.msra.gmra.mxu0 %vm63_vm1, %v54_v2  ;;  %9605 = vmatpush3.msra.mxu1 %v144_v3  ;;  %v141_v6 = vld [vmem:[%s20550_s9] sm:$0xff]  ;;  %v11738_v14 = vld [vmem:[%s20546_s5 + $0x8] sm:$0xff]  ;;  %21196 = vst [vmem:[#allocation11_spill] sm:$0xff] %v11743_v15  ;;  %v11748_v16 = vld [vmem:[%s20546_s5 + $0x18] sm:$0xff] }
   0x4   :  { %9606 = vmatprep.subr.mxu1 %v20557_v1  ;;  %9612 = vmatprep.mubr.msk.f32.mxu1 %vm11608_vm2, %v20557_v1  ;;  %v8098_v7 = vld [vmem:[%s20545_s4] ss:$0 sm:$0xff]  ;;  %21195 = vst [vmem:[#allocation10_spill] sm:$0xff] %v11738_v14  ;;  %21197 = vst [vmem:[#allocation12_spill] sm:$0xff] %v11748_v16  ;;  %v11758_v18 = vld [vmem:[%s20546_s5 + $0x28] sm:$0xff] }
   0x5   :  { %9607 = vmatpush3.msra.mxu1 %v143_v4  ;;  %v8101_v12 = vld [vmem:[%s20551_s10] ss:$0 sm:$0xff]  ;;  %21199 = vst [vmem:[#allocation14_spill] sm:$0xff] %v11758_v18  ;;  %v11763_v19 = vld [vmem:[%s20546_s5 + $0x30] sm:$0xff]  ;;  %v11768_v20 = vld [vmem:[%s20546_s5 + $0x38] sm:$0xff] }
   0x6   :  { %9608 = vmatprep.subr.mxu1 %v20557_v1  ;;  %v11733_v13 = vld [vmem:[%s20546_s5] sm:$0xff]  ;;  %21200 = vst [vmem:[#allocation15_spill] sm:$0xff] %v11763_v19  ;;  %21201 = vst [vmem:[#allocation16_spill] sm:$0xff] %v11768_v20  ;;  %v11783_v24 = vld [vmem:[%s20549_s8 + $0x8] sm:$0x1] }
   0x7   :  { %9609 = vmatpush3.msra.mxu1 %v142_v5  ;;  %21194 = vst [vmem:[#allocation9_spill] sm:$0xff] %v11733_v13  ;;  %v11753_v17 = vld [vmem:[%s20546_s5 + $0x20] sm:$0xff]  ;;  %21204 = vst [vmem:[#allocation19_spill] sm:$0xff] %v11783_v24  ;;  %s11609_s5 = smov 32  }
   0x8   :  { %9610 = vmatprep.subr.mxu1 %v20557_v1  ;;  %21198 = vst [vmem:[#allocation13_spill] sm:$0xff] %v11753_v17  ;;  %v11773_v21 = vld [vmem:[%s20547_s6] sm:$0x1] }
   0x9   :  { %9611 = vmatpush3.msra.mxu1 %v141_v6  ;;  %21202 = vst [vmem:[#allocation17_spill] sm:$0xff] %v11773_v21  ;;  %v11778_v23 = vld [vmem:[%s20549_s8] sm:$0xff]  ;;  %s11796_s8 = smov (!%p8103_p0), 0  }
   0xa   :  { %21203 = vst [vmem:[#allocation18_spill] sm:$0xff] %v11778_v23 }
  0xc3   :  { %v137_v8 = vpop.f32.mrf.mxu0 }
  0xc4   :  { %v138_v9 = vadd.f32 %v8098_v7, %v137_v8 }
  0xc5   :  { %v9603_v10 = vpop.f32.mrf.mxu0 }
  0xc6   :  { %234 = vst.msk [vmem:[#allocation3] sm:$0x3] %vm226_vm3, %v138_v9  ;;  %227 = vst.msk [vmem:[#allocation2] sm:$0x3] %vm226_vm3, %v138_v9  ;;  %9613 = vmatmul.mubr.msk.f32.vlgmr.msra.gmra.mxu1 %vm152_vm4, %v138_v9 }
  0xcd   :  { %v248_v11 = vld [vmem:[#allocation3] sm:$0x3]  }
  0xce   :  { %v21205_v29 = vmov %v248_v11 }
 0x186   :  { %v222_v22 = vpop.f32.mrf.mxu1 }
 0x187   :  { %v223_v25 = vadd.f32 %v8101_v12, %v222_v22 }
 0x188   :  { %v9614_v26 = vpop.f32.mrf.mxu1 }
 0x189   :  { %229 = vrot.lane.b32.xlu0 %v223_v25, %s11609_s5 }
 0x1fb   :  { %v230_v27 = vpop.permute.xlu0 %229 }
 0x1fc   :  { %233 = vst.msk [vmem:[#allocation2] sm:$0x3] %vm232_vm5, %v230_v27 }
 0x200   :  { %8091 = sbr.rel (%p8103_p0) target bundleno = 3259 (0xcbb), region = 86 }
 0x203   :  { %v247_v28 = vld [vmem:[#allocation2] sm:$0x3]  }
 0x204   :  { %v21206_v30 = vmov %v247_v28 }
 0x205 LB: > { %v21207_v20 = vld [vmem:[#allocation16_spill] sm:$0xff]  ;;  %v21208_v19 = vld [vmem:[#allocation15_spill] sm:$0xff]  ;;  %v21211_v13 = vld [vmem:[#allocation9_spill] sm:$0xff]  ;;  %v21216_v31 = vmov %v11593_v28  ;;  %v20559_v36 = vmov 0.0   ;;  %vm11611_vm6 = vmmov 0   ;;  %vm587_vm7 = vcmask 523264   ;;  %s11597_s8 = sphi %s11796_s8, %s252_s8   ;;  %v11593_v28 = vphi %v247_v28, %v21816_v28   ;;  %v11589_v11 = vphi %v248_v11, %v21815_v11  }
 0x206   : > { %v21209_v16 = vld [vmem:[#allocation12_spill] sm:$0xff]  ;;  %v21210_v15 = vld [vmem:[#allocation11_spill] sm:$0xff]  ;;  %v21212_v14 = vld [vmem:[#allocation10_spill] sm:$0xff]  ;;  %361 = vmatprep.mubr.f32.mxu0 %v20559_v36  ;;  %432 = vmatprep.mubr.f32.mxu1 %v20559_v36  ;;  %v11832_v41 = vsub.f32 %v21216_v31, %v11589_v11  ;;  %s8104_s18 = sshll.u32 %s11597_s8, 1  ;;  %s252_s8 = sadd.s32 1, %s11597_s8  }
 0x207   : > { %v21213_v17 = vld [vmem:[#allocation13_spill] sm:$0xff]  ;;  %v21214_v18 = vld [vmem:[#allocation14_spill] sm:$0xff]  ;;  %v288_v42 = vld [vmem:[%s20552_s11 + $0xd8] sm:$0xff]  ;;  %s12645_s21 = scalar_lea.vmem %s20542_s1, %s8104_s18  ;;  %p251_p1 = scmp.ge.s32.totalorder %s252_s8, %s20541_s0 }
 0x208   : > { %v21215_v23 = vld [vmem:[#allocation18_spill] sm:$0xff]  ;;  %v285_v33 = vld [vmem:[%s20552_s11 + $0xc0] sm:$0xff]  ;;  %392 = vmatprep.subr.mxu1 %v288_v42  ;;  %v280_v45 = vld [vmem:[%s20552_s11 + $0x98] sm:$0xff] }
 0x209   : > { %v286_v32 = vld [vmem:[%s20552_s11 + $0xc8] sm:$0xff]  ;;  %v277_v35 = vld [vmem:[%s20552_s11 + $0x80] sm:$0xff]  ;;  %v287_v43 = vld [vmem:[%s20552_s11 + $0xd0] sm:$0xff] }
 0x20a   : > { %v278_v34 = vld [vmem:[%s20552_s11 + $0x88] sm:$0xff]  ;;  %321 = vmatprep.subr.mxu0 %v286_v32  ;;  %v269_v38 = vld [vmem:[%s20552_s11 + $0x40] sm:$0xff]  ;;  %393 = vmatpush1.msra.mxu1 %v287_v43  ;;  %v279_v48 = vld [vmem:[%s20552_s11 + $0x90] sm:$0xff] }
 0x20b   : > { %322 = vmatpush1.msra.mxu0 %v285_v33  ;;  %v270_v37 = vld [vmem:[%s20552_s11 + $0x48] sm:$0xff]  ;;  %v261_v40 = vld [vmem:[%s20552_s11] sm:$0xff]  ;;  %394 = vmatprep.subr.mxu1 %v280_v45  ;;  %v272_v50 = vld [vmem:[%s20552_s11 + $0x58] sm:$0xff] }
 0x20c   : > { %323 = vmatprep.subr.mxu0 %v278_v34  ;;  %v262_v39 = vld [vmem:[%s20552_s11 + $0x8] sm:$0xff]  ;;  %v289_v46 = vld [vmem:[%s20552_s11 + $0xe0] sm:$0xff]  ;;  %v271_v52 = vld [vmem:[%s20552_s11 + $0x50] sm:$0xff]  ;;  %395 = vmatpush1.msra.mxu1 %v279_v48 }
 0x20d   : > { %324 = vmatpush1.msra.mxu0 %v277_v35  ;;  %v290_v44 = vld [vmem:[%s20552_s11 + $0xe8] sm:$0xff]  ;;  %v281_v49 = vld [vmem:[%s20552_s11 + $0xa0] sm:$0xff]  ;;  %v264_v54 = vld [vmem:[%s20552_s11 + $0x18] sm:$0xff]  ;;  %396 = vmatprep.subr.mxu1 %v272_v50 }
 0x20e   : > { %325 = vmatprep.subr.mxu0 %v270_v37  ;;  %v282_v47 = vld [vmem:[%s20552_s11 + $0xa8] sm:$0xff]  ;;  %v273_v53 = vld [vmem:[%s20552_s11 + $0x60] sm:$0xff]  ;;  %v263_v56 = vld [vmem:[%s20552_s11 + $0x10] sm:$0xff]  ;;  %397 = vmatpush1.msra.mxu1 %v271_v52 }
 0x20f   : > { %326 = vmatpush1.msra.mxu0 %v269_v38  ;;  %v274_v51 = vld [vmem:[%s20552_s11 + $0x68] sm:$0xff]  ;;  %v265_v57 = vld [vmem:[%s20552_s11 + $0x20] sm:$0xff]  ;;  %398 = vmatprep.subr.mxu1 %v264_v54  ;;  %v292_v58 = vld [vmem:[%s20552_s11 + $0xf8] sm:$0xff] }
 0x210   : > { %327 = vmatprep.subr.mxu0 %v262_v39  ;;  %v266_v55 = vld [vmem:[%s20552_s11 + $0x28] sm:$0xff]  ;;  %399 = vmatpush1.msra.mxu1 %v263_v56  ;;  %v291_v59 = vld [vmem:[%s20552_s11 + $0xf0] sm:$0xff]  ;;  %v284_v60 = vld [vmem:[%s20552_s11 + $0xb8] sm:$0xff] }
 0x211   : > { %328 = vmatpush1.msra.mxu0 %v261_v40  ;;  %8106 = vmatmul.mubr.msk.f32.vlgmr.msra.gmra.mxu1 %vm152_vm4, %v11832_v41  ;;  %v283_v61 = vld [vmem:[%s20552_s11 + $0xb0] sm:$0xff]  ;;  %v276_v62 = vld [vmem:[%s20552_s11 + $0x78] sm:$0xff]  ;;  %v798_v3 = vld [vmem:[%s20548_s7 + $0x440] sm:$0xff] }
 0x212   : > { %8105 = vmatmul.mubr.msk.f32.vlgmr.msra.gmra.mxu0 %vm152_vm4, %v11832_v41  ;;  %463 = vmatprep.subr.mxu0 %v290_v44  ;;  %v275_v63 = vld [vmem:[%s20552_s11 + $0x70] sm:$0xff]  ;;  %v268_v0 = vld [vmem:[%s20552_s11 + $0x38] sm:$0xff]  ;;  %v799_v8 = vld [vmem:[%s20548_s7 + $0x448] sm:$0xff] }
 0x213   : > { %464 = vmatpush1.msra.mxu0 %v289_v46  ;;  %503 = vmatprep.mubr.f32.mxu0 %v20559_v36  ;;  %v267_v2 = vld [vmem:[%s20552_s11 + $0x30] sm:$0xff]  ;;  %v797_v4 = vld [vmem:[%s20548_s7 + $0x438] sm:$0xff]  ;;  %v791_v9 = vld [vmem:[%s20548_s7 + $0x408] sm:$0xff] }
 0x214   : > { %465 = vmatprep.subr.mxu0 %v282_v47  ;;  %534 = vmatprep.subr.mxu1 %v292_v58  ;;  %v789_v5 = vld [vmem:[%s20548_s7 + $0x3f8] sm:$0xff]  ;;  %v788_v6 = vld [vmem:[%s20548_s7 + $0x3f0] sm:$0xff]  ;;  %v790_v10 = vld [vmem:[%s20548_s7 + $0x400] sm:$0xff] }
 0x215   : > { %466 = vmatpush1.msra.mxu0 %v281_v49  ;;  %535 = vmatpush1.msra.mxu1 %v291_v59  ;;  %v800_v7 = vld [vmem:[%s20548_s7 + $0x450] sm:$0xff]  ;;  %v782_v12 = vld [vmem:[%s20548_s7 + $0x3c0] sm:$0xff]  ;;  %v779_v22 = vld [vmem:[%s20548_s7 + $0x3a8] sm:$0xff] }
 0x216   : > { %467 = vmatprep.subr.mxu0 %v274_v51  ;;  %536 = vmatprep.subr.mxu1 %v284_v60  ;;  %v780_v11 = vld [vmem:[%s20548_s7 + $0x3b0] sm:$0xff]  ;;  %v781_v25 = vld [vmem:[%s20548_s7 + $0x3b8] sm:$0xff]  ;;  %v771_v26 = vld [vmem:[%s20548_s7 + $0x368] sm:$0xff] }
 0x217   : > { %468 = vmatpush1.msra.mxu0 %v273_v53  ;;  %537 = vmatpush1.msra.mxu1 %v283_v61  ;;  %v773_v27 = vld [vmem:[%s20548_s7 + $0x378] sm:$0xff]  ;;  %v770_v28 = vld [vmem:[%s20548_s7 + $0x360] sm:$0xff]  ;;  %v772_v29 = vld [vmem:[%s20548_s7 + $0x370] sm:$0xff] }
 0x218   : > { %469 = vmatprep.subr.mxu0 %v266_v55  ;;  %538 = vmatprep.subr.mxu1 %v276_v62  ;;  %v762_v30 = vld [vmem:[%s20548_s7 + $0x320] sm:$0xff]  ;;  %v764_v32 = vld [vmem:[%s20548_s7 + $0x330] sm:$0xff]  ;;  %v761_v33 = vld [vmem:[%s20548_s7 + $0x318] sm:$0xff] }
 0x219   : > { %470 = vmatpush1.msra.mxu0 %v265_v57  ;;  %539 = vmatpush1.msra.mxu1 %v275_v63  ;;  %v763_v34 = vld [vmem:[%s20548_s7 + $0x328] sm:$0xff]  ;;  %v753_v35 = vld [vmem:[%s20548_s7 + $0x2d8] sm:$0xff]  ;;  %v752_v38 = vld [vmem:[%s20548_s7 + $0x2d0] sm:$0xff] }
 0x21a   : > { %8107 = vmatmul.mubr.msk.f32.vlgmr.msra.gmra.mxu0 %vm152_vm4, %v11832_v41  ;;  %9615 = vmatprep.subr.mxu0 %v20559_v36  ;;  %v755_v37 = vld [vmem:[%s20548_s7 + $0x2e8] sm:$0xff]  ;;  %v754_v39 = vld [vmem:[%s20548_s7 + $0x2e0] sm:$0xff]  ;;  %v744_v40 = vld [vmem:[%s20548_s7 + $0x290] sm:$0xff] }
 0x21b   : > { %9616 = vmatpush3.msra.mxu0 %v21207_v20  ;;  %9631 = vmatprep.mubr.msk.f32.mxu0 %vm11611_vm6, %v20559_v36  ;;  %v743_v42 = vld [vmem:[%s20548_s7 + $0x288] sm:$0xff]  ;;  %v745_v43 = vld [vmem:[%s20548_s7 + $0x298] sm:$0xff]  ;;  %v734_v46 = vld [vmem:[%s20548_s7 + $0x240] sm:$0xff] }
 0x21c   : > { %9617 = vmatprep.subr.mxu0 %v20559_v36  ;;  %540 = vmatprep.subr.mxu1 %v268_v0  ;;  %v735_v44 = vld [vmem:[%s20548_s7 + $0x248] sm:$0xff]  ;;  %v737_v45 = vld [vmem:[%s20548_s7 + $0x258] sm:$0xff]  ;;  %v736_v47 = vld [vmem:[%s20548_s7 + $0x250] sm:$0xff] }
 0x21d   : > { %9618 = vmatpush3.msra.mxu0 %v21208_v19  ;;  %541 = vmatpush1.msra.mxu1 %v267_v2  ;;  %v726_v48 = vld [vmem:[%s20548_s7 + $0x200] sm:$0xff]  ;;  %v728_v49 = vld [vmem:[%s20548_s7 + $0x210] sm:$0xff]  ;;  %v725_v50 = vld [vmem:[%s20548_s7 + $0x1f8] sm:$0xff] }
 0x21e   : > { %9619 = vmatprep.subr.mxu0 %v20559_v36  ;;  %574 = vmatprep.mubr.f32.mxu1 %v20559_v36  ;;  %v727_v51 = vld [vmem:[%s20548_s7 + $0x208] sm:$0xff]  ;;  %v717_v52 = vld [vmem:[%s20548_s7 + $0x1b8] sm:$0xff]  ;;  %v716_v54 = vld [vmem:[%s20548_s7 + $0x1b0] sm:$0xff] }
 0x21f   : > { %9620 = vmatpush3.msra.mxu0 %v21214_v18  ;;  %8108 = vmatmul.mubr.msk.f32.vlgmr.msra.gmra.mxu1 %vm152_vm4, %v11832_v41  ;;  %v746_v41 = vld [vmem:[%s20548_s7 + $0x2a0] sm:$0xff]  ;;  %v719_v53 = vld [vmem:[%s20548_s7 + $0x1c8] sm:$0xff]  ;;  %v708_v56 = vld [vmem:[%s20548_s7 + $0x170] sm:$0xff] }
 0x220   : > { %9621 = vmatprep.subr.mxu0 %v20559_v36  ;;  %853 = vmatprep.subr.mxu1 %v798_v3  ;;  %v718_v55 = vld [vmem:[%s20548_s7 + $0x1c0] sm:$0xff]  ;;  %v707_v58 = vld [vmem:[%s20548_s7 + $0x168] sm:$0xff]  ;;  %v709_v59 = vld [vmem:[%s20548_s7 + $0x178] sm:$0xff] }
 0x221   : > { %9622 = vmatpush3.msra.mxu0 %v21213_v17  ;;  %854 = vmatpush1.msra.mxu1 %v797_v4  ;;  %v710_v57 = vld [vmem:[%s20548_s7 + $0x180] sm:$0xff]  ;;  %v699_v60 = vld [vmem:[%s20548_s7 + $0x128] sm:$0xff]  ;;  %v701_v61 = vld [vmem:[%s20548_s7 + $0x138] sm:$0xff] }
 0x222   : > { %9623 = vmatprep.subr.mxu0 %v20559_v36  ;;  %855 = vmatprep.subr.mxu1 %v789_v5  ;;  %v698_v62 = vld [vmem:[%s20548_s7 + $0x120] sm:$0xff]  ;;  %v700_v63 = vld [vmem:[%s20548_s7 + $0x130] sm:$0xff]  ;;  %v689_v3 = vld [vmem:[%s20548_s7 + $0xd8] sm:$0xff] }
 0x223   : > { %9624 = vmatpush3.msra.mxu0 %v21209_v16  ;;  %856 = vmatpush1.msra.mxu1 %v788_v6  ;;  %v690_v0 = vld [vmem:[%s20548_s7 + $0xe0] sm:$0xff]  ;;  %v692_v2 = vld [vmem:[%s20548_s7 + $0xf0] sm:$0xff]  ;;  %v691_v4 = vld [vmem:[%s20548_s7 + $0xe8] sm:$0xff] }
 0x224   : > { %9625 = vmatprep.subr.mxu0 %v20559_v36  ;;  %917 = vmatprep.mubr.f32.mxu1 %v20559_v36  ;;  %v681_v5 = vld [vmem:[%s20548_s7 + $0x98] sm:$0xff]  ;;  %v683_v6 = vld [vmem:[%s20548_s7 + $0xa8] sm:$0xff] }
 0x225   : > { %9626 = vmatpush3.msra.mxu0 %v21210_v15  ;;  %857 = vmatprep.subr.mxu1 %v780_v11  ;;  %v671_v11 = vld [vmem:[%s20548_s7 + $0x48] sm:$0xff]  ;;  %v21254_v24 = vld [vmem:[#allocation19_spill] sm:$0xff] }
 0x226   : > { %9627 = vmatprep.subr.mxu0 %v20559_v36  ;;  %858 = vmatpush1.msra.mxu1 %v779_v22  ;;  %v663_v22 = vld [vmem:[%s20548_s7 + $0x8] sm:$0xff] }
 0x227   : > { %9628 = vmatpush3.msra.mxu0 %v21212_v14  ;;  %859 = vmatprep.subr.mxu1 %v771_v26  ;;  %v662_v26 = vld [vmem:[%s20548_s7] sm:$0xff]  ;;  %v12889_v1 = vld [vmem:[%s20553_s12 + $0x328] sm:$0xff] }
 0x228   : > { %9629 = vmatprep.subr.mxu0 %v20559_v36  ;;  %860 = vmatpush1.msra.mxu1 %v770_v28  ;;  %v802_v28 = vld [vmem:[%s20548_s7 + $0x460] sm:$0xff]  ;;  %21231 = vst [vmem:[#allocation33_spill] sm:$0xff] %v12889_v1 }
 0x229   : > { %9630 = vmatpush3.msra.mxu0 %v21211_v13  ;;  %861 = vmatprep.subr.mxu1 %v762_v30  ;;  %v582_v30 = vlaneseq  ;;  %v21217_v21 = vld [vmem:[#allocation17_spill] sm:$0xff] }
 0x22a   : > { %9632 = vmatmul.mubr.msk.f32.vlgmr.msra.gmra.mxu0 %vm587_vm7, %v21216_v31  ;;  %924 = vmatprep.subr.mxu0 %v800_v7  ;;  %v680_v7 = vld [vmem:[%s20548_s7 + $0x90] sm:$0xff] }
 0x22b   : > { %925 = vmatpush1.msra.mxu0 %v799_v8  ;;  %988 = vmatprep.mubr.f32.mxu0 %v20559_v36  ;;  %v682_v8 = vld [vmem:[%s20548_s7 + $0xa0] sm:$0xff] }
 0x22c   : > { %926 = vmatprep.subr.mxu0 %v791_v9  ;;  %862 = vmatpush1.msra.mxu1 %v761_v33  ;;  %v672_v9 = vld [vmem:[%s20548_s7 + $0x50] sm:$0xff]  ;;  %v12138_v33 = vshrl.u32 %v582_v30, 7 }
 0x22d   : > { %927 = vmatpush1.msra.mxu0 %v790_v10  ;;  %863 = vmatprep.subr.mxu1 %v753_v35  ;;  %v674_v10 = vld [vmem:[%s20548_s7 + $0x60] sm:$0xff]  ;;  %v712_v30 = vld [vmem:[%s20548_s7 + $0x190] sm:$0xff] }
 0x22e   : > { %928 = vmatprep.subr.mxu0 %v782_v12  ;;  %864 = vmatpush1.msra.mxu1 %v752_v38  ;;  %v673_v12 = vld [vmem:[%s20548_s7 + $0x58] sm:$0xff]  ;;  %v12143_v35 = vsub.s32 0, %v12138_v33 }
 0x22f   : > { %929 = vmatpush1.msra.mxu0 %v781_v25  ;;  %865 = vmatprep.subr.mxu1 %v744_v40  ;;  %v665_v25 = vld [vmem:[%s20548_s7 + $0x18] sm:$0xff] }
 0x230   : > { %930 = vmatprep.subr.mxu0 %v773_v27  ;;  %866 = vmatpush1.msra.mxu1 %v743_v42  ;;  %v664_v27 = vld [vmem:[%s20548_s7 + $0x10] sm:$0xff]  ;;  %v12149_v38 = vrot.slane %v21217_v21, %v12143_v35  ;;  %v12906_v21 = vld [vmem:[%s20553_s12 + $0x220] sm:$0xff] }
 0x231   : > { %931 = vmatpush1.msra.mxu0 %v772_v29  ;;  %867 = vmatprep.subr.mxu1 %v735_v44  ;;  %v804_v29 = vld [vmem:[%s20548_s7 + $0x470] sm:$0xff]  ;;  %v801_v44 = vld [vmem:[%s20548_s7 + $0x458] sm:$0xff]  ;;  %21234 = vst [vmem:[#allocation36_spill] sm:$0xff] %v12906_v21 }
 0x232   : > { %932 = vmatprep.subr.mxu0 %v764_v32  ;;  %868 = vmatpush1.msra.mxu1 %v734_v46  ;;  %21218 = vst [vmem:[#allocation20_spill] sm:$0xff] %v12149_v38  ;;  %v793_v46 = vld [vmem:[%s20548_s7 + $0x418] sm:$0xff] }
 0x233   : > { %933 = vmatpush1.msra.mxu0 %v763_v34  ;;  %869 = vmatprep.subr.mxu1 %v726_v48  ;;  %v792_v48 = vld [vmem:[%s20548_s7 + $0x410] sm:$0xff] }
 0x234   : > { %934 = vmatprep.subr.mxu0 %v755_v37  ;;  %870 = vmatpush1.msra.mxu1 %v725_v50  ;;  %v784_v50 = vld [vmem:[%s20548_s7 + $0x3d0] sm:$0xff] }
 0x235   : > { %935 = vmatpush1.msra.mxu0 %v754_v39  ;;  %871 = vmatprep.subr.mxu1 %v717_v52  ;;  %v783_v52 = vld [vmem:[%s20548_s7 + $0x3c8] sm:$0xff] }
 0x236   : > { %936 = vmatprep.subr.mxu0 %v746_v41  ;;  %872 = vmatpush1.msra.mxu1 %v716_v54  ;;  %v775_v54 = vld [vmem:[%s20548_s7 + $0x388] sm:$0xff] }
 0x237   : > { %937 = vmatpush1.msra.mxu0 %v745_v43  ;;  %873 = vmatprep.subr.mxu1 %v708_v56  ;;  %v774_v56 = vld [vmem:[%s20548_s7 + $0x380] sm:$0xff] }
 0x238   : > { %938 = vmatprep.subr.mxu0 %v737_v45  ;;  %874 = vmatpush1.msra.mxu1 %v707_v58  ;;  %v803_v45 = vld [vmem:[%s20548_s7 + $0x468] sm:$0xff]  ;;  %v766_v58 = vld [vmem:[%s20548_s7 + $0x340] sm:$0xff] }
 0x239   : > { %939 = vmatpush1.msra.mxu0 %v736_v47  ;;  %875 = vmatprep.subr.mxu1 %v699_v60  ;;  %v795_v47 = vld [vmem:[%s20548_s7 + $0x428] sm:$0xff]  ;;  %v765_v60 = vld [vmem:[%s20548_s7 + $0x338] sm:$0xff] }
 0x23a   : > { %940 = vmatprep.subr.mxu0 %v728_v49  ;;  %876 = vmatpush1.msra.mxu1 %v698_v62  ;;  %v794_v49 = vld [vmem:[%s20548_s7 + $0x420] sm:$0xff]  ;;  %v757_v62 = vld [vmem:[%s20548_s7 + $0x2f8] sm:$0xff] }
 0x23b   : > { %941 = vmatpush1.msra.mxu0 %v727_v51  ;;  %877 = vmatprep.subr.mxu1 %v690_v0  ;;  %v786_v51 = vld [vmem:[%s20548_s7 + $0x3e0] sm:$0xff]  ;;  %v756_v0 = vld [vmem:[%s20548_s7 + $0x2f0] sm:$0xff] }
 0x23c   : > { %942 = vmatprep.subr.mxu0 %v719_v53  ;;  %878 = vmatpush1.msra.mxu1 %v689_v3  ;;  %v785_v53 = vld [vmem:[%s20548_s7 + $0x3d8] sm:$0xff]  ;;  %v748_v3 = vld [vmem:[%s20548_s7 + $0x2b0] sm:$0xff] }
 0x23d   : > { %943 = vmatpush1.msra.mxu0 %v718_v55  ;;  %879 = vmatprep.subr.mxu1 %v681_v5  ;;  %v777_v55 = vld [vmem:[%s20548_s7 + $0x398] sm:$0xff]  ;;  %v747_v5 = vld [vmem:[%s20548_s7 + $0x2a8] sm:$0xff] }
 0x23e   : > { %944 = vmatprep.subr.mxu0 %v710_v57  ;;  %880 = vmatpush1.msra.mxu1 %v680_v7  ;;  %v776_v57 = vld [vmem:[%s20548_s7 + $0x390] sm:$0xff]  ;;  %v739_v7 = vld [vmem:[%s20548_s7 + $0x268] sm:$0xff] }
 0x23f   : > { %945 = vmatpush1.msra.mxu0 %v709_v59  ;;  %881 = vmatprep.subr.mxu1 %v672_v9  ;;  %v768_v59 = vld [vmem:[%s20548_s7 + $0x350] sm:$0xff]  ;;  %v738_v9 = vld [vmem:[%s20548_s7 + $0x260] sm:$0xff] }
 0x240   : > { %946 = vmatprep.subr.mxu0 %v701_v61  ;;  %882 = vmatpush1.msra.mxu1 %v671_v11  ;;  %v767_v61 = vld [vmem:[%s20548_s7 + $0x348] sm:$0xff]  ;;  %v730_v11 = vld [vmem:[%s20548_s7 + $0x220] sm:$0xff] }
 0x241   : > { %947 = vmatpush1.msra.mxu0 %v700_v63  ;;  %883 = vmatprep.subr.mxu1 %v663_v22  ;;  %v759_v63 = vld [vmem:[%s20548_s7 + $0x308] sm:$0xff]  ;;  %v729_v22 = vld [vmem:[%s20548_s7 + $0x218] sm:$0xff] }
 0x242   : > { %948 = vmatprep.subr.mxu0 %v692_v2  ;;  %884 = vmatpush1.msra.mxu1 %v662_v26  ;;  %v758_v2 = vld [vmem:[%s20548_s7 + $0x300] sm:$0xff]  ;;  %v721_v26 = vld [vmem:[%s20548_s7 + $0x1d8] sm:$0xff] }
 0x243   : > { %949 = vmatpush1.msra.mxu0 %v691_v4  ;;  %995 = vmatprep.subr.mxu1 %v802_v28  ;;  %v750_v4 = vld [vmem:[%s20548_s7 + $0x2c0] sm:$0xff]  ;;  %v720_v28 = vld [vmem:[%s20548_s7 + $0x1d0] sm:$0xff] }
 0x244   : > { %950 = vmatprep.subr.mxu0 %v683_v6  ;;  %v749_v6 = vld [vmem:[%s20548_s7 + $0x2b8] sm:$0xff] }
 0x245   : > { %951 = vmatpush1.msra.mxu0 %v682_v8  ;;  %v741_v8 = vld [vmem:[%s20548_s7 + $0x278] sm:$0xff] }
 0x246   : > { %952 = vmatprep.subr.mxu0 %v674_v10  ;;  %v740_v10 = vld [vmem:[%s20548_s7 + $0x270] sm:$0xff] }
 0x247   : > { %953 = vmatpush1.msra.mxu0 %v673_v12  ;;  %v732_v12 = vld [vmem:[%s20548_s7 + $0x230] sm:$0xff] }
 0x248   : > { %954 = vmatprep.subr.mxu0 %v665_v25  ;;  %v731_v25 = vld [vmem:[%s20548_s7 + $0x228] sm:$0xff] }
 0x249   : > { %955 = vmatpush1.msra.mxu0 %v664_v27  ;;  %v723_v27 = vld [vmem:[%s20548_s7 + $0x1e8] sm:$0xff] }
 0x24a   : > { %1066 = vmatprep.subr.mxu0 %v804_v29  ;;  %v722_v29 = vld [vmem:[%s20548_s7 + $0x1e0] sm:$0xff] }
 0x2d2   : > { %v12136_v32 = vpop.f32.mrf.mxu0 }
 0x2d4   : > { %v12140_v34 = vpop.f32.mrf.mxu0 }
 0x2da   : > { %v12145_v37 = vpop.f32.mrf.mxu0 }
 0x2dc   : > { %v12151_v39 = vpop.f32.mrf.mxu0 }
 0x2dd   : > { %21219 = vst [vmem:[#allocation21_spill] sm:$0xff] %v12151_v39 }
 0x2ea   : > { %v657_v40 = vpop.f32.mrf.mxu0 }
 0x2eb   : > { %v658_v41 = vadd.f32 %v657_v40, %v12149_v38  ;;  %v714_v40 = vld [vmem:[%s20548_s7 + $0x1a0] sm:$0xff] }
 0x2ec   : > { %v9633_v42 = vpop.f32.mrf.mxu0 }
 0x2ed   : > { %v12154_v43 = vmax.f32 %v658_v41, 0.0  ;;  %v711_v41 = vld [vmem:[%s20548_s7 + $0x188] sm:$0xff]  ;;  %v713_v42 = vld [vmem:[%s20548_s7 + $0x198] sm:$0xff] }
 0x2ef   : > { %918 = vmatmul.mubr.f32.vlgmr.msra.gmra.mxu1 %v12154_v43  ;;  %989 = vmatmul.mubr.f32.vlgmr.msra.gmra.mxu0 %v12154_v43 }
 0x2f0   : > { %996 = vmatpush1.msra.mxu1 %v801_v44  ;;  %1067 = vmatpush1.msra.mxu0 %v803_v45  ;;  %v703_v44 = vld [vmem:[%s20548_s7 + $0x148] sm:$0xff]  ;;  %v705_v45 = vld [vmem:[%s20548_s7 + $0x158] sm:$0xff] }
 0x2f1   : > { %997 = vmatprep.subr.mxu1 %v793_v46  ;;  %1068 = vmatprep.subr.mxu0 %v795_v47  ;;  %v702_v46 = vld [vmem:[%s20548_s7 + $0x140] sm:$0xff]  ;;  %v704_v47 = vld [vmem:[%s20548_s7 + $0x150] sm:$0xff] }
 0x2f2   : > { %998 = vmatpush1.msra.mxu1 %v792_v48  ;;  %1069 = vmatpush1.msra.mxu0 %v794_v49  ;;  %v694_v48 = vld [vmem:[%s20548_s7 + $0x100] sm:$0xff]  ;;  %v696_v49 = vld [vmem:[%s20548_s7 + $0x110] sm:$0xff] }
 0x2f3   : > { %999 = vmatprep.subr.mxu1 %v784_v50  ;;  %1070 = vmatprep.subr.mxu0 %v786_v51  ;;  %v693_v50 = vld [vmem:[%s20548_s7 + $0xf8] sm:$0xff]  ;;  %v695_v51 = vld [vmem:[%s20548_s7 + $0x108] sm:$0xff] }
 0x2f4   : > { %1000 = vmatpush1.msra.mxu1 %v783_v52  ;;  %1071 = vmatpush1.msra.mxu0 %v785_v53  ;;  %v685_v52 = vld [vmem:[%s20548_s7 + $0xb8] sm:$0xff]  ;;  %v687_v53 = vld [vmem:[%s20548_s7 + $0xc8] sm:$0xff] }
 0x2f5   : > { %1001 = vmatprep.subr.mxu1 %v775_v54  ;;  %1072 = vmatprep.subr.mxu0 %v777_v55  ;;  %v684_v54 = vld [vmem:[%s20548_s7 + $0xb0] sm:$0xff]  ;;  %v686_v55 = vld [vmem:[%s20548_s7 + $0xc0] sm:$0xff] }
 0x2f6   : > { %1002 = vmatpush1.msra.mxu1 %v774_v56  ;;  %1073 = vmatpush1.msra.mxu0 %v776_v57  ;;  %v676_v56 = vld [vmem:[%s20548_s7 + $0x70] sm:$0xff]  ;;  %v678_v57 = vld [vmem:[%s20548_s7 + $0x80] sm:$0xff] }
 0x2f7   : > { %1003 = vmatprep.subr.mxu1 %v766_v58  ;;  %1074 = vmatprep.subr.mxu0 %v768_v59  ;;  %v675_v58 = vld [vmem:[%s20548_s7 + $0x68] sm:$0xff]  ;;  %v677_v59 = vld [vmem:[%s20548_s7 + $0x78] sm:$0xff] }
 0x2f8   : > { %1004 = vmatpush1.msra.mxu1 %v765_v60  ;;  %1075 = vmatpush1.msra.mxu0 %v767_v61  ;;  %v667_v60 = vld [vmem:[%s20548_s7 + $0x28] sm:$0xff]  ;;  %v669_v61 = vld [vmem:[%s20548_s7 + $0x38] sm:$0xff] }
 0x2f9   : > { %1005 = vmatprep.subr.mxu1 %v757_v62  ;;  %1076 = vmatprep.subr.mxu0 %v759_v63  ;;  %v666_v62 = vld [vmem:[%s20548_s7 + $0x20] sm:$0xff]  ;;  %v668_v63 = vld [vmem:[%s20548_s7 + $0x30] sm:$0xff] }
 0x2fa   : > { %1006 = vmatpush1.msra.mxu1 %v756_v0  ;;  %1077 = vmatpush1.msra.mxu0 %v758_v2  ;;  %v805_v0 = vld [vmem:[%s20548_s7 + $0x478] sm:$0xff] }
 0x2fb   : > { %1007 = vmatprep.subr.mxu1 %v748_v3  ;;  %1078 = vmatprep.subr.mxu0 %v750_v4  ;;  %v1256_v2 = vld [vmem:[%s20553_s12 + $0xf8] sm:$0xff]  ;;  %v796_v4 = vld [vmem:[%s20548_s7 + $0x430] sm:$0xff] }
 0x2fc   : > { %1008 = vmatpush1.msra.mxu1 %v747_v5  ;;  %1079 = vmatpush1.msra.mxu0 %v749_v6  ;;  %v1240_v3 = vld [vmem:[%s20553_s12 + $0x78] sm:$0xff]  ;;  %v1255_v5 = vld [vmem:[%s20553_s12 + $0xf0] sm:$0xff] }
 0x2fd   : > { %1009 = vmatprep.subr.mxu1 %v739_v7  ;;  %1080 = vmatprep.subr.mxu0 %v741_v8  ;;  %v1239_v6 = vld [vmem:[%s20553_s12 + $0x70] sm:$0xff]  ;;  %v787_v7 = vld [vmem:[%s20548_s7 + $0x3e8] sm:$0xff] }
 0x2fe   : > { %1010 = vmatpush1.msra.mxu1 %v738_v9  ;;  %1081 = vmatpush1.msra.mxu0 %v740_v10  ;;  %v1254_v8 = vld [vmem:[%s20553_s12 + $0xe8] sm:$0xff]  ;;  %v778_v10 = vld [vmem:[%s20548_s7 + $0x3a0] sm:$0xff] }
 0x2ff   : > { %1011 = vmatprep.subr.mxu1 %v730_v11  ;;  %1082 = vmatprep.subr.mxu0 %v732_v12  ;;  %v1238_v9 = vld [vmem:[%s20553_s12 + $0x68] sm:$0xff]  ;;  %v1253_v11 = vld [vmem:[%s20553_s12 + $0xe0] sm:$0xff] }
 0x300   : > { %1012 = vmatpush1.msra.mxu1 %v729_v22  ;;  %1083 = vmatpush1.msra.mxu0 %v731_v25  ;;  %v1237_v12 = vld [vmem:[%s20553_s12 + $0x60] sm:$0xff]  ;;  %v769_v22 = vld [vmem:[%s20548_s7 + $0x358] sm:$0xff] }
 0x301   : > { %1013 = vmatprep.subr.mxu1 %v721_v26  ;;  %1084 = vmatprep.subr.mxu0 %v723_v27  ;;  %v1252_v25 = vld [vmem:[%s20553_s12 + $0xd8] sm:$0xff]  ;;  %v760_v27 = vld [vmem:[%s20548_s7 + $0x310] sm:$0xff] }
 0x302   : > { %1014 = vmatpush1.msra.mxu1 %v720_v28  ;;  %1085 = vmatpush1.msra.mxu0 %v722_v29  ;;  %v1236_v26 = vld [vmem:[%s20553_s12 + $0x58] sm:$0xff]  ;;  %v1251_v28 = vld [vmem:[%s20553_s12 + $0xd0] sm:$0xff]  ;;  %v751_v29 = vld [vmem:[%s20548_s7 + $0x2c8] sm:$0xff] }
 0x303   : > { %1015 = vmatprep.subr.mxu1 %v712_v30  ;;  %1086 = vmatprep.subr.mxu0 %v714_v40  ;;  %v742_v30 = vld [vmem:[%s20548_s7 + $0x280] sm:$0xff]  ;;  %v733_v40 = vld [vmem:[%s20548_s7 + $0x238] sm:$0xff] }
 0x304   : > { %1016 = vmatpush1.msra.mxu1 %v711_v41  ;;  %1087 = vmatpush1.msra.mxu0 %v713_v42  ;;  %v724_v41 = vld [vmem:[%s20548_s7 + $0x1f0] sm:$0xff]  ;;  %v715_v42 = vld [vmem:[%s20548_s7 + $0x1a8] sm:$0xff] }
 0x305   : > { %1017 = vmatprep.subr.mxu1 %v703_v44  ;;  %1088 = vmatprep.subr.mxu0 %v705_v45  ;;  %v706_v44 = vld [vmem:[%s20548_s7 + $0x160] sm:$0xff]  ;;  %v697_v45 = vld [vmem:[%s20548_s7 + $0x118] sm:$0xff] }
 0x306   : > { %1018 = vmatpush1.msra.mxu1 %v702_v46  ;;  %1089 = vmatpush1.msra.mxu0 %v704_v47  ;;  %v688_v46 = vld [vmem:[%s20548_s7 + $0xd0] sm:$0xff]  ;;  %v679_v47 = vld [vmem:[%s20548_s7 + $0x88] sm:$0xff] }
 0x307   : > { %1019 = vmatprep.subr.mxu1 %v694_v48  ;;  %1090 = vmatprep.subr.mxu0 %v696_v49  ;;  %v670_v48 = vld [vmem:[%s20548_s7 + $0x40] sm:$0xff]  ;;  %v1288_v49 = vld [vmem:[%s20553_s12 + $0x1f8] sm:$0xff] }
 0x308   : > { %1020 = vmatpush1.msra.mxu1 %v693_v50  ;;  %1091 = vmatpush1.msra.mxu0 %v695_v51  ;;  %v1272_v50 = vld [vmem:[%s20553_s12 + $0x178] sm:$0xff]  ;;  %v1287_v51 = vld [vmem:[%s20553_s12 + $0x1f0] sm:$0xff] }
 0x309   : > { %1021 = vmatprep.subr.mxu1 %v685_v52  ;;  %1092 = vmatprep.subr.mxu0 %v687_v53  ;;  %v1271_v52 = vld [vmem:[%s20553_s12 + $0x170] sm:$0xff] }
 0x30a   : > { %1022 = vmatpush1.msra.mxu1 %v684_v54  ;;  %1093 = vmatpush1.msra.mxu0 %v686_v55  ;;  %v1235_v53 = vld [vmem:[%s20553_s12 + $0x50] sm:$0xff]  ;;  %v1286_v54 = vld [vmem:[%s20553_s12 + $0x1e8] sm:$0xff] }
 0x30b   : > { %1023 = vmatprep.subr.mxu1 %v676_v56  ;;  %1094 = vmatprep.subr.mxu0 %v678_v57  ;;  %v1250_v55 = vld [vmem:[%s20553_s12 + $0xc8] sm:$0xff]  ;;  %v1285_v57 = vld [vmem:[%s20553_s12 + $0x1e0] sm:$0xff] }
 0x30c   : > { %1024 = vmatpush1.msra.mxu1 %v675_v58  ;;  %1095 = vmatpush1.msra.mxu0 %v677_v59  ;;  %v1234_v56 = vld [vmem:[%s20553_s12 + $0x48] sm:$0xff]  ;;  %v1249_v58 = vld [vmem:[%s20553_s12 + $0xc0] sm:$0xff] }
 0x30d   : > { %1025 = vmatprep.subr.mxu1 %v667_v60  ;;  %1096 = vmatprep.subr.mxu0 %v669_v61  ;;  %v1269_v59 = vld [vmem:[%s20553_s12 + $0x160] sm:$0xff]  ;;  %v1248_v61 = vld [vmem:[%s20553_s12 + $0xb8] sm:$0xff] }
 0x30e   : > { %1026 = vmatpush1.msra.mxu1 %v666_v62  ;;  %1059 = vmatprep.mubr.f32.mxu1 %v20559_v36  ;;  %v1233_v60 = vld [vmem:[%s20553_s12 + $0x40] sm:$0xff]  ;;  %v1284_v62 = vld [vmem:[%s20553_s12 + $0x1d8] sm:$0xff] }
 0x30f   : > { %1097 = vmatpush1.msra.mxu0 %v668_v63  ;;  %1130 = vmatprep.mubr.f32.mxu0 %v20559_v36  ;;  %v1232_v63 = vld [vmem:[%s20553_s12 + $0x38] sm:$0xff] }
 0x310   : > { %1060 = vmatmul.mubr.f32.vlgmr.msra.gmra.mxu1 %v12154_v43  ;;  %1131 = vmatmul.mubr.f32.vlgmr.msra.gmra.mxu0 %v12154_v43 }
 0x311   : > { %9634 = vmatprep.subr.mxu1 %v20559_v36  ;;  %9666 = vmatprep.mubr.msk.f32.mxu1 %vm11611_vm6, %v20559_v36 }
 0x312   : > { %9635 = vmatpush3.msra.mxu1 %v805_v0  ;;  %8156 = vmatprep.subr.mxu0 %v1256_v2  ;;  %v1268_v0 = vld [vmem:[%s20553_s12 + $0x158] sm:$0xff]  ;;  %v1247_v2 = vld [vmem:[%s20553_s12 + $0xb0] sm:$0xff] }
 0x313   : > { %9636 = vmatprep.subr.mxu1 %v20559_v36  ;;  %8157 = vmatpush3.msra.mxu0 %v1240_v3  ;;  %v1231_v3 = vld [vmem:[%s20553_s12 + $0x30] sm:$0xff] }
 0x314   : > { %9637 = vmatpush3.msra.mxu1 %v796_v4  ;;  %8158 = vmatprep.subr.mxu0 %v1255_v5  ;;  %v1283_v4 = vld [vmem:[%s20553_s12 + $0x1d0] sm:$0xff]  ;;  %v1246_v5 = vld [vmem:[%s20553_s12 + $0xa8] sm:$0xff] }
 0x315   : > { %9638 = vmatprep.subr.mxu1 %v20559_v36  ;;  %8159 = vmatpush3.msra.mxu0 %v1239_v6  ;;  %v1267_v6 = vld [vmem:[%s20553_s12 + $0x150] sm:$0xff] }
 0x316   : > { %9639 = vmatpush3.msra.mxu1 %v787_v7  ;;  %8160 = vmatprep.subr.mxu0 %v1254_v8  ;;  %v1230_v7 = vld [vmem:[%s20553_s12 + $0x28] sm:$0xff] }
 0x317   : > { %9640 = vmatprep.subr.mxu1 %v20559_v36  ;;  %8161 = vmatpush3.msra.mxu0 %v1238_v9  ;;  %v1282_v8 = vld [vmem:[%s20553_s12 + $0x1c8] sm:$0xff]  ;;  %v1245_v9 = vld [vmem:[%s20553_s12 + $0xa0] sm:$0xff] }
 0x318   : > { %9641 = vmatpush3.msra.mxu1 %v778_v10  ;;  %8162 = vmatprep.subr.mxu0 %v1253_v11  ;;  %v1266_v10 = vld [vmem:[%s20553_s12 + $0x148] sm:$0xff]  ;;  %v1229_v11 = vld [vmem:[%s20553_s12 + $0x20] sm:$0xff] }
 0x319   : > { %9642 = vmatprep.subr.mxu1 %v20559_v36  ;;  %8163 = vmatpush3.msra.mxu0 %v1237_v12  ;;  %v1281_v12 = vld [vmem:[%s20553_s12 + $0x1c0] sm:$0xff] }
 0x31a   : > { %9643 = vmatpush3.msra.mxu1 %v769_v22  ;;  %8164 = vmatprep.subr.mxu0 %v1252_v25  ;;  %v1244_v22 = vld [vmem:[%s20553_s12 + $0x98] sm:$0xff]  ;;  %v1265_v25 = vld [vmem:[%s20553_s12 + $0x140] sm:$0xff] }
 0x31b   : > { %9644 = vmatprep.subr.mxu1 %v20559_v36  ;;  %8165 = vmatpush3.msra.mxu0 %v1236_v26  ;;  %v1228_v26 = vld [vmem:[%s20553_s12 + $0x18] sm:$0xff] }
 0x31c   : > { %9645 = vmatpush3.msra.mxu1 %v760_v27  ;;  %8166 = vmatprep.subr.mxu0 %v1251_v28  ;;  %v1280_v27 = vld [vmem:[%s20553_s12 + $0x1b8] sm:$0xff]  ;;  %v1243_v28 = vld [vmem:[%s20553_s12 + $0x90] sm:$0xff] }
 0x31d   : > { %9646 = vmatprep.subr.mxu1 %v20559_v36  ;;  %8167 = vmatpush3.msra.mxu0 %v1235_v53  ;;  %v1260_v53 = vld [vmem:[%s20553_s12 + $0x118] sm:$0xff] }
 0x31e   : > { %9647 = vmatpush3.msra.mxu1 %v751_v29  ;;  %8168 = vmatprep.subr.mxu0 %v1250_v55  ;;  %v1264_v29 = vld [vmem:[%s20553_s12 + $0x138] sm:$0xff]  ;;  %v1259_v55 = vld [vmem:[%s20553_s12 + $0x110] sm:$0xff] }
 0x31f   : > { %9648 = vmatprep.subr.mxu1 %v20559_v36  ;;  %8169 = vmatpush3.msra.mxu0 %v1234_v56  ;;  %v1258_v56 = vld [vmem:[%s20553_s12 + $0x108] sm:$0xff] }
 0x320   : > { %9649 = vmatpush3.msra.mxu1 %v742_v30  ;;  %8170 = vmatprep.subr.mxu0 %v1249_v58  ;;  %v1227_v30 = vld [vmem:[%s20553_s12 + $0x10] sm:$0xff]  ;;  %v1257_v58 = vld [vmem:[%s20553_s12 + $0x100] sm:$0xff] }
 0x321   : > { %9650 = vmatprep.subr.mxu1 %v20559_v36  ;;  %8171 = vmatpush3.msra.mxu0 %v1233_v60  ;;  %v12613_v60 = vpop.f32.mrf.mxu1 }
 0x322   : > { %9651 = vmatpush3.msra.mxu1 %v733_v40  ;;  %8172 = vmatprep.subr.mxu0 %v1248_v61  ;;  %v1279_v40 = vld [vmem:[%s20553_s12 + $0x1b0] sm:$0xff] }
 0x323   : > { %9652 = vmatprep.subr.mxu1 %v20559_v36  ;;  %8173 = vmatpush3.msra.mxu0 %v1232_v63  ;;  %v12615_v61 = vpop.f32.mrf.mxu1 }
 0x324   : > { %9653 = vmatpush3.msra.mxu1 %v724_v41  ;;  %8174 = vmatprep.subr.mxu0 %v1247_v2  ;;  %v1242_v41 = vld [vmem:[%s20553_s12 + $0x88] sm:$0xff]  ;;  %v822_v2 = vsub.s32 3, %v12138_v33 }
 0x325   : > { %9654 = vmatprep.subr.mxu1 %v20559_v36  ;;  %8175 = vmatpush3.msra.mxu0 %v1231_v3  ;;  %v12618_v63 = vpop.f32.mrf.mxu1  ;;  %v12624_v3 = vrot.slane %v21215_v23, %v12143_v35 }
 0x326   : > { %9655 = vmatpush3.msra.mxu1 %v715_v42  ;;  %8176 = vmatprep.subr.mxu0 %v1246_v5  ;;  %v1263_v42 = vld [vmem:[%s20553_s12 + $0x130] sm:$0xff] }
 0x327   : > { %9656 = vmatprep.subr.mxu1 %v20559_v36  ;;  %8177 = vmatpush3.msra.mxu0 %v1230_v7  ;;  %21220 = vst [vmem:[#allocation22_spill] sm:$0xff] %v12624_v3  ;;  %v12629_v5 = vpop.f32.mrf.mxu1  ;;  %v12635_v7 = vrot.slane %v21215_v23, %v822_v2  ;;  %v12715_v2 = vld [vmem:[%s20553_s12 + $0x3d8] sm:$0xff] }
 0x328   : > { %9657 = vmatpush3.msra.mxu1 %v706_v44  ;;  %8178 = vmatprep.subr.mxu0 %v1245_v9  ;;  %v1226_v44 = vld [vmem:[%s20553_s12 + $0x8] sm:$0xff]  ;;  %21221 = vst [vmem:[#allocation23_spill] sm:$0xff] %v12629_v5 }
 0x329   : > { %9658 = vmatprep.subr.mxu1 %v20559_v36  ;;  %8179 = vmatpush3.msra.mxu0 %v1229_v11 }
 0x32a   : > { %9659 = vmatpush3.msra.mxu1 %v697_v45  ;;  %8180 = vmatprep.subr.mxu0 %v1244_v22  ;;  %v1278_v45 = vld [vmem:[%s20553_s12 + $0x1a8] sm:$0xff] }
 0x32b   : > { %9660 = vmatprep.subr.mxu1 %v20559_v36  ;;  %8181 = vmatpush3.msra.mxu0 %v1228_v26 }
 0x32c   : > { %9661 = vmatpush3.msra.mxu1 %v688_v46  ;;  %8182 = vmatprep.subr.mxu0 %v1243_v28  ;;  %v1241_v46 = vld [vmem:[%s20553_s12 + $0x80] sm:$0xff] }
 0x32d   : > { %9662 = vmatprep.subr.mxu1 %v20559_v36  ;;  %8183 = vmatpush3.msra.mxu0 %v1227_v30 }
 0x32e   : > { %9663 = vmatpush3.msra.mxu1 %v679_v47  ;;  %v1262_v47 = vld [vmem:[%s20553_s12 + $0x128] sm:$0xff]  ;;  %8184 = vmatprep.subr.mxu0 %v1242_v41 }
 0x32f   : > { %9664 = vmatprep.subr.mxu1 %v20559_v36  ;;  %8185 = vmatpush3.msra.mxu0 %v1226_v44  ;;  %v12894_v36 = vld [vmem:[%s20553_s12 + $0x2a0] sm:$0xff] }
 0x330   : > { %9665 = vmatpush3.msra.mxu1 %v670_v48  ;;  %v1225_v48 = vld [vmem:[%s20553_s12] sm:$0xff]  ;;  %8186 = vmatprep.subr.mxu0 %v1241_v46  ;;  %21232 = vst [vmem:[#allocation34_spill] sm:$0xff] %v12894_v36 }
 0x331   : > { %9667 = vmatmul.mubr.f32.vlgmr.msra.gmra.mxu1 %v12154_v43  ;;  %8191 = vmatprep.subr.mxu1 %v1288_v49  ;;  %v1270_v43 = vld [vmem:[%s20553_s12 + $0x168] sm:$0xff]  ;;  %v1277_v49 = vld [vmem:[%s20553_s12 + $0x1a0] sm:$0xff] }
 0x332   : > { %8192 = vmatpush3.msra.mxu1 %v1272_v50  ;;  %v1261_v50 = vld [vmem:[%s20553_s12 + $0x120] sm:$0xff]  ;;  %8187 = vmatpush3.msra.mxu0 %v1225_v48  ;;  %v1319_v48 = vld [vmem:[%s20553_s12 + $0x2f0] sm:$0xff] }
 0x333   : > { %8193 = vmatprep.subr.mxu1 %v1287_v51  ;;  %v1320_v51 = vld [vmem:[%s20553_s12 + $0x2f8] sm:$0xff] }
 0x334   : > { %8194 = vmatpush3.msra.mxu1 %v1271_v52  ;;  %v1276_v52 = vld [vmem:[%s20553_s12 + $0x198] sm:$0xff]  ;;  %8226 = vmatprep.subr.mxu0 %v1320_v51  ;;  %v1335_v51 = vld [vmem:[%s20553_s12 + $0x370] sm:$0xff] }
 0x335   : > { %8195 = vmatprep.subr.mxu1 %v1286_v54  ;;  %v1275_v54 = vld [vmem:[%s20553_s12 + $0x190] sm:$0xff] }
 0x336   : > { %8196 = vmatpush3.msra.mxu1 %v1270_v43  ;;  %v1274_v43 = vld [vmem:[%s20553_s12 + $0x188] sm:$0xff] }
 0x337   : > { %8197 = vmatprep.subr.mxu1 %v1285_v57  ;;  %v1273_v57 = vld [vmem:[%s20553_s12 + $0x180] sm:$0xff] }
 0x338   : > { %8198 = vmatpush3.msra.mxu1 %v1269_v59  ;;  %v1352_v59 = vld [vmem:[%s20553_s12 + $0x3f8] sm:$0xff] }
 0x339   : > { %8199 = vmatprep.subr.mxu1 %v1284_v62  ;;  %v818_v62 = vsub.s32 2, %v12138_v33 }
 0x33a   : > { %8200 = vmatpush3.msra.mxu1 %v1268_v0  ;;  %v814_v0 = vsub.s32 1, %v12138_v33 }
 0x33b   : > { %8201 = vmatprep.subr.mxu1 %v1283_v4  ;;  %v12627_v4 = vrot.slane %v21215_v23, %v818_v62  ;;  %v12703_v62 = vld [vmem:[%s20553_s12 + $0x360] sm:$0xff] }
 0x33c   : > { %8202 = vmatpush3.msra.mxu1 %v1267_v6  ;;  %v12632_v6 = vrot.slane %v21215_v23, %v814_v0  ;;  %v12708_v0 = vld [vmem:[%s20553_s12 + $0x2d8] sm:$0xff] }
 0x33d   : > { %8203 = vmatprep.subr.mxu1 %v1282_v8 }
 0x33e   : > { %8204 = vmatpush3.msra.mxu1 %v1266_v10 }
 0x33f   : > { %8205 = vmatprep.subr.mxu1 %v1281_v12 }
 0x340   : > { %8206 = vmatpush3.msra.mxu1 %v1265_v25 }
 0x341   : > { %8207 = vmatprep.subr.mxu1 %v1280_v27 }
 0x342   : > { %8208 = vmatpush3.msra.mxu1 %v1264_v29  ;;  %v259_v29 = vld [vmem:[%s12645_s21] sm:$0x3] }
 0x343   : > { %8209 = vmatprep.subr.mxu1 %v1279_v40 }
 0x344   : > { %8210 = vmatpush3.msra.mxu1 %v1263_v42 }
 0x345   : > { %8211 = vmatprep.subr.mxu1 %v1278_v45  ;;  %v1304_v45 = vld [vmem:[%s20553_s12 + $0x278] sm:$0xff] }
 0x346   : > { %8212 = vmatpush3.msra.mxu1 %v1262_v47  ;;  %v1336_v47 = vld [vmem:[%s20553_s12 + $0x378] sm:$0xff] }
 0x347   : > { %8213 = vmatprep.subr.mxu1 %v1277_v49  ;;  %v1351_v49 = vld [vmem:[%s20553_s12 + $0x3f0] sm:$0xff] }
 0x348   : > { %8214 = vmatpush3.msra.mxu1 %v1261_v50  ;;  %v1303_v50 = vld [vmem:[%s20553_s12 + $0x270] sm:$0xff] }
 0x349   : > { %8215 = vmatprep.subr.mxu1 %v1276_v52  ;;  %v1318_v52 = vld [vmem:[%s20553_s12 + $0x2e8] sm:$0xff] }
 0x34a   : > { %8216 = vmatpush3.msra.mxu1 %v1260_v53  ;;  %v1350_v53 = vld [vmem:[%s20553_s12 + $0x3e8] sm:$0xff] }
 0x34b   : > { %8217 = vmatprep.subr.mxu1 %v1275_v54  ;;  %v1302_v54 = vld [vmem:[%s20553_s12 + $0x268] sm:$0xff] }
 0x34c   : > { %8218 = vmatpush3.msra.mxu1 %v1259_v55  ;;  %v12681_v55 = vld [vmem:[%s20553_s12 + $0x368] sm:$0xff] }
 0x34d   : > { %8219 = vmatprep.subr.mxu1 %v1274_v43  ;;  %v12686_v43 = vld [vmem:[%s20553_s12 + $0x2e0] sm:$0xff] }
 0x34e   : > { %8220 = vmatpush3.msra.mxu1 %v1258_v56  ;;  %v12691_v56 = vld [vmem:[%s20553_s12 + $0x3e0] sm:$0xff] }
 0x34f   : > { %8221 = vmatprep.subr.mxu1 %v1273_v57  ;;  %v12696_v57 = vld [vmem:[%s20553_s12 + $0x260] sm:$0xff] }
 0x350   : > { %8222 = vmatpush3.msra.mxu1 %v1257_v58  ;;  %v826_v58 = vsub.s32 4, %v12138_v33 }
 0x351   : > { %8261 = vmatprep.subr.mxu1 %v1352_v59  ;;  %v834_v59 = vsub.s32 6, %v12138_v33 }
 0x3af   : > { %v919_v8 = vpop.f32.mrf.mxu1  ;;  %v990_v9 = vpop.f32.mrf.mxu0 }
 0x3b0   : > { %v920_v10 = vadd.f32 %v919_v8, %v12624_v3  ;;  %v991_v11 = vadd.f32 %v990_v9, %v12627_v4  ;;  %v12720_v8 = vld [vmem:[%s20553_s12 + $0x258] sm:$0xff]  ;;  %v830_v9 = vsub.s32 5, %v12138_v33 }
 0x3b1   : > { %v921_v12 = vpop.f32.mrf.mxu1  ;;  %v992_v22 = vpop.f32.mrf.mxu0 }
 0x3b2   : > { %10385 = vtanh.f32 %v920_v10  ;;  %v922_v25 = vadd.f32 %v921_v12, %v12632_v6  ;;  %v993_v26 = vadd.f32 %v992_v22, %v12635_v7  ;;  %v838_v10 = vsub.s32 7, %v12138_v33  ;;  %v12734_v12 = vld [vmem:[%s20553_s12 + $0x2d0] sm:$0xff] }
 0x3b3   : > { %10387 = vtanh.f32 %v991_v11  ;;  %v12729_v11 = vld [vmem:[%s20553_s12 + $0x358] sm:$0xff]  ;;  %v12739_v33 = vrot.slane %v21215_v23, %v826_v58  ;;  %v12742_v22 = vrot.slane %v21215_v23, %v834_v59 }
 0x3b4   : > { %10389 = vtanh.f32 %v922_v25  ;;  %v12747_v25 = vld [vmem:[%s20553_s12 + $0x3d0] sm:$0xff] }
 0x3b5   : > { %10391 = vtanh.f32 %v993_v26  ;;  %v12752_v26 = vld [vmem:[%s20553_s12 + $0x250] sm:$0xff] }
 0x3bf   : > { %v10386_v27 = vpop.eup %10385 }
 0x3c0   : > { %v10388_v28 = vpop.eup %10387  ;;  %v1216_v44 = vmul.f32 %v10386_v27, %v259_v29  ;;  %v12759_v27 = vld [vmem:[%s20553_s12 + $0x350] sm:$0xff]  ;;  %v12769_v29 = vrot.slane %v21215_v23, %v830_v9  ;;  %v12829_v9 = vld [vmem:[%s20553_s12 + $0x3b8] sm:$0xff] }
 0x3c1   : > { %v10390_v30 = vpop.eup %10389  ;;  %v1218_v46 = vmul.f32 %v10388_v28, %v12140_v34  ;;  %v12764_v28 = vld [vmem:[%s20553_s12 + $0x2c8] sm:$0xff] }
 0x3c2   : > { %v10392_v40 = vpop.eup %10391  ;;  %v1217_v41 = vmul.f32 %v10390_v30, %v12136_v32  ;;  %v12772_v30 = vrot.slane %v21215_v23, %v838_v10  ;;  %v12834_v10 = vld [vmem:[%s20553_s12 + $0x238] sm:$0xff]  ;;  %v12901_v23 = vld [vmem:[%s20553_s12 + $0x3a0] sm:$0xff] }
 0x3c3   : > { %v1219_v42 = vmul.f32 %v10392_v40, %v12613_v60  ;;  %v12777_v40 = vld [vmem:[%s20553_s12 + $0x3c8] sm:$0xff]  ;;  %21222 = vst [vmem:[#allocation24_spill] sm:$0xff] %v12834_v10  ;;  %21233 = vst [vmem:[#allocation35_spill] sm:$0xff] %v12901_v23 }
 0x3c4   : > { %1433 = vmatprep.mubr.f32.mxu0 %v1217_v41  ;;  %v12782_v41 = vld [vmem:[%s20553_s12 + $0x248] sm:$0xff] }
 0x3c5   : > { %1503 = vmatprep.mubr.f32.mxu1 %v1219_v42  ;;  %1434 = vmatmul.mubr.f32.vlgmr.msra.gmra.mxu0 %v1216_v44 }
 0x3c6   : > { %1504 = vmatmul.mubr.f32.vlgmr.msra.gmra.mxu1 %v1218_v46  ;;  %8227 = vmatpush3.msra.mxu0 %v1304_v45  ;;  %v12789_v45 = vld [vmem:[%s20553_s12 + $0x348] sm:$0xff]  ;;  %v12794_v46 = vld [vmem:[%s20553_s12 + $0x2c0] sm:$0xff] }
 0x3c7   : > { %8262 = vmatpush3.msra.mxu1 %v1336_v47  ;;  %8228 = vmatprep.subr.mxu0 %v1319_v48 }
 0x3c8   : > { %8263 = vmatprep.subr.mxu1 %v1351_v49  ;;  %8229 = vmatpush3.msra.mxu0 %v1303_v50  ;;  %v12803_v49 = vld [vmem:[%s20553_s12 + $0x3c0] sm:$0xff] }
 0x3c9   : > { %8264 = vmatpush3.msra.mxu1 %v1335_v51  ;;  %8230 = vmatprep.subr.mxu0 %v1318_v52  ;;  %v12808_v50 = vld [vmem:[%s20553_s12 + $0x240] sm:$0xff] }
 0x3ca   : > { %8265 = vmatprep.subr.mxu1 %v1350_v53  ;;  %8231 = vmatpush3.msra.mxu0 %v1302_v54  ;;  %v12815_v53 = vld [vmem:[%s20553_s12 + $0x340] sm:$0xff]  ;;  %v12820_v54 = vld [vmem:[%s20553_s12 + $0x2b8] sm:$0xff] }
 0x3cb   : > { %8266 = vmatpush3.msra.mxu1 %v12681_v55  ;;  %8232 = vmatprep.subr.mxu0 %v12686_v43 }
 0x3cc   : > { %8267 = vmatprep.subr.mxu1 %v12691_v56  ;;  %8233 = vmatpush3.msra.mxu0 %v12696_v57 }
 0x3cd   : > { %8268 = vmatpush3.msra.mxu1 %v12703_v62  ;;  %8234 = vmatprep.subr.mxu0 %v12708_v0 }
 0x3ce   : > { %8269 = vmatprep.subr.mxu1 %v12715_v2  ;;  %8235 = vmatpush3.msra.mxu0 %v12720_v8 }
 0x3cf   : > { %8270 = vmatpush3.msra.mxu1 %v12729_v11  ;;  %8236 = vmatprep.subr.mxu0 %v12734_v12 }
 0x3d0   : > { %v1061_v42 = vpop.f32.mrf.mxu1  ;;  %v1132_v44 = vpop.f32.mrf.mxu0  ;;  %8271 = vmatprep.subr.mxu1 %v12747_v25  ;;  %8237 = vmatpush3.msra.mxu0 %v12752_v26 }
 0x3d1   : > { %v1062_v47 = vadd.f32 %v1061_v42, %v12739_v33  ;;  %v1133_v48 = vadd.f32 %v1132_v44, %v12742_v22  ;;  %8272 = vmatpush3.msra.mxu1 %v12759_v27  ;;  %8238 = vmatprep.subr.mxu0 %v12764_v28  ;;  %v12841_v42 = vld [vmem:[%s20553_s12 + $0x338] sm:$0xff]  ;;  %v12846_v44 = vld [vmem:[%s20553_s12 + $0x2b0] sm:$0xff] }
 0x3d2   : > { %v1063_v51 = vpop.f32.mrf.mxu1  ;;  %v1134_v52 = vpop.f32.mrf.mxu0  ;;  %8273 = vmatprep.subr.mxu1 %v12777_v40  ;;  %8239 = vmatpush3.msra.mxu0 %v12782_v41  ;;  %21223 = vst [vmem:[#allocation25_spill] sm:$0xff] %v12841_v42  ;;  %21224 = vst [vmem:[#allocation26_spill] sm:$0xff] %v12846_v44 }
 0x3d3   : > { %10393 = vtanh.f32 %v1062_v47  ;;  %v1064_v58 = vadd.f32 %v1063_v51, %v12769_v29  ;;  %v1135_v59 = vadd.f32 %v1134_v52, %v12772_v30  ;;  %8274 = vmatpush3.msra.mxu1 %v12789_v45  ;;  %8240 = vmatprep.subr.mxu0 %v12794_v46  ;;  %v12853_v47 = vld [vmem:[%s20553_s12 + $0x3b0] sm:$0xff]  ;;  %v12870_v52 = vld [vmem:[%s20553_s12 + $0x2a8] sm:$0xff] }
 0x3d4   : > { %10395 = vtanh.f32 %v1133_v48  ;;  %8275 = vmatprep.subr.mxu1 %v12803_v49  ;;  %8241 = vmatpush3.msra.mxu0 %v12808_v50  ;;  %21225 = vst [vmem:[#allocation27_spill] sm:$0xff] %v12853_v47  ;;  %v12858_v48 = vld [vmem:[%s20553_s12 + $0x230] sm:$0xff]  ;;  %21228 = vst [vmem:[#allocation30_spill] sm:$0xff] %v12870_v52 }
 0x3d5   : > { %10397 = vtanh.f32 %v1064_v58  ;;  %8276 = vmatpush3.msra.mxu1 %v12815_v53  ;;  %8242 = vmatprep.subr.mxu0 %v12820_v54  ;;  %21226 = vst [vmem:[#allocation28_spill] sm:$0xff] %v12858_v48  ;;  %v12865_v51 = vld [vmem:[%s20553_s12 + $0x330] sm:$0xff]  ;;  %v12877_v58 = vld [vmem:[%s20553_s12 + $0x3a8] sm:$0xff] }
 0x3d6   : > { %10399 = vtanh.f32 %v1135_v59  ;;  %8277 = vmatprep.subr.mxu1 %v12829_v9  ;;  %8243 = vmatpush3.msra.mxu0 %v12834_v10  ;;  %21227 = vst [vmem:[#allocation29_spill] sm:$0xff] %v12865_v51  ;;  %21229 = vst [vmem:[#allocation31_spill] sm:$0xff] %v12877_v58  ;;  %v12882_v59 = vld [vmem:[%s20553_s12 + $0x228] sm:$0xff] }
 0x3d7   : > { %8278 = vmatpush3.msra.mxu1 %v12841_v42  ;;  %8244 = vmatprep.subr.mxu0 %v12846_v44  ;;  %21230 = vst [vmem:[#allocation32_spill] sm:$0xff] %v12882_v59 }
 0x3d8   : > { %8279 = vmatprep.subr.mxu1 %v12853_v47  ;;  %8245 = vmatpush3.msra.mxu0 %v12858_v48 }
 0x3d9   : > { %8280 = vmatpush3.msra.mxu1 %v12865_v51  ;;  %8246 = vmatprep.subr.mxu0 %v12870_v52  ;;  %v12913_v51 = vld [vmem:[%s20553_s12 + $0x320] sm:$0xff]  ;;  %v12918_v52 = vld [vmem:[%s20553_s12 + $0x298] sm:$0xff] }
 0x3da   : > { %8281 = vmatprep.subr.mxu1 %v12877_v58  ;;  %8247 = vmatpush3.msra.mxu0 %v12882_v59  ;;  %21235 = vst [vmem:[#allocation37_spill] sm:$0xff] %v12913_v51  ;;  %21236 = vst [vmem:[#allocation38_spill] sm:$0xff] %v12918_v52  ;;  %v12925_v58 = vld [vmem:[%s20553_s12 + $0x398] sm:$0xff] }
 0x3db   : > { %8282 = vmatpush3.msra.mxu1 %v12889_v1  ;;  %8248 = vmatprep.subr.mxu0 %v12894_v36  ;;  %21237 = vst [vmem:[#allocation39_spill] sm:$0xff] %v12925_v58  ;;  %v12930_v59 = vld [vmem:[%s20553_s12 + $0x218] sm:$0xff]  ;;  %v12942_v36 = vld [vmem:[%s20553_s12 + $0x290] sm:$0xff] }
 0x3dc   : > { %21238 = vst [vmem:[#allocation40_spill] sm:$0xff] %v12930_v59  ;;  %8283 = vmatprep.subr.mxu1 %v12901_v23  ;;  %8249 = vmatpush3.msra.mxu0 %v12906_v21  ;;  %v12937_v1 = vld [vmem:[%s20553_s12 + $0x318] sm:$0xff]  ;;  %21240 = vst [vmem:[#allocation42_spill] sm:$0xff] %v12942_v36  ;;  %v12949_v23 = vld [vmem:[%s20553_s12 + $0x390] sm:$0xff] }
 0x3dd   : > { %21239 = vst [vmem:[#allocation41_spill] sm:$0xff] %v12937_v1  ;;  %8284 = vmatpush3.msra.mxu1 %v12913_v51  ;;  %8250 = vmatprep.subr.mxu0 %v12918_v52  ;;  %21241 = vst [vmem:[#allocation43_spill] sm:$0xff] %v12949_v23  ;;  %v12954_v21 = vld [vmem:[%s20553_s12 + $0x210] sm:$0xff]  ;;  %v12966_v52 = vld [vmem:[%s20553_s12 + $0x288] sm:$0xff] }
 0x3de   : > { %21242 = vst [vmem:[#allocation44_spill] sm:$0xff] %v12954_v21  ;;  %8285 = vmatprep.subr.mxu1 %v12925_v58  ;;  %8251 = vmatpush3.msra.mxu0 %v12930_v59  ;;  %v12961_v51 = vld [vmem:[%s20553_s12 + $0x310] sm:$0xff]  ;;  %21244 = vst [vmem:[#allocation46_spill] sm:$0xff] %v12966_v52  ;;  %v12973_v58 = vld [vmem:[%s20553_s12 + $0x388] sm:$0xff] }
 0x3df   : > { %21243 = vst [vmem:[#allocation45_spill] sm:$0xff] %v12961_v51  ;;  %8286 = vmatpush3.msra.mxu1 %v12937_v1  ;;  %8252 = vmatprep.subr.mxu0 %v12942_v36  ;;  %21245 = vst [vmem:[#allocation47_spill] sm:$0xff] %v12973_v58  ;;  %v12978_v59 = vld [vmem:[%s20553_s12 + $0x208] sm:$0xff]  ;;  %v12990_v36 = vld [vmem:[%s20553_s12 + $0x280] sm:$0xff] }
 0x3e0   : > { %21246 = vst [vmem:[#allocation48_spill] sm:$0xff] %v12978_v59  ;;  %v10394_v48 = vpop.eup %10393  ;;  %8287 = vmatprep.subr.mxu1 %v12949_v23  ;;  %8253 = vmatpush3.msra.mxu0 %v12954_v21  ;;  %v12985_v1 = vld [vmem:[%s20553_s12 + $0x308] sm:$0xff]  ;;  %v12997_v23 = vld [vmem:[%s20553_s12 + $0x380] sm:$0xff] }
 0x3e1   : > { %21247 = vst [vmem:[#allocation49_spill] sm:$0xff] %v12985_v1  ;;  %v10396_v47 = vpop.eup %10395  ;;  %8288 = vmatpush3.msra.mxu1 %v12961_v51  ;;  %8254 = vmatprep.subr.mxu0 %v12966_v52  ;;  %v13002_v21 = vld [vmem:[%s20553_s12 + $0x200] sm:$0xff] }
 0x3e2   : > { %v10398_v44 = vpop.eup %10397  ;;  %8289 = vmatprep.subr.mxu1 %v12973_v58  ;;  %8255 = vmatpush3.msra.mxu0 %v12978_v59  ;;  %v13009_v51 = vld [vmem:[%s20553_s12 + $0x300] sm:$0xff]  ;;  %v1220_v59 = vmul.f32 %v10394_v48, %v12615_v61  ;;  %v1222_v10 = vmul.f32 %v10396_v47, %v12151_v39  ;;  %v13056_v47 = vld [vmem:[%s20553_s12 + $0x458] sm:$0xff]  ;;  %v13062_v48 = vrot.slane %v21254_v24, %v12143_v35  ;;  %v13078_v35 = vld [vmem:[%s20553_s12 + $0x448] sm:$0xff] }
 0x3e3   : > { %v10400_v52 = vpop.eup %10399  ;;  %8290 = vmatpush3.msra.mxu1 %v12985_v1  ;;  %8256 = vmatprep.subr.mxu0 %v12990_v36  ;;  %v1221_v42 = vmul.f32 %v10398_v44, %v12145_v37  ;;  %v13023_v1 = vld [vmem:[%s20553_s12 + $0x478] sm:$0xff]  ;;  %v21249_v44 = vmov 0.0   ;;  %21253 = vst [vmem:[#allocation54_spill] sm:$0xff] %v13056_v47  ;;  %21257 = vst [vmem:[#allocation57_spill] sm:$0xff] %v13078_v35 }
 0x3e4   : > { %8291 = vmatprep.subr.mxu1 %v12997_v23  ;;  %8257 = vmatpush3.msra.mxu0 %v13002_v21  ;;  %v1223_v58 = vmul.f32 %v10400_v52, %v12618_v63  ;;  %21248 = vst [vmem:[#allocation50_spill] sm:$0xff] %v13023_v1  ;;  %v13029_v52 = vld [vmem:[%s20553_s12 + $0x470] sm:$0xff]  ;;  %21255 = vst [vmem:[#allocation55_spill] sm:$0xff] %v13062_v48 }
 0x3e5   : > { %1573 = vmatprep.mubr.f32.mxu0 %v1221_v42  ;;  %8292 = vmatpush3.msra.mxu1 %v13009_v51  ;;  %21250 = vst [vmem:[#allocation51_spill] sm:$0xff] %v13029_v52  ;;  %v13038_v42 = vld [vmem:[%s20553_s12 + $0x468] sm:$0xff] }
 0x3e6   : > { %1643 = vmatprep.mubr.f32.mxu1 %v1223_v58  ;;  %1574 = vmatmul.mubr.f32.vlgmr.msra.gmra.mxu0 %v1220_v59  ;;  %21251 = vst [vmem:[#allocation52_spill] sm:$0xff] %v13038_v42  ;;  %v13069_v58 = vld [vmem:[%s20553_s12 + $0x450] sm:$0xff] }
 0x3e7   : > { %1644 = vmatmul.mubr.f32.vlgmr.msra.gmra.mxu1 %v1222_v10  ;;  %9669 = vmatprep.subr.mxu0 %v21249_v44  ;;  %v13047_v10 = vld [vmem:[%s20553_s12 + $0x460] sm:$0xff]  ;;  %21256 = vst [vmem:[#allocation56_spill] sm:$0xff] %v13069_v58 }
 0x3e8   : > { %9670 = vmatpush3.msra.mxu0 %v13023_v1  ;;  %9701 = vmatprep.mubr.msk.f32.mxu0 %vm11611_vm6, %v21249_v44  ;;  %21252 = vst [vmem:[#allocation53_spill] sm:$0xff] %v13047_v10 }
 0x3e9   : > { %9671 = vmatprep.subr.mxu0 %v21249_v44  ;;  %9704 = vmatprep.subr.mxu1 %v21249_v44 }
 0x3ea   : > { %9672 = vmatpush3.msra.mxu0 %v13029_v52  ;;  %9705 = vmatpush3.msra.mxu1 %v21207_v20 }
 0x3eb   : > { %9673 = vmatprep.subr.mxu0 %v21249_v44  ;;  %9706 = vmatprep.subr.mxu1 %v21249_v44 }
 0x3ec   : > { %9674 = vmatpush3.msra.mxu0 %v13038_v42  ;;  %9707 = vmatpush3.msra.mxu1 %v21208_v19 }
 0x3ed   : > { %9675 = vmatprep.subr.mxu0 %v21249_v44  ;;  %9708 = vmatprep.subr.mxu1 %v21249_v44 }
 0x3ee   : > { %9676 = vmatpush3.msra.mxu0 %v13047_v10  ;;  %9709 = vmatpush3.msra.mxu1 %v21214_v18 }
 0x3ef   : > { %9677 = vmatprep.subr.mxu0 %v21249_v44  ;;  %9710 = vmatprep.subr.mxu1 %v21249_v44 }
 0x3f0   : > { %9678 = vmatpush3.msra.mxu0 %v13056_v47  ;;  %9711 = vmatpush3.msra.mxu1 %v21213_v17  ;;  %v13088_v17 = vld [vmem:[%s20553_s12 + $0x440] sm:$0xff] }
 0x3f1   : > { %v1203_v59 = vpop.f32.mrf.mxu1  ;;  %9679 = vmatprep.subr.mxu0 %v21249_v44  ;;  %9712 = vmatprep.subr.mxu1 %v21249_v44  ;;  %21258 = vst [vmem:[#allocation58_spill] sm:$0xff] %v13088_v17 }
 0x3f2   : > { %v1204_v24 = vadd.f32 %v1203_v59, %v13062_v48  ;;  %9680 = vmatpush3.msra.mxu0 %v13069_v58  ;;  %9713 = vmatpush3.msra.mxu1 %v21209_v16  ;;  %v13106_v59 = vld [vmem:[%s20553_s12 + $0x430] sm:$0xff] }
 0x3f3   : > { %v9668_v18 = vpop.f32.mrf.mxu1  ;;  %9681 = vmatprep.subr.mxu0 %v21249_v44  ;;  %9714 = vmatprep.subr.mxu1 %v21249_v44  ;;  %21260 = vst [vmem:[#allocation60_spill] sm:$0xff] %v13106_v59 }
 0x3f4   : > { %9682 = vmatpush3.msra.mxu0 %v13078_v35  ;;  %9715 = vmatpush3.msra.mxu1 %v21210_v15  ;;  %10401 = vtanh.f32 %v1204_v24  ;;  %v13097_v18 = vld [vmem:[%s20553_s12 + $0x438] sm:$0xff]  ;;  %v13115_v24 = vld [vmem:[%s20553_s12 + $0x428] sm:$0xff] }
 0x3f5   : > { %9683 = vmatprep.subr.mxu0 %v21249_v44  ;;  %21259 = vst [vmem:[#allocation59_spill] sm:$0xff] %v13097_v18  ;;  %9716 = vmatprep.subr.mxu1 %v21249_v44  ;;  %21261 = vst [vmem:[#allocation61_spill] sm:$0xff] %v13115_v24 }
 0x3f6   : > { %9684 = vmatpush3.msra.mxu0 %v13088_v17  ;;  %9717 = vmatpush3.msra.mxu1 %v21212_v14  ;;  %v13123_v14 = vld [vmem:[%s20548_s7 + $0x450] sm:$0xff]  ;;  %v13173_v17 = vld [vmem:[%s20548_s7 + $0x438] sm:$0xff] }
 0x3f7   : > { %9685 = vmatprep.subr.mxu0 %v21249_v44  ;;  %9718 = vmatprep.subr.mxu1 %v21249_v44  ;;  %21262 = vst [vmem:[#allocation62_spill] sm:$0xff] %v13123_v14  ;;  %21269 = vst [vmem:[#allocation69_spill] sm:$0xff] %v13173_v17 }
 0x3f8   : > { %9686 = vmatpush3.msra.mxu0 %v13097_v18  ;;  %9719 = vmatpush3.msra.mxu1 %v21211_v13  ;;  %v13130_v13 = vld [vmem:[%s20553_s12 + $0x420] sm:$0xff] }
 0x3f9   : > { %9687 = vmatprep.subr.mxu0 %v21249_v44  ;;  %9720 = vmatprep.mubr.msk.f32.mxu1 %vm11611_vm6, %v21249_v44  ;;  %21263 = vst [vmem:[#allocation63_spill] sm:$0xff] %v13130_v13 }
 0x3fa   : > { %9688 = vmatpush3.msra.mxu0 %v13106_v59  ;;  %1866 = vmatprep.subr.mxu1 %v13123_v14  ;;  %v13137_v59 = vld [vmem:[%s20553_s12 + $0x418] sm:$0xff]  ;;  %v13144_v14 = vld [vmem:[%s20553_s12 + $0x410] sm:$0xff] }
 0x3fb   : > { %9689 = vmatprep.subr.mxu0 %v21249_v44  ;;  %21264 = vst [vmem:[#allocation64_spill] sm:$0xff] %v13137_v59  ;;  %21265 = vst [vmem:[#allocation65_spill] sm:$0xff] %v13144_v14 }
 0x3fc   : > { %9690 = vmatpush3.msra.mxu0 %v13115_v24  ;;  %v13151_v24 = vld [vmem:[%s20553_s12 + $0x408] sm:$0xff] }
 0x3fd   : > { %9691 = vmatprep.subr.mxu0 %v21249_v44  ;;  %21266 = vst [vmem:[#allocation66_spill] sm:$0xff] %v13151_v24 }
 0x3fe   : > { %9692 = vmatpush3.msra.mxu0 %v13130_v13  ;;  %v13158_v13 = vld [vmem:[%s20553_s12 + $0x400] sm:$0xff] }
 0x3ff   : > { %9693 = vmatprep.subr.mxu0 %v21249_v44  ;;  %21267 = vst [vmem:[#allocation67_spill] sm:$0xff] %v13158_v13 }
 0x400   : > { %9694 = vmatpush3.msra.mxu0 %v13137_v59 }
 0x401   : > { %9695 = vmatprep.subr.mxu0 %v21249_v44  ;;  %v10402_v18 = vpop.eup %10401 }
 0x402   : > { %9696 = vmatpush3.msra.mxu0 %v13144_v14  ;;  %v1224_v59 = vmul.f32 %v10402_v18, %v12629_v5  ;;  %v13167_v14 = vld [vmem:[%s20548_s7 + $0x440] sm:$0xff]  ;;  %v13180_v18 = vld [vmem:[%s20548_s7 + $0x3f8] sm:$0xff] }
 0x403   : > { %9697 = vmatprep.subr.mxu0 %v21249_v44  ;;  %21268 = vst [vmem:[#allocation68_spill] sm:$0xff] %v13167_v14  ;;  %21270 = vst [vmem:[#allocation70_spill] sm:$0xff] %v13180_v18 }
 0x404   : > { %9698 = vmatpush3.msra.mxu0 %v13151_v24 }
 0x405   : > { %9699 = vmatprep.subr.mxu0 %v21249_v44 }
 0x406   : > { %9700 = vmatpush3.msra.mxu0 %v13158_v13 }
 0x407   : > { %9702 = vmatmul.mubr.f32.vlgmr.msra.gmra.mxu0 %v1224_v59  ;;  %1795 = vmatprep.subr.mxu0 %v13167_v14  ;;  %v13186_v59 = vld [vmem:[%s20548_s7 + $0x3f0] sm:$0xff]  ;;  %v13198_v14 = vld [vmem:[%s20548_s7 + $0x3a8] sm:$0xff] }
 0x408   : > { %1796 = vmatpush1.msra.mxu0 %v13173_v17  ;;  %1859 = vmatprep.mubr.f32.mxu0 %v21249_v44  ;;  %21271 = vst [vmem:[#allocation71_spill] sm:$0xff] %v13186_v59  ;;  %v13192_v17 = vld [vmem:[%s20548_s7 + $0x3b0] sm:$0xff]  ;;  %21273 = vst [vmem:[#allocation73_spill] sm:$0xff] %v13198_v14 }
 0x409   : > { %1797 = vmatprep.subr.mxu0 %v13180_v18  ;;  %21272 = vst [vmem:[#allocation72_spill] sm:$0xff] %v13192_v17  ;;  %v13204_v18 = vld [vmem:[%s20548_s7 + $0x368] sm:$0xff] }
 0x40a   : > { %1798 = vmatpush1.msra.mxu0 %v13186_v59  ;;  %21274 = vst [vmem:[#allocation74_spill] sm:$0xff] %v13204_v18  ;;  %v13210_v59 = vld [vmem:[%s20548_s7 + $0x360] sm:$0xff] }
 0x40b   : > { %1799 = vmatprep.subr.mxu0 %v13192_v17  ;;  %21275 = vst [vmem:[#allocation75_spill] sm:$0xff] %v13210_v59  ;;  %v13216_v17 = vld [vmem:[%s20548_s7 + $0x320] sm:$0xff] }
 0x40c   : > { %1800 = vmatpush1.msra.mxu0 %v13198_v14  ;;  %21276 = vst [vmem:[#allocation76_spill] sm:$0xff] %v13216_v17  ;;  %v13222_v14 = vld [vmem:[%s20548_s7 + $0x318] sm:$0xff] }
 0x40d   : > { %1801 = vmatprep.subr.mxu0 %v13204_v18  ;;  %21277 = vst [vmem:[#allocation77_spill] sm:$0xff] %v13222_v14  ;;  %v13228_v18 = vld [vmem:[%s20548_s7 + $0x2d8] sm:$0xff] }
 0x40e   : > { %1802 = vmatpush1.msra.mxu0 %v13210_v59  ;;  %21278 = vst [vmem:[#allocation78_spill] sm:$0xff] %v13228_v18  ;;  %v13234_v59 = vld [vmem:[%s20548_s7 + $0x2d0] sm:$0xff] }
 0x40f   : > { %1803 = vmatprep.subr.mxu0 %v13216_v17  ;;  %21279 = vst [vmem:[#allocation79_spill] sm:$0xff] %v13234_v59  ;;  %v13240_v17 = vld [vmem:[%s20548_s7 + $0x290] sm:$0xff] }
 0x410   : > { %1804 = vmatpush1.msra.mxu0 %v13222_v14  ;;  %21280 = vst [vmem:[#allocation80_spill] sm:$0xff] %v13240_v17  ;;  %v13246_v14 = vld [vmem:[%s20548_s7 + $0x288] sm:$0xff] }
 0x411   : > { %1805 = vmatprep.subr.mxu0 %v13228_v18  ;;  %21281 = vst [vmem:[#allocation81_spill] sm:$0xff] %v13246_v14  ;;  %v13252_v18 = vld [vmem:[%s20548_s7 + $0x248] sm:$0xff] }
 0x412   : > { %1806 = vmatpush1.msra.mxu0 %v13234_v59  ;;  %21282 = vst [vmem:[#allocation82_spill] sm:$0xff] %v13252_v18  ;;  %v13258_v59 = vld [vmem:[%s20548_s7 + $0x240] sm:$0xff] }
 0x413   : > { %1807 = vmatprep.subr.mxu0 %v13240_v17  ;;  %21283 = vst [vmem:[#allocation83_spill] sm:$0xff] %v13258_v59  ;;  %v13264_v17 = vld [vmem:[%s20548_s7 + $0x200] sm:$0xff] }
 0x414   : > { %1808 = vmatpush1.msra.mxu0 %v13246_v14  ;;  %21284 = vst [vmem:[#allocation84_spill] sm:$0xff] %v13264_v17  ;;  %v13270_v14 = vld [vmem:[%s20548_s7 + $0x1f8] sm:$0xff] }
 0x415   : > { %1809 = vmatprep.subr.mxu0 %v13252_v18  ;;  %21285 = vst [vmem:[#allocation85_spill] sm:$0xff] %v13270_v14  ;;  %v13276_v18 = vld [vmem:[%s20548_s7 + $0x1b8] sm:$0xff] }
 0x416   : > { %1810 = vmatpush1.msra.mxu0 %v13258_v59  ;;  %21286 = vst [vmem:[#allocation86_spill] sm:$0xff] %v13276_v18  ;;  %v13282_v59 = vld [vmem:[%s20548_s7 + $0x1b0] sm:$0xff] }
 0x417   : > { %1811 = vmatprep.subr.mxu0 %v13264_v17  ;;  %21287 = vst [vmem:[#allocation87_spill] sm:$0xff] %v13282_v59  ;;  %v13288_v17 = vld [vmem:[%s20548_s7 + $0x170] sm:$0xff] }
 0x418   : > { %1812 = vmatpush1.msra.mxu0 %v13270_v14  ;;  %21288 = vst [vmem:[#allocation88_spill] sm:$0xff] %v13288_v17  ;;  %v13294_v14 = vld [vmem:[%s20548_s7 + $0x168] sm:$0xff] }
 0x419   : > { %1813 = vmatprep.subr.mxu0 %v13276_v18  ;;  %21289 = vst [vmem:[#allocation89_spill] sm:$0xff] %v13294_v14  ;;  %v13300_v18 = vld [vmem:[%s20548_s7 + $0x128] sm:$0xff] }
 0x41a   : > { %1814 = vmatpush1.msra.mxu0 %v13282_v59  ;;  %21290 = vst [vmem:[#allocation90_spill] sm:$0xff] %v13300_v18  ;;  %v13306_v59 = vld [vmem:[%s20548_s7 + $0x120] sm:$0xff] }
 0x41b   : > { %1815 = vmatprep.subr.mxu0 %v13288_v17  ;;  %21291 = vst [vmem:[#allocation91_spill] sm:$0xff] %v13306_v59  ;;  %v13312_v17 = vld [vmem:[%s20548_s7 + $0xe0] sm:$0xff] }
 0x41c   : > { %1816 = vmatpush1.msra.mxu0 %v13294_v14  ;;  %21292 = vst [vmem:[#allocation92_spill] sm:$0xff] %v13312_v17  ;;  %v13318_v14 = vld [vmem:[%s20548_s7 + $0xd8] sm:$0xff] }
 0x41d   : > { %1817 = vmatprep.subr.mxu0 %v13300_v18  ;;  %21293 = vst [vmem:[#allocation93_spill] sm:$0xff] %v13318_v14  ;;  %v13324_v18 = vld [vmem:[%s20548_s7 + $0x98] sm:$0xff] }
 0x41e   : > { %1818 = vmatpush1.msra.mxu0 %v13306_v59  ;;  %21294 = vst [vmem:[#allocation94_spill] sm:$0xff] %v13324_v18  ;;  %v13330_v59 = vld [vmem:[%s20548_s7 + $0x90] sm:$0xff] }
 0x41f   : > { %1819 = vmatprep.subr.mxu0 %v13312_v17  ;;  %21295 = vst [vmem:[#allocation95_spill] sm:$0xff] %v13330_v59  ;;  %v13336_v17 = vld [vmem:[%s20548_s7 + $0x50] sm:$0xff] }
 0x420   : > { %1820 = vmatpush1.msra.mxu0 %v13318_v14  ;;  %21296 = vst [vmem:[#allocation96_spill] sm:$0xff] %v13336_v17  ;;  %v13342_v14 = vld [vmem:[%s20548_s7 + $0x48] sm:$0xff] }
 0x421   : > { %1821 = vmatprep.subr.mxu0 %v13324_v18  ;;  %21297 = vst [vmem:[#allocation97_spill] sm:$0xff] %v13342_v14  ;;  %v13348_v18 = vld [vmem:[%s20548_s7 + $0x8] sm:$0xff] }
 0x422   : > { %1822 = vmatpush1.msra.mxu0 %v13330_v59  ;;  %21298 = vst [vmem:[#allocation98_spill] sm:$0xff] %v13348_v18  ;;  %v13354_v59 = vld [vmem:[%s20548_s7] sm:$0xff] }
 0x423   : > { %1823 = vmatprep.subr.mxu0 %v13336_v17  ;;  %21299 = vst [vmem:[#allocation99_spill] sm:$0xff] %v13354_v59  ;;  %v13360_v17 = vld [vmem:[%s20548_s7 + $0x460] sm:$0xff] }
 0x424   : > { %1824 = vmatpush1.msra.mxu0 %v13342_v14  ;;  %21300 = vst [vmem:[#allocation100_spill] sm:$0xff] %v13360_v17 }
 0x425   : > { %1825 = vmatprep.subr.mxu0 %v13348_v18 }
 0x426   : > { %1826 = vmatpush1.msra.mxu0 %v13354_v59 }
 0x427   : > { %1937 = vmatprep.subr.mxu0 %v13360_v17 }
 0x485   : > { %v8188_v14 = vpop.f32.mrf.mxu0 }
 0x486   : > { %v8223_v13 = vpop.f32.mrf.mxu1 }
 0x487   : > { %v8189_v5 = vpop.f32.mrf.mxu0 }
 0x488   : > { %v8224_v15 = vpop.f32.mrf.mxu1  ;;  %v8190_v35 = vadd.f32 %v8189_v5, %v8188_v14  ;;  %v13378_v14 = vld [vmem:[%s20548_s7 + $0x408] sm:$0xff] }
 0x489   : > { %v8225_v16 = vadd.f32 %v8224_v15, %v8223_v13  ;;  %v13371_v13 = vld [vmem:[%s20548_s7 + $0x448] sm:$0xff]  ;;  %v13390_v15 = vld [vmem:[%s20548_s7 + $0x3c0] sm:$0xff] }
 0x48a   : > { %v13426_v5 = vld [vmem:[%s20548_s7 + $0x2e8] sm:$0xff] }
 0x48b   : > { %v1506_v47 = vadd.f32 %v8225_v16, %v8190_v35  ;;  %v13396_v16 = vld [vmem:[%s20548_s7 + $0x3b8] sm:$0xff]  ;;  %21303 = vst [vmem:[#allocation103_spill] sm:$0xff] %v13426_v5  ;;  %v13462_v35 = vld [vmem:[%s20548_s7 + $0x210] sm:$0xff] }
 0x48c   : > { %21309 = vst [vmem:[#allocation109_spill] sm:$0xff] %v13462_v35 }
 0x4a6   : > { %v8258_v24 = vpop.f32.mrf.mxu0 }
 0x4a7   : > { %v8293_v58 = vpop.f32.mrf.mxu1 }
 0x4a8   : > { %v8259_v18 = vpop.f32.mrf.mxu0 }
 0x4a9   : > { %v8260_v48 = vadd.f32 %v8259_v18, %v8258_v24  ;;  %v8294_v10 = vpop.f32.mrf.mxu1  ;;  %v13468_v24 = vld [vmem:[%s20548_s7 + $0x208] sm:$0xff] }
 0x4aa   : > { %v8295_v19 = vadd.f32 %v8294_v10, %v8293_v58  ;;  %v13438_v10 = vld [vmem:[%s20548_s7 + $0x2a0] sm:$0xff]  ;;  %v13456_v58 = vld [vmem:[%s20548_s7 + $0x250] sm:$0xff]  ;;  %21310 = vst [vmem:[#allocation110_spill] sm:$0xff] %v13468_v24  ;;  %v13474_v18 = vld [vmem:[%s20548_s7 + $0x1c8] sm:$0xff] }
 0x4ab   : > { %v1576_v59 = vadd.f32 %v8260_v48, %v1506_v47  ;;  %21305 = vst [vmem:[#allocation105_spill] sm:$0xff] %v13438_v10  ;;  %v13444_v47 = vld [vmem:[%s20548_s7 + $0x298] sm:$0xff]  ;;  %21308 = vst [vmem:[#allocation108_spill] sm:$0xff] %v13456_v58 }
 0x4ac   : > { %21306 = vst [vmem:[#allocation106_spill] sm:$0xff] %v13444_v47  ;;  %v13450_v48 = vld [vmem:[%s20548_s7 + $0x258] sm:$0xff]  ;;  %21311 = vst [vmem:[#allocation111_spill] sm:$0xff] %v13474_v18 }
 0x4ad   : > { %v1646_v42 = vadd.f32 %v8295_v19, %v1576_v59  ;;  %v13408_v19 = vld [vmem:[%s20548_s7 + $0x370] sm:$0xff]  ;;  %21307 = vst [vmem:[#allocation107_spill] sm:$0xff] %v13450_v48  ;;  %v13480_v59 = vld [vmem:[%s20548_s7 + $0x1c0] sm:$0xff] }
 0x4ae   : > { %21312 = vst [vmem:[#allocation112_spill] sm:$0xff] %v13480_v59 }
 0x4c7   : > { %v1715_v20 = vpop.f32.mrf.mxu0 }
 0x4c8   : > { %v13363_v52 = vadd.f32 %v1715_v20, %v1646_v42  ;;  %v13414_v20 = vld [vmem:[%s20548_s7 + $0x330] sm:$0xff]  ;;  %v13432_v42 = vld [vmem:[%s20548_s7 + $0x2e0] sm:$0xff] }
 0x4c9   : > { %v9703_v1 = vpop.f32.mrf.mxu0  ;;  %21304 = vst [vmem:[#allocation104_spill] sm:$0xff] %v13432_v42 }
 0x4ca   : > { %21301 = vst [vmem:[#allocation101_spill] sm:$0xff] %v13363_v52  ;;  %v1719_v17 = vmul.f32 0.5, %v13363_v52  ;;  %v13384_v1 = vld [vmem:[%s20548_s7 + $0x400] sm:$0xff] }
 0x4cb   : > { %v13486_v52 = vld [vmem:[%s20548_s7 + $0x180] sm:$0xff] }
 0x4cc   : > { %v1720_v39 = vadd.f32 %v21216_v31, %v1719_v17  ;;  %v13402_v17 = vld [vmem:[%s20548_s7 + $0x378] sm:$0xff]  ;;  %21313 = vst [vmem:[#allocation113_spill] sm:$0xff] %v13486_v52 }
 0x4ce   : > { %9721 = vmatmul.mubr.msk.f32.vlgmr.msra.gmra.mxu1 %vm587_vm7, %v1720_v39  ;;  %v13420_v39 = vld [vmem:[%s20548_s7 + $0x328] sm:$0xff] }
 0x4cf   : > { %1867 = vmatpush1.msra.mxu1 %v13371_v13  ;;  %1930 = vmatprep.mubr.f32.mxu1 %v21249_v44  ;;  %21302 = vst [vmem:[#allocation102_spill] sm:$0xff] %v13420_v39 }
 0x4d0   : > { %1868 = vmatprep.subr.mxu1 %v13378_v14 }
 0x4d1   : > { %1869 = vmatpush1.msra.mxu1 %v13384_v1 }
 0x4d2   : > { %1870 = vmatprep.subr.mxu1 %v13390_v15 }
 0x4d3   : > { %1871 = vmatpush1.msra.mxu1 %v13396_v16 }
 0x4d4   : > { %1872 = vmatprep.subr.mxu1 %v13402_v17 }
 0x4d5   : > { %1873 = vmatpush1.msra.mxu1 %v13408_v19 }
 0x4d6   : > { %1874 = vmatprep.subr.mxu1 %v13414_v20 }
 0x4d7   : > { %1875 = vmatpush1.msra.mxu1 %v13420_v39 }
 0x4d8   : > { %1876 = vmatprep.subr.mxu1 %v13426_v5 }
 0x4d9   : > { %1877 = vmatpush1.msra.mxu1 %v13432_v42 }
 0x4da   : > { %1878 = vmatprep.subr.mxu1 %v13438_v10 }
 0x4db   : > { %1879 = vmatpush1.msra.mxu1 %v13444_v47 }
 0x4dc   : > { %1880 = vmatprep.subr.mxu1 %v13450_v48 }
 0x4dd   : > { %1881 = vmatpush1.msra.mxu1 %v13456_v58 }
 0x4de   : > { %1882 = vmatprep.subr.mxu1 %v13462_v35 }
 0x4df   : > { %1883 = vmatpush1.msra.mxu1 %v13468_v24  ;;  %v13492_v24 = vld [vmem:[%s20548_s7 + $0x178] sm:$0xff] }
 0x4e0   : > { %1884 = vmatprep.subr.mxu1 %v13474_v18  ;;  %21314 = vst [vmem:[#allocation114_spill] sm:$0xff] %v13492_v24  ;;  %v13498_v18 = vld [vmem:[%s20548_s7 + $0x138] sm:$0xff] }
 0x4e1   : > { %1885 = vmatpush1.msra.mxu1 %v13480_v59  ;;  %21315 = vst [vmem:[#allocation115_spill] sm:$0xff] %v13498_v18  ;;  %v13504_v59 = vld [vmem:[%s20548_s7 + $0x130] sm:$0xff] }
 0x4e2   : > { %1886 = vmatprep.subr.mxu1 %v13486_v52  ;;  %21316 = vst [vmem:[#allocation116_spill] sm:$0xff] %v13504_v59  ;;  %v13510_v52 = vld [vmem:[%s20548_s7 + $0xf0] sm:$0xff] }
 0x4e3   : > { %1887 = vmatpush1.msra.mxu1 %v13492_v24  ;;  %21317 = vst [vmem:[#allocation117_spill] sm:$0xff] %v13510_v52  ;;  %v13516_v24 = vld [vmem:[%s20548_s7 + $0xe8] sm:$0xff] }
 0x4e4   : > { %1888 = vmatprep.subr.mxu1 %v13498_v18  ;;  %21318 = vst [vmem:[#allocation118_spill] sm:$0xff] %v13516_v24  ;;  %v13522_v18 = vld [vmem:[%s20548_s7 + $0xa8] sm:$0xff] }
 0x4e5   : > { %1889 = vmatpush1.msra.mxu1 %v13504_v59  ;;  %21319 = vst [vmem:[#allocation119_spill] sm:$0xff] %v13522_v18  ;;  %v13528_v59 = vld [vmem:[%s20548_s7 + $0xa0] sm:$0xff] }
 0x4e6   : > { %1890 = vmatprep.subr.mxu1 %v13510_v52  ;;  %21320 = vst [vmem:[#allocation120_spill] sm:$0xff] %v13528_v59  ;;  %v13534_v52 = vld [vmem:[%s20548_s7 + $0x60] sm:$0xff] }
 0x4e7   : > { %1891 = vmatpush1.msra.mxu1 %v13516_v24  ;;  %21321 = vst [vmem:[#allocation121_spill] sm:$0xff] %v13534_v52  ;;  %v13540_v24 = vld [vmem:[%s20548_s7 + $0x58] sm:$0xff] }
 0x4e8   : > { %1892 = vmatprep.subr.mxu1 %v13522_v18  ;;  %21322 = vst [vmem:[#allocation122_spill] sm:$0xff] %v13540_v24  ;;  %v13546_v18 = vld [vmem:[%s20548_s7 + $0x18] sm:$0xff] }
 0x4e9   : > { %1893 = vmatpush1.msra.mxu1 %v13528_v59  ;;  %21323 = vst [vmem:[#allocation123_spill] sm:$0xff] %v13546_v18  ;;  %v13552_v59 = vld [vmem:[%s20548_s7 + $0x10] sm:$0xff] }
 0x4ea   : > { %1894 = vmatprep.subr.mxu1 %v13534_v52  ;;  %21324 = vst [vmem:[#allocation124_spill] sm:$0xff] %v13552_v59  ;;  %v13558_v52 = vld [vmem:[%s20548_s7 + $0x470] sm:$0xff] }
 0x4eb   : > { %1895 = vmatpush1.msra.mxu1 %v13540_v24  ;;  %21325 = vst [vmem:[#allocation125_spill] sm:$0xff] %v13558_v52 }
 0x4ec   : > { %1896 = vmatprep.subr.mxu1 %v13546_v18 }
 0x4ed   : > { %1897 = vmatpush1.msra.mxu1 %v13552_v59  ;;  %v13569_v59 = vld [vmem:[%s20548_s7 + $0x458] sm:$0xff] }
 0x4ee   : > { %2008 = vmatprep.subr.mxu1 %v13558_v52  ;;  %21326 = vst [vmem:[#allocation126_spill] sm:$0xff] %v13569_v59  ;;  %v13575_v52 = vld [vmem:[%s20548_s7 + $0x468] sm:$0xff] }
 0x4ef   : > { %21327 = vst [vmem:[#allocation127_spill] sm:$0xff] %v13575_v52 }
 0x58e   : > { %v1790_v24 = vpop.f32.mrf.mxu1 }
 0x58f   : > { %v1791_v35 = vadd.f32 %v1790_v24, %v12149_v38  ;;  %v13593_v24 = vld [vmem:[%s20548_s7 + $0x410] sm:$0xff] }
 0x590   : > { %v9722_v58 = vpop.f32.mrf.mxu1  ;;  %21330 = vst [vmem:[#allocation130_spill] sm:$0xff] %v13593_v24 }
 0x591   : > { %v13562_v48 = vmax.f32 %v1791_v35, 0.0  ;;  %v13581_v58 = vld [vmem:[%s20548_s7 + $0x418] sm:$0xff]  ;;  %v13587_v35 = vld [vmem:[%s20548_s7 + $0x428] sm:$0xff] }
 0x592   : > { %21328 = vst [vmem:[#allocation128_spill] sm:$0xff] %v13581_v58  ;;  %21329 = vst [vmem:[#allocation129_spill] sm:$0xff] %v13587_v35 }
 0x593   : > { %1860 = vmatmul.mubr.f32.vlgmr.msra.gmra.mxu0 %v13562_v48  ;;  %1931 = vmatmul.mubr.f32.vlgmr.msra.gmra.mxu1 %v13562_v48 }
 0x594   : > { %1938 = vmatpush1.msra.mxu0 %v13569_v59  ;;  %2009 = vmatpush1.msra.mxu1 %v13575_v52  ;;  %v13599_v52 = vld [vmem:[%s20548_s7 + $0x420] sm:$0xff] }
 0x595   : > { %1939 = vmatprep.subr.mxu0 %v13581_v58  ;;  %2010 = vmatprep.subr.mxu1 %v13587_v35  ;;  %21331 = vst [vmem:[#allocation131_spill] sm:$0xff] %v13599_v52  ;;  %v13605_v58 = vld [vmem:[%s20548_s7 + $0x3d0] sm:$0xff]  ;;  %v13611_v35 = vld [vmem:[%s20548_s7 + $0x3e0] sm:$0xff] }
 0x596   : > { %1940 = vmatpush1.msra.mxu0 %v13593_v24  ;;  %2011 = vmatpush1.msra.mxu1 %v13599_v52  ;;  %21332 = vst [vmem:[#allocation132_spill] sm:$0xff] %v13605_v58  ;;  %21333 = vst [vmem:[#allocation133_spill] sm:$0xff] %v13611_v35  ;;  %v13617_v24 = vld [vmem:[%s20548_s7 + $0x3c8] sm:$0xff]  ;;  %v13623_v52 = vld [vmem:[%s20548_s7 + $0x3d8] sm:$0xff] }
 0x597   : > { %1941 = vmatprep.subr.mxu0 %v13605_v58  ;;  %2012 = vmatprep.subr.mxu1 %v13611_v35  ;;  %21334 = vst [vmem:[#allocation134_spill] sm:$0xff] %v13617_v24  ;;  %21335 = vst [vmem:[#allocation135_spill] sm:$0xff] %v13623_v52  ;;  %v13629_v58 = vld [vmem:[%s20548_s7 + $0x388] sm:$0xff]  ;;  %v13635_v35 = vld [vmem:[%s20548_s7 + $0x398] sm:$0xff] }
 0x598   : > { %1942 = vmatpush1.msra.mxu0 %v13617_v24  ;;  %2013 = vmatpush1.msra.mxu1 %v13623_v52  ;;  %21336 = vst [vmem:[#allocation136_spill] sm:$0xff] %v13629_v58  ;;  %21337 = vst [vmem:[#allocation137_spill] sm:$0xff] %v13635_v35  ;;  %v13641_v24 = vld [vmem:[%s20548_s7 + $0x380] sm:$0xff]  ;;  %v13647_v52 = vld [vmem:[%s20548_s7 + $0x390] sm:$0xff] }
 0x599   : > { %1943 = vmatprep.subr.mxu0 %v13629_v58  ;;  %2014 = vmatprep.subr.mxu1 %v13635_v35  ;;  %21338 = vst [vmem:[#allocation138_spill] sm:$0xff] %v13641_v24  ;;  %21339 = vst [vmem:[#allocation139_spill] sm:$0xff] %v13647_v52  ;;  %v13653_v58 = vld [vmem:[%s20548_s7 + $0x340] sm:$0xff]  ;;  %v13659_v35 = vld [vmem:[%s20548_s7 + $0x350] sm:$0xff] }
 0x59a   : > { %1944 = vmatpush1.msra.mxu0 %v13641_v24  ;;  %2015 = vmatpush1.msra.mxu1 %v13647_v52  ;;  %21340 = vst [vmem:[#allocation140_spill] sm:$0xff] %v13653_v58  ;;  %21341 = vst [vmem:[#allocation141_spill] sm:$0xff] %v13659_v35  ;;  %v13665_v24 = vld [vmem:[%s20548_s7 + $0x338] sm:$0xff]  ;;  %v13671_v52 = vld [vmem:[%s20548_s7 + $0x348] sm:$0xff] }
 0x59b   : > { %1945 = vmatprep.subr.mxu0 %v13653_v58  ;;  %2016 = vmatprep.subr.mxu1 %v13659_v35  ;;  %21342 = vst [vmem:[#allocation142_spill] sm:$0xff] %v13665_v24  ;;  %21343 = vst [vmem:[#allocation143_spill] sm:$0xff] %v13671_v52  ;;  %v13677_v58 = vld [vmem:[%s20548_s7 + $0x2f8] sm:$0xff]  ;;  %v13683_v35 = vld [vmem:[%s20548_s7 + $0x308] sm:$0xff] }
 0x59c   : > { %1946 = vmatpush1.msra.mxu0 %v13665_v24  ;;  %2017 = vmatpush1.msra.mxu1 %v13671_v52  ;;  %21344 = vst [vmem:[#allocation144_spill] sm:$0xff] %v13677_v58  ;;  %21345 = vst [vmem:[#allocation145_spill] sm:$0xff] %v13683_v35  ;;  %v13689_v24 = vld [vmem:[%s20548_s7 + $0x2f0] sm:$0xff]  ;;  %v13695_v52 = vld [vmem:[%s20548_s7 + $0x300] sm:$0xff] }
 0x59d   : > { %1947 = vmatprep.subr.mxu0 %v13677_v58  ;;  %2018 = vmatprep.subr.mxu1 %v13683_v35  ;;  %21346 = vst [vmem:[#allocation146_spill] sm:$0xff] %v13689_v24  ;;  %21347 = vst [vmem:[#allocation147_spill] sm:$0xff] %v13695_v52  ;;  %v13701_v58 = vld [vmem:[%s20548_s7 + $0x2b0] sm:$0xff]  ;;  %v13707_v35 = vld [vmem:[%s20548_s7 + $0x2c0] sm:$0xff] }
 0x59e   : > { %1948 = vmatpush1.msra.mxu0 %v13689_v24  ;;  %2019 = vmatpush1.msra.mxu1 %v13695_v52  ;;  %21348 = vst [vmem:[#allocation148_spill] sm:$0xff] %v13701_v58  ;;  %21349 = vst [vmem:[#allocation149_spill] sm:$0xff] %v13707_v35  ;;  %v13713_v24 = vld [vmem:[%s20548_s7 + $0x2a8] sm:$0xff]  ;;  %v13719_v52 = vld [vmem:[%s20548_s7 + $0x2b8] sm:$0xff] }
 0x59f   : > { %1949 = vmatprep.subr.mxu0 %v13701_v58  ;;  %2020 = vmatprep.subr.mxu1 %v13707_v35  ;;  %21350 = vst [vmem:[#allocation150_spill] sm:$0xff] %v13713_v24  ;;  %21351 = vst [vmem:[#allocation151_spill] sm:$0xff] %v13719_v52  ;;  %v13725_v58 = vld [vmem:[%s20548_s7 + $0x268] sm:$0xff]  ;;  %v13731_v35 = vld [vmem:[%s20548_s7 + $0x278] sm:$0xff] }
 0x5a0   : > { %1950 = vmatpush1.msra.mxu0 %v13713_v24  ;;  %2021 = vmatpush1.msra.mxu1 %v13719_v52  ;;  %21352 = vst [vmem:[#allocation152_spill] sm:$0xff] %v13725_v58  ;;  %21353 = vst [vmem:[#allocation153_spill] sm:$0xff] %v13731_v35  ;;  %v13737_v24 = vld [vmem:[%s20548_s7 + $0x260] sm:$0xff]  ;;  %v13743_v52 = vld [vmem:[%s20548_s7 + $0x270] sm:$0xff] }
 0x5a1   : > { %1951 = vmatprep.subr.mxu0 %v13725_v58  ;;  %2022 = vmatprep.subr.mxu1 %v13731_v35  ;;  %21354 = vst [vmem:[#allocation154_spill] sm:$0xff] %v13737_v24  ;;  %21355 = vst [vmem:[#allocation155_spill] sm:$0xff] %v13743_v52  ;;  %v13749_v58 = vld [vmem:[%s20548_s7 + $0x220] sm:$0xff]  ;;  %v13755_v35 = vld [vmem:[%s20548_s7 + $0x230] sm:$0xff] }
 0x5a2   : > { %1952 = vmatpush1.msra.mxu0 %v13737_v24  ;;  %2023 = vmatpush1.msra.mxu1 %v13743_v52  ;;  %21356 = vst [vmem:[#allocation156_spill] sm:$0xff] %v13749_v58  ;;  %21357 = vst [vmem:[#allocation157_spill] sm:$0xff] %v13755_v35  ;;  %v13761_v24 = vld [vmem:[%s20548_s7 + $0x218] sm:$0xff]  ;;  %v13767_v52 = vld [vmem:[%s20548_s7 + $0x228] sm:$0xff] }
 0x5a3   : > { %1953 = vmatprep.subr.mxu0 %v13749_v58  ;;  %2024 = vmatprep.subr.mxu1 %v13755_v35  ;;  %21358 = vst [vmem:[#allocation158_spill] sm:$0xff] %v13761_v24  ;;  %21359 = vst [vmem:[#allocation159_spill] sm:$0xff] %v13767_v52  ;;  %v13773_v58 = vld [vmem:[%s20548_s7 + $0x1d8] sm:$0xff]  ;;  %v13779_v35 = vld [vmem:[%s20548_s7 + $0x1e8] sm:$0xff] }
 0x5a4   : > { %1954 = vmatpush1.msra.mxu0 %v13761_v24  ;;  %2025 = vmatpush1.msra.mxu1 %v13767_v52  ;;  %21360 = vst [vmem:[#allocation160_spill] sm:$0xff] %v13773_v58  ;;  %21361 = vst [vmem:[#allocation161_spill] sm:$0xff] %v13779_v35  ;;  %v13785_v24 = vld [vmem:[%s20548_s7 + $0x1d0] sm:$0xff]  ;;  %v13791_v52 = vld [vmem:[%s20548_s7 + $0x1e0] sm:$0xff] }
 0x5a5   : > { %1955 = vmatprep.subr.mxu0 %v13773_v58  ;;  %2026 = vmatprep.subr.mxu1 %v13779_v35  ;;  %21362 = vst [vmem:[#allocation162_spill] sm:$0xff] %v13785_v24  ;;  %21363 = vst [vmem:[#allocation163_spill] sm:$0xff] %v13791_v52  ;;  %v13797_v58 = vld [vmem:[%s20548_s7 + $0x190] sm:$0xff]  ;;  %v13803_v35 = vld [vmem:[%s20548_s7 + $0x1a0] sm:$0xff] }
 0x5a6   : > { %1956 = vmatpush1.msra.mxu0 %v13785_v24  ;;  %2027 = vmatpush1.msra.mxu1 %v13791_v52  ;;  %21364 = vst [vmem:[#allocation164_spill] sm:$0xff] %v13797_v58  ;;  %21365 = vst [vmem:[#allocation165_spill] sm:$0xff] %v13803_v35  ;;  %v13809_v24 = vld [vmem:[%s20548_s7 + $0x188] sm:$0xff]  ;;  %v13815_v52 = vld [vmem:[%s20548_s7 + $0x198] sm:$0xff] }
 0x5a7   : > { %1957 = vmatprep.subr.mxu0 %v13797_v58  ;;  %2028 = vmatprep.subr.mxu1 %v13803_v35  ;;  %21366 = vst [vmem:[#allocation166_spill] sm:$0xff] %v13809_v24  ;;  %21367 = vst [vmem:[#allocation167_spill] sm:$0xff] %v13815_v52  ;;  %v13821_v58 = vld [vmem:[%s20548_s7 + $0x148] sm:$0xff]  ;;  %v13827_v35 = vld [vmem:[%s20548_s7 + $0x158] sm:$0xff] }
 0x5a8   : > { %1958 = vmatpush1.msra.mxu0 %v13809_v24  ;;  %2029 = vmatpush1.msra.mxu1 %v13815_v52  ;;  %21368 = vst [vmem:[#allocation168_spill] sm:$0xff] %v13821_v58  ;;  %21369 = vst [vmem:[#allocation169_spill] sm:$0xff] %v13827_v35  ;;  %v13833_v24 = vld [vmem:[%s20548_s7 + $0x140] sm:$0xff]  ;;  %v13839_v52 = vld [vmem:[%s20548_s7 + $0x150] sm:$0xff] }
 0x5a9   : > { %1959 = vmatprep.subr.mxu0 %v13821_v58  ;;  %2030 = vmatprep.subr.mxu1 %v13827_v35  ;;  %21370 = vst [vmem:[#allocation170_spill] sm:$0xff] %v13833_v24  ;;  %21371 = vst [vmem:[#allocation171_spill] sm:$0xff] %v13839_v52  ;;  %v13845_v58 = vld [vmem:[%s20548_s7 + $0x100] sm:$0xff]  ;;  %v13851_v35 = vld [vmem:[%s20548_s7 + $0x110] sm:$0xff] }
 0x5aa   : > { %1960 = vmatpush1.msra.mxu0 %v13833_v24  ;;  %2031 = vmatpush1.msra.mxu1 %v13839_v52  ;;  %21372 = vst [vmem:[#allocation172_spill] sm:$0xff] %v13845_v58  ;;  %21373 = vst [vmem:[#allocation173_spill] sm:$0xff] %v13851_v35  ;;  %v13857_v24 = vld [vmem:[%s20548_s7 + $0xf8] sm:$0xff]  ;;  %v13863_v52 = vld [vmem:[%s20548_s7 + $0x108] sm:$0xff] }
 0x5ab   : > { %1961 = vmatprep.subr.mxu0 %v13845_v58  ;;  %2032 = vmatprep.subr.mxu1 %v13851_v35  ;;  %21374 = vst [vmem:[#allocation174_spill] sm:$0xff] %v13857_v24  ;;  %21375 = vst [vmem:[#allocation175_spill] sm:$0xff] %v13863_v52  ;;  %v13869_v58 = vld [vmem:[%s20548_s7 + $0xb8] sm:$0xff]  ;;  %v13875_v35 = vld [vmem:[%s20548_s7 + $0xc8] sm:$0xff] }
 0x5ac   : > { %1962 = vmatpush1.msra.mxu0 %v13857_v24  ;;  %2033 = vmatpush1.msra.mxu1 %v13863_v52  ;;  %21376 = vst [vmem:[#allocation176_spill] sm:$0xff] %v13869_v58  ;;  %21377 = vst [vmem:[#allocation177_spill] sm:$0xff] %v13875_v35  ;;  %v13881_v24 = vld [vmem:[%s20548_s7 + $0xb0] sm:$0xff]  ;;  %v13887_v52 = vld [vmem:[%s20548_s7 + $0xc0] sm:$0xff] }
 0x5ad   : > { %1963 = vmatprep.subr.mxu0 %v13869_v58  ;;  %2034 = vmatprep.subr.mxu1 %v13875_v35  ;;  %21378 = vst [vmem:[#allocation178_spill] sm:$0xff] %v13881_v24  ;;  %21379 = vst [vmem:[#allocation179_spill] sm:$0xff] %v13887_v52  ;;  %v13893_v58 = vld [vmem:[%s20548_s7 + $0x70] sm:$0xff]  ;;  %v13899_v35 = vld [vmem:[%s20548_s7 + $0x80] sm:$0xff] }
 0x5ae   : > { %1964 = vmatpush1.msra.mxu0 %v13881_v24  ;;  %2035 = vmatpush1.msra.mxu1 %v13887_v52  ;;  %21380 = vst [vmem:[#allocation180_spill] sm:$0xff] %v13893_v58  ;;  %21381 = vst [vmem:[#allocation181_spill] sm:$0xff] %v13899_v35  ;;  %v13905_v24 = vld [vmem:[%s20548_s7 + $0x68] sm:$0xff]  ;;  %v13911_v52 = vld [vmem:[%s20548_s7 + $0x78] sm:$0xff] }
 0x5af   : > { %1965 = vmatprep.subr.mxu0 %v13893_v58  ;;  %2036 = vmatprep.subr.mxu1 %v13899_v35  ;;  %21382 = vst [vmem:[#allocation182_spill] sm:$0xff] %v13905_v24  ;;  %21383 = vst [vmem:[#allocation183_spill] sm:$0xff] %v13911_v52  ;;  %v13917_v58 = vld [vmem:[%s20548_s7 + $0x28] sm:$0xff]  ;;  %v13923_v35 = vld [vmem:[%s20548_s7 + $0x38] sm:$0xff] }
 0x5b0   : > { %1966 = vmatpush1.msra.mxu0 %v13905_v24  ;;  %2037 = vmatpush1.msra.mxu1 %v13911_v52  ;;  %21384 = vst [vmem:[#allocation184_spill] sm:$0xff] %v13917_v58  ;;  %21385 = vst [vmem:[#allocation185_spill] sm:$0xff] %v13923_v35  ;;  %v13929_v24 = vld [vmem:[%s20548_s7 + $0x20] sm:$0xff] }
 0x5b1   : > { %1967 = vmatprep.subr.mxu0 %v13917_v58  ;;  %2038 = vmatprep.subr.mxu1 %v13923_v35  ;;  %21386 = vst [vmem:[#allocation186_spill] sm:$0xff] %v13929_v24  ;;  %v13936_v58 = vld [vmem:[%s20548_s7 + $0x30] sm:$0xff]  ;;  %v13961_v35 = vld [vmem:[%s20553_s12 + $0x78] sm:$0xff] }
 0x5b2   : > { %1968 = vmatpush1.msra.mxu0 %v13929_v24  ;;  %2001 = vmatprep.mubr.f32.mxu0 %v21249_v44  ;;  %21387 = vst [vmem:[#allocation187_spill] sm:$0xff] %v13936_v58  ;;  %v13948_v24 = vld [vmem:[%s20548_s7 + $0x478] sm:$0xff]  ;;  %21390 = vst [vmem:[#allocation190_spill] sm:$0xff] %v13961_v35 }
 0x5b3   : > { %2039 = vmatpush1.msra.mxu1 %v13936_v58  ;;  %2072 = vmatprep.mubr.f32.mxu1 %v21249_v44  ;;  %21388 = vst [vmem:[#allocation188_spill] sm:$0xff] %v13948_v24  ;;  %v13954_v58 = vld [vmem:[%s20553_s12 + $0xf8] sm:$0xff] }
 0x5b4   : > { %2002 = vmatmul.mubr.f32.vlgmr.msra.gmra.mxu0 %v13562_v48  ;;  %2073 = vmatmul.mubr.f32.vlgmr.msra.gmra.mxu1 %v13562_v48  ;;  %21389 = vst [vmem:[#allocation189_spill] sm:$0xff] %v13954_v58 }
 0x5b5   : > { %9723 = vmatprep.subr.mxu0 %v21249_v44  ;;  %9755 = vmatprep.mubr.msk.f32.mxu0 %vm11611_vm6, %v21249_v44 }
 0x5b6   : > { %9724 = vmatpush3.msra.mxu0 %v13948_v24  ;;  %8339 = vmatprep.subr.mxu1 %v13954_v58  ;;  %v13967_v24 = vld [vmem:[%s20548_s7 + $0x430] sm:$0xff] }
 0x5b7   : > { %9725 = vmatprep.subr.mxu0 %v21249_v44  ;;  %8340 = vmatpush3.msra.mxu1 %v13961_v35  ;;  %21391 = vst [vmem:[#allocation191_spill] sm:$0xff] %v13967_v24  ;;  %v13973_v58 = vld [vmem:[%s20553_s12 + $0xf0] sm:$0xff] }
 0x5b8   : > { %9726 = vmatpush3.msra.mxu0 %v13967_v24  ;;  %21392 = vst [vmem:[#allocation192_spill] sm:$0xff] %v13973_v58  ;;  %8341 = vmatprep.subr.mxu1 %v13973_v58  ;;  %v13980_v35 = vld [vmem:[%s20553_s12 + $0x70] sm:$0xff]  ;;  %v13986_v24 = vld [vmem:[%s20548_s7 + $0x3e8] sm:$0xff] }
 0x5b9   : > { %9727 = vmatprep.subr.mxu0 %v21249_v44  ;;  %21393 = vst [vmem:[#allocation193_spill] sm:$0xff] %v13980_v35  ;;  %8342 = vmatpush3.msra.mxu1 %v13980_v35  ;;  %21394 = vst [vmem:[#allocation194_spill] sm:$0xff] %v13986_v24  ;;  %v13992_v58 = vld [vmem:[%s20553_s12 + $0xe8] sm:$0xff] }
 0x5ba   : > { %9728 = vmatpush3.msra.mxu0 %v13986_v24  ;;  %21395 = vst [vmem:[#allocation195_spill] sm:$0xff] %v13992_v58  ;;  %8343 = vmatprep.subr.mxu1 %v13992_v58  ;;  %v13999_v35 = vld [vmem:[%s20553_s12 + $0x68] sm:$0xff]  ;;  %v14005_v24 = vld [vmem:[%s20548_s7 + $0x3a0] sm:$0xff] }
 0x5bb   : > { %9729 = vmatprep.subr.mxu0 %v21249_v44  ;;  %21396 = vst [vmem:[#allocation196_spill] sm:$0xff] %v13999_v35  ;;  %8344 = vmatpush3.msra.mxu1 %v13999_v35  ;;  %21397 = vst [vmem:[#allocation197_spill] sm:$0xff] %v14005_v24  ;;  %v14011_v58 = vld [vmem:[%s20553_s12 + $0xe0] sm:$0xff] }
 0x5bc   : > { %9730 = vmatpush3.msra.mxu0 %v14005_v24  ;;  %21398 = vst [vmem:[#allocation198_spill] sm:$0xff] %v14011_v58  ;;  %8345 = vmatprep.subr.mxu1 %v14011_v58  ;;  %v14018_v35 = vld [vmem:[%s20553_s12 + $0x60] sm:$0xff]  ;;  %v14024_v24 = vld [vmem:[%s20548_s7 + $0x358] sm:$0xff] }
 0x5bd   : > { %9731 = vmatprep.subr.mxu0 %v21249_v44  ;;  %21399 = vst [vmem:[#allocation199_spill] sm:$0xff] %v14018_v35  ;;  %8346 = vmatpush3.msra.mxu1 %v14018_v35  ;;  %21400 = vst [vmem:[#allocation200_spill] sm:$0xff] %v14024_v24  ;;  %v14030_v58 = vld [vmem:[%s20553_s12 + $0xd8] sm:$0xff] }
 0x5be   : > { %9732 = vmatpush3.msra.mxu0 %v14024_v24  ;;  %21401 = vst [vmem:[#allocation201_spill] sm:$0xff] %v14030_v58  ;;  %8347 = vmatprep.subr.mxu1 %v14030_v58  ;;  %v14037_v35 = vld [vmem:[%s20553_s12 + $0x58] sm:$0xff]  ;;  %v14043_v24 = vld [vmem:[%s20548_s7 + $0x310] sm:$0xff] }
 0x5bf   : > { %9733 = vmatprep.subr.mxu0 %v21249_v44  ;;  %21402 = vst [vmem:[#allocation202_spill] sm:$0xff] %v14037_v35  ;;  %8348 = vmatpush3.msra.mxu1 %v14037_v35  ;;  %21403 = vst [vmem:[#allocation203_spill] sm:$0xff] %v14043_v24  ;;  %v14049_v58 = vld [vmem:[%s20553_s12 + $0xd0] sm:$0xff] }
 0x5c0   : > { %9734 = vmatpush3.msra.mxu0 %v14043_v24  ;;  %21404 = vst [vmem:[#allocation204_spill] sm:$0xff] %v14049_v58  ;;  %8349 = vmatprep.subr.mxu1 %v14049_v58  ;;  %v14056_v35 = vld [vmem:[%s20553_s12 + $0x50] sm:$0xff]  ;;  %v14062_v24 = vld [vmem:[%s20548_s7 + $0x2c8] sm:$0xff] }
 0x5c1   : > { %9735 = vmatprep.subr.mxu0 %v21249_v44  ;;  %21405 = vst [vmem:[#allocation205_spill] sm:$0xff] %v14056_v35  ;;  %8350 = vmatpush3.msra.mxu1 %v14056_v35  ;;  %21406 = vst [vmem:[#allocation206_spill] sm:$0xff] %v14062_v24  ;;  %v14068_v58 = vld [vmem:[%s20553_s12 + $0xc8] sm:$0xff] }
 0x5c2   : > { %9736 = vmatpush3.msra.mxu0 %v14062_v24  ;;  %21407 = vst [vmem:[#allocation207_spill] sm:$0xff] %v14068_v58  ;;  %8351 = vmatprep.subr.mxu1 %v14068_v58  ;;  %v14075_v35 = vld [vmem:[%s20553_s12 + $0x48] sm:$0xff]  ;;  %v14081_v24 = vld [vmem:[%s20548_s7 + $0x280] sm:$0xff] }
 0x5c3   : > { %9737 = vmatprep.subr.mxu0 %v21249_v44  ;;  %21408 = vst [vmem:[#allocation208_spill] sm:$0xff] %v14075_v35  ;;  %8352 = vmatpush3.msra.mxu1 %v14075_v35  ;;  %21409 = vst [vmem:[#allocation209_spill] sm:$0xff] %v14081_v24  ;;  %v14087_v58 = vld [vmem:[%s20553_s12 + $0xc0] sm:$0xff] }
 0x5c4   : > { %9738 = vmatpush3.msra.mxu0 %v14081_v24  ;;  %21410 = vst [vmem:[#allocation210_spill] sm:$0xff] %v14087_v58  ;;  %8353 = vmatprep.subr.mxu1 %v14087_v58  ;;  %v14094_v35 = vld [vmem:[%s20553_s12 + $0x40] sm:$0xff]  ;;  %v14100_v24 = vld [vmem:[%s20548_s7 + $0x238] sm:$0xff] }
 0x5c5   : > { %9739 = vmatprep.subr.mxu0 %v21249_v44  ;;  %21411 = vst [vmem:[#allocation211_spill] sm:$0xff] %v14094_v35  ;;  %8354 = vmatpush3.msra.mxu1 %v14094_v35  ;;  %21412 = vst [vmem:[#allocation212_spill] sm:$0xff] %v14100_v24  ;;  %v14106_v58 = vld [vmem:[%s20553_s12 + $0xb8] sm:$0xff] }
 0x5c6   : > { %9740 = vmatpush3.msra.mxu0 %v14100_v24  ;;  %21413 = vst [vmem:[#allocation213_spill] sm:$0xff] %v14106_v58  ;;  %8355 = vmatprep.subr.mxu1 %v14106_v58  ;;  %v14113_v35 = vld [vmem:[%s20553_s12 + $0x38] sm:$0xff]  ;;  %v14119_v24 = vld [vmem:[%s20548_s7 + $0x1f0] sm:$0xff] }
 0x5c7   : > { %9741 = vmatprep.subr.mxu0 %v21249_v44  ;;  %21414 = vst [vmem:[#allocation214_spill] sm:$0xff] %v14113_v35  ;;  %8356 = vmatpush3.msra.mxu1 %v14113_v35  ;;  %21415 = vst [vmem:[#allocation215_spill] sm:$0xff] %v14119_v24  ;;  %v14125_v58 = vld [vmem:[%s20553_s12 + $0xb0] sm:$0xff] }
 0x5c8   : > { %9742 = vmatpush3.msra.mxu0 %v14119_v24  ;;  %21416 = vst [vmem:[#allocation216_spill] sm:$0xff] %v14125_v58  ;;  %8357 = vmatprep.subr.mxu1 %v14125_v58  ;;  %v14132_v35 = vld [vmem:[%s20553_s12 + $0x30] sm:$0xff]  ;;  %v14138_v24 = vld [vmem:[%s20548_s7 + $0x1a8] sm:$0xff] }
 0x5c9   : > { %9743 = vmatprep.subr.mxu0 %v21249_v44  ;;  %21417 = vst [vmem:[#allocation217_spill] sm:$0xff] %v14132_v35  ;;  %8358 = vmatpush3.msra.mxu1 %v14132_v35  ;;  %21418 = vst [vmem:[#allocation218_spill] sm:$0xff] %v14138_v24  ;;  %v14144_v58 = vld [vmem:[%s20553_s12 + $0xa8] sm:$0xff] }
 0x5ca   : > { %9744 = vmatpush3.msra.mxu0 %v14138_v24  ;;  %21419 = vst [vmem:[#allocation219_spill] sm:$0xff] %v14144_v58  ;;  %8359 = vmatprep.subr.mxu1 %v14144_v58  ;;  %v14151_v35 = vld [vmem:[%s20553_s12 + $0x28] sm:$0xff]  ;;  %v14157_v24 = vld [vmem:[%s20548_s7 + $0x160] sm:$0xff] }
 0x5cb   : > { %9745 = vmatprep.subr.mxu0 %v21249_v44  ;;  %21420 = vst [vmem:[#allocation220_spill] sm:$0xff] %v14151_v35  ;;  %8360 = vmatpush3.msra.mxu1 %v14151_v35  ;;  %21421 = vst [vmem:[#allocation221_spill] sm:$0xff] %v14157_v24  ;;  %v14163_v58 = vld [vmem:[%s20553_s12 + $0xa0] sm:$0xff] }
 0x5cc   : > { %9746 = vmatpush3.msra.mxu0 %v14157_v24  ;;  %21422 = vst [vmem:[#allocation222_spill] sm:$0xff] %v14163_v58  ;;  %8361 = vmatprep.subr.mxu1 %v14163_v58  ;;  %v14170_v35 = vld [vmem:[%s20553_s12 + $0x20] sm:$0xff]  ;;  %v14176_v24 = vld [vmem:[%s20548_s7 + $0x118] sm:$0xff] }
 0x5cd   : > { %9747 = vmatprep.subr.mxu0 %v21249_v44  ;;  %21423 = vst [vmem:[#allocation223_spill] sm:$0xff] %v14170_v35  ;;  %8362 = vmatpush3.msra.mxu1 %v14170_v35  ;;  %21424 = vst [vmem:[#allocation224_spill] sm:$0xff] %v14176_v24  ;;  %v14182_v58 = vld [vmem:[%s20553_s12 + $0x98] sm:$0xff] }
 0x5ce   : > { %9748 = vmatpush3.msra.mxu0 %v14176_v24  ;;  %21425 = vst [vmem:[#allocation225_spill] sm:$0xff] %v14182_v58  ;;  %8363 = vmatprep.subr.mxu1 %v14182_v58  ;;  %v14189_v35 = vld [vmem:[%s20553_s12 + $0x18] sm:$0xff]  ;;  %v14195_v24 = vld [vmem:[%s20548_s7 + $0xd0] sm:$0xff] }
 0x5cf   : > { %9749 = vmatprep.subr.mxu0 %v21249_v44  ;;  %21426 = vst [vmem:[#allocation226_spill] sm:$0xff] %v14189_v35  ;;  %8364 = vmatpush3.msra.mxu1 %v14189_v35  ;;  %21427 = vst [vmem:[#allocation227_spill] sm:$0xff] %v14195_v24  ;;  %v14201_v58 = vld [vmem:[%s20553_s12 + $0x90] sm:$0xff] }
 0x5d0   : > { %9750 = vmatpush3.msra.mxu0 %v14195_v24  ;;  %21428 = vst [vmem:[#allocation228_spill] sm:$0xff] %v14201_v58  ;;  %8365 = vmatprep.subr.mxu1 %v14201_v58  ;;  %v14208_v35 = vld [vmem:[%s20553_s12 + $0x10] sm:$0xff]  ;;  %v14214_v24 = vld [vmem:[%s20548_s7 + $0x88] sm:$0xff] }
 0x5d1   : > { %9751 = vmatprep.subr.mxu0 %v21249_v44  ;;  %21429 = vst [vmem:[#allocation229_spill] sm:$0xff] %v14208_v35  ;;  %8366 = vmatpush3.msra.mxu1 %v14208_v35  ;;  %21430 = vst [vmem:[#allocation230_spill] sm:$0xff] %v14214_v24  ;;  %v14220_v58 = vld [vmem:[%s20553_s12 + $0x88] sm:$0xff] }
 0x5d2   : > { %9752 = vmatpush3.msra.mxu0 %v14214_v24  ;;  %21431 = vst [vmem:[#allocation231_spill] sm:$0xff] %v14220_v58  ;;  %8367 = vmatprep.subr.mxu1 %v14220_v58  ;;  %v14227_v35 = vld [vmem:[%s20553_s12 + $0x8] sm:$0xff]  ;;  %v14233_v24 = vld [vmem:[%s20548_s7 + $0x40] sm:$0xff] }
 0x5d3   : > { %9753 = vmatprep.subr.mxu0 %v21249_v44  ;;  %21432 = vst [vmem:[#allocation232_spill] sm:$0xff] %v14227_v35  ;;  %8368 = vmatpush3.msra.mxu1 %v14227_v35  ;;  %21433 = vst [vmem:[#allocation233_spill] sm:$0xff] %v14233_v24  ;;  %v14239_v58 = vld [vmem:[%s20553_s12 + $0x80] sm:$0xff]  ;;  %v14246_v35 = vld [vmem:[%s20553_s12 + $0x1f8] sm:$0xff] }
 0x5d4   : > { %9754 = vmatpush3.msra.mxu0 %v14233_v24  ;;  %21434 = vst [vmem:[#allocation234_spill] sm:$0xff] %v14239_v58  ;;  %8369 = vmatprep.subr.mxu1 %v14239_v58  ;;  %21435 = vst [vmem:[#allocation235_spill] sm:$0xff] %v14246_v35  ;;  %v14252_v24 = vld [vmem:[%s20553_s12 + $0x178] sm:$0xff]  ;;  %v14258_v58 = vld [vmem:[%s20553_s12] sm:$0xff] }
 0x5d5   : > { %9756 = vmatmul.mubr.f32.vlgmr.msra.gmra.mxu0 %v13562_v48  ;;  %8374 = vmatprep.subr.mxu0 %v14246_v35  ;;  %21436 = vst [vmem:[#allocation236_spill] sm:$0xff] %v14252_v24  ;;  %21437 = vst [vmem:[#allocation237_spill] sm:$0xff] %v14258_v58  ;;  %v14264_v48 = vld [vmem:[%s20553_s12 + $0x1f0] sm:$0xff]  ;;  %v14270_v35 = vld [vmem:[%s20553_s12 + $0x2f8] sm:$0xff] }
 0x5d6   : > { %8375 = vmatpush3.msra.mxu0 %v14252_v24  ;;  %8370 = vmatpush3.msra.mxu1 %v14258_v58  ;;  %21438 = vst [vmem:[#allocation238_spill] sm:$0xff] %v14264_v48  ;;  %21439 = vst [vmem:[#allocation239_spill] sm:$0xff] %v14270_v35  ;;  %v14276_v24 = vld [vmem:[%s20553_s12 + $0x170] sm:$0xff]  ;;  %v14282_v58 = vld [vmem:[%s20553_s12 + $0x1e8] sm:$0xff] }
 0x5d7   : > { %8376 = vmatprep.subr.mxu0 %v14264_v48  ;;  %8409 = vmatprep.subr.mxu1 %v14270_v35  ;;  %21440 = vst [vmem:[#allocation240_spill] sm:$0xff] %v14276_v24  ;;  %21441 = vst [vmem:[#allocation241_spill] sm:$0xff] %v14282_v58  ;;  %v14288_v48 = vld [vmem:[%s20553_s12 + $0x168] sm:$0xff]  ;;  %v14294_v35 = vld [vmem:[%s20553_s12 + $0x1e0] sm:$0xff] }
 0x5d8   : > { %8377 = vmatpush3.msra.mxu0 %v14276_v24  ;;  %21442 = vst [vmem:[#allocation242_spill] sm:$0xff] %v14288_v48  ;;  %21443 = vst [vmem:[#allocation243_spill] sm:$0xff] %v14294_v35  ;;  %v14300_v24 = vld [vmem:[%s20553_s12 + $0x160] sm:$0xff] }
 0x5d9   : > { %8378 = vmatprep.subr.mxu0 %v14282_v58  ;;  %21444 = vst [vmem:[#allocation244_spill] sm:$0xff] %v14300_v24  ;;  %v14306_v58 = vld [vmem:[%s20553_s12 + $0x1d8] sm:$0xff] }
 0x5da   : > { %8379 = vmatpush3.msra.mxu0 %v14288_v48  ;;  %21445 = vst [vmem:[#allocation245_spill] sm:$0xff] %v14306_v58  ;;  %v14312_v48 = vld [vmem:[%s20553_s12 + $0x158] sm:$0xff] }
 0x5db   : > { %8380 = vmatprep.subr.mxu0 %v14294_v35  ;;  %21446 = vst [vmem:[#allocation246_spill] sm:$0xff] %v14312_v48  ;;  %v14318_v35 = vld [vmem:[%s20553_s12 + $0x1d0] sm:$0xff] }
 0x5dc   : > { %8381 = vmatpush3.msra.mxu0 %v14300_v24  ;;  %21447 = vst [vmem:[#allocation247_spill] sm:$0xff] %v14318_v35  ;;  %v14324_v24 = vld [vmem:[%s20553_s12 + $0x150] sm:$0xff] }
 0x5dd   : > { %8382 = vmatprep.subr.mxu0 %v14306_v58  ;;  %21448 = vst [vmem:[#allocation248_spill] sm:$0xff] %v14324_v24  ;;  %v14330_v58 = vld [vmem:[%s20553_s12 + $0x1c8] sm:$0xff] }
 0x5de   : > { %8383 = vmatpush3.msra.mxu0 %v14312_v48  ;;  %21449 = vst [vmem:[#allocation249_spill] sm:$0xff] %v14330_v58  ;;  %v14336_v48 = vld [vmem:[%s20553_s12 + $0x148] sm:$0xff] }
 0x5df   : > { %8384 = vmatprep.subr.mxu0 %v14318_v35  ;;  %21450 = vst [vmem:[#allocation250_spill] sm:$0xff] %v14336_v48  ;;  %v14342_v35 = vld [vmem:[%s20553_s12 + $0x1c0] sm:$0xff] }
 0x5e0   : > { %8385 = vmatpush3.msra.mxu0 %v14324_v24  ;;  %21451 = vst [vmem:[#allocation251_spill] sm:$0xff] %v14342_v35  ;;  %v14348_v24 = vld [vmem:[%s20553_s12 + $0x140] sm:$0xff] }
 0x5e1   : > { %8386 = vmatprep.subr.mxu0 %v14330_v58  ;;  %21452 = vst [vmem:[#allocation252_spill] sm:$0xff] %v14348_v24  ;;  %v14354_v58 = vld [vmem:[%s20553_s12 + $0x1b8] sm:$0xff] }
 0x5e2   : > { %8387 = vmatpush3.msra.mxu0 %v14336_v48  ;;  %21453 = vst [vmem:[#allocation253_spill] sm:$0xff] %v14354_v58  ;;  %v14360_v48 = vld [vmem:[%s20553_s12 + $0x138] sm:$0xff] }
 0x5e3   : > { %8388 = vmatprep.subr.mxu0 %v14342_v35  ;;  %21454 = vst [vmem:[#allocation254_spill] sm:$0xff] %v14360_v48  ;;  %v14366_v35 = vld [vmem:[%s20553_s12 + $0x1b0] sm:$0xff] }
 0x5e4   : > { %8389 = vmatpush3.msra.mxu0 %v14348_v24  ;;  %21455 = vst [vmem:[#allocation255_spill] sm:$0xff] %v14366_v35  ;;  %v14372_v24 = vld [vmem:[%s20553_s12 + $0x130] sm:$0xff] }
 0x5e5   : > { %8390 = vmatprep.subr.mxu0 %v14354_v58  ;;  %21456 = vst [vmem:[#allocation256_spill] sm:$0xff] %v14372_v24  ;;  %v14378_v58 = vld [vmem:[%s20553_s12 + $0x1a8] sm:$0xff] }
 0x5e6   : > { %8391 = vmatpush3.msra.mxu0 %v14360_v48  ;;  %21457 = vst [vmem:[#allocation257_spill] sm:$0xff] %v14378_v58  ;;  %v14384_v48 = vld [vmem:[%s20553_s12 + $0x128] sm:$0xff] }
 0x5e7   : > { %8392 = vmatprep.subr.mxu0 %v14366_v35  ;;  %21458 = vst [vmem:[#allocation258_spill] sm:$0xff] %v14384_v48  ;;  %v14390_v35 = vld [vmem:[%s20553_s12 + $0x1a0] sm:$0xff] }
 0x5e8   : > { %8393 = vmatpush3.msra.mxu0 %v14372_v24  ;;  %21459 = vst [vmem:[#allocation259_spill] sm:$0xff] %v14390_v35  ;;  %v14396_v24 = vld [vmem:[%s20553_s12 + $0x120] sm:$0xff] }
 0x5e9   : > { %8394 = vmatprep.subr.mxu0 %v14378_v58  ;;  %21460 = vst [vmem:[#allocation260_spill] sm:$0xff] %v14396_v24  ;;  %v14402_v58 = vld [vmem:[%s20553_s12 + $0x198] sm:$0xff] }
 0x5ea   : > { %8395 = vmatpush3.msra.mxu0 %v14384_v48  ;;  %21461 = vst [vmem:[#allocation261_spill] sm:$0xff] %v14402_v58  ;;  %v14408_v48 = vld [vmem:[%s20553_s12 + $0x118] sm:$0xff] }
 0x5eb   : > { %8396 = vmatprep.subr.mxu0 %v14390_v35  ;;  %21462 = vst [vmem:[#allocation262_spill] sm:$0xff] %v14408_v48  ;;  %v14414_v35 = vld [vmem:[%s20553_s12 + $0x190] sm:$0xff] }
 0x5ec   : > { %8397 = vmatpush3.msra.mxu0 %v14396_v24  ;;  %21463 = vst [vmem:[#allocation263_spill] sm:$0xff] %v14414_v35  ;;  %v14420_v24 = vld [vmem:[%s20553_s12 + $0x110] sm:$0xff] }
 0x5ed   : > { %8398 = vmatprep.subr.mxu0 %v14402_v58  ;;  %21464 = vst [vmem:[#allocation264_spill] sm:$0xff] %v14420_v24  ;;  %v14426_v58 = vld [vmem:[%s20553_s12 + $0x188] sm:$0xff] }
 0x5ee   : > { %8399 = vmatpush3.msra.mxu0 %v14408_v48  ;;  %21465 = vst [vmem:[#allocation265_spill] sm:$0xff] %v14426_v58  ;;  %v14432_v48 = vld [vmem:[%s20553_s12 + $0x108] sm:$0xff] }
 0x5ef   : > { %8400 = vmatprep.subr.mxu0 %v14414_v35  ;;  %21466 = vst [vmem:[#allocation266_spill] sm:$0xff] %v14432_v48  ;;  %v14438_v35 = vld [vmem:[%s20553_s12 + $0x180] sm:$0xff] }
 0x5f0   : > { %8401 = vmatpush3.msra.mxu0 %v14420_v24  ;;  %21467 = vst [vmem:[#allocation267_spill] sm:$0xff] %v14438_v35  ;;  %v14444_v24 = vld [vmem:[%s20553_s12 + $0x100] sm:$0xff] }
 0x5f1   : > { %8402 = vmatprep.subr.mxu0 %v14426_v58  ;;  %21468 = vst [vmem:[#allocation268_spill] sm:$0xff] %v14444_v24  ;;  %v14450_v58 = vld [vmem:[%s20553_s12 + $0x3f8] sm:$0xff] }
 0x5f2   : > { %8403 = vmatpush3.msra.mxu0 %v14432_v48  ;;  %21469 = vst [vmem:[#allocation269_spill] sm:$0xff] %v14450_v58 }
 0x5f3   : > { %8404 = vmatprep.subr.mxu0 %v14438_v35 }
 0x5f4   : > { %8405 = vmatpush3.msra.mxu0 %v14444_v24 }
 0x5f5   : > { %8444 = vmatprep.subr.mxu0 %v14450_v58 }
 0x653   : > { %v1861_v48 = vpop.f32.mrf.mxu0  ;;  %v1932_v52 = vpop.f32.mrf.mxu1 }
 0x654   : > { %v1862_v59 = vadd.f32 %v1861_v48, %v12624_v3  ;;  %v1933_v35 = vadd.f32 %v1932_v52, %v12627_v4  ;;  %v14460_v3 = vld [vmem:[%s12645_s21] sm:$0x3] }
 0x655   : > { %v1863_v38 = vpop.f32.mrf.mxu0  ;;  %v1934_v18 = vpop.f32.mrf.mxu1 }
 0x656   : > { %10403 = vtanh.f32 %v1862_v59  ;;  %v1864_v47 = vadd.f32 %v1863_v38, %v12632_v6  ;;  %v1935_v24 = vadd.f32 %v1934_v18, %v12635_v7  ;;  %v14497_v18 = vld [vmem:[%s20553_s12 + $0x370] sm:$0xff]  ;;  %v14503_v59 = vld [vmem:[%s20553_s12 + $0x2e8] sm:$0xff] }
 0x657   : > { %10405 = vtanh.f32 %v1933_v35  ;;  %v14515_v35 = vld [vmem:[%s20553_s12 + $0x268] sm:$0xff] }
 0x658   : > { %10407 = vtanh.f32 %v1864_v47  ;;  %v14467_v47 = vld [vmem:[%s20553_s12 + $0x278] sm:$0xff] }
 0x659   : > { %10409 = vtanh.f32 %v1935_v24 }
 0x663   : > { %v10404_v10 = vpop.eup %10403 }
 0x664   : > { %v10406_v42 = vpop.eup %10405  ;;  %v2158_v52 = vmul.f32 %v14460_v3, %v10404_v10  ;;  %v14491_v10 = vld [vmem:[%s20553_s12 + $0x270] sm:$0xff] }
 0x665   : > { %v10408_v58 = vpop.eup %10407  ;;  %v2160_v38 = vmul.f32 %v10406_v42, %v12140_v34  ;;  %v14485_v42 = vld [vmem:[%s20553_s12 + $0x3f0] sm:$0xff] }
 0x666   : > { %v10410_v5 = vpop.eup %10409  ;;  %v2159_v39 = vmul.f32 %v10408_v58, %v12136_v32  ;;  %v14509_v58 = vld [vmem:[%s20553_s12 + $0x3e8] sm:$0xff] }
 0x667   : > { %v2161_v48 = vmul.f32 %v10410_v5, %v12613_v60  ;;  %v14473_v5 = vld [vmem:[%s20553_s12 + $0x378] sm:$0xff] }
 0x668   : > { %2231 = vmatprep.mubr.f32.mxu1 %v2159_v39  ;;  %v14479_v39 = vld [vmem:[%s20553_s12 + $0x2f0] sm:$0xff] }
 0x669   : > { %2301 = vmatprep.mubr.f32.mxu0 %v2161_v48  ;;  %2232 = vmatmul.mubr.f32.vlgmr.msra.gmra.mxu1 %v2158_v52  ;;  %v21486_v48 = vld [vmem:[#allocation40_spill] sm:$0xff]  ;;  %v21487_v52 = vld [vmem:[#allocation41_spill] sm:$0xff] }
 0x66a   : > { %2302 = vmatmul.mubr.f32.vlgmr.msra.gmra.mxu0 %v2160_v38  ;;  %8410 = vmatpush3.msra.mxu1 %v14467_v47  ;;  %v21488_v38 = vld [vmem:[#allocation42_spill] sm:$0xff] }
 0x66b   : > { %8445 = vmatpush3.msra.mxu0 %v14473_v5  ;;  %8411 = vmatprep.subr.mxu1 %v14479_v39 }
 0x66c   : > { %8446 = vmatprep.subr.mxu0 %v14485_v42  ;;  %8412 = vmatpush3.msra.mxu1 %v14491_v10 }
 0x66d   : > { %8447 = vmatpush3.msra.mxu0 %v14497_v18  ;;  %8413 = vmatprep.subr.mxu1 %v14503_v59 }
 0x66e   : > { %8448 = vmatprep.subr.mxu0 %v14509_v58  ;;  %8414 = vmatpush3.msra.mxu1 %v14515_v35 }
 0x66f   : > { %8449 = vmatpush3.msra.mxu0 %v12681_v55  ;;  %8415 = vmatprep.subr.mxu1 %v12686_v43 }
 0x670   : > { %8450 = vmatprep.subr.mxu0 %v12691_v56  ;;  %8416 = vmatpush3.msra.mxu1 %v12696_v57 }
 0x671   : > { %8451 = vmatpush3.msra.mxu0 %v12703_v62  ;;  %8417 = vmatprep.subr.mxu1 %v12708_v0 }
 0x672   : > { %8452 = vmatprep.subr.mxu0 %v12715_v2  ;;  %8418 = vmatpush3.msra.mxu1 %v12720_v8  ;;  %v21470_v8 = vld [vmem:[#allocation24_spill] sm:$0xff] }
 0x673   : > { %8453 = vmatpush3.msra.mxu0 %v12729_v11  ;;  %8419 = vmatprep.subr.mxu1 %v12734_v12  ;;  %v21471_v11 = vld [vmem:[#allocation25_spill] sm:$0xff]  ;;  %v21472_v12 = vld [vmem:[#allocation26_spill] sm:$0xff] }
 0x674   : > { %v2003_v24 = vpop.f32.mrf.mxu0  ;;  %v2074_v55 = vpop.f32.mrf.mxu1  ;;  %8454 = vmatprep.subr.mxu0 %v12747_v25  ;;  %8420 = vmatpush3.msra.mxu1 %v12752_v26  ;;  %v21473_v25 = vld [vmem:[#allocation27_spill] sm:$0xff]  ;;  %v21474_v26 = vld [vmem:[#allocation28_spill] sm:$0xff] }
 0x675   : > { %v2004_v43 = vadd.f32 %v2003_v24, %v12739_v33  ;;  %v2075_v56 = vadd.f32 %v2074_v55, %v12742_v22  ;;  %8455 = vmatpush3.msra.mxu0 %v12759_v27  ;;  %8421 = vmatprep.subr.mxu1 %v12764_v28  ;;  %v21475_v27 = vld [vmem:[#allocation29_spill] sm:$0xff]  ;;  %v21476_v28 = vld [vmem:[#allocation30_spill] sm:$0xff]  ;;  %v21489_v55 = vld [vmem:[#allocation43_spill] sm:$0xff] }
 0x676   : > { %v2005_v57 = vpop.f32.mrf.mxu0  ;;  %v2076_v62 = vpop.f32.mrf.mxu1  ;;  %8456 = vmatprep.subr.mxu0 %v12777_v40  ;;  %8422 = vmatpush3.msra.mxu1 %v12782_v41  ;;  %v21477_v40 = vld [vmem:[#allocation31_spill] sm:$0xff]  ;;  %v21478_v41 = vld [vmem:[#allocation32_spill] sm:$0xff] }
 0x677   : > { %10411 = vtanh.f32 %v2004_v43  ;;  %v2006_v0 = vadd.f32 %v2005_v57, %v12769_v29  ;;  %v2077_v2 = vadd.f32 %v2076_v62, %v12772_v30  ;;  %8457 = vmatpush3.msra.mxu0 %v12789_v45  ;;  %8423 = vmatprep.subr.mxu1 %v12794_v46  ;;  %v21479_v45 = vld [vmem:[#allocation33_spill] sm:$0xff]  ;;  %v21480_v46 = vld [vmem:[#allocation34_spill] sm:$0xff]  ;;  %v21490_v43 = vld [vmem:[#allocation44_spill] sm:$0xff] }
 0x678   : > { %10413 = vtanh.f32 %v2075_v56  ;;  %8458 = vmatprep.subr.mxu0 %v12803_v49  ;;  %8424 = vmatpush3.msra.mxu1 %v12808_v50  ;;  %v21481_v49 = vld [vmem:[#allocation35_spill] sm:$0xff]  ;;  %v21482_v50 = vld [vmem:[#allocation36_spill] sm:$0xff]  ;;  %v21491_v57 = vld [vmem:[#allocation45_spill] sm:$0xff] }
 0x679   : > { %10415 = vtanh.f32 %v2006_v0  ;;  %8459 = vmatpush3.msra.mxu0 %v12815_v53  ;;  %8425 = vmatprep.subr.mxu1 %v12820_v54  ;;  %v21483_v53 = vld [vmem:[#allocation37_spill] sm:$0xff]  ;;  %v21484_v54 = vld [vmem:[#allocation38_spill] sm:$0xff] }
 0x67a   : > { %10417 = vtanh.f32 %v2077_v2  ;;  %8460 = vmatprep.subr.mxu0 %v12829_v9  ;;  %8426 = vmatpush3.msra.mxu1 %v21470_v8  ;;  %v21485_v9 = vld [vmem:[#allocation39_spill] sm:$0xff]  ;;  %v21492_v62 = vld [vmem:[#allocation46_spill] sm:$0xff]  ;;  %v21494_v8 = vld [vmem:[#allocation48_spill] sm:$0xff] }
 0x67b   : > { %8461 = vmatpush3.msra.mxu0 %v21471_v11  ;;  %8427 = vmatprep.subr.mxu1 %v21472_v12  ;;  %v21493_v2 = vld [vmem:[#allocation47_spill] sm:$0xff]  ;;  %v21495_v12 = vld [vmem:[#allocation49_spill] sm:$0xff] }
 0x67c   : > { %8462 = vmatprep.subr.mxu0 %v21473_v25  ;;  %8428 = vmatpush3.msra.mxu1 %v21474_v26 }
 0x67d   : > { %8463 = vmatpush3.msra.mxu0 %v21475_v27  ;;  %8429 = vmatprep.subr.mxu1 %v21476_v28  ;;  %v21496_v28 = vld [vmem:[#allocation21_spill] sm:$0xff] }
 0x67e   : > { %8464 = vmatprep.subr.mxu0 %v21477_v40  ;;  %8430 = vmatpush3.msra.mxu1 %v21478_v41  ;;  %v21501_v41 = vld [vmem:[#allocation15_spill] sm:$0xff] }
 0x67f   : > { %8465 = vmatpush3.msra.mxu0 %v21479_v45  ;;  %8431 = vmatprep.subr.mxu1 %v21480_v46  ;;  %v21502_v45 = vld [vmem:[#allocation53_spill] sm:$0xff]  ;;  %v21503_v46 = vld [vmem:[#allocation14_spill] sm:$0xff] }
 0x680   : > { %8466 = vmatprep.subr.mxu0 %v21481_v49  ;;  %8432 = vmatpush3.msra.mxu1 %v21482_v50  ;;  %v21504_v49 = vld [vmem:[#allocation54_spill] sm:$0xff] }
 0x681   : > { %8467 = vmatpush3.msra.mxu0 %v21483_v53  ;;  %8433 = vmatprep.subr.mxu1 %v21484_v54  ;;  %v21505_v50 = vld [vmem:[#allocation13_spill] sm:$0xff]  ;;  %v21506_v54 = vld [vmem:[#allocation55_spill] sm:$0xff] }
 0x682   : > { %8468 = vmatprep.subr.mxu0 %v21485_v9  ;;  %8434 = vmatpush3.msra.mxu1 %v21486_v48  ;;  %v21507_v48 = vld [vmem:[#allocation56_spill] sm:$0xff] }
 0x683   : > { %8469 = vmatpush3.msra.mxu0 %v21487_v52  ;;  %8435 = vmatprep.subr.mxu1 %v21488_v38  ;;  %v21508_v52 = vld [vmem:[#allocation12_spill] sm:$0xff] }
 0x684   : > { %v10412_v24 = vpop.eup %10411  ;;  %8470 = vmatprep.subr.mxu0 %v21489_v55  ;;  %8436 = vmatpush3.msra.mxu1 %v21490_v43  ;;  %v21510_v55 = vld [vmem:[#allocation11_spill] sm:$0xff]  ;;  %v21511_v43 = vld [vmem:[#allocation58_spill] sm:$0xff] }
 0x685   : > { %v10414_v56 = vpop.eup %10413  ;;  %8471 = vmatpush3.msra.mxu0 %v21491_v57  ;;  %8437 = vmatprep.subr.mxu1 %v21492_v62  ;;  %v2162_v27 = vmul.f32 %v10412_v24, %v12615_v61  ;;  %v21509_v24 = vld [vmem:[#allocation57_spill] sm:$0xff]  ;;  %v21513_v57 = vld [vmem:[#allocation59_spill] sm:$0xff]  ;;  %v21514_v62 = vld [vmem:[#allocation9_spill] sm:$0xff] }
 0x686   : > { %v10416_v0 = vpop.eup %10415  ;;  %8472 = vmatprep.subr.mxu0 %v21493_v2  ;;  %8438 = vmatpush3.msra.mxu1 %v21494_v8  ;;  %v2164_v40 = vmul.f32 %v10414_v56, %v21496_v28  ;;  %v21512_v56 = vld [vmem:[#allocation10_spill] sm:$0xff]  ;;  %v21516_v2 = vld [vmem:[#allocation62_spill] sm:$0xff]  ;;  %v21517_v8 = vld [vmem:[#allocation61_spill] sm:$0xff] }
 0x687   : > { %v10418_v11 = vpop.eup %10417  ;;  %8473 = vmatpush3.msra.mxu0 %v21495_v12  ;;  %8439 = vmatprep.subr.mxu1 %v12990_v36  ;;  %v2163_v25 = vmul.f32 %v10416_v0, %v12145_v37  ;;  %v21497_v36 = vld [vmem:[#allocation50_spill] sm:$0xff]  ;;  %v21515_v0 = vld [vmem:[#allocation60_spill] sm:$0xff] }
 0x688   : > { %8474 = vmatprep.subr.mxu0 %v12997_v23  ;;  %8440 = vmatpush3.msra.mxu1 %v13002_v21  ;;  %v2165_v26 = vmul.f32 %v10418_v11, %v12618_v63  ;;  %v21498_v21 = vld [vmem:[#allocation51_spill] sm:$0xff]  ;;  %v21499_v23 = vld [vmem:[#allocation16_spill] sm:$0xff]  ;;  %v21519_v12 = vld [vmem:[#allocation64_spill] sm:$0xff] }
 0x689   : > { %2371 = vmatprep.mubr.f32.mxu1 %v2163_v25  ;;  %8475 = vmatpush3.msra.mxu0 %v13009_v51  ;;  %v21500_v51 = vld [vmem:[#allocation52_spill] sm:$0xff]  ;;  %v21518_v11 = vld [vmem:[#allocation63_spill] sm:$0xff] }
 0x68a   : > { %2441 = vmatprep.mubr.f32.mxu0 %v2165_v26  ;;  %2372 = vmatmul.mubr.f32.vlgmr.msra.gmra.mxu1 %v2162_v27  ;;  %v21520_v26 = vld [vmem:[#allocation65_spill] sm:$0xff]  ;;  %v21521_v27 = vld [vmem:[#allocation66_spill] sm:$0xff] }
 0x68b   : > { %2442 = vmatmul.mubr.f32.vlgmr.msra.gmra.mxu0 %v2164_v40  ;;  %9758 = vmatprep.subr.mxu1 %v21249_v44  ;;  %v21522_v40 = vld [vmem:[#allocation23_spill] sm:$0xff] }
 0x68c   : > { %9759 = vmatpush3.msra.mxu1 %v21497_v36  ;;  %9790 = vmatprep.mubr.msk.f32.mxu1 %vm11611_vm6, %v21249_v44 }
 0x68d   : > { %9760 = vmatprep.subr.mxu1 %v21249_v44  ;;  %9793 = vmatprep.subr.mxu0 %v21249_v44 }
 0x68e   : > { %9761 = vmatpush3.msra.mxu1 %v21498_v21  ;;  %9794 = vmatpush3.msra.mxu0 %v21499_v23  ;;  %v21523_v21 = vld [vmem:[#allocation67_spill] sm:$0xff] }
 0x68f   : > { %9762 = vmatprep.subr.mxu1 %v21249_v44  ;;  %9795 = vmatprep.subr.mxu0 %v21249_v44 }
 0x690   : > { %9763 = vmatpush3.msra.mxu1 %v21500_v51  ;;  %9796 = vmatpush3.msra.mxu0 %v21501_v41  ;;  %v21524_v51 = vld [vmem:[#allocation68_spill] sm:$0xff] }
 0x691   : > { %9764 = vmatprep.subr.mxu1 %v21249_v44  ;;  %9797 = vmatprep.subr.mxu0 %v21249_v44 }
 0x692   : > { %9765 = vmatpush3.msra.mxu1 %v21502_v45  ;;  %9798 = vmatpush3.msra.mxu0 %v21503_v46  ;;  %v21525_v45 = vld [vmem:[#allocation69_spill] sm:$0xff] }
 0x693   : > { %9766 = vmatprep.subr.mxu1 %v21249_v44  ;;  %9799 = vmatprep.subr.mxu0 %v21249_v44 }
 0x694   : > { %9767 = vmatpush3.msra.mxu1 %v21504_v49  ;;  %9800 = vmatpush3.msra.mxu0 %v21505_v50  ;;  %v21526_v49 = vld [vmem:[#allocation70_spill] sm:$0xff] }
 0x695   : > { %v2145_v53 = vpop.f32.mrf.mxu0  ;;  %9768 = vmatprep.subr.mxu1 %v21249_v44  ;;  %9801 = vmatprep.subr.mxu0 %v21249_v44 }
 0x696   : > { %v2146_v9 = vadd.f32 %v2145_v53, %v21506_v54  ;;  %9769 = vmatpush3.msra.mxu1 %v21507_v48  ;;  %9802 = vmatpush3.msra.mxu0 %v21508_v52  ;;  %v21527_v53 = vld [vmem:[#allocation71_spill] sm:$0xff]  ;;  %v21529_v48 = vld [vmem:[#allocation73_spill] sm:$0xff] }
 0x697   : > { %v9757_v38 = vpop.f32.mrf.mxu0  ;;  %9770 = vmatprep.subr.mxu1 %v21249_v44  ;;  %9803 = vmatprep.subr.mxu0 %v21249_v44 }
 0x698   : > { %9771 = vmatpush3.msra.mxu1 %v21509_v24  ;;  %9804 = vmatpush3.msra.mxu0 %v21510_v55  ;;  %10419 = vtanh.f32 %v2146_v9  ;;  %v21528_v9 = vld [vmem:[#allocation72_spill] sm:$0xff]  ;;  %v21530_v38 = vld [vmem:[#allocation74_spill] sm:$0xff]  ;;  %v21531_v24 = vld [vmem:[#allocation75_spill] sm:$0xff] }
 0x699   : > { %9772 = vmatprep.subr.mxu1 %v21249_v44  ;;  %9805 = vmatprep.subr.mxu0 %v21249_v44 }
 0x69a   : > { %9773 = vmatpush3.msra.mxu1 %v21511_v43  ;;  %9806 = vmatpush3.msra.mxu0 %v21512_v56  ;;  %v21532_v43 = vld [vmem:[#allocation76_spill] sm:$0xff] }
 0x69b   : > { %9774 = vmatprep.subr.mxu1 %v21249_v44  ;;  %9807 = vmatprep.subr.mxu0 %v21249_v44 }
 0x69c   : > { %9775 = vmatpush3.msra.mxu1 %v21513_v57  ;;  %9808 = vmatpush3.msra.mxu0 %v21514_v62  ;;  %v21533_v57 = vld [vmem:[#allocation77_spill] sm:$0xff] }
 0x69d   : > { %9776 = vmatprep.subr.mxu1 %v21249_v44  ;;  %9809 = vmatprep.mubr.msk.f32.mxu0 %vm11611_vm6, %v21249_v44 }
 0x69e   : > { %9777 = vmatpush3.msra.mxu1 %v21515_v0  ;;  %2664 = vmatprep.subr.mxu0 %v21516_v2  ;;  %v21534_v0 = vld [vmem:[#allocation78_spill] sm:$0xff]  ;;  %v21535_v2 = vld [vmem:[#allocation79_spill] sm:$0xff] }
 0x69f   : > { %9778 = vmatprep.subr.mxu1 %v21249_v44 }
 0x6a0   : > { %9779 = vmatpush3.msra.mxu1 %v21517_v8  ;;  %v21536_v8 = vld [vmem:[#allocation80_spill] sm:$0xff] }
 0x6a1   : > { %9780 = vmatprep.subr.mxu1 %v21249_v44 }
 0x6a2   : > { %9781 = vmatpush3.msra.mxu1 %v21518_v11  ;;  %v21537_v11 = vld [vmem:[#allocation81_spill] sm:$0xff] }
 0x6a3   : > { %9782 = vmatprep.subr.mxu1 %v21249_v44 }
 0x6a4   : > { %9783 = vmatpush3.msra.mxu1 %v21519_v12  ;;  %v21538_v12 = vld [vmem:[#allocation82_spill] sm:$0xff] }
 0x6a5   : > { %9784 = vmatprep.subr.mxu1 %v21249_v44  ;;  %v10420_v25 = vpop.eup %10419 }
 0x6a6   : > { %9785 = vmatpush3.msra.mxu1 %v21520_v26  ;;  %v2166_v36 = vmul.f32 %v10420_v25, %v21522_v40  ;;  %v21539_v25 = vld [vmem:[#allocation83_spill] sm:$0xff]  ;;  %v21540_v26 = vld [vmem:[#allocation84_spill] sm:$0xff] }
 0x6a7   : > { %9786 = vmatprep.subr.mxu1 %v21249_v44 }
 0x6a8   : > { %9787 = vmatpush3.msra.mxu1 %v21521_v27  ;;  %v21541_v27 = vld [vmem:[#allocation85_spill] sm:$0xff] }
 0x6a9   : > { %9788 = vmatprep.subr.mxu1 %v21249_v44 }
 0x6aa   : > { %9789 = vmatpush3.msra.mxu1 %v21523_v21  ;;  %v21543_v21 = vld [vmem:[#allocation87_spill] sm:$0xff] }
 0x6ab   : > { %9791 = vmatmul.mubr.f32.vlgmr.msra.gmra.mxu1 %v2166_v36  ;;  %2593 = vmatprep.subr.mxu1 %v21524_v51  ;;  %v21542_v36 = vld [vmem:[#allocation86_spill] sm:$0xff]  ;;  %v21544_v51 = vld [vmem:[#allocation88_spill] sm:$0xff] }
 0x6ac   : > { %2594 = vmatpush1.msra.mxu1 %v21525_v45  ;;  %2657 = vmatprep.mubr.f32.mxu1 %v21249_v44  ;;  %v21545_v45 = vld [vmem:[#allocation89_spill] sm:$0xff] }
 0x6ad   : > { %2595 = vmatprep.subr.mxu1 %v21526_v49  ;;  %v21546_v49 = vld [vmem:[#allocation90_spill] sm:$0xff] }
 0x6ae   : > { %2596 = vmatpush1.msra.mxu1 %v21527_v53  ;;  %v21547_v53 = vld [vmem:[#allocation91_spill] sm:$0xff] }
 0x6af   : > { %2597 = vmatprep.subr.mxu1 %v21528_v9  ;;  %v21548_v9 = vld [vmem:[#allocation92_spill] sm:$0xff] }
 0x6b0   : > { %2598 = vmatpush1.msra.mxu1 %v21529_v48  ;;  %v21549_v48 = vld [vmem:[#allocation93_spill] sm:$0xff] }
 0x6b1   : > { %2599 = vmatprep.subr.mxu1 %v21530_v38  ;;  %v21550_v38 = vld [vmem:[#allocation94_spill] sm:$0xff] }
 0x6b2   : > { %2600 = vmatpush1.msra.mxu1 %v21531_v24  ;;  %v21551_v24 = vld [vmem:[#allocation95_spill] sm:$0xff] }
 0x6b3   : > { %2601 = vmatprep.subr.mxu1 %v21532_v43  ;;  %v21552_v43 = vld [vmem:[#allocation96_spill] sm:$0xff] }
 0x6b4   : > { %2602 = vmatpush1.msra.mxu1 %v21533_v57  ;;  %v21553_v57 = vld [vmem:[#allocation97_spill] sm:$0xff] }
 0x6b5   : > { %2603 = vmatprep.subr.mxu1 %v21534_v0  ;;  %v21554_v0 = vld [vmem:[#allocation98_spill] sm:$0xff] }
 0x6b6   : > { %2604 = vmatpush1.msra.mxu1 %v21535_v2  ;;  %v21555_v2 = vld [vmem:[#allocation99_spill] sm:$0xff] }
 0x6b7   : > { %2605 = vmatprep.subr.mxu1 %v21536_v8  ;;  %v21556_v8 = vld [vmem:[#allocation100_spill] sm:$0xff] }
 0x6b8   : > { %2606 = vmatpush1.msra.mxu1 %v21537_v11 }
 0x6b9   : > { %2607 = vmatprep.subr.mxu1 %v21538_v12 }
 0x6ba   : > { %2608 = vmatpush1.msra.mxu1 %v21539_v25 }
 0x6bb   : > { %2609 = vmatprep.subr.mxu1 %v21540_v26 }
 0x6bc   : > { %2610 = vmatpush1.msra.mxu1 %v21541_v27 }
 0x6bd   : > { %2611 = vmatprep.subr.mxu1 %v21542_v36 }
 0x6be   : > { %2612 = vmatpush1.msra.mxu1 %v21543_v21 }
 0x6bf   : > { %2613 = vmatprep.subr.mxu1 %v21544_v51 }
 0x6c0   : > { %2614 = vmatpush1.msra.mxu1 %v21545_v45 }
 0x6c1   : > { %2615 = vmatprep.subr.mxu1 %v21546_v49 }
 0x6c2   : > { %2616 = vmatpush1.msra.mxu1 %v21547_v53 }
 0x6c3   : > { %2617 = vmatprep.subr.mxu1 %v21548_v9 }
 0x6c4   : > { %2618 = vmatpush1.msra.mxu1 %v21549_v48 }
 0x6c5   : > { %2619 = vmatprep.subr.mxu1 %v21550_v38 }
 0x6c6   : > { %2620 = vmatpush1.msra.mxu1 %v21551_v24 }
 0x6c7   : > { %2621 = vmatprep.subr.mxu1 %v21552_v43 }
 0x6c8   : > { %2622 = vmatpush1.msra.mxu1 %v21553_v57 }
 0x6c9   : > { %2623 = vmatprep.subr.mxu1 %v21554_v0 }
 0x6ca   : > { %2624 = vmatpush1.msra.mxu1 %v21555_v2 }
 0x6cb   : > { %2735 = vmatprep.subr.mxu1 %v21556_v8 }
 0x729   : > { %v8371_v11 = vpop.f32.mrf.mxu1 }
 0x72a   : > { %v8406_v12 = vpop.f32.mrf.mxu0 }
 0x72b   : > { %v8372_v25 = vpop.f32.mrf.mxu1 }
 0x72c   : > { %v8407_v27 = vpop.f32.mrf.mxu0  ;;  %v8373_v21 = vadd.f32 %v8372_v25, %v8371_v11  ;;  %v21558_v11 = vld [vmem:[#allocation102_spill] sm:$0xff]  ;;  %v21561_v25 = vld [vmem:[#allocation105_spill] sm:$0xff] }
 0x72d   : > { %v8408_v51 = vadd.f32 %v8407_v27, %v8406_v12  ;;  %v21559_v12 = vld [vmem:[#allocation103_spill] sm:$0xff]  ;;  %v21570_v27 = vld [vmem:[#allocation114_spill] sm:$0xff] }
 0x72f   : > { %v2304_v53 = vadd.f32 %v8408_v51, %v8373_v21  ;;  %v21572_v21 = vld [vmem:[#allocation116_spill] sm:$0xff]  ;;  %v21573_v51 = vld [vmem:[#allocation117_spill] sm:$0xff] }
 0x74a   : > { %v8441_v26 = vpop.f32.mrf.mxu1 }
 0x74b   : > { %v8476_v45 = vpop.f32.mrf.mxu0 }
 0x74c   : > { %v8442_v36 = vpop.f32.mrf.mxu1 }
 0x74d   : > { %v8443_v49 = vadd.f32 %v8442_v36, %v8441_v26  ;;  %v8477_v9 = vpop.f32.mrf.mxu0  ;;  %v21569_v26 = vld [vmem:[#allocation113_spill] sm:$0xff]  ;;  %v21571_v36 = vld [vmem:[#allocation115_spill] sm:$0xff] }
 0x74e   : > { %v8478_v38 = vadd.f32 %v8477_v9, %v8476_v45  ;;  %v21574_v45 = vld [vmem:[#allocation118_spill] sm:$0xff]  ;;  %v21577_v9 = vld [vmem:[#allocation121_spill] sm:$0xff] }
 0x74f   : > { %v2374_v48 = vadd.f32 %v8443_v49, %v2304_v53  ;;  %v21575_v49 = vld [vmem:[#allocation119_spill] sm:$0xff]  ;;  %v21576_v53 = vld [vmem:[#allocation120_spill] sm:$0xff] }
 0x751   : > { %v2444_v24 = vadd.f32 %v8478_v38, %v2374_v48  ;;  %v21578_v48 = vld [vmem:[#allocation122_spill] sm:$0xff]  ;;  %v21579_v38 = vld [vmem:[#allocation123_spill] sm:$0xff] }
 0x76b   : > { %v2513_v43 = vpop.f32.mrf.mxu1 }
 0x76c   : > { %v14668_v57 = vadd.f32 %v2513_v43, %v2444_v24  ;;  %v21580_v24 = vld [vmem:[#allocation124_spill] sm:$0xff]  ;;  %v21581_v43 = vld [vmem:[#allocation125_spill] sm:$0xff] }
 0x76d   : > { %v9792_v0 = vpop.f32.mrf.mxu1 }
 0x76e   : > { %21557 = vst [vmem:[#allocation24_spill] sm:$0xff] %v14668_v57  ;;  %v2517_v2 = vmul.f32 0.5, %v14668_v57  ;;  %v15112_v57 = vld [vmem:[%s20553_s12 + $0x220] sm:$0xff] }
 0x76f   : > { %21736 = vst [vmem:[#allocation33_spill] sm:$0xff] %v15112_v57 }
 0x770   : > { %v2518_v8 = vadd.f32 %v21216_v31, %v2517_v2  ;;  %v21582_v2 = vld [vmem:[#allocation20_spill] sm:$0xff] }
 0x772   : > { %9810 = vmatmul.mubr.msk.f32.vlgmr.msra.gmra.mxu0 %vm587_vm7, %v2518_v8 }
 0x773   : > { %2665 = vmatpush1.msra.mxu0 %v13371_v13  ;;  %2728 = vmatprep.mubr.f32.mxu0 %v21249_v44  ;;  %v21560_v13 = vld [vmem:[#allocation104_spill] sm:$0xff] }
 0x774   : > { %2666 = vmatprep.subr.mxu0 %v13378_v14  ;;  %v21562_v14 = vld [vmem:[#allocation106_spill] sm:$0xff] }
 0x775   : > { %2667 = vmatpush1.msra.mxu0 %v13384_v1  ;;  %v21563_v1 = vld [vmem:[#allocation107_spill] sm:$0xff] }
 0x776   : > { %2668 = vmatprep.subr.mxu0 %v13390_v15  ;;  %v21564_v15 = vld [vmem:[#allocation108_spill] sm:$0xff] }
 0x777   : > { %2669 = vmatpush1.msra.mxu0 %v13396_v16  ;;  %v21565_v16 = vld [vmem:[#allocation109_spill] sm:$0xff] }
 0x778   : > { %2670 = vmatprep.subr.mxu0 %v13402_v17  ;;  %v21566_v17 = vld [vmem:[#allocation110_spill] sm:$0xff] }
 0x779   : > { %2671 = vmatpush1.msra.mxu0 %v13408_v19  ;;  %v21567_v19 = vld [vmem:[#allocation111_spill] sm:$0xff] }
 0x77a   : > { %2672 = vmatprep.subr.mxu0 %v13414_v20  ;;  %v21568_v20 = vld [vmem:[#allocation112_spill] sm:$0xff] }
 0x77b   : > { %2673 = vmatpush1.msra.mxu0 %v21558_v11 }
 0x77c   : > { %2674 = vmatprep.subr.mxu0 %v21559_v12 }
 0x77d   : > { %2675 = vmatpush1.msra.mxu0 %v21560_v13  ;;  %v21583_v13 = vld [vmem:[#allocation126_spill] sm:$0xff] }
 0x77e   : > { %2676 = vmatprep.subr.mxu0 %v21561_v25  ;;  %v21584_v25 = vld [vmem:[#allocation127_spill] sm:$0xff] }
 0x77f   : > { %2677 = vmatpush1.msra.mxu0 %v21562_v14  ;;  %v21585_v14 = vld [vmem:[#allocation128_spill] sm:$0xff] }
 0x780   : > { %2678 = vmatprep.subr.mxu0 %v21563_v1  ;;  %v21586_v1 = vld [vmem:[#allocation129_spill] sm:$0xff] }
 0x781   : > { %2679 = vmatpush1.msra.mxu0 %v21564_v15  ;;  %v21587_v15 = vld [vmem:[#allocation130_spill] sm:$0xff] }
 0x782   : > { %2680 = vmatprep.subr.mxu0 %v21565_v16  ;;  %v21588_v16 = vld [vmem:[#allocation131_spill] sm:$0xff] }
 0x783   : > { %2681 = vmatpush1.msra.mxu0 %v21566_v17  ;;  %v21589_v17 = vld [vmem:[#allocation132_spill] sm:$0xff] }
 0x784   : > { %2682 = vmatprep.subr.mxu0 %v21567_v19  ;;  %v21590_v19 = vld [vmem:[#allocation133_spill] sm:$0xff] }
 0x785   : > { %2683 = vmatpush1.msra.mxu0 %v21568_v20  ;;  %v21591_v20 = vld [vmem:[#allocation134_spill] sm:$0xff] }
 0x786   : > { %2684 = vmatprep.subr.mxu0 %v21569_v26  ;;  %v21592_v26 = vld [vmem:[#allocation135_spill] sm:$0xff] }
 0x787   : > { %2685 = vmatpush1.msra.mxu0 %v21570_v27  ;;  %v21593_v27 = vld [vmem:[#allocation136_spill] sm:$0xff] }
 0x788   : > { %2686 = vmatprep.subr.mxu0 %v21571_v36  ;;  %v21594_v36 = vld [vmem:[#allocation137_spill] sm:$0xff] }
 0x789   : > { %2687 = vmatpush1.msra.mxu0 %v21572_v21  ;;  %v21595_v21 = vld [vmem:[#allocation138_spill] sm:$0xff] }
 0x78a   : > { %2688 = vmatprep.subr.mxu0 %v21573_v51  ;;  %v21596_v51 = vld [vmem:[#allocation139_spill] sm:$0xff] }
 0x78b   : > { %2689 = vmatpush1.msra.mxu0 %v21574_v45  ;;  %v21597_v45 = vld [vmem:[#allocation140_spill] sm:$0xff] }
 0x78c   : > { %2690 = vmatprep.subr.mxu0 %v21575_v49  ;;  %v21598_v49 = vld [vmem:[#allocation141_spill] sm:$0xff] }
 0x78d   : > { %2691 = vmatpush1.msra.mxu0 %v21576_v53  ;;  %v21599_v53 = vld [vmem:[#allocation142_spill] sm:$0xff] }
 0x78e   : > { %2692 = vmatprep.subr.mxu0 %v21577_v9  ;;  %v21600_v9 = vld [vmem:[#allocation143_spill] sm:$0xff] }
 0x78f   : > { %2693 = vmatpush1.msra.mxu0 %v21578_v48  ;;  %v21601_v48 = vld [vmem:[#allocation144_spill] sm:$0xff] }
 0x790   : > { %2694 = vmatprep.subr.mxu0 %v21579_v38  ;;  %v21602_v38 = vld [vmem:[#allocation145_spill] sm:$0xff] }
 0x791   : > { %2695 = vmatpush1.msra.mxu0 %v21580_v24  ;;  %v21603_v24 = vld [vmem:[#allocation146_spill] sm:$0xff] }
 0x792   : > { %2806 = vmatprep.subr.mxu0 %v21581_v43  ;;  %v21604_v43 = vld [vmem:[#allocation147_spill] sm:$0xff] }
 0x832   : > { %v2588_v0 = vpop.f32.mrf.mxu0 }
 0x833   : > { %v2589_v8 = vadd.f32 %v2588_v0, %v21582_v2  ;;  %v21605_v0 = vld [vmem:[#allocation148_spill] sm:$0xff] }
 0x834   : > { %v9811_v11 = vpop.f32.mrf.mxu0 }
 0x835   : > { %v14707_v12 = vmax.f32 %v2589_v8, 0.0  ;;  %v21606_v8 = vld [vmem:[#allocation149_spill] sm:$0xff]  ;;  %v21607_v11 = vld [vmem:[#allocation150_spill] sm:$0xff] }
 0x837   : > { %2658 = vmatmul.mubr.f32.vlgmr.msra.gmra.mxu1 %v14707_v12  ;;  %2729 = vmatmul.mubr.f32.vlgmr.msra.gmra.mxu0 %v14707_v12 }
 0x838   : > { %2736 = vmatpush1.msra.mxu1 %v21583_v13  ;;  %2807 = vmatpush1.msra.mxu0 %v21584_v25  ;;  %v21608_v13 = vld [vmem:[#allocation151_spill] sm:$0xff]  ;;  %v21609_v25 = vld [vmem:[#allocation152_spill] sm:$0xff] }
 0x839   : > { %2737 = vmatprep.subr.mxu1 %v21585_v14  ;;  %2808 = vmatprep.subr.mxu0 %v21586_v1  ;;  %v21610_v14 = vld [vmem:[#allocation153_spill] sm:$0xff]  ;;  %v21611_v1 = vld [vmem:[#allocation154_spill] sm:$0xff] }
 0x83a   : > { %2738 = vmatpush1.msra.mxu1 %v21587_v15  ;;  %2809 = vmatpush1.msra.mxu0 %v21588_v16  ;;  %v21612_v15 = vld [vmem:[#allocation155_spill] sm:$0xff]  ;;  %v21613_v16 = vld [vmem:[#allocation156_spill] sm:$0xff] }
 0x83b   : > { %2739 = vmatprep.subr.mxu1 %v21589_v17  ;;  %2810 = vmatprep.subr.mxu0 %v21590_v19  ;;  %v21614_v17 = vld [vmem:[#allocation157_spill] sm:$0xff]  ;;  %v21615_v19 = vld [vmem:[#allocation158_spill] sm:$0xff] }
 0x83c   : > { %2740 = vmatpush1.msra.mxu1 %v21591_v20  ;;  %2811 = vmatpush1.msra.mxu0 %v21592_v26  ;;  %v21616_v20 = vld [vmem:[#allocation159_spill] sm:$0xff]  ;;  %v21617_v26 = vld [vmem:[#allocation160_spill] sm:$0xff] }
 0x83d   : > { %2741 = vmatprep.subr.mxu1 %v21593_v27  ;;  %2812 = vmatprep.subr.mxu0 %v21594_v36  ;;  %v21618_v27 = vld [vmem:[#allocation161_spill] sm:$0xff]  ;;  %v21619_v36 = vld [vmem:[#allocation162_spill] sm:$0xff] }
 0x83e   : > { %2742 = vmatpush1.msra.mxu1 %v21595_v21  ;;  %2813 = vmatpush1.msra.mxu0 %v21596_v51  ;;  %v21620_v21 = vld [vmem:[#allocation163_spill] sm:$0xff]  ;;  %v21621_v51 = vld [vmem:[#allocation164_spill] sm:$0xff] }
 0x83f   : > { %2743 = vmatprep.subr.mxu1 %v21597_v45  ;;  %2814 = vmatprep.subr.mxu0 %v21598_v49  ;;  %v21622_v45 = vld [vmem:[#allocation165_spill] sm:$0xff]  ;;  %v21623_v49 = vld [vmem:[#allocation166_spill] sm:$0xff] }
 0x840   : > { %2744 = vmatpush1.msra.mxu1 %v21599_v53  ;;  %2815 = vmatpush1.msra.mxu0 %v21600_v9  ;;  %v21624_v53 = vld [vmem:[#allocation167_spill] sm:$0xff]  ;;  %v21625_v9 = vld [vmem:[#allocation168_spill] sm:$0xff] }
 0x841   : > { %2745 = vmatprep.subr.mxu1 %v21601_v48  ;;  %2816 = vmatprep.subr.mxu0 %v21602_v38  ;;  %v21626_v48 = vld [vmem:[#allocation169_spill] sm:$0xff]  ;;  %v21627_v38 = vld [vmem:[#allocation170_spill] sm:$0xff] }
 0x842   : > { %2746 = vmatpush1.msra.mxu1 %v21603_v24  ;;  %2817 = vmatpush1.msra.mxu0 %v21604_v43  ;;  %v21628_v24 = vld [vmem:[#allocation171_spill] sm:$0xff]  ;;  %v21629_v43 = vld [vmem:[#allocation172_spill] sm:$0xff] }
 0x843   : > { %2747 = vmatprep.subr.mxu1 %v21605_v0  ;;  %2818 = vmatprep.subr.mxu0 %v21606_v8  ;;  %v21630_v0 = vld [vmem:[#allocation173_spill] sm:$0xff]  ;;  %v21631_v8 = vld [vmem:[#allocation174_spill] sm:$0xff] }
 0x844   : > { %2748 = vmatpush1.msra.mxu1 %v21607_v11  ;;  %2819 = vmatpush1.msra.mxu0 %v21608_v13  ;;  %v21632_v11 = vld [vmem:[#allocation175_spill] sm:$0xff]  ;;  %v21633_v13 = vld [vmem:[#allocation176_spill] sm:$0xff] }
 0x845   : > { %2749 = vmatprep.subr.mxu1 %v21609_v25  ;;  %2820 = vmatprep.subr.mxu0 %v21610_v14  ;;  %v21634_v25 = vld [vmem:[#allocation177_spill] sm:$0xff]  ;;  %v21635_v14 = vld [vmem:[#allocation178_spill] sm:$0xff] }
 0x846   : > { %2750 = vmatpush1.msra.mxu1 %v21611_v1  ;;  %2821 = vmatpush1.msra.mxu0 %v21612_v15  ;;  %v21636_v1 = vld [vmem:[#allocation179_spill] sm:$0xff]  ;;  %v21637_v15 = vld [vmem:[#allocation180_spill] sm:$0xff] }
 0x847   : > { %2751 = vmatprep.subr.mxu1 %v21613_v16  ;;  %2822 = vmatprep.subr.mxu0 %v21614_v17  ;;  %v21638_v16 = vld [vmem:[#allocation181_spill] sm:$0xff]  ;;  %v21639_v17 = vld [vmem:[#allocation182_spill] sm:$0xff] }
 0x848   : > { %2752 = vmatpush1.msra.mxu1 %v21615_v19  ;;  %2823 = vmatpush1.msra.mxu0 %v21616_v20  ;;  %v21640_v19 = vld [vmem:[#allocation183_spill] sm:$0xff]  ;;  %v21641_v20 = vld [vmem:[#allocation184_spill] sm:$0xff] }
 0x849   : > { %2753 = vmatprep.subr.mxu1 %v21617_v26  ;;  %2824 = vmatprep.subr.mxu0 %v21618_v27  ;;  %v21642_v26 = vld [vmem:[#allocation185_spill] sm:$0xff]  ;;  %v21643_v27 = vld [vmem:[#allocation186_spill] sm:$0xff] }
 0x84a   : > { %2754 = vmatpush1.msra.mxu1 %v21619_v36  ;;  %2825 = vmatpush1.msra.mxu0 %v21620_v21  ;;  %v21644_v36 = vld [vmem:[#allocation187_spill] sm:$0xff]  ;;  %v21645_v21 = vld [vmem:[#allocation188_spill] sm:$0xff] }
 0x84b   : > { %2755 = vmatprep.subr.mxu1 %v21621_v51  ;;  %2826 = vmatprep.subr.mxu0 %v21622_v45  ;;  %v21646_v51 = vld [vmem:[#allocation189_spill] sm:$0xff]  ;;  %v21647_v45 = vld [vmem:[#allocation190_spill] sm:$0xff] }
 0x84c   : > { %2756 = vmatpush1.msra.mxu1 %v21623_v49  ;;  %2827 = vmatpush1.msra.mxu0 %v21624_v53  ;;  %v21648_v49 = vld [vmem:[#allocation191_spill] sm:$0xff]  ;;  %v21649_v53 = vld [vmem:[#allocation192_spill] sm:$0xff] }
 0x84d   : > { %2757 = vmatprep.subr.mxu1 %v21625_v9  ;;  %2828 = vmatprep.subr.mxu0 %v21626_v48  ;;  %v21650_v9 = vld [vmem:[#allocation193_spill] sm:$0xff]  ;;  %v21651_v48 = vld [vmem:[#allocation194_spill] sm:$0xff] }
 0x84e   : > { %2758 = vmatpush1.msra.mxu1 %v21627_v38  ;;  %2829 = vmatpush1.msra.mxu0 %v21628_v24  ;;  %v21652_v38 = vld [vmem:[#allocation195_spill] sm:$0xff]  ;;  %v21653_v24 = vld [vmem:[#allocation196_spill] sm:$0xff] }
 0x84f   : > { %2759 = vmatprep.subr.mxu1 %v21629_v43  ;;  %2830 = vmatprep.subr.mxu0 %v21630_v0  ;;  %v21654_v43 = vld [vmem:[#allocation197_spill] sm:$0xff]  ;;  %v21655_v0 = vld [vmem:[#allocation198_spill] sm:$0xff] }
 0x850   : > { %2760 = vmatpush1.msra.mxu1 %v21631_v8  ;;  %2831 = vmatpush1.msra.mxu0 %v21632_v11  ;;  %v21656_v8 = vld [vmem:[#allocation199_spill] sm:$0xff]  ;;  %v21657_v11 = vld [vmem:[#allocation200_spill] sm:$0xff] }
 0x851   : > { %2761 = vmatprep.subr.mxu1 %v21633_v13  ;;  %2832 = vmatprep.subr.mxu0 %v21634_v25  ;;  %v21658_v13 = vld [vmem:[#allocation201_spill] sm:$0xff]  ;;  %v21659_v25 = vld [vmem:[#allocation202_spill] sm:$0xff] }
 0x852   : > { %2762 = vmatpush1.msra.mxu1 %v21635_v14  ;;  %2833 = vmatpush1.msra.mxu0 %v21636_v1  ;;  %v21660_v14 = vld [vmem:[#allocation203_spill] sm:$0xff]  ;;  %v21661_v1 = vld [vmem:[#allocation204_spill] sm:$0xff] }
 0x853   : > { %2763 = vmatprep.subr.mxu1 %v21637_v15  ;;  %2834 = vmatprep.subr.mxu0 %v21638_v16  ;;  %v21662_v15 = vld [vmem:[#allocation205_spill] sm:$0xff]  ;;  %v21663_v16 = vld [vmem:[#allocation206_spill] sm:$0xff] }
 0x854   : > { %2764 = vmatpush1.msra.mxu1 %v21639_v17  ;;  %2835 = vmatpush1.msra.mxu0 %v21640_v19  ;;  %v21664_v17 = vld [vmem:[#allocation207_spill] sm:$0xff]  ;;  %v21665_v19 = vld [vmem:[#allocation208_spill] sm:$0xff] }
 0x855   : > { %2765 = vmatprep.subr.mxu1 %v21641_v20  ;;  %2836 = vmatprep.subr.mxu0 %v21642_v26  ;;  %v21666_v20 = vld [vmem:[#allocation209_spill] sm:$0xff]  ;;  %v21667_v26 = vld [vmem:[#allocation210_spill] sm:$0xff] }
 0x856   : > { %2766 = vmatpush1.msra.mxu1 %v21643_v27  ;;  %2799 = vmatprep.mubr.f32.mxu1 %v21249_v44  ;;  %v21668_v27 = vld [vmem:[#allocation211_spill] sm:$0xff] }
 0x857   : > { %2837 = vmatpush1.msra.mxu0 %v21644_v36  ;;  %2870 = vmatprep.mubr.f32.mxu0 %v21249_v44  ;;  %v21669_v36 = vld [vmem:[#allocation212_spill] sm:$0xff] }
 0x858   : > { %2800 = vmatmul.mubr.f32.vlgmr.msra.gmra.mxu1 %v14707_v12  ;;  %2871 = vmatmul.mubr.f32.vlgmr.msra.gmra.mxu0 %v14707_v12 }
 0x859   : > { %9812 = vmatprep.subr.mxu1 %v21249_v44  ;;  %9844 = vmatprep.mubr.msk.f32.mxu1 %vm11611_vm6, %v21249_v44 }
 0x85a   : > { %9813 = vmatpush3.msra.mxu1 %v21645_v21  ;;  %8522 = vmatprep.subr.mxu0 %v21646_v51  ;;  %v21670_v21 = vld [vmem:[#allocation213_spill] sm:$0xff]  ;;  %v21671_v51 = vld [vmem:[#allocation214_spill] sm:$0xff] }
 0x85b   : > { %9814 = vmatprep.subr.mxu1 %v21249_v44  ;;  %8523 = vmatpush3.msra.mxu0 %v21647_v45  ;;  %v21672_v45 = vld [vmem:[#allocation215_spill] sm:$0xff] }
 0x85c   : > { %9815 = vmatpush3.msra.mxu1 %v21648_v49  ;;  %8524 = vmatprep.subr.mxu0 %v21649_v53  ;;  %v21673_v49 = vld [vmem:[#allocation216_spill] sm:$0xff]  ;;  %v21674_v53 = vld [vmem:[#allocation217_spill] sm:$0xff] }
 0x85d   : > { %9816 = vmatprep.subr.mxu1 %v21249_v44  ;;  %8525 = vmatpush3.msra.mxu0 %v21650_v9  ;;  %v21675_v9 = vld [vmem:[#allocation218_spill] sm:$0xff] }
 0x85e   : > { %9817 = vmatpush3.msra.mxu1 %v21651_v48  ;;  %8526 = vmatprep.subr.mxu0 %v21652_v38  ;;  %v21676_v48 = vld [vmem:[#allocation219_spill] sm:$0xff]  ;;  %v21677_v38 = vld [vmem:[#allocation220_spill] sm:$0xff] }
 0x85f   : > { %9818 = vmatprep.subr.mxu1 %v21249_v44  ;;  %8527 = vmatpush3.msra.mxu0 %v21653_v24  ;;  %v21678_v24 = vld [vmem:[#allocation221_spill] sm:$0xff] }
 0x860   : > { %9819 = vmatpush3.msra.mxu1 %v21654_v43  ;;  %8528 = vmatprep.subr.mxu0 %v21655_v0  ;;  %v21679_v43 = vld [vmem:[#allocation222_spill] sm:$0xff]  ;;  %v21680_v0 = vld [vmem:[#allocation223_spill] sm:$0xff] }
 0x861   : > { %9820 = vmatprep.subr.mxu1 %v21249_v44  ;;  %8529 = vmatpush3.msra.mxu0 %v21656_v8  ;;  %v21681_v8 = vld [vmem:[#allocation224_spill] sm:$0xff] }
 0x862   : > { %9821 = vmatpush3.msra.mxu1 %v21657_v11  ;;  %8530 = vmatprep.subr.mxu0 %v21658_v13  ;;  %v21682_v11 = vld [vmem:[#allocation225_spill] sm:$0xff]  ;;  %v21683_v13 = vld [vmem:[#allocation226_spill] sm:$0xff] }
 0x863   : > { %9822 = vmatprep.subr.mxu1 %v21249_v44  ;;  %8531 = vmatpush3.msra.mxu0 %v21659_v25  ;;  %v21684_v25 = vld [vmem:[#allocation227_spill] sm:$0xff] }
 0x864   : > { %9823 = vmatpush3.msra.mxu1 %v21660_v14  ;;  %8532 = vmatprep.subr.mxu0 %v21661_v1  ;;  %v21685_v14 = vld [vmem:[#allocation228_spill] sm:$0xff]  ;;  %v21686_v1 = vld [vmem:[#allocation229_spill] sm:$0xff] }
 0x865   : > { %9824 = vmatprep.subr.mxu1 %v21249_v44  ;;  %8533 = vmatpush3.msra.mxu0 %v21662_v15  ;;  %v21687_v15 = vld [vmem:[#allocation230_spill] sm:$0xff] }
 0x866   : > { %9825 = vmatpush3.msra.mxu1 %v21663_v16  ;;  %8534 = vmatprep.subr.mxu0 %v21664_v17  ;;  %v21688_v16 = vld [vmem:[#allocation231_spill] sm:$0xff]  ;;  %v21689_v17 = vld [vmem:[#allocation232_spill] sm:$0xff] }
 0x867   : > { %9826 = vmatprep.subr.mxu1 %v21249_v44  ;;  %8535 = vmatpush3.msra.mxu0 %v21665_v19  ;;  %v21690_v19 = vld [vmem:[#allocation233_spill] sm:$0xff] }
 0x868   : > { %9827 = vmatpush3.msra.mxu1 %v21666_v20  ;;  %8536 = vmatprep.subr.mxu0 %v21667_v26  ;;  %v21691_v20 = vld [vmem:[#allocation234_spill] sm:$0xff]  ;;  %v21692_v26 = vld [vmem:[#allocation235_spill] sm:$0xff] }
 0x869   : > { %9828 = vmatprep.subr.mxu1 %v21249_v44  ;;  %8537 = vmatpush3.msra.mxu0 %v21668_v27  ;;  %v21693_v27 = vld [vmem:[#allocation236_spill] sm:$0xff] }
 0x86a   : > { %9829 = vmatpush3.msra.mxu1 %v21669_v36  ;;  %8538 = vmatprep.subr.mxu0 %v21670_v21  ;;  %v21694_v36 = vld [vmem:[#allocation237_spill] sm:$0xff]  ;;  %v21695_v21 = vld [vmem:[#allocation238_spill] sm:$0xff] }
 0x86b   : > { %9830 = vmatprep.subr.mxu1 %v21249_v44  ;;  %8539 = vmatpush3.msra.mxu0 %v21671_v51  ;;  %v21696_v51 = vld [vmem:[#allocation239_spill] sm:$0xff] }
 0x86c   : > { %9831 = vmatpush3.msra.mxu1 %v21672_v45  ;;  %8540 = vmatprep.subr.mxu0 %v21673_v49  ;;  %v21697_v45 = vld [vmem:[#allocation240_spill] sm:$0xff]  ;;  %v21698_v49 = vld [vmem:[#allocation241_spill] sm:$0xff] }
 0x86d   : > { %9832 = vmatprep.subr.mxu1 %v21249_v44  ;;  %8541 = vmatpush3.msra.mxu0 %v21674_v53  ;;  %v21699_v53 = vld [vmem:[#allocation242_spill] sm:$0xff] }
 0x86e   : > { %9833 = vmatpush3.msra.mxu1 %v21675_v9  ;;  %8542 = vmatprep.subr.mxu0 %v21676_v48  ;;  %v21700_v9 = vld [vmem:[#allocation243_spill] sm:$0xff]  ;;  %v21701_v48 = vld [vmem:[#allocation244_spill] sm:$0xff] }
 0x86f   : > { %9834 = vmatprep.subr.mxu1 %v21249_v44  ;;  %8543 = vmatpush3.msra.mxu0 %v21677_v38  ;;  %v21703_v38 = vld [vmem:[#allocation246_spill] sm:$0xff] }
 0x870   : > { %9835 = vmatpush3.msra.mxu1 %v21678_v24  ;;  %8544 = vmatprep.subr.mxu0 %v21679_v43  ;;  %v21704_v24 = vld [vmem:[#allocation247_spill] sm:$0xff]  ;;  %v21705_v43 = vld [vmem:[#allocation248_spill] sm:$0xff] }
 0x871   : > { %9836 = vmatprep.subr.mxu1 %v21249_v44  ;;  %8545 = vmatpush3.msra.mxu0 %v21680_v0  ;;  %v21706_v0 = vld [vmem:[#allocation249_spill] sm:$0xff] }
 0x872   : > { %9837 = vmatpush3.msra.mxu1 %v21681_v8  ;;  %8546 = vmatprep.subr.mxu0 %v21682_v11  ;;  %v21707_v8 = vld [vmem:[#allocation250_spill] sm:$0xff]  ;;  %v21708_v11 = vld [vmem:[#allocation251_spill] sm:$0xff] }
 0x873   : > { %9838 = vmatprep.subr.mxu1 %v21249_v44  ;;  %8547 = vmatpush3.msra.mxu0 %v21683_v13  ;;  %v21709_v13 = vld [vmem:[#allocation252_spill] sm:$0xff] }
 0x874   : > { %9839 = vmatpush3.msra.mxu1 %v21684_v25  ;;  %8548 = vmatprep.subr.mxu0 %v21685_v14  ;;  %v21710_v25 = vld [vmem:[#allocation253_spill] sm:$0xff]  ;;  %v21711_v14 = vld [vmem:[#allocation254_spill] sm:$0xff] }
 0x875   : > { %9840 = vmatprep.subr.mxu1 %v21249_v44  ;;  %8549 = vmatpush3.msra.mxu0 %v21686_v1  ;;  %v21712_v1 = vld [vmem:[#allocation255_spill] sm:$0xff] }
 0x876   : > { %9841 = vmatpush3.msra.mxu1 %v21687_v15  ;;  %8550 = vmatprep.subr.mxu0 %v21688_v16  ;;  %v21713_v15 = vld [vmem:[#allocation256_spill] sm:$0xff]  ;;  %v21714_v16 = vld [vmem:[#allocation257_spill] sm:$0xff] }
 0x877   : > { %9842 = vmatprep.subr.mxu1 %v21249_v44  ;;  %8551 = vmatpush3.msra.mxu0 %v21689_v17  ;;  %v21715_v17 = vld [vmem:[#allocation258_spill] sm:$0xff] }
 0x878   : > { %9843 = vmatpush3.msra.mxu1 %v21690_v19  ;;  %8552 = vmatprep.subr.mxu0 %v21691_v20  ;;  %v21716_v19 = vld [vmem:[#allocation259_spill] sm:$0xff]  ;;  %v21717_v20 = vld [vmem:[#allocation260_spill] sm:$0xff] }
 0x879   : > { %9845 = vmatmul.mubr.f32.vlgmr.msra.gmra.mxu1 %v14707_v12  ;;  %8557 = vmatprep.subr.mxu1 %v21692_v26  ;;  %v21702_v12 = vld [vmem:[#allocation245_spill] sm:$0xff] }
 0x87a   : > { %8558 = vmatpush3.msra.mxu1 %v21693_v27  ;;  %8553 = vmatpush3.msra.mxu0 %v21694_v36  ;;  %v21718_v26 = vld [vmem:[#allocation261_spill] sm:$0xff]  ;;  %v21719_v27 = vld [vmem:[#allocation262_spill] sm:$0xff]  ;;  %v21720_v36 = vld [vmem:[#allocation263_spill] sm:$0xff] }
 0x87b   : > { %8559 = vmatprep.subr.mxu1 %v21695_v21  ;;  %8592 = vmatprep.subr.mxu0 %v21696_v51  ;;  %v21721_v21 = vld [vmem:[#allocation264_spill] sm:$0xff]  ;;  %v21722_v51 = vld [vmem:[#allocation265_spill] sm:$0xff] }
 0x87c   : > { %8560 = vmatpush3.msra.mxu1 %v21697_v45  ;;  %v21723_v45 = vld [vmem:[#allocation266_spill] sm:$0xff] }
 0x87d   : > { %8561 = vmatprep.subr.mxu1 %v21698_v49  ;;  %v21724_v49 = vld [vmem:[#allocation267_spill] sm:$0xff] }
 0x87e   : > { %8562 = vmatpush3.msra.mxu1 %v21699_v53  ;;  %v21725_v53 = vld [vmem:[#allocation268_spill] sm:$0xff] }
 0x87f   : > { %8563 = vmatprep.subr.mxu1 %v21700_v9  ;;  %v21726_v9 = vld [vmem:[#allocation269_spill] sm:$0xff] }
 0x880   : > { %8564 = vmatpush3.msra.mxu1 %v21701_v48 }
 0x881   : > { %8565 = vmatprep.subr.mxu1 %v21702_v12 }
 0x882   : > { %8566 = vmatpush3.msra.mxu1 %v21703_v38  ;;  %v21727_v38 = vld [vmem:[#allocation22_spill] sm:$0xff] }
 0x883   : > { %8567 = vmatprep.subr.mxu1 %v21704_v24 }
 0x884   : > { %8568 = vmatpush3.msra.mxu1 %v21705_v43 }
 0x885   : > { %8569 = vmatprep.subr.mxu1 %v21706_v0 }
 0x886   : > { %8570 = vmatpush3.msra.mxu1 %v21707_v8 }
 0x887   : > { %8571 = vmatprep.subr.mxu1 %v21708_v11 }
 0x888   : > { %8572 = vmatpush3.msra.mxu1 %v21709_v13 }
 0x889   : > { %8573 = vmatprep.subr.mxu1 %v21710_v25 }
 0x88a   : > { %8574 = vmatpush3.msra.mxu1 %v21711_v14 }
 0x88b   : > { %8575 = vmatprep.subr.mxu1 %v21712_v1 }
 0x88c   : > { %8576 = vmatpush3.msra.mxu1 %v21713_v15 }
 0x88d   : > { %8577 = vmatprep.subr.mxu1 %v21714_v16 }
 0x88e   : > { %8578 = vmatpush3.msra.mxu1 %v21715_v17 }
 0x88f   : > { %8579 = vmatprep.subr.mxu1 %v21716_v19 }
 0x890   : > { %8580 = vmatpush3.msra.mxu1 %v21717_v20 }
 0x891   : > { %8581 = vmatprep.subr.mxu1 %v21718_v26 }
 0x892   : > { %8582 = vmatpush3.msra.mxu1 %v21719_v27 }
 0x893   : > { %8583 = vmatprep.subr.mxu1 %v21720_v36  ;;  %v14958_v36 = vld [vmem:[%s20553_s12 + $0x3d0] sm:$0xff] }
 0x894   : > { %8584 = vmatpush3.msra.mxu1 %v21721_v21  ;;  %v14964_v21 = vld [vmem:[%s20553_s12 + $0x250] sm:$0xff] }
 0x895   : > { %8585 = vmatprep.subr.mxu1 %v21722_v51 }
 0x896   : > { %8586 = vmatpush3.msra.mxu1 %v21723_v45 }
 0x897   : > { %8587 = vmatprep.subr.mxu1 %v21724_v49  ;;  %v14972_v49 = vld [vmem:[%s20553_s12 + $0x350] sm:$0xff] }
 0x898   : > { %8588 = vmatpush3.msra.mxu1 %v21725_v53  ;;  %v14978_v53 = vld [vmem:[%s20553_s12 + $0x2c8] sm:$0xff] }
 0x899   : > { %8627 = vmatprep.subr.mxu1 %v21726_v9 }
 0x8f7   : > { %v2659_v48 = vpop.f32.mrf.mxu1  ;;  %v2730_v12 = vpop.f32.mrf.mxu0 }
 0x8f8   : > { %v2660_v24 = vadd.f32 %v2659_v48, %v21727_v38  ;;  %v2731_v43 = vadd.f32 %v2730_v12, %v12627_v4  ;;  %v14984_v12 = vld [vmem:[%s20553_s12 + $0x3c8] sm:$0xff] }
 0x8f9   : > { %v2661_v0 = vpop.f32.mrf.mxu1  ;;  %v2732_v8 = vpop.f32.mrf.mxu0 }
 0x8fa   : > { %10421 = vtanh.f32 %v2660_v24  ;;  %v2662_v11 = vadd.f32 %v2661_v0, %v12632_v6  ;;  %v2733_v13 = vadd.f32 %v2732_v8, %v12635_v7  ;;  %v14990_v24 = vld [vmem:[%s20553_s12 + $0x248] sm:$0xff] }
 0x8fb   : > { %10423 = vtanh.f32 %v2731_v43  ;;  %v14998_v8 = vld [vmem:[%s20553_s12 + $0x348] sm:$0xff] }
 0x8fc   : > { %10425 = vtanh.f32 %v2662_v11  ;;  %v15004_v11 = vld [vmem:[%s20553_s12 + $0x2c0] sm:$0xff] }
 0x8fd   : > { %10427 = vtanh.f32 %v2733_v13  ;;  %v15010_v13 = vld [vmem:[%s20553_s12 + $0x3c0] sm:$0xff] }
 0x907   : > { %v10422_v25 = vpop.eup %10421 }
 0x908   : > { %v10424_v14 = vpop.eup %10423  ;;  %v2956_v19 = vmul.f32 %v14460_v3, %v10422_v25  ;;  %v14898_v3 = vld [vmem:[%s20553_s12 + $0x368] sm:$0xff]  ;;  %v15016_v25 = vld [vmem:[%s20553_s12 + $0x240] sm:$0xff] }
 0x909   : > { %v10426_v1 = vpop.eup %10425  ;;  %v2958_v20 = vmul.f32 %v10424_v14, %v12140_v34  ;;  %v15022_v14 = vld [vmem:[%s20553_s12 + $0x340] sm:$0xff] }
 0x90a   : > { %v10428_v15 = vpop.eup %10427  ;;  %v2957_v16 = vmul.f32 %v10426_v1, %v12136_v32  ;;  %v15028_v1 = vld [vmem:[%s20553_s12 + $0x2b8] sm:$0xff] }
 0x90b   : > { %v2959_v17 = vmul.f32 %v10428_v15, %v12613_v60  ;;  %v15034_v15 = vld [vmem:[%s20553_s12 + $0x3b8] sm:$0xff] }
 0x90c   : > { %3029 = vmatprep.mubr.f32.mxu0 %v2957_v16  ;;  %v15040_v16 = vld [vmem:[%s20553_s12 + $0x238] sm:$0xff] }
 0x90d   : > { %3099 = vmatprep.mubr.f32.mxu1 %v2959_v17  ;;  %3030 = vmatmul.mubr.f32.vlgmr.msra.gmra.mxu0 %v2956_v19  ;;  %v15046_v17 = vld [vmem:[%s20553_s12 + $0x338] sm:$0xff]  ;;  %v15052_v19 = vld [vmem:[%s20553_s12 + $0x2b0] sm:$0xff] }
 0x90e   : > { %3100 = vmatmul.mubr.f32.vlgmr.msra.gmra.mxu1 %v2958_v20  ;;  %8593 = vmatpush3.msra.mxu0 %v14467_v47  ;;  %v14904_v47 = vld [vmem:[%s20553_s12 + $0x2e0] sm:$0xff]  ;;  %v15058_v20 = vld [vmem:[%s20553_s12 + $0x3b0] sm:$0xff] }
 0x90f   : > { %8628 = vmatpush3.msra.mxu1 %v14473_v5  ;;  %8594 = vmatprep.subr.mxu0 %v14479_v39  ;;  %v14910_v5 = vld [vmem:[%s20553_s12 + $0x3e0] sm:$0xff] }
 0x910   : > { %8629 = vmatprep.subr.mxu1 %v14485_v42  ;;  %8595 = vmatpush3.msra.mxu0 %v14491_v10  ;;  %v14916_v39 = vld [vmem:[%s20553_s12 + $0x260] sm:$0xff]  ;;  %v14928_v10 = vld [vmem:[%s20553_s12 + $0x2d8] sm:$0xff] }
 0x911   : > { %8630 = vmatpush3.msra.mxu1 %v14497_v18  ;;  %8596 = vmatprep.subr.mxu0 %v14503_v59  ;;  %v14922_v42 = vld [vmem:[%s20553_s12 + $0x360] sm:$0xff]  ;;  %v14934_v18 = vld [vmem:[%s20553_s12 + $0x3d8] sm:$0xff] }
 0x912   : > { %8631 = vmatprep.subr.mxu1 %v14509_v58  ;;  %8597 = vmatpush3.msra.mxu0 %v14515_v35  ;;  %v14940_v59 = vld [vmem:[%s20553_s12 + $0x258] sm:$0xff]  ;;  %v14952_v35 = vld [vmem:[%s20553_s12 + $0x2d0] sm:$0xff] }
 0x913   : > { %8632 = vmatpush3.msra.mxu1 %v14898_v3  ;;  %8598 = vmatprep.subr.mxu0 %v14904_v47  ;;  %v14946_v58 = vld [vmem:[%s20553_s12 + $0x358] sm:$0xff] }
 0x914   : > { %8633 = vmatprep.subr.mxu1 %v14910_v5  ;;  %8599 = vmatpush3.msra.mxu0 %v14916_v39 }
 0x915   : > { %8634 = vmatpush3.msra.mxu1 %v14922_v42  ;;  %8600 = vmatprep.subr.mxu0 %v14928_v10 }
 0x916   : > { %8635 = vmatprep.subr.mxu1 %v14934_v18  ;;  %8601 = vmatpush3.msra.mxu0 %v14940_v59 }
 0x917   : > { %8636 = vmatpush3.msra.mxu1 %v14946_v58  ;;  %8602 = vmatprep.subr.mxu0 %v14952_v35 }
 0x918   : > { %v2801_v26 = vpop.f32.mrf.mxu1  ;;  %v2872_v27 = vpop.f32.mrf.mxu0  ;;  %8637 = vmatprep.subr.mxu1 %v14958_v36  ;;  %8603 = vmatpush3.msra.mxu0 %v14964_v21 }
 0x919   : > { %v2802_v51 = vadd.f32 %v2801_v26, %v12739_v33  ;;  %v2873_v45 = vadd.f32 %v2872_v27, %v12742_v22  ;;  %8638 = vmatpush3.msra.mxu1 %v14972_v49  ;;  %8604 = vmatprep.subr.mxu0 %v14978_v53  ;;  %v15064_v26 = vld [vmem:[%s20553_s12 + $0x230] sm:$0xff] }
 0x91a   : > { %v2803_v9 = vpop.f32.mrf.mxu1  ;;  %v2874_v48 = vpop.f32.mrf.mxu0  ;;  %8639 = vmatprep.subr.mxu1 %v14984_v12  ;;  %8605 = vmatpush3.msra.mxu0 %v14990_v24  ;;  %21728 = vst [vmem:[#allocation25_spill] sm:$0xff] %v15064_v26  ;;  %v15070_v27 = vld [vmem:[%s20553_s12 + $0x330] sm:$0xff] }
 0x91b   : > { %10429 = vtanh.f32 %v2802_v51  ;;  %v2804_v43 = vadd.f32 %v2803_v9, %v12769_v29  ;;  %v2875_v0 = vadd.f32 %v2874_v48, %v12772_v30  ;;  %8640 = vmatpush3.msra.mxu1 %v14998_v8  ;;  %8606 = vmatprep.subr.mxu0 %v15004_v11  ;;  %21729 = vst [vmem:[#allocation26_spill] sm:$0xff] %v15070_v27  ;;  %v15076_v51 = vld [vmem:[%s20553_s12 + $0x2a8] sm:$0xff] }
 0x91c   : > { %10431 = vtanh.f32 %v2873_v45  ;;  %8641 = vmatprep.subr.mxu1 %v15010_v13  ;;  %8607 = vmatpush3.msra.mxu0 %v15016_v25  ;;  %21730 = vst [vmem:[#allocation27_spill] sm:$0xff] %v15076_v51  ;;  %v15082_v45 = vld [vmem:[%s20553_s12 + $0x3a8] sm:$0xff] }
 0x91d   : > { %10433 = vtanh.f32 %v2804_v43  ;;  %8642 = vmatpush3.msra.mxu1 %v15022_v14  ;;  %8608 = vmatprep.subr.mxu0 %v15028_v1  ;;  %21731 = vst [vmem:[#allocation28_spill] sm:$0xff] %v15082_v45  ;;  %v15088_v9 = vld [vmem:[%s20553_s12 + $0x228] sm:$0xff]  ;;  %v15100_v43 = vld [vmem:[%s20553_s12 + $0x2a0] sm:$0xff] }
 0x91e   : > { %10435 = vtanh.f32 %v2875_v0  ;;  %8643 = vmatprep.subr.mxu1 %v15034_v15  ;;  %8609 = vmatpush3.msra.mxu0 %v15040_v16  ;;  %21732 = vst [vmem:[#allocation29_spill] sm:$0xff] %v15088_v9  ;;  %v15094_v48 = vld [vmem:[%s20553_s12 + $0x328] sm:$0xff]  ;;  %21734 = vst [vmem:[#allocation31_spill] sm:$0xff] %v15100_v43  ;;  %v15106_v0 = vld [vmem:[%s20553_s12 + $0x3a0] sm:$0xff] }
 0x91f   : > { %8644 = vmatpush3.msra.mxu1 %v15046_v17  ;;  %8610 = vmatprep.subr.mxu0 %v15052_v19  ;;  %21733 = vst [vmem:[#allocation30_spill] sm:$0xff] %v15094_v48  ;;  %21735 = vst [vmem:[#allocation32_spill] sm:$0xff] %v15106_v0 }
 0x920   : > { %8645 = vmatprep.subr.mxu1 %v15058_v20  ;;  %8611 = vmatpush3.msra.mxu0 %v15064_v26 }
 0x921   : > { %8646 = vmatpush3.msra.mxu1 %v15070_v27  ;;  %8612 = vmatprep.subr.mxu0 %v15076_v51  ;;  %v15184_v51 = vld [vmem:[%s20553_s12 + $0x208] sm:$0xff]  ;;  %v15196_v27 = vld [vmem:[%s20553_s12 + $0x280] sm:$0xff] }
 0x922   : > { %8647 = vmatprep.subr.mxu1 %v15082_v45  ;;  %8613 = vmatpush3.msra.mxu0 %v15088_v9  ;;  %v15154_v9 = vld [vmem:[%s20553_s12 + $0x390] sm:$0xff]  ;;  %v15172_v45 = vld [vmem:[%s20553_s12 + $0x288] sm:$0xff]  ;;  %21748 = vst [vmem:[#allocation45_spill] sm:$0xff] %v15184_v51  ;;  %21750 = vst [vmem:[#allocation47_spill] sm:$0xff] %v15196_v27 }
 0x923   : > { %8648 = vmatpush3.msra.mxu1 %v15094_v48  ;;  %8614 = vmatprep.subr.mxu0 %v15100_v43  ;;  %v15118_v48 = vld [vmem:[%s20553_s12 + $0x320] sm:$0xff]  ;;  %v15124_v43 = vld [vmem:[%s20553_s12 + $0x298] sm:$0xff]  ;;  %21743 = vst [vmem:[#allocation40_spill] sm:$0xff] %v15154_v9  ;;  %21746 = vst [vmem:[#allocation43_spill] sm:$0xff] %v15172_v45 }
 0x924   : > { %8649 = vmatprep.subr.mxu1 %v15106_v0  ;;  %8615 = vmatpush3.msra.mxu0 %v15112_v57  ;;  %21737 = vst [vmem:[#allocation34_spill] sm:$0xff] %v15118_v48  ;;  %21738 = vst [vmem:[#allocation35_spill] sm:$0xff] %v15124_v43  ;;  %v15130_v0 = vld [vmem:[%s20553_s12 + $0x398] sm:$0xff] }
 0x925   : > { %8650 = vmatpush3.msra.mxu1 %v15118_v48  ;;  %8616 = vmatprep.subr.mxu0 %v15124_v43  ;;  %21739 = vst [vmem:[#allocation36_spill] sm:$0xff] %v15130_v0  ;;  %v15136_v57 = vld [vmem:[%s20553_s12 + $0x218] sm:$0xff]  ;;  %v15148_v43 = vld [vmem:[%s20553_s12 + $0x290] sm:$0xff] }
 0x926   : > { %8651 = vmatprep.subr.mxu1 %v15130_v0  ;;  %21740 = vst [vmem:[#allocation37_spill] sm:$0xff] %v15136_v57  ;;  %8617 = vmatpush3.msra.mxu0 %v15136_v57  ;;  %v15142_v48 = vld [vmem:[%s20553_s12 + $0x318] sm:$0xff]  ;;  %21742 = vst [vmem:[#allocation39_spill] sm:$0xff] %v15148_v43  ;;  %v15160_v57 = vld [vmem:[%s20553_s12 + $0x210] sm:$0xff] }
 0x927   : > { %21741 = vst [vmem:[#allocation38_spill] sm:$0xff] %v15142_v48  ;;  %8652 = vmatpush3.msra.mxu1 %v15142_v48  ;;  %8618 = vmatprep.subr.mxu0 %v15148_v43  ;;  %21744 = vst [vmem:[#allocation41_spill] sm:$0xff] %v15160_v57  ;;  %v15166_v43 = vld [vmem:[%s20553_s12 + $0x310] sm:$0xff] }
 0x928   : > { %v10430_v0 = vpop.eup %10429  ;;  %8653 = vmatprep.subr.mxu1 %v15154_v9  ;;  %8619 = vmatpush3.msra.mxu0 %v15160_v57  ;;  %21745 = vst [vmem:[#allocation42_spill] sm:$0xff] %v15166_v43  ;;  %v15178_v57 = vld [vmem:[%s20553_s12 + $0x388] sm:$0xff] }
 0x929   : > { %v10432_v48 = vpop.eup %10431  ;;  %8654 = vmatpush3.msra.mxu1 %v15166_v43  ;;  %8620 = vmatprep.subr.mxu0 %v15172_v45  ;;  %21747 = vst [vmem:[#allocation44_spill] sm:$0xff] %v15178_v57  ;;  %v15190_v45 = vld [vmem:[%s20553_s12 + $0x308] sm:$0xff] }
 0x92a   : > { %v10434_v9 = vpop.eup %10433  ;;  %8655 = vmatprep.subr.mxu1 %v15178_v57  ;;  %8621 = vmatpush3.msra.mxu0 %v15184_v51  ;;  %21749 = vst [vmem:[#allocation46_spill] sm:$0xff] %v15190_v45  ;;  %v15203_v51 = vld [vmem:[%s20553_s12 + $0x380] sm:$0xff] }
 0x92b   : > { %v10436_v43 = vpop.eup %10435  ;;  %8656 = vmatpush3.msra.mxu1 %v15190_v45  ;;  %8622 = vmatprep.subr.mxu0 %v15196_v27  ;;  %v2961_v57 = vmul.f32 %v10434_v9, %v12145_v37  ;;  %21751 = vst [vmem:[#allocation48_spill] sm:$0xff] %v15203_v51  ;;  %v15209_v45 = vld [vmem:[%s20553_s12 + $0x200] sm:$0xff]  ;;  %v2960_v27 = vmul.f32 %v10430_v0, %v12615_v61  ;;  %v10740_v0 = vld [vmem:[%s20548_s7 + $0x450] sm:$0xff] }
 0x92c   : > { %8657 = vmatprep.subr.mxu1 %v15203_v51  ;;  %8623 = vmatpush3.msra.mxu0 %v15209_v45  ;;  %v2963_v26 = vmul.f32 %v10436_v43, %v12618_v63  ;;  %v15217_v9 = vld [vmem:[%s20553_s12 + $0x300] sm:$0xff]  ;;  %v2962_v51 = vmul.f32 %v10432_v48, %v21496_v28  ;;  %v15225_v43 = vld [vmem:[%s20553_s12 + $0x478] sm:$0xff] }
 0x92d   : > { %3169 = vmatprep.mubr.f32.mxu0 %v2961_v57  ;;  %21752 = vst [vmem:[#allocation49_spill] sm:$0xff] %v15217_v9  ;;  %8658 = vmatpush3.msra.mxu1 %v15217_v9  ;;  %21753 = vst [vmem:[#allocation50_spill] sm:$0xff] %v15225_v43  ;;  %v15235_v57 = vld [vmem:[%s20553_s12 + $0x470] sm:$0xff] }
 0x92e   : > { %3239 = vmatprep.mubr.f32.mxu1 %v2963_v26  ;;  %3170 = vmatmul.mubr.f32.vlgmr.msra.gmra.mxu0 %v2960_v27  ;;  %21754 = vst [vmem:[#allocation51_spill] sm:$0xff] %v15235_v57  ;;  %v15244_v26 = vld [vmem:[%s20553_s12 + $0x468] sm:$0xff] }
 0x92f   : > { %3240 = vmatmul.mubr.f32.vlgmr.msra.gmra.mxu1 %v2962_v51  ;;  %9847 = vmatprep.subr.mxu0 %v21249_v44  ;;  %21755 = vst [vmem:[#allocation52_spill] sm:$0xff] %v15244_v26  ;;  %v15272_v51 = vld [vmem:[%s20553_s12 + $0x450] sm:$0xff] }
 0x930   : > { %9848 = vmatpush3.msra.mxu0 %v15225_v43  ;;  %9879 = vmatprep.mubr.msk.f32.mxu0 %vm11611_vm6, %v21249_v44  ;;  %21758 = vst [vmem:[#allocation56_spill] sm:$0xff] %v15272_v51 }
 0x931   : > { %9849 = vmatprep.subr.mxu0 %v21249_v44  ;;  %9882 = vmatprep.subr.mxu1 %v21249_v44 }
 0x932   : > { %9850 = vmatpush3.msra.mxu0 %v15235_v57  ;;  %9883 = vmatpush3.msra.mxu1 %v21499_v23  ;;  %v15253_v23 = vld [vmem:[%s20553_s12 + $0x460] sm:$0xff] }
 0x933   : > { %9851 = vmatprep.subr.mxu0 %v21249_v44  ;;  %9884 = vmatprep.subr.mxu1 %v21249_v44  ;;  %21756 = vst [vmem:[#allocation53_spill] sm:$0xff] %v15253_v23 }
 0x934   : > { %9852 = vmatpush3.msra.mxu0 %v15244_v26  ;;  %9885 = vmatpush3.msra.mxu1 %v21501_v41  ;;  %v15262_v41 = vld [vmem:[%s20553_s12 + $0x458] sm:$0xff] }
 0x935   : > { %9853 = vmatprep.subr.mxu0 %v21249_v44  ;;  %9886 = vmatprep.subr.mxu1 %v21249_v44  ;;  %21757 = vst [vmem:[#allocation54_spill] sm:$0xff] %v15262_v41 }
 0x936   : > { %9854 = vmatpush3.msra.mxu0 %v15253_v23  ;;  %9887 = vmatpush3.msra.mxu1 %v21503_v46 }
 0x937   : > { %9855 = vmatprep.subr.mxu0 %v21249_v44  ;;  %9888 = vmatprep.subr.mxu1 %v21249_v44 }
 0x938   : > { %9856 = vmatpush3.msra.mxu0 %v15262_v41  ;;  %9889 = vmatpush3.msra.mxu1 %v21505_v50  ;;  %v15281_v50 = vld [vmem:[%s20553_s12 + $0x448] sm:$0xff] }
 0x939   : > { %v2943_v27 = vpop.f32.mrf.mxu1  ;;  %9857 = vmatprep.subr.mxu0 %v21249_v44  ;;  %9890 = vmatprep.subr.mxu1 %v21249_v44  ;;  %21759 = vst [vmem:[#allocation57_spill] sm:$0xff] %v15281_v50 }
 0x93a   : > { %v2944_v46 = vadd.f32 %v2943_v27, %v21506_v54  ;;  %9858 = vmatpush3.msra.mxu0 %v15272_v51  ;;  %9891 = vmatpush3.msra.mxu1 %v21508_v52  ;;  %v15290_v52 = vld [vmem:[%s20553_s12 + $0x440] sm:$0xff] }
 0x93b   : > { %v9846_v48 = vpop.f32.mrf.mxu1  ;;  %9859 = vmatprep.subr.mxu0 %v21249_v44  ;;  %9892 = vmatprep.subr.mxu1 %v21249_v44  ;;  %21760 = vst [vmem:[#allocation58_spill] sm:$0xff] %v15290_v52  ;;  %v15326_v27 = vld [vmem:[%s20553_s12 + $0x420] sm:$0xff] }
 0x93c   : > { %9860 = vmatpush3.msra.mxu0 %v15281_v50  ;;  %9893 = vmatpush3.msra.mxu1 %v21510_v55  ;;  %10437 = vtanh.f32 %v2944_v46  ;;  %v15299_v55 = vld [vmem:[%s20553_s12 + $0x438] sm:$0xff]  ;;  %21764 = vst [vmem:[#allocation61_spill] sm:$0xff] %v15326_v27 }
 0x93d   : > { %9861 = vmatprep.subr.mxu0 %v21249_v44  ;;  %9894 = vmatprep.subr.mxu1 %v21249_v44  ;;  %21761 = vst [vmem:[#allocation59_spill] sm:$0xff] %v15299_v55  ;;  %v15333_v46 = vld [vmem:[%s20553_s12 + $0x418] sm:$0xff] }
 0x93e   : > { %9862 = vmatpush3.msra.mxu0 %v15290_v52  ;;  %9895 = vmatpush3.msra.mxu1 %v21512_v56  ;;  %v15309_v56 = vld [vmem:[%s20553_s12 + $0x430] sm:$0xff]  ;;  %21765 = vst [vmem:[#allocation63_spill] sm:$0xff] %v15333_v46 }
 0x93f   : > { %9863 = vmatprep.subr.mxu0 %v21249_v44  ;;  %9896 = vmatprep.subr.mxu1 %v21249_v44  ;;  %21762 = vst [vmem:[#allocation60_spill] sm:$0xff] %v15309_v56 }
 0x940   : > { %9864 = vmatpush3.msra.mxu0 %v15299_v55  ;;  %9897 = vmatpush3.msra.mxu1 %v21514_v62  ;;  %v15319_v62 = vld [vmem:[%s20553_s12 + $0x428] sm:$0xff] }
 0x941   : > { %9865 = vmatprep.subr.mxu0 %v21249_v44  ;;  %9898 = vmatprep.mubr.msk.f32.mxu1 %vm11611_vm6, %v21249_v44  ;;  %21763 = vst [vmem:[#allocation62_spill] sm:$0xff] %v15319_v62 }
 0x942   : > { %9866 = vmatpush3.msra.mxu0 %v15309_v56  ;;  %3461 = vmatprep.subr.mxu1 %v10740_v0  ;;  %v15340_v0 = vld [vmem:[%s20553_s12 + $0x410] sm:$0xff] }
 0x943   : > { %9867 = vmatprep.subr.mxu0 %v21249_v44  ;;  %21766 = vst [vmem:[#allocation64_spill] sm:$0xff] %v15340_v0 }
 0x944   : > { %9868 = vmatpush3.msra.mxu0 %v15319_v62  ;;  %v15355_v62 = vld [vmem:[%s20553_s12 + $0x400] sm:$0xff] }
 0x945   : > { %9869 = vmatprep.subr.mxu0 %v21249_v44  ;;  %21768 = vst [vmem:[#allocation66_spill] sm:$0xff] %v15355_v62 }
 0x946   : > { %9870 = vmatpush3.msra.mxu0 %v15326_v27  ;;  %v15347_v27 = vld [vmem:[%s20553_s12 + $0x408] sm:$0xff] }
 0x947   : > { %9871 = vmatprep.subr.mxu0 %v21249_v44  ;;  %21767 = vst [vmem:[#allocation65_spill] sm:$0xff] %v15347_v27 }
 0x948   : > { %9872 = vmatpush3.msra.mxu0 %v15333_v46 }
 0x949   : > { %9873 = vmatprep.subr.mxu0 %v21249_v44  ;;  %v10438_v48 = vpop.eup %10437 }
 0x94a   : > { %9874 = vmatpush3.msra.mxu0 %v15340_v0  ;;  %v2964_v46 = vmul.f32 %v10438_v48, %v21522_v40  ;;  %v10747_v0 = vld [vmem:[%s20548_s7 + $0x440] sm:$0xff]  ;;  %v10749_v48 = vld [vmem:[%s20548_s7 + $0x3f8] sm:$0xff] }
 0x94b   : > { %9875 = vmatprep.subr.mxu0 %v21249_v44 }
 0x94c   : > { %9876 = vmatpush3.msra.mxu0 %v15347_v27  ;;  %v10748_v27 = vld [vmem:[%s20548_s7 + $0x438] sm:$0xff] }
 0x94d   : > { %9877 = vmatprep.subr.mxu0 %v21249_v44 }
 0x94e   : > { %9878 = vmatpush3.msra.mxu0 %v15355_v62  ;;  %v10753_v62 = vld [vmem:[%s20548_s7 + $0x368] sm:$0xff] }
 0x94f   : > { %9880 = vmatmul.mubr.f32.vlgmr.msra.gmra.mxu0 %v2964_v46  ;;  %3390 = vmatprep.subr.mxu0 %v10747_v0  ;;  %v10750_v46 = vld [vmem:[%s20548_s7 + $0x3f0] sm:$0xff] }
 0x950   : > { %3391 = vmatpush1.msra.mxu0 %v10748_v27  ;;  %3454 = vmatprep.mubr.f32.mxu0 %v21249_v44  ;;  %v10751_v0 = vld [vmem:[%s20548_s7 + $0x3b0] sm:$0xff]  ;;  %v10752_v27 = vld [vmem:[%s20548_s7 + $0x3a8] sm:$0xff] }
 0x951   : > { %3392 = vmatprep.subr.mxu0 %v10749_v48  ;;  %v10754_v48 = vld [vmem:[%s20548_s7 + $0x360] sm:$0xff] }
 0x952   : > { %3393 = vmatpush1.msra.mxu0 %v10750_v46  ;;  %v10755_v46 = vld [vmem:[%s20548_s7 + $0x320] sm:$0xff] }
 0x953   : > { %3394 = vmatprep.subr.mxu0 %v10751_v0  ;;  %v10756_v0 = vld [vmem:[%s20548_s7 + $0x318] sm:$0xff] }
 0x954   : > { %3395 = vmatpush1.msra.mxu0 %v10752_v27  ;;  %v10757_v27 = vld [vmem:[%s20548_s7 + $0x2d8] sm:$0xff] }
 0x955   : > { %3396 = vmatprep.subr.mxu0 %v10753_v62  ;;  %v10758_v62 = vld [vmem:[%s20548_s7 + $0x2d0] sm:$0xff] }
 0x956   : > { %3397 = vmatpush1.msra.mxu0 %v10754_v48  ;;  %v10759_v48 = vld [vmem:[%s20548_s7 + $0x290] sm:$0xff] }
 0x957   : > { %3398 = vmatprep.subr.mxu0 %v10755_v46  ;;  %v10760_v46 = vld [vmem:[%s20548_s7 + $0x288] sm:$0xff] }
 0x958   : > { %3399 = vmatpush1.msra.mxu0 %v10756_v0  ;;  %v10761_v0 = vld [vmem:[%s20548_s7 + $0x248] sm:$0xff] }
 0x959   : > { %3400 = vmatprep.subr.mxu0 %v10757_v27  ;;  %v10762_v27 = vld [vmem:[%s20548_s7 + $0x240] sm:$0xff] }
 0x95a   : > { %3401 = vmatpush1.msra.mxu0 %v10758_v62  ;;  %v10763_v62 = vld [vmem:[%s20548_s7 + $0x200] sm:$0xff] }
 0x95b   : > { %3402 = vmatprep.subr.mxu0 %v10759_v48  ;;  %v10764_v48 = vld [vmem:[%s20548_s7 + $0x1f8] sm:$0xff] }
 0x95c   : > { %3403 = vmatpush1.msra.mxu0 %v10760_v46  ;;  %v10765_v46 = vld [vmem:[%s20548_s7 + $0x1b8] sm:$0xff] }
 0x95d   : > { %3404 = vmatprep.subr.mxu0 %v10761_v0  ;;  %v10766_v0 = vld [vmem:[%s20548_s7 + $0x1b0] sm:$0xff] }
 0x95e   : > { %3405 = vmatpush1.msra.mxu0 %v10762_v27  ;;  %v10767_v27 = vld [vmem:[%s20548_s7 + $0x170] sm:$0xff] }
 0x95f   : > { %3406 = vmatprep.subr.mxu0 %v10763_v62  ;;  %v10768_v62 = vld [vmem:[%s20548_s7 + $0x168] sm:$0xff] }
 0x960   : > { %3407 = vmatpush1.msra.mxu0 %v10764_v48  ;;  %v10769_v48 = vld [vmem:[%s20548_s7 + $0x128] sm:$0xff] }
 0x961   : > { %3408 = vmatprep.subr.mxu0 %v10765_v46  ;;  %v10770_v46 = vld [vmem:[%s20548_s7 + $0x120] sm:$0xff] }
 0x962   : > { %3409 = vmatpush1.msra.mxu0 %v10766_v0  ;;  %v10771_v0 = vld [vmem:[%s20548_s7 + $0xe0] sm:$0xff] }
 0x963   : > { %3410 = vmatprep.subr.mxu0 %v10767_v27  ;;  %v10772_v27 = vld [vmem:[%s20548_s7 + $0xd8] sm:$0xff] }
 0x964   : > { %3411 = vmatpush1.msra.mxu0 %v10768_v62  ;;  %v10773_v62 = vld [vmem:[%s20548_s7 + $0x98] sm:$0xff] }
 0x965   : > { %3412 = vmatprep.subr.mxu0 %v10769_v48  ;;  %v10774_v48 = vld [vmem:[%s20548_s7 + $0x90] sm:$0xff] }
 0x966   : > { %3413 = vmatpush1.msra.mxu0 %v10770_v46  ;;  %v10775_v46 = vld [vmem:[%s20548_s7 + $0x50] sm:$0xff] }
 0x967   : > { %3414 = vmatprep.subr.mxu0 %v10771_v0  ;;  %v10776_v0 = vld [vmem:[%s20548_s7 + $0x48] sm:$0xff] }
 0x968   : > { %3415 = vmatpush1.msra.mxu0 %v10772_v27  ;;  %v10777_v27 = vld [vmem:[%s20548_s7 + $0x8] sm:$0xff] }
 0x969   : > { %3416 = vmatprep.subr.mxu0 %v10773_v62  ;;  %v10778_v62 = vld [vmem:[%s20548_s7] sm:$0xff] }
 0x96a   : > { %3417 = vmatpush1.msra.mxu0 %v10774_v48  ;;  %v10779_v48 = vld [vmem:[%s20548_s7 + $0x460] sm:$0xff] }
 0x96b   : > { %3418 = vmatprep.subr.mxu0 %v10775_v46 }
 0x96c   : > { %3419 = vmatpush1.msra.mxu0 %v10776_v0 }
 0x96d   : > { %3420 = vmatprep.subr.mxu0 %v10777_v27 }
 0x96e   : > { %3421 = vmatpush1.msra.mxu0 %v10778_v62 }
 0x96f   : > { %3532 = vmatprep.subr.mxu0 %v10779_v48 }
 0x9cd   : > { %v8554_v46 = vpop.f32.mrf.mxu0 }
 0x9ce   : > { %v8589_v40 = vpop.f32.mrf.mxu1 }
 0x9cf   : > { %v8555_v56 = vpop.f32.mrf.mxu0 }
 0x9d0   : > { %v8590_v0 = vpop.f32.mrf.mxu1  ;;  %v8556_v50 = vadd.f32 %v8555_v56, %v8554_v46  ;;  %v10792_v56 = vld [vmem:[%s20548_s7 + $0x298] sm:$0xff] }
 0x9d1   : > { %v8591_v51 = vadd.f32 %v8590_v0, %v8589_v40  ;;  %v10780_v40 = vld [vmem:[%s20548_s7 + $0x448] sm:$0xff]  ;;  %v10793_v46 = vld [vmem:[%s20548_s7 + $0x258] sm:$0xff]  ;;  %v10794_v0 = vld [vmem:[%s20548_s7 + $0x250] sm:$0xff] }
 0x9d3   : > { %v3102_v41 = vadd.f32 %v8591_v51, %v8556_v50  ;;  %v10788_v51 = vld [vmem:[%s20548_s7 + $0x328] sm:$0xff] }
 0x9d4   : > { %v10789_v50 = vld [vmem:[%s20548_s7 + $0x2e8] sm:$0xff] }
 0x9ee   : > { %v8624_v55 = vpop.f32.mrf.mxu0 }
 0x9ef   : > { %v8659_v54 = vpop.f32.mrf.mxu1 }
 0x9f0   : > { %v8625_v52 = vpop.f32.mrf.mxu0 }
 0x9f1   : > { %v8626_v27 = vadd.f32 %v8625_v52, %v8624_v55  ;;  %v8660_v23 = vpop.f32.mrf.mxu1  ;;  %v10790_v52 = vld [vmem:[%s20548_s7 + $0x2e0] sm:$0xff] }
 0x9f2   : > { %v8661_v57 = vadd.f32 %v8660_v23, %v8659_v54  ;;  %v10781_v54 = vld [vmem:[%s20548_s7 + $0x408] sm:$0xff]  ;;  %v10786_v23 = vld [vmem:[%s20548_s7 + $0x370] sm:$0xff]  ;;  %v10791_v55 = vld [vmem:[%s20548_s7 + $0x2a0] sm:$0xff] }
 0x9f3   : > { %v3172_v26 = vadd.f32 %v8626_v27, %v3102_v41  ;;  %v10787_v41 = vld [vmem:[%s20548_s7 + $0x330] sm:$0xff] }
 0x9f4   : > { %v10795_v27 = vld [vmem:[%s20548_s7 + $0x210] sm:$0xff] }
 0x9f5   : > { %v3242_v62 = vadd.f32 %v8661_v57, %v3172_v26  ;;  %v10784_v57 = vld [vmem:[%s20548_s7 + $0x3b8] sm:$0xff] }
 0x9f6   : > { %v10785_v26 = vld [vmem:[%s20548_s7 + $0x378] sm:$0xff] }
 0xa0f   : > { %v3311_v43 = vpop.f32.mrf.mxu0 }
 0xa10   : > { %v15458_v28 = vadd.f32 %v3311_v43, %v3242_v62  ;;  %v10783_v43 = vld [vmem:[%s20548_s7 + $0x3c0] sm:$0xff]  ;;  %v10796_v62 = vld [vmem:[%s20548_s7 + $0x208] sm:$0xff] }
 0xa11   : > { %v9881_v9 = vpop.f32.mrf.mxu0 }
 0xa12   : > { %v3315_v48 = vadd.f32 %v21216_v31, %v15458_v28  ;;  %v10782_v9 = vld [vmem:[%s20548_s7 + $0x400] sm:$0xff] }
 0xa14   : > { %9899 = vmatmul.mubr.msk.f32.vlgmr.msra.gmra.mxu1 %vm587_vm7, %v3315_v48  ;;  %v10797_v48 = vld [vmem:[%s20548_s7 + $0x1c8] sm:$0xff] }
 0xa15   : > { %3462 = vmatpush1.msra.mxu1 %v10780_v40  ;;  %3525 = vmatprep.mubr.f32.mxu1 %v21249_v44  ;;  %v10798_v40 = vld [vmem:[%s20548_s7 + $0x1c0] sm:$0xff] }
 0xa16   : > { %3463 = vmatprep.subr.mxu1 %v10781_v54  ;;  %v10799_v54 = vld [vmem:[%s20548_s7 + $0x180] sm:$0xff] }
 0xa17   : > { %3464 = vmatpush1.msra.mxu1 %v10782_v9  ;;  %v10800_v9 = vld [vmem:[%s20548_s7 + $0x178] sm:$0xff] }
 0xa18   : > { %3465 = vmatprep.subr.mxu1 %v10783_v43  ;;  %v10801_v43 = vld [vmem:[%s20548_s7 + $0x138] sm:$0xff] }
 0xa19   : > { %3466 = vmatpush1.msra.mxu1 %v10784_v57  ;;  %v10802_v57 = vld [vmem:[%s20548_s7 + $0x130] sm:$0xff] }
 0xa1a   : > { %3467 = vmatprep.subr.mxu1 %v10785_v26  ;;  %v10803_v26 = vld [vmem:[%s20548_s7 + $0xf0] sm:$0xff] }
 0xa1b   : > { %3468 = vmatpush1.msra.mxu1 %v10786_v23  ;;  %v10804_v23 = vld [vmem:[%s20548_s7 + $0xe8] sm:$0xff] }
 0xa1c   : > { %3469 = vmatprep.subr.mxu1 %v10787_v41  ;;  %v10805_v41 = vld [vmem:[%s20548_s7 + $0xa8] sm:$0xff] }
 0xa1d   : > { %3470 = vmatpush1.msra.mxu1 %v10788_v51  ;;  %v10806_v51 = vld [vmem:[%s20548_s7 + $0xa0] sm:$0xff] }
 0xa1e   : > { %3471 = vmatprep.subr.mxu1 %v10789_v50  ;;  %v10807_v50 = vld [vmem:[%s20548_s7 + $0x60] sm:$0xff] }
 0xa1f   : > { %3472 = vmatpush1.msra.mxu1 %v10790_v52  ;;  %v10808_v52 = vld [vmem:[%s20548_s7 + $0x58] sm:$0xff] }
 0xa20   : > { %3473 = vmatprep.subr.mxu1 %v10791_v55  ;;  %v10809_v55 = vld [vmem:[%s20548_s7 + $0x18] sm:$0xff] }
 0xa21   : > { %3474 = vmatpush1.msra.mxu1 %v10792_v56  ;;  %v10810_v56 = vld [vmem:[%s20548_s7 + $0x10] sm:$0xff] }
 0xa22   : > { %3475 = vmatprep.subr.mxu1 %v10793_v46  ;;  %v10811_v46 = vld [vmem:[%s20548_s7 + $0x470] sm:$0xff] }
 0xa23   : > { %3476 = vmatpush1.msra.mxu1 %v10794_v0 }
 0xa24   : > { %3477 = vmatprep.subr.mxu1 %v10795_v27 }
 0xa25   : > { %3478 = vmatpush1.msra.mxu1 %v10796_v62 }
 0xa26   : > { %3479 = vmatprep.subr.mxu1 %v10797_v48 }
 0xa27   : > { %3480 = vmatpush1.msra.mxu1 %v10798_v40  ;;  %v10812_v40 = vld [vmem:[%s20548_s7 + $0x458] sm:$0xff] }
 0xa28   : > { %3481 = vmatprep.subr.mxu1 %v10799_v54  ;;  %v10813_v54 = vld [vmem:[%s20548_s7 + $0x468] sm:$0xff] }
 0xa29   : > { %3482 = vmatpush1.msra.mxu1 %v10800_v9  ;;  %v10815_v9 = vld [vmem:[%s20548_s7 + $0x428] sm:$0xff] }
 0xa2a   : > { %3483 = vmatprep.subr.mxu1 %v10801_v43  ;;  %v10816_v43 = vld [vmem:[%s20548_s7 + $0x410] sm:$0xff] }
 0xa2b   : > { %3484 = vmatpush1.msra.mxu1 %v10802_v57  ;;  %v10817_v57 = vld [vmem:[%s20548_s7 + $0x420] sm:$0xff] }
 0xa2c   : > { %3485 = vmatprep.subr.mxu1 %v10803_v26  ;;  %v10818_v26 = vld [vmem:[%s20548_s7 + $0x3d0] sm:$0xff] }
 0xa2d   : > { %3486 = vmatpush1.msra.mxu1 %v10804_v23  ;;  %v10819_v23 = vld [vmem:[%s20548_s7 + $0x3e0] sm:$0xff] }
 0xa2e   : > { %3487 = vmatprep.subr.mxu1 %v10805_v41  ;;  %v10820_v41 = vld [vmem:[%s20548_s7 + $0x3c8] sm:$0xff] }
 0xa2f   : > { %3488 = vmatpush1.msra.mxu1 %v10806_v51  ;;  %v10821_v51 = vld [vmem:[%s20548_s7 + $0x3d8] sm:$0xff] }
 0xa30   : > { %3489 = vmatprep.subr.mxu1 %v10807_v50  ;;  %v10822_v50 = vld [vmem:[%s20548_s7 + $0x388] sm:$0xff] }
 0xa31   : > { %3490 = vmatpush1.msra.mxu1 %v10808_v52  ;;  %v10823_v52 = vld [vmem:[%s20548_s7 + $0x398] sm:$0xff] }
 0xa32   : > { %3491 = vmatprep.subr.mxu1 %v10809_v55  ;;  %v10824_v55 = vld [vmem:[%s20548_s7 + $0x380] sm:$0xff] }
 0xa33   : > { %3492 = vmatpush1.msra.mxu1 %v10810_v56  ;;  %v10825_v56 = vld [vmem:[%s20548_s7 + $0x390] sm:$0xff] }
 0xa34   : > { %3603 = vmatprep.subr.mxu1 %v10811_v46  ;;  %v10826_v46 = vld [vmem:[%s20548_s7 + $0x340] sm:$0xff] }
 0xad4   : > { %v3385_v0 = vpop.f32.mrf.mxu1 }
 0xad5   : > { %v3386_v27 = vadd.f32 %v3385_v0, %v21582_v2  ;;  %v10814_v2 = vld [vmem:[%s20548_s7 + $0x418] sm:$0xff]  ;;  %v10827_v0 = vld [vmem:[%s20548_s7 + $0x350] sm:$0xff] }
 0xad6   : > { %v9900_v62 = vpop.f32.mrf.mxu1 }
 0xad7   : > { %v15561_v48 = vmax.f32 %v3386_v27, 0.0  ;;  %v10828_v27 = vld [vmem:[%s20548_s7 + $0x338] sm:$0xff]  ;;  %v10829_v62 = vld [vmem:[%s20548_s7 + $0x348] sm:$0xff] }
 0xad9   : > { %3455 = vmatmul.mubr.f32.vlgmr.msra.gmra.mxu0 %v15561_v48  ;;  %3526 = vmatmul.mubr.f32.vlgmr.msra.gmra.mxu1 %v15561_v48 }
 0xada   : > { %3533 = vmatpush1.msra.mxu0 %v10812_v40  ;;  %3604 = vmatpush1.msra.mxu1 %v10813_v54  ;;  %v10830_v40 = vld [vmem:[%s20548_s7 + $0x2f8] sm:$0xff]  ;;  %v10831_v54 = vld [vmem:[%s20548_s7 + $0x308] sm:$0xff] }
 0xadb   : > { %3534 = vmatprep.subr.mxu0 %v10814_v2  ;;  %3605 = vmatprep.subr.mxu1 %v10815_v9  ;;  %v10832_v2 = vld [vmem:[%s20548_s7 + $0x2f0] sm:$0xff]  ;;  %v10833_v9 = vld [vmem:[%s20548_s7 + $0x300] sm:$0xff] }
 0xadc   : > { %3535 = vmatpush1.msra.mxu0 %v10816_v43  ;;  %3606 = vmatpush1.msra.mxu1 %v10817_v57  ;;  %v10834_v43 = vld [vmem:[%s20548_s7 + $0x2b0] sm:$0xff]  ;;  %v10835_v57 = vld [vmem:[%s20548_s7 + $0x2c0] sm:$0xff] }
 0xadd   : > { %3536 = vmatprep.subr.mxu0 %v10818_v26  ;;  %3607 = vmatprep.subr.mxu1 %v10819_v23  ;;  %v10836_v26 = vld [vmem:[%s20548_s7 + $0x2a8] sm:$0xff]  ;;  %v10837_v23 = vld [vmem:[%s20548_s7 + $0x2b8] sm:$0xff] }
 0xade   : > { %3537 = vmatpush1.msra.mxu0 %v10820_v41  ;;  %3608 = vmatpush1.msra.mxu1 %v10821_v51  ;;  %v10838_v41 = vld [vmem:[%s20548_s7 + $0x268] sm:$0xff]  ;;  %v10839_v51 = vld [vmem:[%s20548_s7 + $0x278] sm:$0xff] }
 0xadf   : > { %3538 = vmatprep.subr.mxu0 %v10822_v50  ;;  %3609 = vmatprep.subr.mxu1 %v10823_v52  ;;  %v10840_v50 = vld [vmem:[%s20548_s7 + $0x260] sm:$0xff]  ;;  %v10841_v52 = vld [vmem:[%s20548_s7 + $0x270] sm:$0xff] }
 0xae0   : > { %3539 = vmatpush1.msra.mxu0 %v10824_v55  ;;  %3610 = vmatpush1.msra.mxu1 %v10825_v56  ;;  %v10842_v55 = vld [vmem:[%s20548_s7 + $0x220] sm:$0xff]  ;;  %v10843_v56 = vld [vmem:[%s20548_s7 + $0x230] sm:$0xff] }
 0xae1   : > { %3540 = vmatprep.subr.mxu0 %v10826_v46  ;;  %3611 = vmatprep.subr.mxu1 %v10827_v0  ;;  %v10844_v46 = vld [vmem:[%s20548_s7 + $0x218] sm:$0xff]  ;;  %v10845_v0 = vld [vmem:[%s20548_s7 + $0x228] sm:$0xff] }
 0xae2   : > { %3541 = vmatpush1.msra.mxu0 %v10828_v27  ;;  %3612 = vmatpush1.msra.mxu1 %v10829_v62  ;;  %v10846_v27 = vld [vmem:[%s20548_s7 + $0x1d8] sm:$0xff]  ;;  %v10847_v62 = vld [vmem:[%s20548_s7 + $0x1e8] sm:$0xff] }
 0xae3   : > { %3542 = vmatprep.subr.mxu0 %v10830_v40  ;;  %3613 = vmatprep.subr.mxu1 %v10831_v54  ;;  %v10848_v40 = vld [vmem:[%s20548_s7 + $0x1d0] sm:$0xff]  ;;  %v10849_v54 = vld [vmem:[%s20548_s7 + $0x1e0] sm:$0xff] }
 0xae4   : > { %3543 = vmatpush1.msra.mxu0 %v10832_v2  ;;  %3614 = vmatpush1.msra.mxu1 %v10833_v9  ;;  %v10850_v2 = vld [vmem:[%s20548_s7 + $0x190] sm:$0xff]  ;;  %v10851_v9 = vld [vmem:[%s20548_s7 + $0x1a0] sm:$0xff] }
 0xae5   : > { %3544 = vmatprep.subr.mxu0 %v10834_v43  ;;  %3615 = vmatprep.subr.mxu1 %v10835_v57  ;;  %v10852_v43 = vld [vmem:[%s20548_s7 + $0x188] sm:$0xff]  ;;  %v10853_v57 = vld [vmem:[%s20548_s7 + $0x198] sm:$0xff] }
 0xae6   : > { %3545 = vmatpush1.msra.mxu0 %v10836_v26  ;;  %3616 = vmatpush1.msra.mxu1 %v10837_v23  ;;  %v10854_v26 = vld [vmem:[%s20548_s7 + $0x148] sm:$0xff]  ;;  %v10855_v23 = vld [vmem:[%s20548_s7 + $0x158] sm:$0xff] }
 0xae7   : > { %3546 = vmatprep.subr.mxu0 %v10838_v41  ;;  %3617 = vmatprep.subr.mxu1 %v10839_v51  ;;  %v10856_v41 = vld [vmem:[%s20548_s7 + $0x140] sm:$0xff]  ;;  %v10857_v51 = vld [vmem:[%s20548_s7 + $0x150] sm:$0xff] }
 0xae8   : > { %3547 = vmatpush1.msra.mxu0 %v10840_v50  ;;  %3618 = vmatpush1.msra.mxu1 %v10841_v52  ;;  %v10858_v50 = vld [vmem:[%s20548_s7 + $0x100] sm:$0xff]  ;;  %v10859_v52 = vld [vmem:[%s20548_s7 + $0x110] sm:$0xff] }
 0xae9   : > { %3548 = vmatprep.subr.mxu0 %v10842_v55  ;;  %3619 = vmatprep.subr.mxu1 %v10843_v56  ;;  %v10860_v55 = vld [vmem:[%s20548_s7 + $0xf8] sm:$0xff]  ;;  %v10861_v56 = vld [vmem:[%s20548_s7 + $0x108] sm:$0xff] }
 0xaea   : > { %3549 = vmatpush1.msra.mxu0 %v10844_v46  ;;  %3620 = vmatpush1.msra.mxu1 %v10845_v0  ;;  %v10862_v46 = vld [vmem:[%s20548_s7 + $0xb8] sm:$0xff]  ;;  %v10863_v0 = vld [vmem:[%s20548_s7 + $0xc8] sm:$0xff] }
 0xaeb   : > { %3550 = vmatprep.subr.mxu0 %v10846_v27  ;;  %3621 = vmatprep.subr.mxu1 %v10847_v62  ;;  %v10864_v27 = vld [vmem:[%s20548_s7 + $0xb0] sm:$0xff]  ;;  %v10865_v62 = vld [vmem:[%s20548_s7 + $0xc0] sm:$0xff] }
 0xaec   : > { %3551 = vmatpush1.msra.mxu0 %v10848_v40  ;;  %3622 = vmatpush1.msra.mxu1 %v10849_v54  ;;  %v10866_v40 = vld [vmem:[%s20548_s7 + $0x70] sm:$0xff]  ;;  %v10867_v54 = vld [vmem:[%s20548_s7 + $0x80] sm:$0xff] }
 0xaed   : > { %3552 = vmatprep.subr.mxu0 %v10850_v2  ;;  %3623 = vmatprep.subr.mxu1 %v10851_v9  ;;  %v10868_v2 = vld [vmem:[%s20548_s7 + $0x68] sm:$0xff]  ;;  %v10869_v9 = vld [vmem:[%s20548_s7 + $0x78] sm:$0xff] }
 0xaee   : > { %3553 = vmatpush1.msra.mxu0 %v10852_v43  ;;  %3624 = vmatpush1.msra.mxu1 %v10853_v57  ;;  %v10870_v43 = vld [vmem:[%s20548_s7 + $0x28] sm:$0xff]  ;;  %v10871_v57 = vld [vmem:[%s20548_s7 + $0x38] sm:$0xff] }
 0xaef   : > { %3554 = vmatprep.subr.mxu0 %v10854_v26  ;;  %3625 = vmatprep.subr.mxu1 %v10855_v23  ;;  %v10872_v26 = vld [vmem:[%s20548_s7 + $0x20] sm:$0xff]  ;;  %v10873_v23 = vld [vmem:[%s20548_s7 + $0x30] sm:$0xff] }
 0xaf0   : > { %3555 = vmatpush1.msra.mxu0 %v10856_v41  ;;  %3626 = vmatpush1.msra.mxu1 %v10857_v51  ;;  %v10874_v41 = vld [vmem:[%s20548_s7 + $0x478] sm:$0xff] }
 0xaf1   : > { %3556 = vmatprep.subr.mxu0 %v10858_v50  ;;  %3627 = vmatprep.subr.mxu1 %v10859_v52  ;;  %v10875_v51 = vld [vmem:[%s20553_s12 + $0xf8] sm:$0xff]  ;;  %v10877_v52 = vld [vmem:[%s20548_s7 + $0x430] sm:$0xff] }
 0xaf2   : > { %3557 = vmatpush1.msra.mxu0 %v10860_v55  ;;  %3628 = vmatpush1.msra.mxu1 %v10861_v56  ;;  %v10876_v50 = vld [vmem:[%s20553_s12 + $0x78] sm:$0xff]  ;;  %v10878_v55 = vld [vmem:[%s20553_s12 + $0xf0] sm:$0xff] }
 0xaf3   : > { %3558 = vmatprep.subr.mxu0 %v10862_v46  ;;  %3629 = vmatprep.subr.mxu1 %v10863_v0  ;;  %v10879_v56 = vld [vmem:[%s20553_s12 + $0x70] sm:$0xff]  ;;  %v10880_v46 = vld [vmem:[%s20548_s7 + $0x3e8] sm:$0xff] }
 0xaf4   : > { %3559 = vmatpush1.msra.mxu0 %v10864_v27  ;;  %3630 = vmatpush1.msra.mxu1 %v10865_v62  ;;  %v10881_v0 = vld [vmem:[%s20553_s12 + $0xe8] sm:$0xff]  ;;  %v10883_v62 = vld [vmem:[%s20548_s7 + $0x3a0] sm:$0xff] }
 0xaf5   : > { %3560 = vmatprep.subr.mxu0 %v10866_v40  ;;  %3631 = vmatprep.subr.mxu1 %v10867_v54  ;;  %v10882_v27 = vld [vmem:[%s20553_s12 + $0x68] sm:$0xff]  ;;  %v10884_v40 = vld [vmem:[%s20553_s12 + $0xe0] sm:$0xff] }
 0xaf6   : > { %3561 = vmatpush1.msra.mxu0 %v10868_v2  ;;  %3632 = vmatpush1.msra.mxu1 %v10869_v9  ;;  %v10885_v54 = vld [vmem:[%s20553_s12 + $0x60] sm:$0xff]  ;;  %v10886_v2 = vld [vmem:[%s20548_s7 + $0x358] sm:$0xff] }
 0xaf7   : > { %3562 = vmatprep.subr.mxu0 %v10870_v43  ;;  %3633 = vmatprep.subr.mxu1 %v10871_v57  ;;  %v10887_v9 = vld [vmem:[%s20553_s12 + $0xd8] sm:$0xff]  ;;  %v10889_v57 = vld [vmem:[%s20548_s7 + $0x310] sm:$0xff] }
 0xaf8   : > { %3563 = vmatpush1.msra.mxu0 %v10872_v26  ;;  %3596 = vmatprep.mubr.f32.mxu0 %v21249_v44  ;;  %v10888_v43 = vld [vmem:[%s20553_s12 + $0x58] sm:$0xff]  ;;  %v10890_v26 = vld [vmem:[%s20553_s12 + $0xd0] sm:$0xff] }
 0xaf9   : > { %3634 = vmatpush1.msra.mxu1 %v10873_v23  ;;  %3667 = vmatprep.mubr.f32.mxu1 %v21249_v44  ;;  %v10891_v23 = vld [vmem:[%s20553_s12 + $0x50] sm:$0xff] }
 0xafa   : > { %3597 = vmatmul.mubr.f32.vlgmr.msra.gmra.mxu0 %v15561_v48  ;;  %3668 = vmatmul.mubr.f32.vlgmr.msra.gmra.mxu1 %v15561_v48 }
 0xafb   : > { %9901 = vmatprep.subr.mxu0 %v21249_v44  ;;  %9933 = vmatprep.mubr.msk.f32.mxu0 %vm11611_vm6, %v21249_v44 }
 0xafc   : > { %9902 = vmatpush3.msra.mxu0 %v10874_v41  ;;  %8705 = vmatprep.subr.mxu1 %v10875_v51  ;;  %v10892_v41 = vld [vmem:[%s20548_s7 + $0x2c8] sm:$0xff] }
 0xafd   : > { %9903 = vmatprep.subr.mxu0 %v21249_v44  ;;  %8706 = vmatpush3.msra.mxu1 %v10876_v50  ;;  %v10893_v51 = vld [vmem:[%s20553_s12 + $0xc8] sm:$0xff] }
 0xafe   : > { %9904 = vmatpush3.msra.mxu0 %v10877_v52  ;;  %8707 = vmatprep.subr.mxu1 %v10878_v55  ;;  %v10894_v50 = vld [vmem:[%s20553_s12 + $0x48] sm:$0xff]  ;;  %v10895_v52 = vld [vmem:[%s20548_s7 + $0x280] sm:$0xff] }
 0xaff   : > { %9905 = vmatprep.subr.mxu0 %v21249_v44  ;;  %8708 = vmatpush3.msra.mxu1 %v10879_v56  ;;  %v10896_v55 = vld [vmem:[%s20553_s12 + $0xc0] sm:$0xff] }
 0xb00   : > { %9906 = vmatpush3.msra.mxu0 %v10880_v46  ;;  %8709 = vmatprep.subr.mxu1 %v10881_v0  ;;  %v10897_v56 = vld [vmem:[%s20553_s12 + $0x40] sm:$0xff]  ;;  %v10898_v46 = vld [vmem:[%s20548_s7 + $0x238] sm:$0xff] }
 0xb01   : > { %9907 = vmatprep.subr.mxu0 %v21249_v44  ;;  %8710 = vmatpush3.msra.mxu1 %v10882_v27  ;;  %v10899_v0 = vld [vmem:[%s20553_s12 + $0xb8] sm:$0xff] }
 0xb02   : > { %9908 = vmatpush3.msra.mxu0 %v10883_v62  ;;  %8711 = vmatprep.subr.mxu1 %v10884_v40  ;;  %v10900_v27 = vld [vmem:[%s20553_s12 + $0x38] sm:$0xff]  ;;  %v10901_v62 = vld [vmem:[%s20548_s7 + $0x1f0] sm:$0xff] }
 0xb03   : > { %9909 = vmatprep.subr.mxu0 %v21249_v44  ;;  %8712 = vmatpush3.msra.mxu1 %v10885_v54  ;;  %v10902_v40 = vld [vmem:[%s20553_s12 + $0xb0] sm:$0xff] }
 0xb04   : > { %9910 = vmatpush3.msra.mxu0 %v10886_v2  ;;  %8713 = vmatprep.subr.mxu1 %v10887_v9  ;;  %v10903_v54 = vld [vmem:[%s20553_s12 + $0x30] sm:$0xff]  ;;  %v10904_v2 = vld [vmem:[%s20548_s7 + $0x1a8] sm:$0xff] }
 0xb05   : > { %9911 = vmatprep.subr.mxu0 %v21249_v44  ;;  %8714 = vmatpush3.msra.mxu1 %v10888_v43  ;;  %v10905_v9 = vld [vmem:[%s20553_s12 + $0xa8] sm:$0xff] }
 0xb06   : > { %9912 = vmatpush3.msra.mxu0 %v10889_v57  ;;  %8715 = vmatprep.subr.mxu1 %v10890_v26  ;;  %v10906_v43 = vld [vmem:[%s20553_s12 + $0x28] sm:$0xff]  ;;  %v10907_v57 = vld [vmem:[%s20548_s7 + $0x160] sm:$0xff] }
 0xb07   : > { %9913 = vmatprep.subr.mxu0 %v21249_v44  ;;  %8716 = vmatpush3.msra.mxu1 %v10891_v23  ;;  %v10908_v26 = vld [vmem:[%s20553_s12 + $0xa0] sm:$0xff] }
 0xb08   : > { %9914 = vmatpush3.msra.mxu0 %v10892_v41  ;;  %8717 = vmatprep.subr.mxu1 %v10893_v51  ;;  %v10909_v23 = vld [vmem:[%s20553_s12 + $0x20] sm:$0xff]  ;;  %v10910_v41 = vld [vmem:[%s20548_s7 + $0x118] sm:$0xff] }
 0xb09   : > { %9915 = vmatprep.subr.mxu0 %v21249_v44  ;;  %8718 = vmatpush3.msra.mxu1 %v10894_v50  ;;  %v10911_v51 = vld [vmem:[%s20553_s12 + $0x98] sm:$0xff] }
 0xb0a   : > { %9916 = vmatpush3.msra.mxu0 %v10895_v52  ;;  %8719 = vmatprep.subr.mxu1 %v10896_v55  ;;  %v10912_v50 = vld [vmem:[%s20553_s12 + $0x18] sm:$0xff]  ;;  %v10913_v52 = vld [vmem:[%s20548_s7 + $0xd0] sm:$0xff] }
 0xb0b   : > { %9917 = vmatprep.subr.mxu0 %v21249_v44  ;;  %8720 = vmatpush3.msra.mxu1 %v10897_v56  ;;  %v10914_v55 = vld [vmem:[%s20553_s12 + $0x90] sm:$0xff] }
 0xb0c   : > { %9918 = vmatpush3.msra.mxu0 %v10898_v46  ;;  %8721 = vmatprep.subr.mxu1 %v10899_v0  ;;  %v10915_v56 = vld [vmem:[%s20553_s12 + $0x10] sm:$0xff]  ;;  %v10916_v46 = vld [vmem:[%s20548_s7 + $0x88] sm:$0xff] }
 0xb0d   : > { %9919 = vmatprep.subr.mxu0 %v21249_v44  ;;  %8722 = vmatpush3.msra.mxu1 %v10900_v27  ;;  %v10917_v0 = vld [vmem:[%s20553_s12 + $0x88] sm:$0xff] }
 0xb0e   : > { %9920 = vmatpush3.msra.mxu0 %v10901_v62  ;;  %8723 = vmatprep.subr.mxu1 %v10902_v40  ;;  %v10918_v27 = vld [vmem:[%s20553_s12 + $0x8] sm:$0xff]  ;;  %v10919_v62 = vld [vmem:[%s20548_s7 + $0x40] sm:$0xff] }
 0xb0f   : > { %9921 = vmatprep.subr.mxu0 %v21249_v44  ;;  %8724 = vmatpush3.msra.mxu1 %v10903_v54  ;;  %v10920_v40 = vld [vmem:[%s20553_s12 + $0x80] sm:$0xff]  ;;  %v10921_v54 = vld [vmem:[%s20553_s12 + $0x1f8] sm:$0xff] }
 0xb10   : > { %9922 = vmatpush3.msra.mxu0 %v10904_v2  ;;  %8725 = vmatprep.subr.mxu1 %v10905_v9  ;;  %v10922_v2 = vld [vmem:[%s20553_s12 + $0x178] sm:$0xff]  ;;  %v10923_v9 = vld [vmem:[%s20553_s12] sm:$0xff] }
 0xb11   : > { %9923 = vmatprep.subr.mxu0 %v21249_v44  ;;  %8726 = vmatpush3.msra.mxu1 %v10906_v43  ;;  %v10924_v43 = vld [vmem:[%s20553_s12 + $0x1f0] sm:$0xff] }
 0xb12   : > { %9924 = vmatpush3.msra.mxu0 %v10907_v57  ;;  %8727 = vmatprep.subr.mxu1 %v10908_v26  ;;  %v10926_v57 = vld [vmem:[%s20553_s12 + $0x170] sm:$0xff]  ;;  %v10927_v26 = vld [vmem:[%s20553_s12 + $0x1e8] sm:$0xff] }
 0xb13   : > { %9925 = vmatprep.subr.mxu0 %v21249_v44  ;;  %8728 = vmatpush3.msra.mxu1 %v10909_v23  ;;  %v10928_v23 = vld [vmem:[%s20553_s12 + $0x168] sm:$0xff] }
 0xb14   : > { %9926 = vmatpush3.msra.mxu0 %v10910_v41  ;;  %8729 = vmatprep.subr.mxu1 %v10911_v51  ;;  %v10929_v41 = vld [vmem:[%s20553_s12 + $0x1e0] sm:$0xff] }
 0xb15   : > { %9927 = vmatprep.subr.mxu0 %v21249_v44  ;;  %8730 = vmatpush3.msra.mxu1 %v10912_v50  ;;  %v10930_v51 = vld [vmem:[%s20553_s12 + $0x160] sm:$0xff]  ;;  %v10931_v50 = vld [vmem:[%s20553_s12 + $0x1d8] sm:$0xff] }
 0xb16   : > { %9928 = vmatpush3.msra.mxu0 %v10913_v52  ;;  %8731 = vmatprep.subr.mxu1 %v10914_v55  ;;  %v10932_v52 = vld [vmem:[%s20553_s12 + $0x158] sm:$0xff]  ;;  %v10933_v55 = vld [vmem:[%s20553_s12 + $0x1d0] sm:$0xff] }
 0xb17   : > { %9929 = vmatprep.subr.mxu0 %v21249_v44  ;;  %8732 = vmatpush3.msra.mxu1 %v10915_v56  ;;  %v10934_v56 = vld [vmem:[%s20553_s12 + $0x150] sm:$0xff] }
 0xb18   : > { %9930 = vmatpush3.msra.mxu0 %v10916_v46  ;;  %8733 = vmatprep.subr.mxu1 %v10917_v0  ;;  %v10935_v46 = vld [vmem:[%s20553_s12 + $0x1c8] sm:$0xff] }
 0xb19   : > { %9931 = vmatprep.subr.mxu0 %v21249_v44  ;;  %8734 = vmatpush3.msra.mxu1 %v10918_v27  ;;  %v10936_v0 = vld [vmem:[%s20553_s12 + $0x148] sm:$0xff]  ;;  %v10937_v27 = vld [vmem:[%s20553_s12 + $0x1c0] sm:$0xff] }
 0xb1a   : > { %9932 = vmatpush3.msra.mxu0 %v10919_v62  ;;  %8735 = vmatprep.subr.mxu1 %v10920_v40  ;;  %v10938_v62 = vld [vmem:[%s20553_s12 + $0x140] sm:$0xff]  ;;  %v10939_v40 = vld [vmem:[%s20553_s12 + $0x1b8] sm:$0xff] }
 0xb1b   : > { %9934 = vmatmul.mubr.f32.vlgmr.msra.gmra.mxu0 %v15561_v48  ;;  %8740 = vmatprep.subr.mxu0 %v10921_v54  ;;  %v10925_v48 = vld [vmem:[%s20553_s12 + $0x2f8] sm:$0xff] }
 0xb1c   : > { %8741 = vmatpush3.msra.mxu0 %v10922_v2  ;;  %8736 = vmatpush3.msra.mxu1 %v10923_v9  ;;  %v10940_v54 = vld [vmem:[%s20553_s12 + $0x138] sm:$0xff]  ;;  %v10941_v2 = vld [vmem:[%s20553_s12 + $0x1b0] sm:$0xff] }
 0xb1d   : > { %8742 = vmatprep.subr.mxu0 %v10924_v43  ;;  %8775 = vmatprep.subr.mxu1 %v10925_v48  ;;  %v10942_v9 = vld [vmem:[%s20553_s12 + $0x130] sm:$0xff]  ;;  %v10943_v43 = vld [vmem:[%s20553_s12 + $0x1a8] sm:$0xff] }
 0xb1e   : > { %8743 = vmatpush3.msra.mxu0 %v10926_v57  ;;  %v10944_v48 = vld [vmem:[%s20553_s12 + $0x128] sm:$0xff]  ;;  %v10945_v57 = vld [vmem:[%s20553_s12 + $0x1a0] sm:$0xff] }
 0xb1f   : > { %8744 = vmatprep.subr.mxu0 %v10927_v26  ;;  %v10946_v26 = vld [vmem:[%s20553_s12 + $0x120] sm:$0xff] }
 0xb20   : > { %8745 = vmatpush3.msra.mxu0 %v10928_v23  ;;  %v10947_v23 = vld [vmem:[%s20553_s12 + $0x198] sm:$0xff] }
 0xb21   : > { %8746 = vmatprep.subr.mxu0 %v10929_v41  ;;  %v10948_v41 = vld [vmem:[%s20553_s12 + $0x118] sm:$0xff] }
 0xb22   : > { %8747 = vmatpush3.msra.mxu0 %v10930_v51  ;;  %v10949_v51 = vld [vmem:[%s20553_s12 + $0x190] sm:$0xff] }
 0xb23   : > { %8748 = vmatprep.subr.mxu0 %v10931_v50  ;;  %v10950_v50 = vld [vmem:[%s20553_s12 + $0x110] sm:$0xff] }
 0xb24   : > { %8749 = vmatpush3.msra.mxu0 %v10932_v52  ;;  %v10951_v52 = vld [vmem:[%s20553_s12 + $0x188] sm:$0xff] }
 0xb25   : > { %8750 = vmatprep.subr.mxu0 %v10933_v55  ;;  %v10952_v55 = vld [vmem:[%s20553_s12 + $0x108] sm:$0xff] }
 0xb26   : > { %8751 = vmatpush3.msra.mxu0 %v10934_v56  ;;  %v10953_v56 = vld [vmem:[%s20553_s12 + $0x180] sm:$0xff] }
 0xb27   : > { %8752 = vmatprep.subr.mxu0 %v10935_v46  ;;  %v10954_v46 = vld [vmem:[%s20553_s12 + $0x100] sm:$0xff] }
 0xb28   : > { %8753 = vmatpush3.msra.mxu0 %v10936_v0  ;;  %v10955_v0 = vld [vmem:[%s20553_s12 + $0x3f8] sm:$0xff] }
 0xb29   : > { %8754 = vmatprep.subr.mxu0 %v10937_v27 }
 0xb2a   : > { %8755 = vmatpush3.msra.mxu0 %v10938_v62 }
 0xb2b   : > { %8756 = vmatprep.subr.mxu0 %v10939_v40 }
 0xb2c   : > { %8757 = vmatpush3.msra.mxu0 %v10940_v54 }
 0xb2d   : > { %8758 = vmatprep.subr.mxu0 %v10941_v2 }
 0xb2e   : > { %8759 = vmatpush3.msra.mxu0 %v10942_v9 }
 0xb2f   : > { %8760 = vmatprep.subr.mxu0 %v10943_v43 }
 0xb30   : > { %8761 = vmatpush3.msra.mxu0 %v10944_v48 }
 0xb31   : > { %8762 = vmatprep.subr.mxu0 %v10945_v57 }
 0xb32   : > { %8763 = vmatpush3.msra.mxu0 %v10946_v26 }
 0xb33   : > { %8764 = vmatprep.subr.mxu0 %v10947_v23 }
 0xb34   : > { %8765 = vmatpush3.msra.mxu0 %v10948_v41 }
 0xb35   : > { %8766 = vmatprep.subr.mxu0 %v10949_v51 }
 0xb36   : > { %8767 = vmatpush3.msra.mxu0 %v10950_v50  ;;  %v10956_v50 = vld [vmem:[%s12645_s21] sm:$0x3] }
 0xb37   : > { %8768 = vmatprep.subr.mxu0 %v10951_v52 }
 0xb38   : > { %8769 = vmatpush3.msra.mxu0 %v10952_v55  ;;  %v10962_v55 = vld [vmem:[%s20553_s12 + $0x370] sm:$0xff] }
 0xb39   : > { %8770 = vmatprep.subr.mxu0 %v10953_v56  ;;  %v10963_v56 = vld [vmem:[%s20553_s12 + $0x2e8] sm:$0xff] }
 0xb3a   : > { %8771 = vmatpush3.msra.mxu0 %v10954_v46  ;;  %v10964_v46 = vld [vmem:[%s20553_s12 + $0x3e8] sm:$0xff] }
 0xb3b   : > { %8810 = vmatprep.subr.mxu0 %v10955_v0  ;;  %v10965_v0 = vld [vmem:[%s20553_s12 + $0x268] sm:$0xff] }
 0xb99   : > { %v3456_v27 = vpop.f32.mrf.mxu0  ;;  %v3527_v62 = vpop.f32.mrf.mxu1 }
 0xb9a   : > { %v3457_v40 = vadd.f32 %v3456_v27, %v21727_v38  ;;  %v3528_v54 = vadd.f32 %v3527_v62, %v12627_v4 }
 0xb9b   : > { %v3458_v2 = vpop.f32.mrf.mxu0  ;;  %v3529_v9 = vpop.f32.mrf.mxu1 }
 0xb9c   : > { %10439 = vtanh.f32 %v3457_v40  ;;  %v3459_v43 = vadd.f32 %v3458_v2, %v12632_v6  ;;  %v3530_v48 = vadd.f32 %v3529_v9, %v12635_v7  ;;  %v10957_v6 = vld [vmem:[%s20553_s12 + $0x278] sm:$0xff]  ;;  %v21790_v40 = vld [vmem:[#allocation46_spill] sm:$0xff] }
 0xb9d   : > { %10441 = vtanh.f32 %v3528_v54  ;;  %v10958_v7 = vld [vmem:[%s20553_s12 + $0x378] sm:$0xff]  ;;  %v21791_v54 = vld [vmem:[#allocation47_spill] sm:$0xff] }
 0xb9e   : > { %10443 = vtanh.f32 %v3459_v43  ;;  %v21792_v9 = vld [vmem:[#allocation48_spill] sm:$0xff] }
 0xb9f   : > { %10445 = vtanh.f32 %v3530_v48 }
 0xba9   : > { %v10440_v57 = vpop.eup %10439 }
 0xbaa   : > { %v10442_v26 = vpop.eup %10441  ;;  %v3753_v4 = vmul.f32 %v10956_v50, %v10440_v57  ;;  %v21793_v57 = vld [vmem:[#allocation49_spill] sm:$0xff] }
 0xbab   : > { %v10444_v23 = vpop.eup %10443  ;;  %v3755_v52 = vmul.f32 %v10442_v26, %v12140_v34  ;;  %v10960_v34 = vld [vmem:[%s20553_s12 + $0x3f0] sm:$0xff]  ;;  %v21794_v26 = vld [vmem:[#allocation21_spill] sm:$0xff] }
 0xbac   : > { %v10446_v41 = vpop.eup %10445  ;;  %v3754_v51 = vmul.f32 %v10444_v23, %v12136_v32  ;;  %v10959_v32 = vld [vmem:[%s20553_s12 + $0x2f0] sm:$0xff] }
 0xbad   : > { %v3756_v38 = vmul.f32 %v10446_v41, %v12613_v60  ;;  %v10961_v60 = vld [vmem:[%s20553_s12 + $0x270] sm:$0xff]  ;;  %v21795_v41 = vld [vmem:[#allocation50_spill] sm:$0xff] }
 0xbae   : > { %3826 = vmatprep.mubr.f32.mxu1 %v3754_v51 }
 0xbaf   : > { %3896 = vmatprep.mubr.f32.mxu0 %v3756_v38  ;;  %3827 = vmatmul.mubr.f32.vlgmr.msra.gmra.mxu1 %v3753_v4  ;;  %v21800_v38 = vld [vmem:[#allocation55_spill] sm:$0xff]  ;;  %v21801_v4 = vld [vmem:[#allocation56_spill] sm:$0xff] }
 0xbb0   : > { %3897 = vmatmul.mubr.f32.vlgmr.msra.gmra.mxu0 %v3755_v52  ;;  %8776 = vmatpush3.msra.mxu1 %v10957_v6  ;;  %v21802_v6 = vld [vmem:[#allocation57_spill] sm:$0xff] }
 0xbb1   : > { %8811 = vmatpush3.msra.mxu0 %v10958_v7  ;;  %8777 = vmatprep.subr.mxu1 %v10959_v32  ;;  %v21803_v7 = vld [vmem:[#allocation58_spill] sm:$0xff]  ;;  %v21804_v32 = vld [vmem:[#allocation59_spill] sm:$0xff] }
 0xbb2   : > { %8812 = vmatprep.subr.mxu0 %v10960_v34  ;;  %8778 = vmatpush3.msra.mxu1 %v10961_v60  ;;  %v21805_v34 = vld [vmem:[#allocation60_spill] sm:$0xff]  ;;  %v21806_v60 = vld [vmem:[#allocation62_spill] sm:$0xff] }
 0xbb3   : > { %8813 = vmatpush3.msra.mxu0 %v10962_v55  ;;  %8779 = vmatprep.subr.mxu1 %v10963_v56  ;;  %v21807_v55 = vld [vmem:[#allocation61_spill] sm:$0xff]  ;;  %v21808_v56 = vld [vmem:[#allocation63_spill] sm:$0xff] }
 0xbb4   : > { %8814 = vmatprep.subr.mxu0 %v10964_v46  ;;  %8780 = vmatpush3.msra.mxu1 %v10965_v0  ;;  %v21809_v0 = vld [vmem:[#allocation64_spill] sm:$0xff] }
 0xbb5   : > { %8815 = vmatpush3.msra.mxu0 %v14898_v3  ;;  %8781 = vmatprep.subr.mxu1 %v14904_v47 }
 0xbb6   : > { %8816 = vmatprep.subr.mxu0 %v14910_v5  ;;  %8782 = vmatpush3.msra.mxu1 %v14916_v39 }
 0xbb7   : > { %8817 = vmatpush3.msra.mxu0 %v14922_v42  ;;  %8783 = vmatprep.subr.mxu1 %v14928_v10 }
 0xbb8   : > { %8818 = vmatprep.subr.mxu0 %v14934_v18  ;;  %8784 = vmatpush3.msra.mxu1 %v14940_v59  ;;  %v21773_v59 = vld [vmem:[#allocation29_spill] sm:$0xff] }
 0xbb9   : > { %8819 = vmatpush3.msra.mxu0 %v14946_v58  ;;  %8785 = vmatprep.subr.mxu1 %v14952_v35  ;;  %v21774_v58 = vld [vmem:[#allocation30_spill] sm:$0xff]  ;;  %v21775_v35 = vld [vmem:[#allocation31_spill] sm:$0xff] }
 0xbba   : > { %v3598_v27 = vpop.f32.mrf.mxu0  ;;  %v3669_v3 = vpop.f32.mrf.mxu1  ;;  %8820 = vmatprep.subr.mxu0 %v14958_v36  ;;  %8786 = vmatpush3.msra.mxu1 %v14964_v21  ;;  %v21776_v36 = vld [vmem:[#allocation32_spill] sm:$0xff]  ;;  %v21777_v21 = vld [vmem:[#allocation33_spill] sm:$0xff] }
 0xbbb   : > { %v3599_v47 = vadd.f32 %v3598_v27, %v12739_v33  ;;  %v3670_v5 = vadd.f32 %v3669_v3, %v12742_v22  ;;  %8821 = vmatpush3.msra.mxu0 %v14972_v49  ;;  %8787 = vmatprep.subr.mxu1 %v14978_v53  ;;  %v21769_v33 = vld [vmem:[#allocation25_spill] sm:$0xff]  ;;  %v21770_v22 = vld [vmem:[#allocation26_spill] sm:$0xff]  ;;  %v21779_v53 = vld [vmem:[#allocation35_spill] sm:$0xff] }
 0xbbc   : > { %v3600_v39 = vpop.f32.mrf.mxu0  ;;  %v3671_v42 = vpop.f32.mrf.mxu1  ;;  %8822 = vmatprep.subr.mxu0 %v14984_v12  ;;  %8788 = vmatpush3.msra.mxu1 %v14990_v24  ;;  %v21778_v49 = vld [vmem:[#allocation34_spill] sm:$0xff]  ;;  %v21780_v12 = vld [vmem:[#allocation36_spill] sm:$0xff]  ;;  %v21781_v24 = vld [vmem:[#allocation37_spill] sm:$0xff] }
 0xbbd   : > { %10447 = vtanh.f32 %v3599_v47  ;;  %v3601_v10 = vadd.f32 %v3600_v39, %v12769_v29  ;;  %v3672_v18 = vadd.f32 %v3671_v42, %v12772_v30  ;;  %8823 = vmatpush3.msra.mxu0 %v14998_v8  ;;  %8789 = vmatprep.subr.mxu1 %v15004_v11  ;;  %v21771_v29 = vld [vmem:[#allocation27_spill] sm:$0xff]  ;;  %v21772_v30 = vld [vmem:[#allocation28_spill] sm:$0xff]  ;;  %v21782_v8 = vld [vmem:[#allocation38_spill] sm:$0xff] }
 0xbbe   : > { %10449 = vtanh.f32 %v3670_v5  ;;  %8824 = vmatprep.subr.mxu0 %v15010_v13  ;;  %8790 = vmatpush3.msra.mxu1 %v15016_v25  ;;  %v21783_v11 = vld [vmem:[#allocation39_spill] sm:$0xff]  ;;  %v21784_v25 = vld [vmem:[#allocation40_spill] sm:$0xff]  ;;  %v21810_v27 = vld [vmem:[#allocation65_spill] sm:$0xff] }
 0xbbf   : > { %10451 = vtanh.f32 %v3601_v10  ;;  %8825 = vmatpush3.msra.mxu0 %v15022_v14  ;;  %8791 = vmatprep.subr.mxu1 %v15028_v1  ;;  %v21785_v14 = vld [vmem:[#allocation41_spill] sm:$0xff]  ;;  %v21811_v3 = vld [vmem:[#allocation23_spill] sm:$0xff]  ;;  %v21812_v5 = vld [vmem:[#allocation66_spill] sm:$0xff] }
 0xbc0   : > { %10453 = vtanh.f32 %v3672_v18  ;;  %8826 = vmatprep.subr.mxu0 %v15034_v15  ;;  %8792 = vmatpush3.msra.mxu1 %v15040_v16  ;;  %v21786_v15 = vld [vmem:[#allocation42_spill] sm:$0xff]  ;;  %v21787_v16 = vld [vmem:[#allocation43_spill] sm:$0xff] }
 0xbc1   : > { %8827 = vmatpush3.msra.mxu0 %v15046_v17  ;;  %8793 = vmatprep.subr.mxu1 %v15052_v19  ;;  %v21788_v19 = vld [vmem:[#allocation44_spill] sm:$0xff] }
 0xbc2   : > { %8828 = vmatprep.subr.mxu0 %v15058_v20  ;;  %8794 = vmatpush3.msra.mxu1 %v21769_v33  ;;  %v21789_v20 = vld [vmem:[#allocation45_spill] sm:$0xff] }
 0xbc3   : > { %8829 = vmatpush3.msra.mxu0 %v21770_v22  ;;  %8795 = vmatprep.subr.mxu1 %v21771_v29 }
 0xbc4   : > { %8830 = vmatprep.subr.mxu0 %v21772_v30  ;;  %8796 = vmatpush3.msra.mxu1 %v21773_v59 }
 0xbc5   : > { %8831 = vmatpush3.msra.mxu0 %v21774_v58  ;;  %8797 = vmatprep.subr.mxu1 %v21775_v35  ;;  %v21813_v35 = vld [vmem:[#allocation24_spill] sm:$0xff] }
 0xbc6   : > { %8832 = vmatprep.subr.mxu0 %v21776_v36  ;;  %8798 = vmatpush3.msra.mxu1 %v21777_v21  ;;  %v4112_v36 = vadd.f32 %v15458_v28, %v21813_v35 }
 0xbc7   : > { %8833 = vmatpush3.msra.mxu0 %v21778_v49  ;;  %8799 = vmatprep.subr.mxu1 %v21779_v53 }
 0xbc8   : > { %8834 = vmatprep.subr.mxu0 %v21780_v12  ;;  %8800 = vmatpush3.msra.mxu1 %v21781_v24  ;;  %v4113_v53 = vmul.f32 2.0, %v4112_v36 }
 0xbc9   : > { %8835 = vmatpush3.msra.mxu0 %v21782_v8  ;;  %8801 = vmatprep.subr.mxu1 %v21783_v11 }
 0xbca   : > { %v10448_v13 = vpop.eup %10447  ;;  %8836 = vmatprep.subr.mxu0 %v21784_v25  ;;  %8802 = vmatpush3.msra.mxu1 %v21785_v14 }
 0xbcb   : > { %v10450_v1 = vpop.eup %10449  ;;  %8837 = vmatpush3.msra.mxu0 %v21786_v15  ;;  %8803 = vmatprep.subr.mxu1 %v21787_v16  ;;  %v3757_v48 = vmul.f32 %v10448_v13, %v12615_v61  ;;  %v21797_v61 = vld [vmem:[#allocation52_spill] sm:$0xff]  ;;  %v21814_v13 = vld [vmem:[#allocation101_spill] sm:$0xff] }
 0xbcc   : > { %v10452_v17 = vpop.eup %10451  ;;  %8838 = vmatprep.subr.mxu0 %v21788_v19  ;;  %8804 = vmatpush3.msra.mxu1 %v21789_v20  ;;  %v3759_v23 = vmul.f32 %v10450_v1, %v21794_v26  ;;  %v4114_v25 = vadd.f32 %v4113_v53, %v21814_v13 }
 0xbcd   : > { %v10454_v62 = vpop.eup %10453  ;;  %8839 = vmatpush3.msra.mxu0 %v21790_v40  ;;  %8805 = vmatprep.subr.mxu1 %v21791_v54  ;;  %v3758_v2 = vmul.f32 %v10452_v17, %v12145_v37  ;;  %v21796_v37 = vld [vmem:[#allocation51_spill] sm:$0xff] }
 0xbce   : > { %8840 = vmatprep.subr.mxu0 %v21792_v9  ;;  %8806 = vmatpush3.msra.mxu1 %v15209_v45  ;;  %v3760_v43 = vmul.f32 %v10454_v62, %v12618_v63  ;;  %v21798_v63 = vld [vmem:[#allocation53_spill] sm:$0xff]  ;;  %v21799_v45 = vld [vmem:[#allocation54_spill] sm:$0xff] }
 0xbcf   : > { %3966 = vmatprep.mubr.f32.mxu1 %v3758_v2  ;;  %8841 = vmatpush3.msra.mxu0 %v21793_v57 }
 0xbd0   : > { %4036 = vmatprep.mubr.f32.mxu0 %v3760_v43  ;;  %3967 = vmatmul.mubr.f32.vlgmr.msra.gmra.mxu1 %v3757_v48 }
 0xbd1   : > { %4037 = vmatmul.mubr.f32.vlgmr.msra.gmra.mxu0 %v3759_v23  ;;  %9936 = vmatprep.subr.mxu1 %v21249_v44 }
 0xbd2   : > { %9937 = vmatpush3.msra.mxu1 %v21795_v41  ;;  %9968 = vmatprep.mubr.msk.f32.mxu1 %vm11611_vm6, %v21249_v44 }
 0xbd3   : > { %9938 = vmatprep.subr.mxu1 %v21249_v44 }
 0xbd4   : > { %9939 = vmatpush3.msra.mxu1 %v21796_v37 }
 0xbd5   : > { %9940 = vmatprep.subr.mxu1 %v21249_v44 }
 0xbd6   : > { %9941 = vmatpush3.msra.mxu1 %v21797_v61 }
 0xbd7   : > { %9942 = vmatprep.subr.mxu1 %v21249_v44 }
 0xbd8   : > { %9943 = vmatpush3.msra.mxu1 %v21798_v63 }
 0xbd9   : > { %9944 = vmatprep.subr.mxu1 %v21249_v44 }
 0xbda   : > { %9945 = vmatpush3.msra.mxu1 %v21799_v45 }
 0xbdb   : > { %v3740_v51 = vpop.f32.mrf.mxu0  ;;  %9946 = vmatprep.subr.mxu1 %v21249_v44 }
 0xbdc   : > { %v3741_v50 = vadd.f32 %v3740_v51, %v21800_v38  ;;  %9947 = vmatpush3.msra.mxu1 %v21801_v4 }
 0xbdd   : > { %v9935_v52 = vpop.f32.mrf.mxu0  ;;  %9948 = vmatprep.subr.mxu1 %v21249_v44 }
 0xbde   : > { %9949 = vmatpush3.msra.mxu1 %v21802_v6  ;;  %10455 = vtanh.f32 %v3741_v50 }
 0xbdf   : > { %9950 = vmatprep.subr.mxu1 %v21249_v44 }
 0xbe0   : > { %9951 = vmatpush3.msra.mxu1 %v21803_v7 }
 0xbe1   : > { %9952 = vmatprep.subr.mxu1 %v21249_v44 }
 0xbe2   : > { %9953 = vmatpush3.msra.mxu1 %v21804_v32 }
 0xbe3   : > { %9954 = vmatprep.subr.mxu1 %v21249_v44 }
 0xbe4   : > { %9955 = vmatpush3.msra.mxu1 %v21805_v34 }
 0xbe5   : > { %9956 = vmatprep.subr.mxu1 %v21249_v44 }
 0xbe6   : > { %9957 = vmatpush3.msra.mxu1 %v21806_v60 }
 0xbe7   : > { %9958 = vmatprep.subr.mxu1 %v21249_v44 }
 0xbe8   : > { %9959 = vmatpush3.msra.mxu1 %v21807_v55 }
 0xbe9   : > { %9960 = vmatprep.subr.mxu1 %v21249_v44 }
 0xbea   : > { %9961 = vmatpush3.msra.mxu1 %v21808_v56 }
 0xbeb   : > { %9962 = vmatprep.subr.mxu1 %v21249_v44  ;;  %v10456_v46 = vpop.eup %10455 }
 0xbec   : > { %9963 = vmatpush3.msra.mxu1 %v21809_v0  ;;  %v3761_v47 = vmul.f32 %v10456_v46, %v21811_v3 }
 0xbed   : > { %9964 = vmatprep.subr.mxu1 %v21249_v44 }
 0xbee   : > { %9965 = vmatpush3.msra.mxu1 %v21810_v27 }
 0xbef   : > { %9966 = vmatprep.subr.mxu1 %v21249_v44 }
 0xbf0   : > { %9967 = vmatpush3.msra.mxu1 %v21812_v5 }
 0xbf1   : > { %9969 = vmatmul.mubr.f32.vlgmr.msra.gmra.mxu1 %v3761_v47 }
 0xc6f   : > { %v8737_v39 = vpop.f32.mrf.mxu1 }
 0xc70   : > { %v8772_v42 = vpop.f32.mrf.mxu0 }
 0xc71   : > { %v8738_v10 = vpop.f32.mrf.mxu1 }
 0xc72   : > { %v8773_v33 = vpop.f32.mrf.mxu0  ;;  %v8739_v29 = vadd.f32 %v8738_v10, %v8737_v39 }
 0xc73   : > { %v8774_v30 = vadd.f32 %v8773_v33, %v8772_v42 }
 0xc75   : > { %v3899_v21 = vadd.f32 %v8774_v30, %v8739_v29  ;;  %v21817_v29 = vmov (%p251_p1), %v21216_v31 }
 0xc90   : > { %v8807_v18 = vpop.f32.mrf.mxu1 }
 0xc91   : > { %v8842_v59 = vpop.f32.mrf.mxu0 }
 0xc92   : > { %v8808_v22 = vpop.f32.mrf.mxu1 }
 0xc93   : > { %v8809_v58 = vadd.f32 %v8808_v22, %v8807_v18  ;;  %v8843_v44 = vpop.f32.mrf.mxu0 }
 0xc94   : > { %v8844_v12 = vadd.f32 %v8843_v44, %v8842_v59 }
 0xc95   : > { %v3969_v49 = vadd.f32 %v8809_v58, %v3899_v21 }
 0xc97   : > { %v4039_v24 = vadd.f32 %v8844_v12, %v3969_v49 }
 0xcb1   : > { %v4108_v8 = vpop.f32.mrf.mxu1 }
 0xcb2   : > { %v4109_v11 = vadd.f32 %v4108_v8, %v4039_v24 }
 0xcb3   : > { %v9970_v14 = vpop.f32.mrf.mxu1 }
 0xcb4   : > { %v4115_v1 = vadd.f32 %v4114_v25, %v4109_v11  ;;  %v21815_v11 = vmov %v21216_v31 }
 0xcb6   : > { %v4116_v15 = vmul.f32 0.16666667, %v4115_v1  ;;  %254 = sbr.rel (!%p251_p1) target bundleno = 517 (0x205), region = 92 }
 0xcb8   : > { %v4117_v16 = vadd.f32 %v21216_v31, %v4116_v15  }
 0xcba   : > { %v21816_v28 = vmov %v4117_v16  ;;  %v21818_v30 = vmov (%p251_p1), %v4117_v16 }
 0xcbb PF:  { %vm4118_vm8 = vcmask 517120   ;;  %4121 = vst.msk [vmem:[#allocation3] sm:$0x3] %vm226_vm3, %v11601_v29  ;;  %v4151_v28 = vld [vmem:[%s20552_s11 + $0xc8] sm:$0xff]  ;;  %v4150_v31 = vld [vmem:[%s20552_s11 + $0xc0] sm:$0xff]  ;;  %v21819_v19 = vmov 0.0   ;;  %v16205_v9 = vsub.f32 %v11605_v30, %v11601_v29  ;;  %v11605_v30 = vphi %v21206_v30, %v21818_v30   ;;  %v11601_v29 = vphi %v21205_v29, %v21817_v29  }
 0xcbc   :  { %v4143_v17 = vld [vmem:[%s20552_s11 + $0x88] sm:$0xff]  ;;  %4226 = vmatprep.mubr.f32.mxu0 %v21819_v19  ;;  %4297 = vmatprep.mubr.f32.mxu1 %v21819_v19  ;;  %4119 = vst.msk [vmem:[#allocation2] sm:$0x3] %vm4118_vm8, %v11605_v30  ;;  %v4142_v20 = vld [vmem:[%s20552_s11 + $0x80] sm:$0xff]  ;;  %v4153_v43 = vld [vmem:[%s20552_s11 + $0xd8] sm:$0xff]  ;;  %vm4452_vm9 = vcmask 523264  }
 0xcbd   :  { %4186 = vmatprep.subr.mxu0 %v4151_v28  ;;  %v4135_v62 = vld [vmem:[%s20552_s11 + $0x48] sm:$0xff]  ;;  %v4134_v40 = vld [vmem:[%s20552_s11 + $0x40] sm:$0xff]  ;;  %v4152_v48 = vld [vmem:[%s20552_s11 + $0xd0] sm:$0xff]  ;;  %4257 = vmatprep.subr.mxu1 %v4153_v43  ;;  %s11612_s30 = smov 96   ;;  %s11613_s9 = smov [#allocation6]   ;;  %vm8069_vm10 = vcmask 58368  }
 0xcbe   :  { %4187 = vmatpush1.msra.mxu0 %v4150_v31  ;;  %v4127_v54 = vld [vmem:[%s20552_s11 + $0x8] sm:$0xff]  ;;  %v4126_v2 = vld [vmem:[%s20552_s11] sm:$0xff]  ;;  %v4145_v26 = vld [vmem:[%s20552_s11 + $0x98] sm:$0xff]  ;;  %4258 = vmatpush1.msra.mxu1 %v4152_v48  ;;  %s8077_s17 = sshll.u32 %s11613_s9, 4  ;;  %s8078_s17 = int_to_ptr.vmem [resolvable:$true] %s8077_s17 }
 0xcbf   :  { %4188 = vmatprep.subr.mxu0 %v4143_v17  ;;  %v4155_v57 = vld [vmem:[%s20552_s11 + $0xe8] sm:$0xff]  ;;  %v4154_v23 = vld [vmem:[%s20552_s11 + $0xe0] sm:$0xff]  ;;  %4259 = vmatprep.subr.mxu1 %v4145_v26  ;;  %v4144_v37 = vld [vmem:[%s20552_s11 + $0x90] sm:$0xff]  ;;  %s11545_s5 = scalar_lea.vmem %s8078_s17, 32  ;;  %p11550_p3 = scmp.lt.s32.totalorder %s8078_s17, %s8078_s17 }
 0xcc0   :  { %4189 = vmatpush1.msra.mxu0 %v4142_v20  ;;  %v4147_v41 = vld [vmem:[%s20552_s11 + $0xa8] sm:$0xff]  ;;  %v4146_v61 = vld [vmem:[%s20552_s11 + $0xa0] sm:$0xff]  ;;  %v4137_v63 = vld [vmem:[%s20552_s11 + $0x58] sm:$0xff]  ;;  %4260 = vmatpush1.msra.mxu1 %v4144_v37  ;;  %p11546_p2 = scmp.ne.s32.totalorder %s8078_s17, %s11545_s5  ;;  %p11551_p4 = scmp.lt.s32.totalorder %s11545_s5, %s11545_s5 }
 0xcc1   :  { %4190 = vmatprep.subr.mxu0 %v4135_v62  ;;  %v4139_v45 = vld [vmem:[%s20552_s11 + $0x68] sm:$0xff]  ;;  %v4136_v51 = vld [vmem:[%s20552_s11 + $0x50] sm:$0xff]  ;;  %v4138_v38 = vld [vmem:[%s20552_s11 + $0x60] sm:$0xff]  ;;  %4261 = vmatprep.subr.mxu1 %v4137_v63 }
 0xcc2   :  { %4191 = vmatpush1.msra.mxu0 %v4134_v40  ;;  %v4129_v50 = vld [vmem:[%s20552_s11 + $0x18] sm:$0xff]  ;;  %v4131_v4 = vld [vmem:[%s20552_s11 + $0x28] sm:$0xff]  ;;  %v4128_v52 = vld [vmem:[%s20552_s11 + $0x10] sm:$0xff]  ;;  %4262 = vmatpush1.msra.mxu1 %v4136_v51  ;;  %p11552_p5 = por %p11551_p4, %p11550_p3 }
 0xcc3   :  { %4192 = vmatprep.subr.mxu0 %v4127_v54  ;;  %v4130_v6 = vld [vmem:[%s20552_s11 + $0x20] sm:$0xff]  ;;  %4263 = vmatprep.subr.mxu1 %v4129_v50  ;;  %v4157_v7 = vld [vmem:[%s20552_s11 + $0xf8] sm:$0xff]  ;;  %v4156_v32 = vld [vmem:[%s20552_s11 + $0xf0] sm:$0xff] }
 0xcc4   :  { %4193 = vmatpush1.msra.mxu0 %v4126_v2  ;;  %4264 = vmatpush1.msra.mxu1 %v4128_v52  ;;  %v21820_v34 = vld [vmem:[#allocation16_spill] sm:$0xff]  ;;  %v4148_v55 = vld [vmem:[%s20552_s11 + $0xb0] sm:$0xff]  ;;  %v21823_v5 = vld [vmem:[#allocation13_spill] sm:$0xff]  ;;  %p11553_p6 = pnand %p11552_p5, %p11546_p2 }
 0xcc5   :  { %8113 = vmatmul.mubr.msk.f32.vlgmr.msra.gmra.mxu0 %vm152_vm4, %v16205_v9  ;;  %4328 = vmatprep.subr.mxu0 %v4155_v57  ;;  %v4149_v60 = vld [vmem:[%s20552_s11 + $0xb8] sm:$0xff]  ;;  %v4140_v0 = vld [vmem:[%s20552_s11 + $0x70] sm:$0xff]  ;;  %v4663_v42 = vld [vmem:[%s20548_s7 + $0x440] sm:$0xff] }
 0xcc6   :  { %4329 = vmatpush1.msra.mxu0 %v4154_v23  ;;  %4368 = vmatprep.mubr.f32.mxu0 %v21819_v19  ;;  %v21821_v56 = vld [vmem:[#allocation15_spill] sm:$0xff]  ;;  %v21822_v27 = vld [vmem:[#allocation14_spill] sm:$0xff]  ;;  %v21824_v39 = vld [vmem:[#allocation12_spill] sm:$0xff] }
 0xcc7   :  { %4330 = vmatprep.subr.mxu0 %v4147_v41  ;;  %8114 = vmatmul.mubr.msk.f32.vlgmr.msra.gmra.mxu1 %vm152_vm4, %v16205_v9  ;;  %v4141_v46 = vld [vmem:[%s20552_s11 + $0x78] sm:$0xff]  ;;  %v4132_v47 = vld [vmem:[%s20552_s11 + $0x30] sm:$0xff]  ;;  %v4664_v58 = vld [vmem:[%s20548_s7 + $0x448] sm:$0xff] }
 0xcc8   :  { %4331 = vmatpush1.msra.mxu0 %v4146_v61  ;;  %4399 = vmatprep.subr.mxu1 %v4157_v7  ;;  %v4133_v3 = vld [vmem:[%s20552_s11 + $0x38] sm:$0xff]  ;;  %v4653_v22 = vld [vmem:[%s20548_s7 + $0x3f0] sm:$0xff]  ;;  %v21827_v35 = vld [vmem:[#allocation9_spill] sm:$0xff] }
 0xcc9   :  { %4332 = vmatprep.subr.mxu0 %v4139_v45  ;;  %4400 = vmatpush1.msra.mxu1 %v4156_v32  ;;  %v4662_v10 = vld [vmem:[%s20548_s7 + $0x438] sm:$0xff]  ;;  %v21826_v29 = vld [vmem:[#allocation10_spill] sm:$0xff]  ;;  %v4655_v21 = vld [vmem:[%s20548_s7 + $0x400] sm:$0xff] }
 0xcca   :  { %4333 = vmatpush1.msra.mxu0 %v4138_v38  ;;  %4401 = vmatprep.subr.mxu1 %v4149_v60  ;;  %v21825_v18 = vld [vmem:[#allocation11_spill] sm:$0xff]  ;;  %v4656_v36 = vld [vmem:[%s20548_s7 + $0x408] sm:$0xff]  ;;  %v4647_v49 = vld [vmem:[%s20548_s7 + $0x3c0] sm:$0xff] }
 0xccb   :  { %4334 = vmatprep.subr.mxu0 %v4131_v4  ;;  %4402 = vmatpush1.msra.mxu1 %v4148_v55  ;;  %v4654_v33 = vld [vmem:[%s20548_s7 + $0x3f8] sm:$0xff]  ;;  %v4665_v59 = vld [vmem:[%s20548_s7 + $0x450] sm:$0xff]  ;;  %v4644_v53 = vld [vmem:[%s20548_s7 + $0x3a8] sm:$0xff] }
 0xccc   :  { %4335 = vmatpush1.msra.mxu0 %v4130_v6  ;;  %4403 = vmatprep.subr.mxu1 %v4141_v46  ;;  %v4645_v44 = vld [vmem:[%s20548_s7 + $0x3b0] sm:$0xff]  ;;  %v4646_v12 = vld [vmem:[%s20548_s7 + $0x3b8] sm:$0xff]  ;;  %v4636_v24 = vld [vmem:[%s20548_s7 + $0x368] sm:$0xff] }
 0xccd   :  { %8115 = vmatmul.mubr.msk.f32.vlgmr.msra.gmra.mxu0 %vm152_vm4, %v16205_v9  ;;  %9971 = vmatprep.subr.mxu0 %v21819_v19  ;;  %v4638_v8 = vld [vmem:[%s20548_s7 + $0x378] sm:$0xff]  ;;  %v4635_v11 = vld [vmem:[%s20548_s7 + $0x360] sm:$0xff]  ;;  %v4637_v13 = vld [vmem:[%s20548_s7 + $0x370] sm:$0xff] }
 0xcce   :  { %9972 = vmatpush3.msra.mxu0 %v21820_v34  ;;  %9987 = vmatprep.mubr.msk.f32.mxu0 %vm11608_vm2, %v21819_v19  ;;  %v4627_v25 = vld [vmem:[%s20548_s7 + $0x320] sm:$0xff]  ;;  %v4629_v14 = vld [vmem:[%s20548_s7 + $0x330] sm:$0xff]  ;;  %v4626_v1 = vld [vmem:[%s20548_s7 + $0x318] sm:$0xff] }
 0xccf   :  { %9973 = vmatprep.subr.mxu0 %v21819_v19  ;;  %4404 = vmatpush1.msra.mxu1 %v4140_v0  ;;  %v4628_v15 = vld [vmem:[%s20548_s7 + $0x328] sm:$0xff]  ;;  %v4618_v16 = vld [vmem:[%s20548_s7 + $0x2d8] sm:$0xff]  ;;  %v4617_v31 = vld [vmem:[%s20548_s7 + $0x2d0] sm:$0xff] }
 0xcd0   :  { %9974 = vmatpush3.msra.mxu0 %v21821_v56  ;;  %4405 = vmatprep.subr.mxu1 %v4133_v3  ;;  %v4620_v28 = vld [vmem:[%s20548_s7 + $0x2e8] sm:$0xff]  ;;  %v4619_v17 = vld [vmem:[%s20548_s7 + $0x2e0] sm:$0xff]  ;;  %v4609_v20 = vld [vmem:[%s20548_s7 + $0x290] sm:$0xff] }
 0xcd1   :  { %9975 = vmatprep.subr.mxu0 %v21819_v19  ;;  %4406 = vmatpush1.msra.mxu1 %v4132_v47  ;;  %v4611_v62 = vld [vmem:[%s20548_s7 + $0x2a0] sm:$0xff]  ;;  %v4608_v40 = vld [vmem:[%s20548_s7 + $0x288] sm:$0xff]  ;;  %v4610_v54 = vld [vmem:[%s20548_s7 + $0x298] sm:$0xff] }
 0xcd2   :  { %9976 = vmatpush3.msra.mxu0 %v21822_v27  ;;  %4439 = vmatprep.mubr.f32.mxu1 %v21819_v19  ;;  %v4600_v2 = vld [vmem:[%s20548_s7 + $0x248] sm:$0xff]  ;;  %v4599_v43 = vld [vmem:[%s20548_s7 + $0x240] sm:$0xff]  ;;  %v4601_v48 = vld [vmem:[%s20548_s7 + $0x250] sm:$0xff] }
 0xcd3   :  { %9977 = vmatprep.subr.mxu0 %v21819_v19  ;;  %8116 = vmatmul.mubr.msk.f32.vlgmr.msra.gmra.mxu1 %vm152_vm4, %v16205_v9  ;;  %v4602_v9 = vld [vmem:[%s20548_s7 + $0x258] sm:$0xff]  ;;  %v4591_v57 = vld [vmem:[%s20548_s7 + $0x200] sm:$0xff]  ;;  %v4593_v26 = vld [vmem:[%s20548_s7 + $0x210] sm:$0xff] }
 0xcd4   :  { %9978 = vmatpush3.msra.mxu0 %v21823_v5  ;;  %4718 = vmatprep.subr.mxu1 %v4663_v42  ;;  %v4590_v23 = vld [vmem:[%s20548_s7 + $0x1f8] sm:$0xff]  ;;  %v4592_v41 = vld [vmem:[%s20548_s7 + $0x208] sm:$0xff]  ;;  %v4581_v63 = vld [vmem:[%s20548_s7 + $0x1b0] sm:$0xff] }
 0xcd5   :  { %9979 = vmatprep.subr.mxu0 %v21819_v19  ;;  %4719 = vmatpush1.msra.mxu1 %v4662_v10  ;;  %v4582_v37 = vld [vmem:[%s20548_s7 + $0x1b8] sm:$0xff]  ;;  %v4584_v61 = vld [vmem:[%s20548_s7 + $0x1c8] sm:$0xff]  ;;  %v4583_v45 = vld [vmem:[%s20548_s7 + $0x1c0] sm:$0xff] }
 0xcd6   :  { %9980 = vmatpush3.msra.mxu0 %v21824_v39  ;;  %4720 = vmatprep.subr.mxu1 %v4654_v33  ;;  %v4573_v51 = vld [vmem:[%s20548_s7 + $0x170] sm:$0xff]  ;;  %v4575_v38 = vld [vmem:[%s20548_s7 + $0x180] sm:$0xff]  ;;  %v4572_v50 = vld [vmem:[%s20548_s7 + $0x168] sm:$0xff] }
 0xcd7   :  { %9981 = vmatprep.subr.mxu0 %v21819_v19  ;;  %4721 = vmatpush1.msra.mxu1 %v4653_v22  ;;  %v4574_v4 = vld [vmem:[%s20548_s7 + $0x178] sm:$0xff]  ;;  %v4564_v52 = vld [vmem:[%s20548_s7 + $0x128] sm:$0xff]  ;;  %v4563_v7 = vld [vmem:[%s20548_s7 + $0x120] sm:$0xff] }
 0xcd8   :  { %9982 = vmatpush3.msra.mxu0 %v21825_v18  ;;  %4782 = vmatprep.mubr.f32.mxu1 %v21819_v19  ;;  %v4566_v6 = vld [vmem:[%s20548_s7 + $0x138] sm:$0xff]  ;;  %v4565_v32 = vld [vmem:[%s20548_s7 + $0x130] sm:$0xff]  ;;  %v4555_v60 = vld [vmem:[%s20548_s7 + $0xe0] sm:$0xff] }
 0xcd9   :  { %9983 = vmatprep.subr.mxu0 %v21819_v19  ;;  %4722 = vmatprep.subr.mxu1 %v4645_v44  ;;  %v4557_v55 = vld [vmem:[%s20548_s7 + $0xf0] sm:$0xff]  ;;  %v4554_v46 = vld [vmem:[%s20548_s7 + $0xd8] sm:$0xff]  ;;  %v4556_v0 = vld [vmem:[%s20548_s7 + $0xe8] sm:$0xff] }
 0xcda   :  { %9984 = vmatpush3.msra.mxu0 %v21826_v29  ;;  %4723 = vmatpush1.msra.mxu1 %v4644_v53  ;;  %v4546_v3 = vld [vmem:[%s20548_s7 + $0x98] sm:$0xff]  ;;  %v4548_v47 = vld [vmem:[%s20548_s7 + $0xa8] sm:$0xff]  ;;  %v4545_v42 = vld [vmem:[%s20548_s7 + $0x90] sm:$0xff] }
 0xcdb   :  { %9985 = vmatprep.subr.mxu0 %v21819_v19  ;;  %4724 = vmatprep.subr.mxu1 %v4636_v24  ;;  %v4547_v10 = vld [vmem:[%s20548_s7 + $0xa0] sm:$0xff]  ;;  %v4537_v33 = vld [vmem:[%s20548_s7 + $0x50] sm:$0xff]  ;;  %v4447_v24 = vlaneseq }
 0xcdc   :  { %9986 = vmatpush3.msra.mxu0 %v21827_v35  ;;  %4725 = vmatpush1.msra.mxu1 %v4635_v11  ;;  %v4539_v22 = vld [vmem:[%s20548_s7 + $0x60] sm:$0xff] }
 0xcdd   :  { %9988 = vmatmul.mubr.msk.f32.vlgmr.msra.gmra.mxu0 %vm4452_vm9, %v11605_v30  ;;  %4789 = vmatprep.subr.mxu0 %v4665_v59  ;;  %v4536_v59 = vld [vmem:[%s20548_s7 + $0x48] sm:$0xff]  ;;  %v4527_v44 = vld [vmem:[%s20548_s7] sm:$0xff]  ;;  %v16511_v11 = vshrl.u32 %v4447_v24, 7  ;;  %v4578_v24 = vld [vmem:[%s20548_s7 + $0x198] sm:$0xff] }
 0xcde   :  { %4790 = vmatpush1.msra.mxu0 %v4664_v58  ;;  %4853 = vmatprep.mubr.f32.mxu0 %v21819_v19  ;;  %v4538_v58 = vld [vmem:[%s20548_s7 + $0x58] sm:$0xff]  ;;  %v4667_v53 = vld [vmem:[%s20548_s7 + $0x460] sm:$0xff] }
 0xcdf   :  { %4791 = vmatprep.subr.mxu0 %v4656_v36  ;;  %4726 = vmatprep.subr.mxu1 %v4627_v25  ;;  %v4528_v36 = vld [vmem:[%s20548_s7 + $0x8] sm:$0xff]  ;;  %v16516_v25 = vsub.s32 0, %v16511_v11 }
 0xce0   :  { %4792 = vmatpush1.msra.mxu0 %v4655_v21  ;;  %4727 = vmatpush1.msra.mxu1 %v4626_v1  ;;  %v4530_v21 = vld [vmem:[%s20548_s7 + $0x18] sm:$0xff]  ;;  %v21828_v1 = vld [vmem:[#allocation17_spill] sm:$0xff] }
 0xce1   :  { %4793 = vmatprep.subr.mxu0 %v4647_v49  ;;  %4728 = vmatprep.subr.mxu1 %v4618_v16  ;;  %v4529_v49 = vld [vmem:[%s20548_s7 + $0x10] sm:$0xff] }
 0xce2   :  { %4794 = vmatpush1.msra.mxu0 %v4646_v12  ;;  %4729 = vmatpush1.msra.mxu1 %v4617_v31  ;;  %v4669_v12 = vld [vmem:[%s20548_s7 + $0x470] sm:$0xff] }
 0xce3   :  { %4795 = vmatprep.subr.mxu0 %v4638_v8  ;;  %4730 = vmatprep.subr.mxu1 %v4609_v20 }
 0xce4   :  { %4796 = vmatpush1.msra.mxu0 %v4637_v13  ;;  %4731 = vmatpush1.msra.mxu1 %v4608_v40  ;;  %v4668_v40 = vld [vmem:[%s20548_s7 + $0x468] sm:$0xff] }
 0xce5   :  { %4797 = vmatprep.subr.mxu0 %v4629_v14  ;;  %4732 = vmatprep.subr.mxu1 %v4600_v2  ;;  %v4660_v2 = vld [vmem:[%s20548_s7 + $0x428] sm:$0xff] }
 0xce6   :  { %4798 = vmatpush1.msra.mxu0 %v4628_v15  ;;  %4733 = vmatpush1.msra.mxu1 %v4599_v43  ;;  %v16522_v15 = vrot.slane %v21828_v1, %v16516_v25  ;;  %v4659_v43 = vld [vmem:[%s20548_s7 + $0x420] sm:$0xff]  ;;  %v4568_v1 = vld [vmem:[%s20548_s7 + $0x148] sm:$0xff] }
 0xce7   :  { %4799 = vmatprep.subr.mxu0 %v4620_v28  ;;  %4734 = vmatprep.subr.mxu1 %v4591_v57  ;;  %v4651_v57 = vld [vmem:[%s20548_s7 + $0x3e0] sm:$0xff] }
 0xce8   :  { %4800 = vmatpush1.msra.mxu0 %v4619_v17  ;;  %4735 = vmatpush1.msra.mxu1 %v4590_v23  ;;  %21829 = vst [vmem:[#allocation17_spill] sm:$0xff] %v16522_v15  ;;  %v4650_v23 = vld [vmem:[%s20548_s7 + $0x3d8] sm:$0xff] }
 0xce9   :  { %4801 = vmatprep.subr.mxu0 %v4611_v62  ;;  %4736 = vmatprep.subr.mxu1 %v4582_v37  ;;  %v4666_v62 = vld [vmem:[%s20548_s7 + $0x458] sm:$0xff] }
 0xcea   :  { %4802 = vmatpush1.msra.mxu0 %v4610_v54  ;;  %4737 = vmatpush1.msra.mxu1 %v4581_v63  ;;  %v4658_v54 = vld [vmem:[%s20548_s7 + $0x418] sm:$0xff]  ;;  %v4641_v63 = vld [vmem:[%s20548_s7 + $0x390] sm:$0xff] }
 0xceb   :  { %4803 = vmatprep.subr.mxu0 %v4602_v9  ;;  %4738 = vmatprep.subr.mxu1 %v4573_v51  ;;  %v4657_v9 = vld [vmem:[%s20548_s7 + $0x410] sm:$0xff]  ;;  %v4642_v37 = vld [vmem:[%s20548_s7 + $0x398] sm:$0xff] }
 0xcec   :  { %4804 = vmatpush1.msra.mxu0 %v4601_v48  ;;  %4739 = vmatpush1.msra.mxu1 %v4572_v50  ;;  %v4649_v48 = vld [vmem:[%s20548_s7 + $0x3d0] sm:$0xff]  ;;  %v4632_v50 = vld [vmem:[%s20548_s7 + $0x348] sm:$0xff] }
 0xced   :  { %4805 = vmatprep.subr.mxu0 %v4593_v26  ;;  %4740 = vmatprep.subr.mxu1 %v4564_v52  ;;  %v4648_v26 = vld [vmem:[%s20548_s7 + $0x3c8] sm:$0xff]  ;;  %v4633_v51 = vld [vmem:[%s20548_s7 + $0x350] sm:$0xff] }
 0xcee   :  { %4806 = vmatpush1.msra.mxu0 %v4592_v41  ;;  %4741 = vmatpush1.msra.mxu1 %v4563_v7  ;;  %v4640_v41 = vld [vmem:[%s20548_s7 + $0x388] sm:$0xff]  ;;  %v4623_v7 = vld [vmem:[%s20548_s7 + $0x300] sm:$0xff] }
 0xcef   :  { %4807 = vmatprep.subr.mxu0 %v4584_v61  ;;  %4742 = vmatprep.subr.mxu1 %v4555_v60  ;;  %v4639_v61 = vld [vmem:[%s20548_s7 + $0x380] sm:$0xff]  ;;  %v4624_v52 = vld [vmem:[%s20548_s7 + $0x308] sm:$0xff] }
 0xcf0   :  { %4808 = vmatpush1.msra.mxu0 %v4583_v45  ;;  %4743 = vmatpush1.msra.mxu1 %v4554_v46  ;;  %v4631_v45 = vld [vmem:[%s20548_s7 + $0x340] sm:$0xff]  ;;  %v4614_v46 = vld [vmem:[%s20548_s7 + $0x2b8] sm:$0xff] }
 0xcf1   :  { %4809 = vmatprep.subr.mxu0 %v4575_v38  ;;  %4744 = vmatprep.subr.mxu1 %v4546_v3  ;;  %v4630_v38 = vld [vmem:[%s20548_s7 + $0x338] sm:$0xff]  ;;  %v4615_v60 = vld [vmem:[%s20548_s7 + $0x2c0] sm:$0xff] }
 0xcf2   :  { %4810 = vmatpush1.msra.mxu0 %v4574_v4  ;;  %4745 = vmatpush1.msra.mxu1 %v4545_v42  ;;  %v4622_v4 = vld [vmem:[%s20548_s7 + $0x2f8] sm:$0xff]  ;;  %v4605_v42 = vld [vmem:[%s20548_s7 + $0x270] sm:$0xff] }
 0xcf3   :  { %4811 = vmatprep.subr.mxu0 %v4566_v6  ;;  %4746 = vmatprep.subr.mxu1 %v4537_v33  ;;  %v4621_v6 = vld [vmem:[%s20548_s7 + $0x2f0] sm:$0xff]  ;;  %v4606_v3 = vld [vmem:[%s20548_s7 + $0x278] sm:$0xff] }
 0xcf4   :  { %4812 = vmatpush1.msra.mxu0 %v4565_v32  ;;  %4747 = vmatpush1.msra.mxu1 %v4536_v59  ;;  %v4613_v32 = vld [vmem:[%s20548_s7 + $0x2b0] sm:$0xff]  ;;  %v4596_v59 = vld [vmem:[%s20548_s7 + $0x228] sm:$0xff] }
 0xcf5   :  { %4813 = vmatprep.subr.mxu0 %v4557_v55  ;;  %4748 = vmatprep.subr.mxu1 %v4528_v36  ;;  %v4612_v55 = vld [vmem:[%s20548_s7 + $0x2a8] sm:$0xff]  ;;  %v4597_v33 = vld [vmem:[%s20548_s7 + $0x230] sm:$0xff] }
 0xcf6   :  { %4814 = vmatpush1.msra.mxu0 %v4556_v0  ;;  %4749 = vmatpush1.msra.mxu1 %v4527_v44  ;;  %v4604_v0 = vld [vmem:[%s20548_s7 + $0x268] sm:$0xff]  ;;  %v4587_v44 = vld [vmem:[%s20548_s7 + $0x1e0] sm:$0xff] }
 0xcf7   :  { %4815 = vmatprep.subr.mxu0 %v4548_v47  ;;  %4860 = vmatprep.subr.mxu1 %v4667_v53  ;;  %v4603_v47 = vld [vmem:[%s20548_s7 + $0x260] sm:$0xff]  ;;  %v4588_v36 = vld [vmem:[%s20548_s7 + $0x1e8] sm:$0xff] }
 0xcf8   :  { %4816 = vmatpush1.msra.mxu0 %v4547_v10  ;;  %v4595_v10 = vld [vmem:[%s20548_s7 + $0x220] sm:$0xff] }
 0xcf9   :  { %4817 = vmatprep.subr.mxu0 %v4539_v22  ;;  %v4594_v22 = vld [vmem:[%s20548_s7 + $0x218] sm:$0xff]  ;;  %v4579_v53 = vld [vmem:[%s20548_s7 + $0x1a0] sm:$0xff] }
 0xcfa   :  { %4818 = vmatpush1.msra.mxu0 %v4538_v58  ;;  %v4586_v58 = vld [vmem:[%s20548_s7 + $0x1d8] sm:$0xff] }
 0xcfb   :  { %4819 = vmatprep.subr.mxu0 %v4530_v21  ;;  %v4585_v21 = vld [vmem:[%s20548_s7 + $0x1d0] sm:$0xff] }
 0xcfc   :  { %4820 = vmatpush1.msra.mxu0 %v4529_v49  ;;  %v4577_v49 = vld [vmem:[%s20548_s7 + $0x190] sm:$0xff] }
 0xcfd   :  { %4931 = vmatprep.subr.mxu0 %v4669_v12  ;;  %v4576_v12 = vld [vmem:[%s20548_s7 + $0x188] sm:$0xff] }
 0xd85   :  { %v16509_v8 = vpop.f32.mrf.mxu0 }
 0xd87   :  { %v16513_v13 = vpop.f32.mrf.mxu0 }
 0xd8d   :  { %v16518_v14 = vpop.f32.mrf.mxu0 }
 0xd8f   :  { %v16524_v16 = vpop.f32.mrf.mxu0 }
 0xd90   :  { %21830 = vst [vmem:[#allocation270_spill] sm:$0xff] %v16524_v16 }
 0xd9d   :  { %v4522_v28 = vpop.f32.mrf.mxu0 }
 0xd9e   :  { %v4523_v31 = vadd.f32 %v4522_v28, %v16522_v15  ;;  %v4570_v28 = vld [vmem:[%s20548_s7 + $0x158] sm:$0xff] }
 0xd9f   :  { %v9989_v17 = vpop.f32.mrf.mxu0 }
 0xda0   :  { %v16527_v20 = vmax.f32 %v4523_v31, 0.0  ;;  %v4567_v31 = vld [vmem:[%s20548_s7 + $0x140] sm:$0xff]  ;;  %v4569_v17 = vld [vmem:[%s20548_s7 + $0x150] sm:$0xff] }
 0xda2   :  { %4783 = vmatmul.mubr.f32.vlgmr.msra.gmra.mxu1 %v16527_v20  ;;  %4854 = vmatmul.mubr.f32.vlgmr.msra.gmra.mxu0 %v16527_v20 }
 0xda3   :  { %4861 = vmatpush1.msra.mxu1 %v4666_v62  ;;  %4932 = vmatpush1.msra.mxu0 %v4668_v40  ;;  %v4559_v62 = vld [vmem:[%s20548_s7 + $0x100] sm:$0xff]  ;;  %v4561_v40 = vld [vmem:[%s20548_s7 + $0x110] sm:$0xff] }
 0xda4   :  { %4862 = vmatprep.subr.mxu1 %v4658_v54  ;;  %4933 = vmatprep.subr.mxu0 %v4660_v2  ;;  %v4558_v54 = vld [vmem:[%s20548_s7 + $0xf8] sm:$0xff]  ;;  %v4560_v2 = vld [vmem:[%s20548_s7 + $0x108] sm:$0xff] }
 0xda5   :  { %4863 = vmatpush1.msra.mxu1 %v4657_v9  ;;  %4934 = vmatpush1.msra.mxu0 %v4659_v43  ;;  %v4550_v9 = vld [vmem:[%s20548_s7 + $0xb8] sm:$0xff]  ;;  %v4552_v43 = vld [vmem:[%s20548_s7 + $0xc8] sm:$0xff] }
 0xda6   :  { %4864 = vmatprep.subr.mxu1 %v4649_v48  ;;  %4935 = vmatprep.subr.mxu0 %v4651_v57  ;;  %v4549_v48 = vld [vmem:[%s20548_s7 + $0xb0] sm:$0xff]  ;;  %v4551_v57 = vld [vmem:[%s20548_s7 + $0xc0] sm:$0xff] }
 0xda7   :  { %4865 = vmatpush1.msra.mxu1 %v4648_v26  ;;  %4936 = vmatpush1.msra.mxu0 %v4650_v23  ;;  %v4541_v26 = vld [vmem:[%s20548_s7 + $0x70] sm:$0xff]  ;;  %v4543_v23 = vld [vmem:[%s20548_s7 + $0x80] sm:$0xff] }
 0xda8   :  { %4866 = vmatprep.subr.mxu1 %v4640_v41  ;;  %4937 = vmatprep.subr.mxu0 %v4642_v37  ;;  %v4540_v41 = vld [vmem:[%s20548_s7 + $0x68] sm:$0xff]  ;;  %v4542_v37 = vld [vmem:[%s20548_s7 + $0x78] sm:$0xff] }
 0xda9   :  { %4867 = vmatpush1.msra.mxu1 %v4639_v61  ;;  %4938 = vmatpush1.msra.mxu0 %v4641_v63  ;;  %v4532_v61 = vld [vmem:[%s20548_s7 + $0x28] sm:$0xff]  ;;  %v4534_v63 = vld [vmem:[%s20548_s7 + $0x38] sm:$0xff] }
 0xdaa   :  { %4868 = vmatprep.subr.mxu1 %v4631_v45  ;;  %4939 = vmatprep.subr.mxu0 %v4633_v51  ;;  %v4531_v45 = vld [vmem:[%s20548_s7 + $0x20] sm:$0xff]  ;;  %v4533_v51 = vld [vmem:[%s20548_s7 + $0x30] sm:$0xff] }
 0xdab   :  { %4869 = vmatpush1.msra.mxu1 %v4630_v38  ;;  %4940 = vmatpush1.msra.mxu0 %v4632_v50  ;;  %v4670_v38 = vld [vmem:[%s20548_s7 + $0x478] sm:$0xff] }
 0xdac   :  { %4870 = vmatprep.subr.mxu1 %v4622_v4  ;;  %4941 = vmatprep.subr.mxu0 %v4624_v52  ;;  %v5121_v50 = vld [vmem:[%s20553_s12 + $0xf8] sm:$0xff]  ;;  %v4661_v52 = vld [vmem:[%s20548_s7 + $0x430] sm:$0xff] }
 0xdad   :  { %4871 = vmatpush1.msra.mxu1 %v4621_v6  ;;  %4942 = vmatpush1.msra.mxu0 %v4623_v7  ;;  %v5105_v4 = vld [vmem:[%s20553_s12 + $0x78] sm:$0xff]  ;;  %v5120_v6 = vld [vmem:[%s20553_s12 + $0xf0] sm:$0xff] }
 0xdae   :  { %4872 = vmatprep.subr.mxu1 %v4613_v32  ;;  %4943 = vmatprep.subr.mxu0 %v4615_v60  ;;  %v5104_v7 = vld [vmem:[%s20553_s12 + $0x70] sm:$0xff]  ;;  %v4652_v32 = vld [vmem:[%s20548_s7 + $0x3e8] sm:$0xff] }
 0xdaf   :  { %4873 = vmatpush1.msra.mxu1 %v4612_v55  ;;  %4944 = vmatpush1.msra.mxu0 %v4614_v46  ;;  %v5119_v60 = vld [vmem:[%s20553_s12 + $0xe8] sm:$0xff]  ;;  %v4643_v46 = vld [vmem:[%s20548_s7 + $0x3a0] sm:$0xff] }
 0xdb0   :  { %4874 = vmatprep.subr.mxu1 %v4604_v0  ;;  %4945 = vmatprep.subr.mxu0 %v4606_v3  ;;  %v5103_v55 = vld [vmem:[%s20553_s12 + $0x68] sm:$0xff]  ;;  %v5118_v0 = vld [vmem:[%s20553_s12 + $0xe0] sm:$0xff] }
 0xdb1   :  { %4875 = vmatpush1.msra.mxu1 %v4603_v47  ;;  %4946 = vmatpush1.msra.mxu0 %v4605_v42  ;;  %v5102_v3 = vld [vmem:[%s20553_s12 + $0x60] sm:$0xff]  ;;  %v4634_v47 = vld [vmem:[%s20548_s7 + $0x358] sm:$0xff] }
 0xdb2   :  { %4876 = vmatprep.subr.mxu1 %v4595_v10  ;;  %4947 = vmatprep.subr.mxu0 %v4597_v33  ;;  %v5117_v42 = vld [vmem:[%s20553_s12 + $0xd8] sm:$0xff]  ;;  %v4625_v33 = vld [vmem:[%s20548_s7 + $0x310] sm:$0xff] }
 0xdb3   :  { %4877 = vmatpush1.msra.mxu1 %v4594_v22  ;;  %4948 = vmatpush1.msra.mxu0 %v4596_v59  ;;  %v5101_v10 = vld [vmem:[%s20553_s12 + $0x58] sm:$0xff]  ;;  %v5116_v22 = vld [vmem:[%s20553_s12 + $0xd0] sm:$0xff]  ;;  %v4616_v59 = vld [vmem:[%s20548_s7 + $0x2c8] sm:$0xff] }
 0xdb4   :  { %4878 = vmatprep.subr.mxu1 %v4586_v58  ;;  %4949 = vmatprep.subr.mxu0 %v4588_v36  ;;  %v4607_v58 = vld [vmem:[%s20548_s7 + $0x280] sm:$0xff]  ;;  %v4598_v36 = vld [vmem:[%s20548_s7 + $0x238] sm:$0xff] }
 0xdb5   :  { %4879 = vmatpush1.msra.mxu1 %v4585_v21  ;;  %4950 = vmatpush1.msra.mxu0 %v4587_v44  ;;  %v4589_v21 = vld [vmem:[%s20548_s7 + $0x1f0] sm:$0xff]  ;;  %v4580_v44 = vld [vmem:[%s20548_s7 + $0x1a8] sm:$0xff] }
 0xdb6   :  { %4880 = vmatprep.subr.mxu1 %v4577_v49  ;;  %4951 = vmatprep.subr.mxu0 %v4579_v53  ;;  %v4571_v49 = vld [vmem:[%s20548_s7 + $0x160] sm:$0xff]  ;;  %v4562_v53 = vld [vmem:[%s20548_s7 + $0x118] sm:$0xff] }
 0xdb7   :  { %4881 = vmatpush1.msra.mxu1 %v4576_v12  ;;  %4952 = vmatpush1.msra.mxu0 %v4578_v24  ;;  %v4553_v12 = vld [vmem:[%s20548_s7 + $0xd0] sm:$0xff]  ;;  %v4544_v24 = vld [vmem:[%s20548_s7 + $0x88] sm:$0xff] }
 0xdb8   :  { %4882 = vmatprep.subr.mxu1 %v4568_v1  ;;  %4953 = vmatprep.subr.mxu0 %v4570_v28  ;;  %v4535_v1 = vld [vmem:[%s20548_s7 + $0x40] sm:$0xff]  ;;  %v5153_v28 = vld [vmem:[%s20553_s12 + $0x1f8] sm:$0xff] }
 0xdb9   :  { %4883 = vmatpush1.msra.mxu1 %v4567_v31  ;;  %4954 = vmatpush1.msra.mxu0 %v4569_v17  ;;  %v5137_v31 = vld [vmem:[%s20553_s12 + $0x178] sm:$0xff]  ;;  %v5152_v17 = vld [vmem:[%s20553_s12 + $0x1f0] sm:$0xff] }
 0xdba   :  { %4884 = vmatprep.subr.mxu1 %v4559_v62  ;;  %4955 = vmatprep.subr.mxu0 %v4561_v40  ;;  %v5136_v62 = vld [vmem:[%s20553_s12 + $0x170] sm:$0xff] }
 0xdbb   :  { %4885 = vmatpush1.msra.mxu1 %v4558_v54  ;;  %4956 = vmatpush1.msra.mxu0 %v4560_v2  ;;  %v5100_v40 = vld [vmem:[%s20553_s12 + $0x50] sm:$0xff]  ;;  %v5151_v54 = vld [vmem:[%s20553_s12 + $0x1e8] sm:$0xff] }
 0xdbc   :  { %4886 = vmatprep.subr.mxu1 %v4550_v9  ;;  %4957 = vmatprep.subr.mxu0 %v4552_v43  ;;  %v5115_v2 = vld [vmem:[%s20553_s12 + $0xc8] sm:$0xff]  ;;  %v5150_v43 = vld [vmem:[%s20553_s12 + $0x1e0] sm:$0xff] }
 0xdbd   :  { %4887 = vmatpush1.msra.mxu1 %v4549_v48  ;;  %4958 = vmatpush1.msra.mxu0 %v4551_v57  ;;  %v5099_v9 = vld [vmem:[%s20553_s12 + $0x48] sm:$0xff]  ;;  %v5114_v48 = vld [vmem:[%s20553_s12 + $0xc0] sm:$0xff] }
 0xdbe   :  { %4888 = vmatprep.subr.mxu1 %v4541_v26  ;;  %4959 = vmatprep.subr.mxu0 %v4543_v23  ;;  %v5134_v57 = vld [vmem:[%s20553_s12 + $0x160] sm:$0xff]  ;;  %v5149_v23 = vld [vmem:[%s20553_s12 + $0x1d8] sm:$0xff] }
 0xdbf   :  { %4889 = vmatpush1.msra.mxu1 %v4540_v41  ;;  %4960 = vmatpush1.msra.mxu0 %v4542_v37  ;;  %v5098_v26 = vld [vmem:[%s20553_s12 + $0x40] sm:$0xff]  ;;  %v5113_v41 = vld [vmem:[%s20553_s12 + $0xb8] sm:$0xff] }
 0xdc0   :  { %4890 = vmatprep.subr.mxu1 %v4532_v61  ;;  %4961 = vmatprep.subr.mxu0 %v4534_v63  ;;  %v5133_v37 = vld [vmem:[%s20553_s12 + $0x158] sm:$0xff]  ;;  %v5148_v63 = vld [vmem:[%s20553_s12 + $0x1d0] sm:$0xff] }
 0xdc1   :  { %4891 = vmatpush1.msra.mxu1 %v4531_v45  ;;  %4924 = vmatprep.mubr.f32.mxu1 %v21819_v19  ;;  %v5097_v61 = vld [vmem:[%s20553_s12 + $0x38] sm:$0xff]  ;;  %v5112_v45 = vld [vmem:[%s20553_s12 + $0xb0] sm:$0xff] }
 0xdc2   :  { %4962 = vmatpush1.msra.mxu0 %v4533_v51  ;;  %4995 = vmatprep.mubr.f32.mxu0 %v21819_v19  ;;  %v5132_v51 = vld [vmem:[%s20553_s12 + $0x150] sm:$0xff] }
 0xdc3   :  { %4925 = vmatmul.mubr.f32.vlgmr.msra.gmra.mxu1 %v16527_v20  ;;  %4996 = vmatmul.mubr.f32.vlgmr.msra.gmra.mxu0 %v16527_v20 }
 0xdc4   :  { %9990 = vmatprep.subr.mxu1 %v21819_v19  ;;  %10022 = vmatprep.mubr.msk.f32.mxu1 %vm11608_vm2, %v21819_v19 }
 0xdc5   :  { %9991 = vmatpush3.msra.mxu1 %v4670_v38  ;;  %8888 = vmatprep.subr.mxu0 %v5121_v50  ;;  %v5096_v38 = vld [vmem:[%s20553_s12 + $0x30] sm:$0xff]  ;;  %v5147_v50 = vld [vmem:[%s20553_s12 + $0x1c8] sm:$0xff] }
 0xdc6   :  { %9992 = vmatprep.subr.mxu1 %v21819_v19  ;;  %8889 = vmatpush3.msra.mxu0 %v5105_v4  ;;  %v5111_v4 = vld [vmem:[%s20553_s12 + $0xa8] sm:$0xff] }
 0xdc7   :  { %9993 = vmatpush3.msra.mxu1 %v4661_v52  ;;  %8890 = vmatprep.subr.mxu0 %v5120_v6  ;;  %v5131_v52 = vld [vmem:[%s20553_s12 + $0x148] sm:$0xff] }
 0xdc8   :  { %9994 = vmatprep.subr.mxu1 %v21819_v19  ;;  %8891 = vmatpush3.msra.mxu0 %v5104_v7  ;;  %v5095_v6 = vld [vmem:[%s20553_s12 + $0x28] sm:$0xff]  ;;  %v5146_v7 = vld [vmem:[%s20553_s12 + $0x1c0] sm:$0xff] }
 0xdc9   :  { %9995 = vmatpush3.msra.mxu1 %v4652_v32  ;;  %8892 = vmatprep.subr.mxu0 %v5119_v60  ;;  %v5110_v32 = vld [vmem:[%s20553_s12 + $0xa0] sm:$0xff] }
 0xdca   :  { %9996 = vmatprep.subr.mxu1 %v21819_v19  ;;  %8893 = vmatpush3.msra.mxu0 %v5103_v55  ;;  %v5130_v60 = vld [vmem:[%s20553_s12 + $0x140] sm:$0xff] }
 0xdcb   :  { %9997 = vmatpush3.msra.mxu1 %v4643_v46  ;;  %8894 = vmatprep.subr.mxu0 %v5118_v0  ;;  %v5094_v55 = vld [vmem:[%s20553_s12 + $0x20] sm:$0xff]  ;;  %v5145_v46 = vld [vmem:[%s20553_s12 + $0x1b8] sm:$0xff] }
 0xdcc   :  { %9998 = vmatprep.subr.mxu1 %v21819_v19  ;;  %8895 = vmatpush3.msra.mxu0 %v5102_v3  ;;  %v5109_v0 = vld [vmem:[%s20553_s12 + $0x98] sm:$0xff] }
 0xdcd   :  { %9999 = vmatpush3.msra.mxu1 %v4634_v47  ;;  %8896 = vmatprep.subr.mxu0 %v5117_v42  ;;  %v5129_v3 = vld [vmem:[%s20553_s12 + $0x138] sm:$0xff]  ;;  %v5144_v42 = vld [vmem:[%s20553_s12 + $0x1b0] sm:$0xff] }
 0xdce   :  { %10000 = vmatprep.subr.mxu1 %v21819_v19  ;;  %8897 = vmatpush3.msra.mxu0 %v5101_v10  ;;  %v5093_v47 = vld [vmem:[%s20553_s12 + $0x18] sm:$0xff]  ;;  %v5108_v10 = vld [vmem:[%s20553_s12 + $0x90] sm:$0xff] }
 0xdcf   :  { %10001 = vmatpush3.msra.mxu1 %v4625_v33  ;;  %8898 = vmatprep.subr.mxu0 %v5116_v22  ;;  %v5092_v33 = vld [vmem:[%s20553_s12 + $0x10] sm:$0xff] }
 0xdd0   :  { %10002 = vmatprep.subr.mxu1 %v21819_v19  ;;  %8899 = vmatpush3.msra.mxu0 %v5100_v40  ;;  %v5128_v22 = vld [vmem:[%s20553_s12 + $0x130] sm:$0xff]  ;;  %v5123_v40 = vld [vmem:[%s20553_s12 + $0x108] sm:$0xff] }
 0xdd1   :  { %10003 = vmatpush3.msra.mxu1 %v4616_v59  ;;  %8900 = vmatprep.subr.mxu0 %v5115_v2  ;;  %v5107_v59 = vld [vmem:[%s20553_s12 + $0x88] sm:$0xff]  ;;  %v5122_v2 = vld [vmem:[%s20553_s12 + $0x100] sm:$0xff] }
 0xdd2   :  { %10004 = vmatprep.subr.mxu1 %v21819_v19  ;;  %8901 = vmatpush3.msra.mxu0 %v5099_v9  ;;  %v16986_v9 = vpop.f32.mrf.mxu1 }
 0xdd3   :  { %10005 = vmatpush3.msra.mxu1 %v4607_v58  ;;  %8902 = vmatprep.subr.mxu0 %v5114_v48  ;;  %v5143_v58 = vld [vmem:[%s20553_s12 + $0x1a8] sm:$0xff]  ;;  %v4683_v48 = vsub.s32 2, %v16511_v11 }
 0xdd4   :  { %10006 = vmatprep.subr.mxu1 %v21819_v19  ;;  %8903 = vmatpush3.msra.mxu0 %v5098_v26  ;;  %v4679_v26 = vsub.s32 1, %v16511_v11 }
 0xdd5   :  { %10007 = vmatpush3.msra.mxu1 %v4598_v36  ;;  %8904 = vmatprep.subr.mxu0 %v5113_v41  ;;  %v5091_v36 = vld [vmem:[%s20553_s12 + $0x8] sm:$0xff] }
 0xdd6   :  { %10008 = vmatprep.subr.mxu1 %v21819_v19  ;;  %8905 = vmatpush3.msra.mxu0 %v5097_v61  ;;  %v21831_v41 = vld [vmem:[#allocation18_spill] sm:$0xff] }
 0xdd7   :  { %10009 = vmatpush3.msra.mxu1 %v4589_v21  ;;  %8906 = vmatprep.subr.mxu0 %v5112_v45  ;;  %v5106_v21 = vld [vmem:[%s20553_s12 + $0x80] sm:$0xff]  ;;  %v17000_v61 = vrot.slane %v21831_v41, %v4683_v48  ;;  %v17005_v45 = vrot.slane %v21831_v41, %v4679_v26  ;;  %v4695_v48 = vsub.s32 5, %v16511_v11  ;;  %v4703_v26 = vsub.s32 7, %v16511_v11 }
 0xdd8   :  { %10010 = vmatprep.subr.mxu1 %v21819_v19  ;;  %8907 = vmatpush3.msra.mxu0 %v5096_v38 }
 0xdd9   :  { %10011 = vmatpush3.msra.mxu1 %v4580_v44  ;;  %8908 = vmatprep.subr.mxu0 %v5111_v4  ;;  %v5127_v44 = vld [vmem:[%s20553_s12 + $0x128] sm:$0xff] }
 0xdda   :  { %10012 = vmatprep.subr.mxu1 %v21819_v19  ;;  %8909 = vmatpush3.msra.mxu0 %v5095_v6 }
 0xddb   :  { %10013 = vmatpush3.msra.mxu1 %v4571_v49  ;;  %8910 = vmatprep.subr.mxu0 %v5110_v32  ;;  %v5090_v49 = vld [vmem:[%s20553_s12] sm:$0xff] }
 0xddc   :  { %10014 = vmatprep.subr.mxu1 %v21819_v19  ;;  %8911 = vmatpush3.msra.mxu0 %v5094_v55 }
 0xddd   :  { %10015 = vmatpush3.msra.mxu1 %v4562_v53  ;;  %8912 = vmatprep.subr.mxu0 %v5109_v0  ;;  %v5142_v53 = vld [vmem:[%s20553_s12 + $0x1a0] sm:$0xff] }
 0xdde   :  { %10016 = vmatprep.subr.mxu1 %v21819_v19  ;;  %8913 = vmatpush3.msra.mxu0 %v5093_v47 }
 0xddf   :  { %10017 = vmatpush3.msra.mxu1 %v4553_v12  ;;  %8914 = vmatprep.subr.mxu0 %v5108_v10  ;;  %v5126_v12 = vld [vmem:[%s20553_s12 + $0x120] sm:$0xff] }
 0xde0   :  { %10018 = vmatprep.subr.mxu1 %v21819_v19  ;;  %8915 = vmatpush3.msra.mxu0 %v5092_v33  ;;  %v5169_v33 = vld [vmem:[%s20553_s12 + $0x278] sm:$0xff] }
 0xde1   :  { %10019 = vmatpush3.msra.mxu1 %v4544_v24  ;;  %8916 = vmatprep.subr.mxu0 %v5107_v59  ;;  %v5185_v24 = vld [vmem:[%s20553_s12 + $0x2f8] sm:$0xff] }
 0xde2   :  { %10020 = vmatprep.subr.mxu1 %v21819_v19  ;;  %8917 = vmatpush3.msra.mxu0 %v5091_v36  ;;  %v5201_v59 = vld [vmem:[%s20553_s12 + $0x378] sm:$0xff]  ;;  %v5216_v36 = vld [vmem:[%s20553_s12 + $0x3f0] sm:$0xff] }
 0xde3   :  { %10021 = vmatpush3.msra.mxu1 %v4535_v1  ;;  %8918 = vmatprep.subr.mxu0 %v5106_v21  ;;  %v5141_v1 = vld [vmem:[%s20553_s12 + $0x198] sm:$0xff]  ;;  %v5168_v21 = vld [vmem:[%s20553_s12 + $0x270] sm:$0xff] }
 0xde4   :  { %10023 = vmatmul.mubr.f32.vlgmr.msra.gmra.mxu1 %v16527_v20  ;;  %8923 = vmatprep.subr.mxu1 %v5153_v28  ;;  %v5135_v20 = vld [vmem:[%s20553_s12 + $0x168] sm:$0xff]  ;;  %v5125_v28 = vld [vmem:[%s20553_s12 + $0x118] sm:$0xff] }
 0xde5   :  { %8924 = vmatpush3.msra.mxu1 %v5137_v31  ;;  %8919 = vmatpush3.msra.mxu0 %v5090_v49  ;;  %v5140_v31 = vld [vmem:[%s20553_s12 + $0x190] sm:$0xff]  ;;  %v5183_v49 = vld [vmem:[%s20553_s12 + $0x2e8] sm:$0xff] }
 0xde6   :  { %8925 = vmatprep.subr.mxu1 %v5152_v17  ;;  %8958 = vmatprep.subr.mxu0 %v5185_v24  ;;  %v5124_v17 = vld [vmem:[%s20553_s12 + $0x110] sm:$0xff]  ;;  %v17047_v24 = vld [vmem:[%s20553_s12 + $0x368] sm:$0xff] }
 0xde7   :  { %8926 = vmatpush3.msra.mxu1 %v5136_v62  ;;  %v5139_v62 = vld [vmem:[%s20553_s12 + $0x188] sm:$0xff] }
 0xde8   :  { %8927 = vmatprep.subr.mxu1 %v5151_v54  ;;  %v5138_v54 = vld [vmem:[%s20553_s12 + $0x180] sm:$0xff] }
 0xde9   :  { %8928 = vmatpush3.msra.mxu1 %v5135_v20  ;;  %v5217_v20 = vld [vmem:[%s20553_s12 + $0x3f8] sm:$0xff] }
 0xdea   :  { %8929 = vmatprep.subr.mxu1 %v5150_v43  ;;  %v16988_v43 = vpop.f32.mrf.mxu1 }
 0xdeb   :  { %8930 = vmatpush3.msra.mxu1 %v5134_v57 }
 0xdec   :  { %8931 = vmatprep.subr.mxu1 %v5149_v23  ;;  %v16991_v57 = vpop.f32.mrf.mxu1  ;;  %v4687_v23 = vsub.s32 3, %v16511_v11 }
 0xded   :  { %8932 = vmatpush3.msra.mxu1 %v5133_v37  ;;  %v16997_v37 = vrot.slane %v21831_v41, %v16516_v25 }
 0xdee   :  { %8933 = vmatprep.subr.mxu1 %v5148_v63  ;;  %v17002_v63 = vpop.f32.mrf.mxu1 }
 0xdef   :  { %8934 = vmatpush3.msra.mxu1 %v5132_v51  ;;  %21832 = vst [vmem:[#allocation18_spill] sm:$0xff] %v17002_v63  ;;  %v17008_v51 = vrot.slane %v21831_v41, %v4687_v23  ;;  %v17095_v23 = vld [vmem:[%s20553_s12 + $0x358] sm:$0xff] }
 0xdf0   :  { %8935 = vmatprep.subr.mxu1 %v5147_v50 }
 0xdf1   :  { %8936 = vmatpush3.msra.mxu1 %v5131_v52 }
 0xdf2   :  { %8937 = vmatprep.subr.mxu1 %v5146_v7 }
 0xdf3   :  { %8938 = vmatpush3.msra.mxu1 %v5130_v60 }
 0xdf4   :  { %8939 = vmatprep.subr.mxu1 %v5145_v46 }
 0xdf5   :  { %8940 = vmatpush3.msra.mxu1 %v5129_v3 }
 0xdf6   :  { %8941 = vmatprep.subr.mxu1 %v5144_v42 }
 0xdf7   :  { %8942 = vmatpush3.msra.mxu1 %v5128_v22 }
 0xdf8   :  { %8943 = vmatprep.subr.mxu1 %v5143_v58  ;;  %v5184_v58 = vld [vmem:[%s20553_s12 + $0x2f0] sm:$0xff] }
 0xdf9   :  { %8944 = vmatpush3.msra.mxu1 %v5127_v44  ;;  %v5200_v44 = vld [vmem:[%s20553_s12 + $0x370] sm:$0xff] }
 0xdfa   :  { %8945 = vmatprep.subr.mxu1 %v5142_v53  ;;  %v5215_v53 = vld [vmem:[%s20553_s12 + $0x3e8] sm:$0xff] }
 0xdfb   :  { %8946 = vmatpush3.msra.mxu1 %v5126_v12  ;;  %v5167_v12 = vld [vmem:[%s20553_s12 + $0x268] sm:$0xff] }
 0xdfc   :  { %8947 = vmatprep.subr.mxu1 %v5141_v1  ;;  %v17052_v1 = vld [vmem:[%s20553_s12 + $0x2e0] sm:$0xff] }
 0xdfd   :  { %8948 = vmatpush3.msra.mxu1 %v5125_v28  ;;  %v17057_v28 = vld [vmem:[%s20553_s12 + $0x3e0] sm:$0xff] }
 0xdfe   :  { %8949 = vmatprep.subr.mxu1 %v5140_v31  ;;  %v17062_v31 = vld [vmem:[%s20553_s12 + $0x260] sm:$0xff] }
 0xdff   :  { %8950 = vmatpush3.msra.mxu1 %v5124_v17  ;;  %v4691_v17 = vsub.s32 4, %v16511_v11 }
 0xe00   :  { %8951 = vmatprep.subr.mxu1 %v5139_v62  ;;  %v4699_v62 = vsub.s32 6, %v16511_v11 }
 0xe01   :  { %8952 = vmatpush3.msra.mxu1 %v5123_v40  ;;  %v17069_v40 = vld [vmem:[%s20553_s12 + $0x360] sm:$0xff]  ;;  %v17105_v11 = vrot.slane %v21831_v41, %v4691_v17  ;;  %v17207_v17 = vld [vmem:[%s20553_s12 + $0x338] sm:$0xff] }
 0xe02   :  { %8953 = vmatprep.subr.mxu1 %v5138_v54  ;;  %v17074_v54 = vld [vmem:[%s20553_s12 + $0x2d8] sm:$0xff]  ;;  %21834 = vst [vmem:[#allocation272_spill] sm:$0xff] %v17207_v17 }
 0xe03   :  { %8954 = vmatpush3.msra.mxu1 %v5122_v2  ;;  %v17081_v2 = vld [vmem:[%s20553_s12 + $0x3d8] sm:$0xff] }
 0xe04   :  { %8993 = vmatprep.subr.mxu1 %v5217_v20  ;;  %v17086_v20 = vld [vmem:[%s20553_s12 + $0x258] sm:$0xff] }
 0xe62   :  { %v4784_v38 = vpop.f32.mrf.mxu1  ;;  %v4855_v50 = vpop.f32.mrf.mxu0 }
 0xe63   :  { %v4785_v4 = vadd.f32 %v4784_v38, %v16997_v37  ;;  %v4856_v52 = vadd.f32 %v4855_v50, %v17000_v61  ;;  %v17100_v38 = vld [vmem:[%s20553_s12 + $0x2d0] sm:$0xff]  ;;  %v17108_v50 = vrot.slane %v21831_v41, %v4699_v62 }
 0xe64   :  { %v4786_v6 = vpop.f32.mrf.mxu1  ;;  %v4857_v7 = vpop.f32.mrf.mxu0  ;;  %v17212_v62 = vld [vmem:[%s20553_s12 + $0x2b0] sm:$0xff] }
 0xe65   :  { %10966 = vtanh.f32 %v4785_v4  ;;  %v4787_v32 = vadd.f32 %v4786_v6, %v17005_v45  ;;  %v4858_v60 = vadd.f32 %v4857_v7, %v17008_v51  ;;  %v17113_v4 = vld [vmem:[%s20553_s12 + $0x3d0] sm:$0xff]  ;;  %v17130_v7 = vld [vmem:[%s20553_s12 + $0x2c8] sm:$0xff]  ;;  %21835 = vst [vmem:[#allocation273_spill] sm:$0xff] %v17212_v62 }
 0xe66   :  { %10968 = vtanh.f32 %v4856_v52  ;;  %v17118_v52 = vld [vmem:[%s20553_s12 + $0x250] sm:$0xff] }
 0xe67   :  { %10970 = vtanh.f32 %v4787_v32  ;;  %v17125_v6 = vld [vmem:[%s20553_s12 + $0x350] sm:$0xff]  ;;  %v17135_v32 = vrot.slane %v21831_v41, %v4695_v48 }
 0xe68   :  { %10972 = vtanh.f32 %v4858_v60  ;;  %v17138_v60 = vrot.slane %v21831_v41, %v4703_v26  ;;  %v17155_v41 = vld [vmem:[%s20553_s12 + $0x348] sm:$0xff]  ;;  %v17219_v48 = vld [vmem:[%s20553_s12 + $0x3b0] sm:$0xff] }
 0xe69   :  { %21836 = vst [vmem:[#allocation274_spill] sm:$0xff] %v17219_v48  ;;  %v17224_v26 = vld [vmem:[%s20553_s12 + $0x230] sm:$0xff] }
 0xe6a   :  { %21837 = vst [vmem:[#allocation275_spill] sm:$0xff] %v17224_v26 }
 0xe72   :  { %v10967_v55 = vpop.eup %10966 }
 0xe73   :  { %v10969_v46 = vpop.eup %10968  ;;  %v5081_v42 = vmul.f32 0.0, %v10967_v55  ;;  %v17143_v55 = vld [vmem:[%s20553_s12 + $0x3c8] sm:$0xff] }
 0xe74   :  { %v10971_v0 = vpop.eup %10970  ;;  %v5083_v22 = vmul.f32 %v10969_v46, %v16513_v13  ;;  %v17148_v46 = vld [vmem:[%s20553_s12 + $0x248] sm:$0xff] }
 0xe75   :  { %v10973_v3 = vpop.eup %10972  ;;  %v5082_v47 = vmul.f32 %v10971_v0, %v16509_v8 }
 0xe76   :  { %v5084_v10 = vmul.f32 %v10973_v3, %v16986_v9 }
 0xe77   :  { %5298 = vmatprep.mubr.f32.mxu0 %v5082_v47  ;;  %v17160_v47 = vld [vmem:[%s20553_s12 + $0x2c0] sm:$0xff] }
 0xe78   :  { %5368 = vmatprep.mubr.f32.mxu1 %v5084_v10  ;;  %5299 = vmatmul.mubr.f32.vlgmr.msra.gmra.mxu0 %v5081_v42 }
 0xe79   :  { %5369 = vmatmul.mubr.f32.vlgmr.msra.gmra.mxu1 %v5083_v22  ;;  %8959 = vmatpush3.msra.mxu0 %v5169_v33  ;;  %v17169_v33 = vld [vmem:[%s20553_s12 + $0x3c0] sm:$0xff] }
 0xe7a   :  { %8994 = vmatpush3.msra.mxu1 %v5201_v59  ;;  %8960 = vmatprep.subr.mxu0 %v5184_v58  ;;  %v17174_v22 = vld [vmem:[%s20553_s12 + $0x240] sm:$0xff] }
 0xe7b   :  { %8995 = vmatprep.subr.mxu1 %v5216_v36  ;;  %8961 = vmatpush3.msra.mxu0 %v5168_v21  ;;  %v17181_v36 = vld [vmem:[%s20553_s12 + $0x340] sm:$0xff]  ;;  %v17186_v21 = vld [vmem:[%s20553_s12 + $0x2b8] sm:$0xff] }
 0xe7c   :  { %8996 = vmatpush3.msra.mxu1 %v5200_v44  ;;  %8962 = vmatprep.subr.mxu0 %v5183_v49 }
 0xe7d   :  { %8997 = vmatprep.subr.mxu1 %v5215_v53  ;;  %8963 = vmatpush3.msra.mxu0 %v5167_v12  ;;  %v17195_v53 = vld [vmem:[%s20553_s12 + $0x3b8] sm:$0xff] }
 0xe7e   :  { %8998 = vmatpush3.msra.mxu1 %v17047_v24  ;;  %8964 = vmatprep.subr.mxu0 %v17052_v1  ;;  %v17200_v12 = vld [vmem:[%s20553_s12 + $0x238] sm:$0xff] }
 0xe7f   :  { %8999 = vmatprep.subr.mxu1 %v17057_v28  ;;  %8965 = vmatpush3.msra.mxu0 %v17062_v31  ;;  %21833 = vst [vmem:[#allocation271_spill] sm:$0xff] %v17200_v12 }
 0xe80   :  { %9000 = vmatpush3.msra.mxu1 %v17069_v40  ;;  %8966 = vmatprep.subr.mxu0 %v17074_v54 }
 0xe81   :  { %9001 = vmatprep.subr.mxu1 %v17081_v2  ;;  %8967 = vmatpush3.msra.mxu0 %v17086_v20 }
 0xe82   :  { %9002 = vmatpush3.msra.mxu1 %v17095_v23  ;;  %8968 = vmatprep.subr.mxu0 %v17100_v38 }
 0xe83   :  { %v4926_v0 = vpop.f32.mrf.mxu1  ;;  %v4997_v3 = vpop.f32.mrf.mxu0  ;;  %9003 = vmatprep.subr.mxu1 %v17113_v4  ;;  %8969 = vmatpush3.msra.mxu0 %v17118_v52 }
 0xe84   :  { %v4927_v42 = vadd.f32 %v4926_v0, %v17105_v11  ;;  %v4998_v10 = vadd.f32 %v4997_v3, %v17108_v50  ;;  %9004 = vmatpush3.msra.mxu1 %v17125_v6  ;;  %8970 = vmatprep.subr.mxu0 %v17130_v7  ;;  %v17231_v0 = vld [vmem:[%s20553_s12 + $0x330] sm:$0xff]  ;;  %v17236_v3 = vld [vmem:[%s20553_s12 + $0x2a8] sm:$0xff] }
 0xe85   :  { %v4928_v59 = vpop.f32.mrf.mxu1  ;;  %v4999_v58 = vpop.f32.mrf.mxu0  ;;  %9005 = vmatprep.subr.mxu1 %v17143_v55  ;;  %8971 = vmatpush3.msra.mxu0 %v17148_v46  ;;  %21838 = vst [vmem:[#allocation276_spill] sm:$0xff] %v17231_v0  ;;  %21839 = vst [vmem:[#allocation277_spill] sm:$0xff] %v17236_v3 }
 0xe86   :  { %10974 = vtanh.f32 %v4927_v42  ;;  %v4929_v44 = vadd.f32 %v4928_v59, %v17135_v32  ;;  %v5000_v49 = vadd.f32 %v4999_v58, %v17138_v60  ;;  %9006 = vmatpush3.msra.mxu1 %v17155_v41  ;;  %8972 = vmatprep.subr.mxu0 %v17160_v47  ;;  %v17243_v42 = vld [vmem:[%s20553_s12 + $0x3a8] sm:$0xff]  ;;  %v17260_v58 = vld [vmem:[%s20553_s12 + $0x2a0] sm:$0xff] }
 0xe87   :  { %10976 = vtanh.f32 %v4998_v10  ;;  %9007 = vmatprep.subr.mxu1 %v17169_v33  ;;  %8973 = vmatpush3.msra.mxu0 %v17174_v22  ;;  %21840 = vst [vmem:[#allocation278_spill] sm:$0xff] %v17243_v42  ;;  %v17248_v10 = vld [vmem:[%s20553_s12 + $0x228] sm:$0xff]  ;;  %21843 = vst [vmem:[#allocation281_spill] sm:$0xff] %v17260_v58 }
 0xe88   :  { %10978 = vtanh.f32 %v4929_v44  ;;  %9008 = vmatpush3.msra.mxu1 %v17181_v36  ;;  %8974 = vmatprep.subr.mxu0 %v17186_v21  ;;  %21841 = vst [vmem:[#allocation279_spill] sm:$0xff] %v17248_v10  ;;  %v17255_v59 = vld [vmem:[%s20553_s12 + $0x328] sm:$0xff]  ;;  %v17267_v44 = vld [vmem:[%s20553_s12 + $0x3a0] sm:$0xff] }
 0xe89   :  { %10980 = vtanh.f32 %v5000_v49  ;;  %9009 = vmatprep.subr.mxu1 %v17195_v53  ;;  %8975 = vmatpush3.msra.mxu0 %v17200_v12  ;;  %21842 = vst [vmem:[#allocation280_spill] sm:$0xff] %v17255_v59  ;;  %21844 = vst [vmem:[#allocation282_spill] sm:$0xff] %v17267_v44  ;;  %v17272_v49 = vld [vmem:[%s20553_s12 + $0x220] sm:$0xff] }
 0xe8a   :  { %9010 = vmatpush3.msra.mxu1 %v17207_v17  ;;  %8976 = vmatprep.subr.mxu0 %v17212_v62  ;;  %21845 = vst [vmem:[#allocation283_spill] sm:$0xff] %v17272_v49 }
 0xe8b   :  { %9011 = vmatprep.subr.mxu1 %v17219_v48  ;;  %8977 = vmatpush3.msra.mxu0 %v17224_v26 }
 0xe8c   :  { %9012 = vmatpush3.msra.mxu1 %v17231_v0  ;;  %8978 = vmatprep.subr.mxu0 %v17236_v3  ;;  %v17279_v0 = vld [vmem:[%s20553_s12 + $0x320] sm:$0xff]  ;;  %v17284_v3 = vld [vmem:[%s20553_s12 + $0x298] sm:$0xff] }
 0xe8d   :  { %9013 = vmatprep.subr.mxu1 %v17243_v42  ;;  %8979 = vmatpush3.msra.mxu0 %v17248_v10  ;;  %21846 = vst [vmem:[#allocation284_spill] sm:$0xff] %v17279_v0  ;;  %21847 = vst [vmem:[#allocation285_spill] sm:$0xff] %v17284_v3  ;;  %v17291_v42 = vld [vmem:[%s20553_s12 + $0x398] sm:$0xff] }
 0xe8e   :  { %9014 = vmatpush3.msra.mxu1 %v17255_v59  ;;  %8980 = vmatprep.subr.mxu0 %v17260_v58  ;;  %21848 = vst [vmem:[#allocation286_spill] sm:$0xff] %v17291_v42  ;;  %v17296_v10 = vld [vmem:[%s20553_s12 + $0x218] sm:$0xff]  ;;  %v17308_v58 = vld [vmem:[%s20553_s12 + $0x290] sm:$0xff] }
 0xe8f   :  { %21849 = vst [vmem:[#allocation287_spill] sm:$0xff] %v17296_v10  ;;  %9015 = vmatprep.subr.mxu1 %v17267_v44  ;;  %8981 = vmatpush3.msra.mxu0 %v17272_v49  ;;  %v17303_v59 = vld [vmem:[%s20553_s12 + $0x318] sm:$0xff]  ;;  %21851 = vst [vmem:[#allocation289_spill] sm:$0xff] %v17308_v58  ;;  %v17315_v44 = vld [vmem:[%s20553_s12 + $0x390] sm:$0xff] }
 0xe90   :  { %21850 = vst [vmem:[#allocation288_spill] sm:$0xff] %v17303_v59  ;;  %9016 = vmatpush3.msra.mxu1 %v17279_v0  ;;  %8982 = vmatprep.subr.mxu0 %v17284_v3  ;;  %21852 = vst [vmem:[#allocation290_spill] sm:$0xff] %v17315_v44  ;;  %v17320_v49 = vld [vmem:[%s20553_s12 + $0x210] sm:$0xff]  ;;  %v17332_v3 = vld [vmem:[%s20553_s12 + $0x288] sm:$0xff] }
 0xe91   :  { %21853 = vst [vmem:[#allocation291_spill] sm:$0xff] %v17320_v49  ;;  %9017 = vmatprep.subr.mxu1 %v17291_v42  ;;  %8983 = vmatpush3.msra.mxu0 %v17296_v10  ;;  %v17327_v0 = vld [vmem:[%s20553_s12 + $0x310] sm:$0xff]  ;;  %21855 = vst [vmem:[#allocation293_spill] sm:$0xff] %v17332_v3  ;;  %v17339_v42 = vld [vmem:[%s20553_s12 + $0x388] sm:$0xff] }
 0xe92   :  { %21854 = vst [vmem:[#allocation292_spill] sm:$0xff] %v17327_v0  ;;  %9018 = vmatpush3.msra.mxu1 %v17303_v59  ;;  %8984 = vmatprep.subr.mxu0 %v17308_v58  ;;  %21856 = vst [vmem:[#allocation294_spill] sm:$0xff] %v17339_v42  ;;  %v17344_v10 = vld [vmem:[%s20553_s12 + $0x208] sm:$0xff]  ;;  %v17356_v58 = vld [vmem:[%s20553_s12 + $0x280] sm:$0xff] }
 0xe93   :  { %21857 = vst [vmem:[#allocation295_spill] sm:$0xff] %v17344_v10  ;;  %v10975_v26 = vpop.eup %10974  ;;  %9019 = vmatprep.subr.mxu1 %v17315_v44  ;;  %8985 = vmatpush3.msra.mxu0 %v17320_v49  ;;  %v17351_v59 = vld [vmem:[%s20553_s12 + $0x308] sm:$0xff]  ;;  %v17363_v44 = vld [vmem:[%s20553_s12 + $0x380] sm:$0xff] }
 0xe94   :  { %21858 = vst [vmem:[#allocation296_spill] sm:$0xff] %v17351_v59  ;;  %v10977_v48 = vpop.eup %10976  ;;  %9020 = vmatpush3.msra.mxu1 %v17327_v0  ;;  %8986 = vmatprep.subr.mxu0 %v17332_v3  ;;  %v17368_v49 = vld [vmem:[%s20553_s12 + $0x200] sm:$0xff] }
 0xe95   :  { %v10979_v62 = vpop.eup %10978  ;;  %9021 = vmatprep.subr.mxu1 %v17339_v42  ;;  %8987 = vmatpush3.msra.mxu0 %v17344_v10  ;;  %v17375_v0 = vld [vmem:[%s20553_s12 + $0x300] sm:$0xff]  ;;  %v5085_v10 = vmul.f32 %v10975_v26, %v16988_v43  ;;  %v5087_v12 = vmul.f32 %v10977_v48, %v16524_v16  ;;  %v17422_v48 = vld [vmem:[%s20553_s12 + $0x458] sm:$0xff] }
 0xe96   :  { %v10981_v3 = vpop.eup %10980  ;;  %9022 = vmatpush3.msra.mxu1 %v17351_v59  ;;  %8988 = vmatprep.subr.mxu0 %v17356_v58  ;;  %v5086_v17 = vmul.f32 %v10979_v62, %v16518_v14  ;;  %v17389_v59 = vld [vmem:[%s20553_s12 + $0x478] sm:$0xff]  ;;  %v17395_v62 = vld [vmem:[%s20553_s12 + $0x470] sm:$0xff]  ;;  %21863 = vst [vmem:[#allocation301_spill] sm:$0xff] %v17422_v48 }
 0xe97   :  { %9023 = vmatprep.subr.mxu1 %v17363_v44  ;;  %8989 = vmatpush3.msra.mxu0 %v17368_v49  ;;  %v5088_v42 = vmul.f32 %v10981_v3, %v16991_v57  ;;  %21859 = vst [vmem:[#allocation297_spill] sm:$0xff] %v17389_v59  ;;  %21860 = vst [vmem:[#allocation298_spill] sm:$0xff] %v17395_v62  ;;  %v21864_v26 = vld [vmem:[#allocation19_spill] sm:$0xff] }
 0xe98   :  { %5438 = vmatprep.mubr.f32.mxu0 %v5086_v17  ;;  %9024 = vmatpush3.msra.mxu1 %v17375_v0  ;;  %v17404_v17 = vld [vmem:[%s20553_s12 + $0x468] sm:$0xff]  ;;  %v17428_v3 = vrot.slane %v21864_v26, %v16516_v25 }
 0xe99   :  { %5508 = vmatprep.mubr.f32.mxu1 %v5088_v42  ;;  %5439 = vmatmul.mubr.f32.vlgmr.msra.gmra.mxu0 %v5085_v10  ;;  %21861 = vst [vmem:[#allocation299_spill] sm:$0xff] %v17404_v17  ;;  %v17435_v42 = vld [vmem:[%s20553_s12 + $0x450] sm:$0xff]  ;;  %v17444_v25 = vld [vmem:[%s20553_s12 + $0x448] sm:$0xff] }
 0xe9a   :  { %5509 = vmatmul.mubr.f32.vlgmr.msra.gmra.mxu1 %v5087_v12  ;;  %10025 = vmatprep.subr.mxu0 %v21819_v19  ;;  %v17413_v12 = vld [vmem:[%s20553_s12 + $0x460] sm:$0xff]  ;;  %21865 = vst [vmem:[#allocation19_spill] sm:$0xff] %v17428_v3  ;;  %21866 = vst [vmem:[#allocation302_spill] sm:$0xff] %v17435_v42 }
 0xe9b   :  { %10026 = vmatpush3.msra.mxu0 %v17389_v59  ;;  %10057 = vmatprep.mubr.msk.f32.mxu0 %vm11608_vm2, %v21819_v19  ;;  %21862 = vst [vmem:[#allocation300_spill] sm:$0xff] %v17413_v12  ;;  %21867 = vst [vmem:[#allocation303_spill] sm:$0xff] %v17444_v25 }
 0xe9c   :  { %10027 = vmatprep.subr.mxu0 %v21819_v19  ;;  %10060 = vmatprep.subr.mxu1 %v21819_v19 }
 0xe9d   :  { %10028 = vmatpush3.msra.mxu0 %v17395_v62  ;;  %10061 = vmatpush3.msra.mxu1 %v21820_v34 }
 0xe9e   :  { %10029 = vmatprep.subr.mxu0 %v21819_v19  ;;  %10062 = vmatprep.subr.mxu1 %v21819_v19 }
 0xe9f   :  { %10030 = vmatpush3.msra.mxu0 %v17404_v17  ;;  %10063 = vmatpush3.msra.mxu1 %v21821_v56 }
 0xea0   :  { %10031 = vmatprep.subr.mxu0 %v21819_v19  ;;  %10064 = vmatprep.subr.mxu1 %v21819_v19 }
 0xea1   :  { %10032 = vmatpush3.msra.mxu0 %v17413_v12  ;;  %10065 = vmatpush3.msra.mxu1 %v21822_v27 }
 0xea2   :  { %10033 = vmatprep.subr.mxu0 %v21819_v19  ;;  %10066 = vmatprep.subr.mxu1 %v21819_v19 }
 0xea3   :  { %10034 = vmatpush3.msra.mxu0 %v17422_v48  ;;  %10067 = vmatpush3.msra.mxu1 %v21823_v5  ;;  %v17454_v5 = vld [vmem:[%s20553_s12 + $0x440] sm:$0xff] }
 0xea4   :  { %v5068_v10 = vpop.f32.mrf.mxu1  ;;  %10035 = vmatprep.subr.mxu0 %v21819_v19  ;;  %10068 = vmatprep.subr.mxu1 %v21819_v19  ;;  %21868 = vst [vmem:[#allocation304_spill] sm:$0xff] %v17454_v5 }
 0xea5   :  { %v5069_v26 = vadd.f32 %v5068_v10, %v17428_v3  ;;  %10036 = vmatpush3.msra.mxu0 %v17435_v42  ;;  %10069 = vmatpush3.msra.mxu1 %v21824_v39  ;;  %v17472_v10 = vld [vmem:[%s20553_s12 + $0x430] sm:$0xff] }
 0xea6   :  { %v10024_v27 = vpop.f32.mrf.mxu1  ;;  %10037 = vmatprep.subr.mxu0 %v21819_v19  ;;  %10070 = vmatprep.subr.mxu1 %v21819_v19  ;;  %21870 = vst [vmem:[#allocation306_spill] sm:$0xff] %v17472_v10 }
 0xea7   :  { %10038 = vmatpush3.msra.mxu0 %v17444_v25  ;;  %10071 = vmatpush3.msra.mxu1 %v21825_v18  ;;  %10982 = vtanh.f32 %v5069_v26  ;;  %v17463_v27 = vld [vmem:[%s20553_s12 + $0x438] sm:$0xff]  ;;  %v17481_v26 = vld [vmem:[%s20553_s12 + $0x428] sm:$0xff] }
 0xea8   :  { %10039 = vmatprep.subr.mxu0 %v21819_v19  ;;  %21869 = vst [vmem:[#allocation305_spill] sm:$0xff] %v17463_v27  ;;  %10072 = vmatprep.subr.mxu1 %v21819_v19  ;;  %21871 = vst [vmem:[#allocation307_spill] sm:$0xff] %v17481_v26 }
 0xea9   :  { %10040 = vmatpush3.msra.mxu0 %v17454_v5  ;;  %10073 = vmatpush3.msra.mxu1 %v21826_v29  ;;  %v17489_v29 = vld [vmem:[%s20548_s7 + $0x450] sm:$0xff]  ;;  %v17539_v5 = vld [vmem:[%s20548_s7 + $0x438] sm:$0xff] }
 0xeaa   :  { %10041 = vmatprep.subr.mxu0 %v21819_v19  ;;  %10074 = vmatprep.subr.mxu1 %v21819_v19  ;;  %21872 = vst [vmem:[#allocation308_spill] sm:$0xff] %v17489_v29  ;;  %21879 = vst [vmem:[#allocation315_spill] sm:$0xff] %v17539_v5 }
 0xeab   :  { %10042 = vmatpush3.msra.mxu0 %v17463_v27  ;;  %10075 = vmatpush3.msra.mxu1 %v21827_v35  ;;  %v17496_v35 = vld [vmem:[%s20553_s12 + $0x420] sm:$0xff] }
 0xeac   :  { %10043 = vmatprep.subr.mxu0 %v21819_v19  ;;  %10076 = vmatprep.mubr.msk.f32.mxu1 %vm11608_vm2, %v21819_v19  ;;  %21873 = vst [vmem:[#allocation309_spill] sm:$0xff] %v17496_v35 }
 0xead   :  { %10044 = vmatpush3.msra.mxu0 %v17472_v10  ;;  %5731 = vmatprep.subr.mxu1 %v17489_v29  ;;  %v17503_v10 = vld [vmem:[%s20553_s12 + $0x418] sm:$0xff]  ;;  %v17510_v29 = vld [vmem:[%s20553_s12 + $0x410] sm:$0xff] }
 0xeae   :  { %10045 = vmatprep.subr.mxu0 %v21819_v19  ;;  %21874 = vst [vmem:[#allocation310_spill] sm:$0xff] %v17503_v10  ;;  %21875 = vst [vmem:[#allocation311_spill] sm:$0xff] %v17510_v29 }
 0xeaf   :  { %10046 = vmatpush3.msra.mxu0 %v17481_v26  ;;  %v17517_v26 = vld [vmem:[%s20553_s12 + $0x408] sm:$0xff] }
 0xeb0   :  { %10047 = vmatprep.subr.mxu0 %v21819_v19  ;;  %21876 = vst [vmem:[#allocation312_spill] sm:$0xff] %v17517_v26 }
 0xeb1   :  { %10048 = vmatpush3.msra.mxu0 %v17496_v35  ;;  %v17524_v35 = vld [vmem:[%s20553_s12 + $0x400] sm:$0xff] }
 0xeb2   :  { %10049 = vmatprep.subr.mxu0 %v21819_v19  ;;  %21877 = vst [vmem:[#allocation313_spill] sm:$0xff] %v17524_v35 }
 0xeb3   :  { %10050 = vmatpush3.msra.mxu0 %v17503_v10 }
 0xeb4   :  { %10051 = vmatprep.subr.mxu0 %v21819_v19  ;;  %v10983_v27 = vpop.eup %10982 }
 0xeb5   :  { %10052 = vmatpush3.msra.mxu0 %v17510_v29  ;;  %v5089_v10 = vmul.f32 %v10983_v27, %v17002_v63  ;;  %v17533_v29 = vld [vmem:[%s20548_s7 + $0x440] sm:$0xff]  ;;  %v17546_v27 = vld [vmem:[%s20548_s7 + $0x3f8] sm:$0xff] }
 0xeb6   :  { %10053 = vmatprep.subr.mxu0 %v21819_v19  ;;  %21878 = vst [vmem:[#allocation314_spill] sm:$0xff] %v17533_v29  ;;  %21880 = vst [vmem:[#allocation316_spill] sm:$0xff] %v17546_v27 }
 0xeb7   :  { %10054 = vmatpush3.msra.mxu0 %v17517_v26 }
 0xeb8   :  { %10055 = vmatprep.subr.mxu0 %v21819_v19 }
 0xeb9   :  { %10056 = vmatpush3.msra.mxu0 %v17524_v35 }
 0xeba   :  { %10058 = vmatmul.mubr.f32.vlgmr.msra.gmra.mxu0 %v5089_v10  ;;  %5660 = vmatprep.subr.mxu0 %v17533_v29  ;;  %v17552_v10 = vld [vmem:[%s20548_s7 + $0x3f0] sm:$0xff]  ;;  %v17564_v29 = vld [vmem:[%s20548_s7 + $0x3a8] sm:$0xff] }
 0xebb   :  { %5661 = vmatpush1.msra.mxu0 %v17539_v5  ;;  %5724 = vmatprep.mubr.f32.mxu0 %v21819_v19  ;;  %21881 = vst [vmem:[#allocation317_spill] sm:$0xff] %v17552_v10  ;;  %v17558_v5 = vld [vmem:[%s20548_s7 + $0x3b0] sm:$0xff]  ;;  %21883 = vst [vmem:[#allocation319_spill] sm:$0xff] %v17564_v29 }
 0xebc   :  { %5662 = vmatprep.subr.mxu0 %v17546_v27  ;;  %21882 = vst [vmem:[#allocation318_spill] sm:$0xff] %v17558_v5  ;;  %v17570_v27 = vld [vmem:[%s20548_s7 + $0x368] sm:$0xff] }
 0xebd   :  { %5663 = vmatpush1.msra.mxu0 %v17552_v10  ;;  %21884 = vst [vmem:[#allocation320_spill] sm:$0xff] %v17570_v27  ;;  %v17576_v10 = vld [vmem:[%s20548_s7 + $0x360] sm:$0xff] }
 0xebe   :  { %5664 = vmatprep.subr.mxu0 %v17558_v5  ;;  %21885 = vst [vmem:[#allocation321_spill] sm:$0xff] %v17576_v10  ;;  %v17582_v5 = vld [vmem:[%s20548_s7 + $0x320] sm:$0xff] }
 0xebf   :  { %5665 = vmatpush1.msra.mxu0 %v17564_v29  ;;  %21886 = vst [vmem:[#allocation322_spill] sm:$0xff] %v17582_v5  ;;  %v17588_v29 = vld [vmem:[%s20548_s7 + $0x318] sm:$0xff] }
 0xec0   :  { %5666 = vmatprep.subr.mxu0 %v17570_v27  ;;  %21887 = vst [vmem:[#allocation323_spill] sm:$0xff] %v17588_v29  ;;  %v17594_v27 = vld [vmem:[%s20548_s7 + $0x2d8] sm:$0xff] }
 0xec1   :  { %5667 = vmatpush1.msra.mxu0 %v17576_v10  ;;  %21888 = vst [vmem:[#allocation324_spill] sm:$0xff] %v17594_v27  ;;  %v17600_v10 = vld [vmem:[%s20548_s7 + $0x2d0] sm:$0xff] }
 0xec2   :  { %5668 = vmatprep.subr.mxu0 %v17582_v5  ;;  %21889 = vst [vmem:[#allocation325_spill] sm:$0xff] %v17600_v10  ;;  %v17606_v5 = vld [vmem:[%s20548_s7 + $0x290] sm:$0xff] }
 0xec3   :  { %5669 = vmatpush1.msra.mxu0 %v17588_v29  ;;  %21890 = vst [vmem:[#allocation326_spill] sm:$0xff] %v17606_v5  ;;  %v17612_v29 = vld [vmem:[%s20548_s7 + $0x288] sm:$0xff] }
 0xec4   :  { %5670 = vmatprep.subr.mxu0 %v17594_v27  ;;  %21891 = vst [vmem:[#allocation327_spill] sm:$0xff] %v17612_v29  ;;  %v17618_v27 = vld [vmem:[%s20548_s7 + $0x248] sm:$0xff] }
 0xec5   :  { %5671 = vmatpush1.msra.mxu0 %v17600_v10  ;;  %21892 = vst [vmem:[#allocation328_spill] sm:$0xff] %v17618_v27  ;;  %v17624_v10 = vld [vmem:[%s20548_s7 + $0x240] sm:$0xff] }
 0xec6   :  { %5672 = vmatprep.subr.mxu0 %v17606_v5  ;;  %21893 = vst [vmem:[#allocation329_spill] sm:$0xff] %v17624_v10  ;;  %v17630_v5 = vld [vmem:[%s20548_s7 + $0x200] sm:$0xff] }
 0xec7   :  { %5673 = vmatpush1.msra.mxu0 %v17612_v29  ;;  %21894 = vst [vmem:[#allocation330_spill] sm:$0xff] %v17630_v5  ;;  %v17636_v29 = vld [vmem:[%s20548_s7 + $0x1f8] sm:$0xff] }
 0xec8   :  { %5674 = vmatprep.subr.mxu0 %v17618_v27  ;;  %21895 = vst [vmem:[#allocation331_spill] sm:$0xff] %v17636_v29  ;;  %v17642_v27 = vld [vmem:[%s20548_s7 + $0x1b8] sm:$0xff] }
 0xec9   :  { %5675 = vmatpush1.msra.mxu0 %v17624_v10  ;;  %21896 = vst [vmem:[#allocation332_spill] sm:$0xff] %v17642_v27  ;;  %v17648_v10 = vld [vmem:[%s20548_s7 + $0x1b0] sm:$0xff] }
 0xeca   :  { %5676 = vmatprep.subr.mxu0 %v17630_v5  ;;  %21897 = vst [vmem:[#allocation333_spill] sm:$0xff] %v17648_v10  ;;  %v17654_v5 = vld [vmem:[%s20548_s7 + $0x170] sm:$0xff] }
 0xecb   :  { %5677 = vmatpush1.msra.mxu0 %v17636_v29  ;;  %21898 = vst [vmem:[#allocation334_spill] sm:$0xff] %v17654_v5  ;;  %v17660_v29 = vld [vmem:[%s20548_s7 + $0x168] sm:$0xff] }
 0xecc   :  { %5678 = vmatprep.subr.mxu0 %v17642_v27  ;;  %21899 = vst [vmem:[#allocation335_spill] sm:$0xff] %v17660_v29  ;;  %v17666_v27 = vld [vmem:[%s20548_s7 + $0x128] sm:$0xff] }
 0xecd   :  { %5679 = vmatpush1.msra.mxu0 %v17648_v10  ;;  %21900 = vst [vmem:[#allocation336_spill] sm:$0xff] %v17666_v27  ;;  %v17672_v10 = vld [vmem:[%s20548_s7 + $0x120] sm:$0xff] }
 0xece   :  { %5680 = vmatprep.subr.mxu0 %v17654_v5  ;;  %21901 = vst [vmem:[#allocation337_spill] sm:$0xff] %v17672_v10  ;;  %v17678_v5 = vld [vmem:[%s20548_s7 + $0xe0] sm:$0xff] }
 0xecf   :  { %5681 = vmatpush1.msra.mxu0 %v17660_v29  ;;  %21902 = vst [vmem:[#allocation338_spill] sm:$0xff] %v17678_v5  ;;  %v17684_v29 = vld [vmem:[%s20548_s7 + $0xd8] sm:$0xff] }
 0xed0   :  { %5682 = vmatprep.subr.mxu0 %v17666_v27  ;;  %21903 = vst [vmem:[#allocation339_spill] sm:$0xff] %v17684_v29  ;;  %v17690_v27 = vld [vmem:[%s20548_s7 + $0x98] sm:$0xff] }
 0xed1   :  { %5683 = vmatpush1.msra.mxu0 %v17672_v10  ;;  %21904 = vst [vmem:[#allocation340_spill] sm:$0xff] %v17690_v27  ;;  %v17696_v10 = vld [vmem:[%s20548_s7 + $0x90] sm:$0xff] }
 0xed2   :  { %5684 = vmatprep.subr.mxu0 %v17678_v5  ;;  %21905 = vst [vmem:[#allocation341_spill] sm:$0xff] %v17696_v10  ;;  %v17702_v5 = vld [vmem:[%s20548_s7 + $0x50] sm:$0xff] }
 0xed3   :  { %5685 = vmatpush1.msra.mxu0 %v17684_v29  ;;  %21906 = vst [vmem:[#allocation342_spill] sm:$0xff] %v17702_v5  ;;  %v17708_v29 = vld [vmem:[%s20548_s7 + $0x48] sm:$0xff] }
 0xed4   :  { %5686 = vmatprep.subr.mxu0 %v17690_v27  ;;  %21907 = vst [vmem:[#allocation343_spill] sm:$0xff] %v17708_v29  ;;  %v17714_v27 = vld [vmem:[%s20548_s7 + $0x8] sm:$0xff] }
 0xed5   :  { %5687 = vmatpush1.msra.mxu0 %v17696_v10  ;;  %21908 = vst [vmem:[#allocation344_spill] sm:$0xff] %v17714_v27  ;;  %v17720_v10 = vld [vmem:[%s20548_s7] sm:$0xff] }
 0xed6   :  { %5688 = vmatprep.subr.mxu0 %v17702_v5  ;;  %21909 = vst [vmem:[#allocation345_spill] sm:$0xff] %v17720_v10  ;;  %v17726_v5 = vld [vmem:[%s20548_s7 + $0x460] sm:$0xff] }
 0xed7   :  { %5689 = vmatpush1.msra.mxu0 %v17708_v29  ;;  %21910 = vst [vmem:[#allocation346_spill] sm:$0xff] %v17726_v5 }
 0xed8   :  { %5690 = vmatprep.subr.mxu0 %v17714_v27 }
 0xed9   :  { %5691 = vmatpush1.msra.mxu0 %v17720_v10 }
 0xeda   :  { %5802 = vmatprep.subr.mxu0 %v17726_v5 }
 0xf38   :  { %v8920_v29 = vpop.f32.mrf.mxu0 }
 0xf39   :  { %v8955_v35 = vpop.f32.mrf.mxu1 }
 0xf3a   :  { %v8921_v63 = vpop.f32.mrf.mxu0 }
 0xf3b   :  { %v8956_v18 = vpop.f32.mrf.mxu1  ;;  %v8922_v25 = vadd.f32 %v8921_v63, %v8920_v29  ;;  %v17768_v29 = vld [vmem:[%s20548_s7 + $0x378] sm:$0xff]  ;;  %v17786_v63 = vld [vmem:[%s20548_s7 + $0x328] sm:$0xff] }
 0xf3c   :  { %v8957_v39 = vadd.f32 %v8956_v18, %v8955_v35  ;;  %v17737_v18 = vld [vmem:[%s20548_s7 + $0x448] sm:$0xff]  ;;  %v17774_v35 = vld [vmem:[%s20548_s7 + $0x370] sm:$0xff]  ;;  %21913 = vst [vmem:[#allocation349_spill] sm:$0xff] %v17786_v63 }
 0xf3e   :  { %v5371_v48 = vadd.f32 %v8957_v39, %v8922_v25  ;;  %v17762_v39 = vld [vmem:[%s20548_s7 + $0x3b8] sm:$0xff]  ;;  %v17828_v25 = vld [vmem:[%s20548_s7 + $0x210] sm:$0xff] }
 0xf3f   :  { %21920 = vst [vmem:[#allocation356_spill] sm:$0xff] %v17828_v25 }
 0xf59   :  { %v8990_v26 = vpop.f32.mrf.mxu0 }
 0xf5a   :  { %v9025_v42 = vpop.f32.mrf.mxu1 }
 0xf5b   :  { %v8991_v27 = vpop.f32.mrf.mxu0 }
 0xf5c   :  { %v8992_v3 = vadd.f32 %v8991_v27, %v8990_v26  ;;  %v9026_v12 = vpop.f32.mrf.mxu1  ;;  %v17834_v26 = vld [vmem:[%s20548_s7 + $0x208] sm:$0xff] }
 0xf5d   :  { %v9027_v56 = vadd.f32 %v9026_v12, %v9025_v42  ;;  %v17804_v12 = vld [vmem:[%s20548_s7 + $0x2a0] sm:$0xff]  ;;  %v17822_v42 = vld [vmem:[%s20548_s7 + $0x250] sm:$0xff]  ;;  %21921 = vst [vmem:[#allocation357_spill] sm:$0xff] %v17834_v26  ;;  %v17840_v27 = vld [vmem:[%s20548_s7 + $0x1c8] sm:$0xff] }
 0xf5e   :  { %v5441_v10 = vadd.f32 %v8992_v3, %v5371_v48  ;;  %21916 = vst [vmem:[#allocation352_spill] sm:$0xff] %v17804_v12  ;;  %v17810_v48 = vld [vmem:[%s20548_s7 + $0x298] sm:$0xff]  ;;  %21919 = vst [vmem:[#allocation355_spill] sm:$0xff] %v17822_v42 }
 0xf5f   :  { %21917 = vst [vmem:[#allocation353_spill] sm:$0xff] %v17810_v48  ;;  %v17816_v3 = vld [vmem:[%s20548_s7 + $0x258] sm:$0xff]  ;;  %21922 = vst [vmem:[#allocation358_spill] sm:$0xff] %v17840_v27 }
 0xf60   :  { %v5511_v17 = vadd.f32 %v9027_v56, %v5441_v10  ;;  %v17750_v56 = vld [vmem:[%s20548_s7 + $0x400] sm:$0xff]  ;;  %21918 = vst [vmem:[#allocation354_spill] sm:$0xff] %v17816_v3 }
 0xf61   :  { %v17846_v10 = vld [vmem:[%s20548_s7 + $0x1c0] sm:$0xff] }
 0xf62   :  { %21923 = vst [vmem:[#allocation359_spill] sm:$0xff] %v17846_v10 }
 0xf7a   :  { %v5580_v34 = vpop.f32.mrf.mxu0 }
 0xf7b   :  { %v17729_v62 = vadd.f32 %v5580_v34, %v5511_v17  ;;  %v17744_v34 = vld [vmem:[%s20548_s7 + $0x408] sm:$0xff]  ;;  %v17798_v17 = vld [vmem:[%s20548_s7 + $0x2e0] sm:$0xff] }
 0xf7c   :  { %v10059_v59 = vpop.f32.mrf.mxu0  ;;  %21915 = vst [vmem:[#allocation351_spill] sm:$0xff] %v17798_v17 }
 0xf7d   :  { %21911 = vst [vmem:[#allocation347_spill] sm:$0xff] %v17729_v62  ;;  %v5584_v5 = vmul.f32 0.5, %v17729_v62  ;;  %v17792_v59 = vld [vmem:[%s20548_s7 + $0x2e8] sm:$0xff]  ;;  %v17852_v62 = vld [vmem:[%s20548_s7 + $0x180] sm:$0xff] }
 0xf7e   :  { %21914 = vst [vmem:[#allocation350_spill] sm:$0xff] %v17792_v59  ;;  %21924 = vst [vmem:[#allocation360_spill] sm:$0xff] %v17852_v62 }
 0xf7f   :  { %v5585_v16 = vadd.f32 %v11605_v30, %v5584_v5  ;;  %v17756_v5 = vld [vmem:[%s20548_s7 + $0x3c0] sm:$0xff] }
 0xf81   :  { %10077 = vmatmul.mubr.msk.f32.vlgmr.msra.gmra.mxu1 %vm4452_vm9, %v5585_v16  ;;  %v17780_v16 = vld [vmem:[%s20548_s7 + $0x330] sm:$0xff] }
 0xf82   :  { %5732 = vmatpush1.msra.mxu1 %v17737_v18  ;;  %5795 = vmatprep.mubr.f32.mxu1 %v21819_v19  ;;  %21912 = vst [vmem:[#allocation348_spill] sm:$0xff] %v17780_v16 }
 0xf83   :  { %5733 = vmatprep.subr.mxu1 %v17744_v34 }
 0xf84   :  { %5734 = vmatpush1.msra.mxu1 %v17750_v56 }
 0xf85   :  { %5735 = vmatprep.subr.mxu1 %v17756_v5 }
 0xf86   :  { %5736 = vmatpush1.msra.mxu1 %v17762_v39 }
 0xf87   :  { %5737 = vmatprep.subr.mxu1 %v17768_v29 }
 0xf88   :  { %5738 = vmatpush1.msra.mxu1 %v17774_v35 }
 0xf89   :  { %5739 = vmatprep.subr.mxu1 %v17780_v16 }
 0xf8a   :  { %5740 = vmatpush1.msra.mxu1 %v17786_v63 }
 0xf8b   :  { %5741 = vmatprep.subr.mxu1 %v17792_v59 }
 0xf8c   :  { %5742 = vmatpush1.msra.mxu1 %v17798_v17 }
 0xf8d   :  { %5743 = vmatprep.subr.mxu1 %v17804_v12 }
 0xf8e   :  { %5744 = vmatpush1.msra.mxu1 %v17810_v48 }
 0xf8f   :  { %5745 = vmatprep.subr.mxu1 %v17816_v3 }
 0xf90   :  { %5746 = vmatpush1.msra.mxu1 %v17822_v42 }
 0xf91   :  { %5747 = vmatprep.subr.mxu1 %v17828_v25 }
 0xf92   :  { %5748 = vmatpush1.msra.mxu1 %v17834_v26  ;;  %v17858_v26 = vld [vmem:[%s20548_s7 + $0x178] sm:$0xff] }
 0xf93   :  { %5749 = vmatprep.subr.mxu1 %v17840_v27  ;;  %21925 = vst [vmem:[#allocation361_spill] sm:$0xff] %v17858_v26  ;;  %v17864_v27 = vld [vmem:[%s20548_s7 + $0x138] sm:$0xff] }
 0xf94   :  { %5750 = vmatpush1.msra.mxu1 %v17846_v10  ;;  %21926 = vst [vmem:[#allocation362_spill] sm:$0xff] %v17864_v27  ;;  %v17870_v10 = vld [vmem:[%s20548_s7 + $0x130] sm:$0xff] }
 0xf95   :  { %5751 = vmatprep.subr.mxu1 %v17852_v62  ;;  %21927 = vst [vmem:[#allocation363_spill] sm:$0xff] %v17870_v10  ;;  %v17876_v62 = vld [vmem:[%s20548_s7 + $0xf0] sm:$0xff] }
 0xf96   :  { %5752 = vmatpush1.msra.mxu1 %v17858_v26  ;;  %21928 = vst [vmem:[#allocation364_spill] sm:$0xff] %v17876_v62  ;;  %v17882_v26 = vld [vmem:[%s20548_s7 + $0xe8] sm:$0xff] }
 0xf97   :  { %5753 = vmatprep.subr.mxu1 %v17864_v27  ;;  %21929 = vst [vmem:[#allocation365_spill] sm:$0xff] %v17882_v26  ;;  %v17888_v27 = vld [vmem:[%s20548_s7 + $0xa8] sm:$0xff] }
 0xf98   :  { %5754 = vmatpush1.msra.mxu1 %v17870_v10  ;;  %21930 = vst [vmem:[#allocation366_spill] sm:$0xff] %v17888_v27  ;;  %v17894_v10 = vld [vmem:[%s20548_s7 + $0xa0] sm:$0xff] }
 0xf99   :  { %5755 = vmatprep.subr.mxu1 %v17876_v62  ;;  %21931 = vst [vmem:[#allocation367_spill] sm:$0xff] %v17894_v10  ;;  %v17900_v62 = vld [vmem:[%s20548_s7 + $0x60] sm:$0xff] }
 0xf9a   :  { %5756 = vmatpush1.msra.mxu1 %v17882_v26  ;;  %21932 = vst [vmem:[#allocation368_spill] sm:$0xff] %v17900_v62  ;;  %v17906_v26 = vld [vmem:[%s20548_s7 + $0x58] sm:$0xff] }
 0xf9b   :  { %5757 = vmatprep.subr.mxu1 %v17888_v27  ;;  %21933 = vst [vmem:[#allocation369_spill] sm:$0xff] %v17906_v26  ;;  %v17912_v27 = vld [vmem:[%s20548_s7 + $0x18] sm:$0xff] }
 0xf9c   :  { %5758 = vmatpush1.msra.mxu1 %v17894_v10  ;;  %21934 = vst [vmem:[#allocation370_spill] sm:$0xff] %v17912_v27  ;;  %v17918_v10 = vld [vmem:[%s20548_s7 + $0x10] sm:$0xff] }
 0xf9d   :  { %5759 = vmatprep.subr.mxu1 %v17900_v62  ;;  %21935 = vst [vmem:[#allocation371_spill] sm:$0xff] %v17918_v10  ;;  %v17924_v62 = vld [vmem:[%s20548_s7 + $0x470] sm:$0xff] }
 0xf9e   :  { %5760 = vmatpush1.msra.mxu1 %v17906_v26  ;;  %21936 = vst [vmem:[#allocation372_spill] sm:$0xff] %v17924_v62 }
 0xf9f   :  { %5761 = vmatprep.subr.mxu1 %v17912_v27 }
 0xfa0   :  { %5762 = vmatpush1.msra.mxu1 %v17918_v10  ;;  %v17935_v10 = vld [vmem:[%s20548_s7 + $0x458] sm:$0xff] }
 0xfa1   :  { %5873 = vmatprep.subr.mxu1 %v17924_v62  ;;  %21937 = vst [vmem:[#allocation373_spill] sm:$0xff] %v17935_v10  ;;  %v17941_v62 = vld [vmem:[%s20548_s7 + $0x468] sm:$0xff] }
 0xfa2   :  { %21938 = vst [vmem:[#allocation374_spill] sm:$0xff] %v17941_v62 }
0x1041   :  { %v5655_v26 = vpop.f32.mrf.mxu1 }
0x1042   :  { %v5656_v25 = vadd.f32 %v5655_v26, %v16522_v15  ;;  %v17959_v26 = vld [vmem:[%s20548_s7 + $0x410] sm:$0xff] }
0x1043   :  { %v10078_v42 = vpop.f32.mrf.mxu1  ;;  %21941 = vst [vmem:[#allocation377_spill] sm:$0xff] %v17959_v26 }
0x1044   :  { %v17928_v3 = vmax.f32 %v5656_v25, 0.0  ;;  %v17947_v42 = vld [vmem:[%s20548_s7 + $0x418] sm:$0xff]  ;;  %v17953_v25 = vld [vmem:[%s20548_s7 + $0x428] sm:$0xff] }
0x1045   :  { %21939 = vst [vmem:[#allocation375_spill] sm:$0xff] %v17947_v42  ;;  %21940 = vst [vmem:[#allocation376_spill] sm:$0xff] %v17953_v25 }
0x1046   :  { %5725 = vmatmul.mubr.f32.vlgmr.msra.gmra.mxu0 %v17928_v3  ;;  %5796 = vmatmul.mubr.f32.vlgmr.msra.gmra.mxu1 %v17928_v3 }
0x1047   :  { %5803 = vmatpush1.msra.mxu0 %v17935_v10  ;;  %5874 = vmatpush1.msra.mxu1 %v17941_v62  ;;  %v17965_v62 = vld [vmem:[%s20548_s7 + $0x420] sm:$0xff] }
0x1048   :  { %5804 = vmatprep.subr.mxu0 %v17947_v42  ;;  %5875 = vmatprep.subr.mxu1 %v17953_v25  ;;  %21942 = vst [vmem:[#allocation378_spill] sm:$0xff] %v17965_v62  ;;  %v17971_v42 = vld [vmem:[%s20548_s7 + $0x3d0] sm:$0xff]  ;;  %v17977_v25 = vld [vmem:[%s20548_s7 + $0x3e0] sm:$0xff] }
0x1049   :  { %5805 = vmatpush1.msra.mxu0 %v17959_v26  ;;  %5876 = vmatpush1.msra.mxu1 %v17965_v62  ;;  %21943 = vst [vmem:[#allocation379_spill] sm:$0xff] %v17971_v42  ;;  %21944 = vst [vmem:[#allocation380_spill] sm:$0xff] %v17977_v25  ;;  %v17983_v26 = vld [vmem:[%s20548_s7 + $0x3c8] sm:$0xff]  ;;  %v17989_v62 = vld [vmem:[%s20548_s7 + $0x3d8] sm:$0xff] }
0x104a   :  { %5806 = vmatprep.subr.mxu0 %v17971_v42  ;;  %5877 = vmatprep.subr.mxu1 %v17977_v25  ;;  %21945 = vst [vmem:[#allocation381_spill] sm:$0xff] %v17983_v26  ;;  %21946 = vst [vmem:[#allocation382_spill] sm:$0xff] %v17989_v62  ;;  %v17995_v42 = vld [vmem:[%s20548_s7 + $0x388] sm:$0xff]  ;;  %v18001_v25 = vld [vmem:[%s20548_s7 + $0x398] sm:$0xff] }
0x104b   :  { %5807 = vmatpush1.msra.mxu0 %v17983_v26  ;;  %5878 = vmatpush1.msra.mxu1 %v17989_v62  ;;  %21947 = vst [vmem:[#allocation383_spill] sm:$0xff] %v17995_v42  ;;  %21948 = vst [vmem:[#allocation384_spill] sm:$0xff] %v18001_v25  ;;  %v18007_v26 = vld [vmem:[%s20548_s7 + $0x380] sm:$0xff]  ;;  %v18013_v62 = vld [vmem:[%s20548_s7 + $0x390] sm:$0xff] }
0x104c   :  { %5808 = vmatprep.subr.mxu0 %v17995_v42  ;;  %5879 = vmatprep.subr.mxu1 %v18001_v25  ;;  %21949 = vst [vmem:[#allocation385_spill] sm:$0xff] %v18007_v26  ;;  %21950 = vst [vmem:[#allocation386_spill] sm:$0xff] %v18013_v62  ;;  %v18019_v42 = vld [vmem:[%s20548_s7 + $0x340] sm:$0xff]  ;;  %v18025_v25 = vld [vmem:[%s20548_s7 + $0x350] sm:$0xff] }
0x104d   :  { %5809 = vmatpush1.msra.mxu0 %v18007_v26  ;;  %5880 = vmatpush1.msra.mxu1 %v18013_v62  ;;  %21951 = vst [vmem:[#allocation387_spill] sm:$0xff] %v18019_v42  ;;  %21952 = vst [vmem:[#allocation388_spill] sm:$0xff] %v18025_v25  ;;  %v18031_v26 = vld [vmem:[%s20548_s7 + $0x338] sm:$0xff]  ;;  %v18037_v62 = vld [vmem:[%s20548_s7 + $0x348] sm:$0xff] }
0x104e   :  { %5810 = vmatprep.subr.mxu0 %v18019_v42  ;;  %5881 = vmatprep.subr.mxu1 %v18025_v25  ;;  %21953 = vst [vmem:[#allocation389_spill] sm:$0xff] %v18031_v26  ;;  %21954 = vst [vmem:[#allocation390_spill] sm:$0xff] %v18037_v62  ;;  %v18043_v42 = vld [vmem:[%s20548_s7 + $0x2f8] sm:$0xff]  ;;  %v18049_v25 = vld [vmem:[%s20548_s7 + $0x308] sm:$0xff] }
0x104f   :  { %5811 = vmatpush1.msra.mxu0 %v18031_v26  ;;  %5882 = vmatpush1.msra.mxu1 %v18037_v62  ;;  %21955 = vst [vmem:[#allocation391_spill] sm:$0xff] %v18043_v42  ;;  %21956 = vst [vmem:[#allocation392_spill] sm:$0xff] %v18049_v25  ;;  %v18055_v26 = vld [vmem:[%s20548_s7 + $0x2f0] sm:$0xff]  ;;  %v18061_v62 = vld [vmem:[%s20548_s7 + $0x300] sm:$0xff] }
0x1050   :  { %5812 = vmatprep.subr.mxu0 %v18043_v42  ;;  %5883 = vmatprep.subr.mxu1 %v18049_v25  ;;  %21957 = vst [vmem:[#allocation393_spill] sm:$0xff] %v18055_v26  ;;  %21958 = vst [vmem:[#allocation394_spill] sm:$0xff] %v18061_v62  ;;  %v18067_v42 = vld [vmem:[%s20548_s7 + $0x2b0] sm:$0xff]  ;;  %v18073_v25 = vld [vmem:[%s20548_s7 + $0x2c0] sm:$0xff] }
0x1051   :  { %5813 = vmatpush1.msra.mxu0 %v18055_v26  ;;  %5884 = vmatpush1.msra.mxu1 %v18061_v62  ;;  %21959 = vst [vmem:[#allocation395_spill] sm:$0xff] %v18067_v42  ;;  %21960 = vst [vmem:[#allocation396_spill] sm:$0xff] %v18073_v25  ;;  %v18079_v26 = vld [vmem:[%s20548_s7 + $0x2a8] sm:$0xff]  ;;  %v18085_v62 = vld [vmem:[%s20548_s7 + $0x2b8] sm:$0xff] }
0x1052   :  { %5814 = vmatprep.subr.mxu0 %v18067_v42  ;;  %5885 = vmatprep.subr.mxu1 %v18073_v25  ;;  %21961 = vst [vmem:[#allocation397_spill] sm:$0xff] %v18079_v26  ;;  %21962 = vst [vmem:[#allocation398_spill] sm:$0xff] %v18085_v62  ;;  %v18091_v42 = vld [vmem:[%s20548_s7 + $0x268] sm:$0xff]  ;;  %v18097_v25 = vld [vmem:[%s20548_s7 + $0x278] sm:$0xff] }
0x1053   :  { %5815 = vmatpush1.msra.mxu0 %v18079_v26  ;;  %5886 = vmatpush1.msra.mxu1 %v18085_v62  ;;  %21963 = vst [vmem:[#allocation399_spill] sm:$0xff] %v18091_v42  ;;  %21964 = vst [vmem:[#allocation400_spill] sm:$0xff] %v18097_v25  ;;  %v18103_v26 = vld [vmem:[%s20548_s7 + $0x260] sm:$0xff]  ;;  %v18109_v62 = vld [vmem:[%s20548_s7 + $0x270] sm:$0xff] }
0x1054   :  { %5816 = vmatprep.subr.mxu0 %v18091_v42  ;;  %5887 = vmatprep.subr.mxu1 %v18097_v25  ;;  %21965 = vst [vmem:[#allocation401_spill] sm:$0xff] %v18103_v26  ;;  %21966 = vst [vmem:[#allocation402_spill] sm:$0xff] %v18109_v62  ;;  %v18115_v42 = vld [vmem:[%s20548_s7 + $0x220] sm:$0xff]  ;;  %v18121_v25 = vld [vmem:[%s20548_s7 + $0x230] sm:$0xff] }
0x1055   :  { %5817 = vmatpush1.msra.mxu0 %v18103_v26  ;;  %5888 = vmatpush1.msra.mxu1 %v18109_v62  ;;  %21967 = vst [vmem:[#allocation403_spill] sm:$0xff] %v18115_v42  ;;  %21968 = vst [vmem:[#allocation404_spill] sm:$0xff] %v18121_v25  ;;  %v18127_v26 = vld [vmem:[%s20548_s7 + $0x218] sm:$0xff]  ;;  %v18133_v62 = vld [vmem:[%s20548_s7 + $0x228] sm:$0xff] }
0x1056   :  { %5818 = vmatprep.subr.mxu0 %v18115_v42  ;;  %5889 = vmatprep.subr.mxu1 %v18121_v25  ;;  %21969 = vst [vmem:[#allocation405_spill] sm:$0xff] %v18127_v26  ;;  %21970 = vst [vmem:[#allocation406_spill] sm:$0xff] %v18133_v62  ;;  %v18139_v42 = vld [vmem:[%s20548_s7 + $0x1d8] sm:$0xff]  ;;  %v18145_v25 = vld [vmem:[%s20548_s7 + $0x1e8] sm:$0xff] }
0x1057   :  { %5819 = vmatpush1.msra.mxu0 %v18127_v26  ;;  %5890 = vmatpush1.msra.mxu1 %v18133_v62  ;;  %21971 = vst [vmem:[#allocation407_spill] sm:$0xff] %v18139_v42  ;;  %21972 = vst [vmem:[#allocation408_spill] sm:$0xff] %v18145_v25  ;;  %v18151_v26 = vld [vmem:[%s20548_s7 + $0x1d0] sm:$0xff]  ;;  %v18157_v62 = vld [vmem:[%s20548_s7 + $0x1e0] sm:$0xff] }
0x1058   :  { %5820 = vmatprep.subr.mxu0 %v18139_v42  ;;  %5891 = vmatprep.subr.mxu1 %v18145_v25  ;;  %21973 = vst [vmem:[#allocation409_spill] sm:$0xff] %v18151_v26  ;;  %21974 = vst [vmem:[#allocation410_spill] sm:$0xff] %v18157_v62  ;;  %v18163_v42 = vld [vmem:[%s20548_s7 + $0x190] sm:$0xff]  ;;  %v18169_v25 = vld [vmem:[%s20548_s7 + $0x1a0] sm:$0xff] }
0x1059   :  { %5821 = vmatpush1.msra.mxu0 %v18151_v26  ;;  %5892 = vmatpush1.msra.mxu1 %v18157_v62  ;;  %21975 = vst [vmem:[#allocation411_spill] sm:$0xff] %v18163_v42  ;;  %21976 = vst [vmem:[#allocation412_spill] sm:$0xff] %v18169_v25  ;;  %v18175_v26 = vld [vmem:[%s20548_s7 + $0x188] sm:$0xff]  ;;  %v18181_v62 = vld [vmem:[%s20548_s7 + $0x198] sm:$0xff] }
0x105a   :  { %5822 = vmatprep.subr.mxu0 %v18163_v42  ;;  %5893 = vmatprep.subr.mxu1 %v18169_v25  ;;  %21977 = vst [vmem:[#allocation413_spill] sm:$0xff] %v18175_v26  ;;  %21978 = vst [vmem:[#allocation414_spill] sm:$0xff] %v18181_v62  ;;  %v18187_v42 = vld [vmem:[%s20548_s7 + $0x148] sm:$0xff]  ;;  %v18193_v25 = vld [vmem:[%s20548_s7 + $0x158] sm:$0xff] }
0x105b   :  { %5823 = vmatpush1.msra.mxu0 %v18175_v26  ;;  %5894 = vmatpush1.msra.mxu1 %v18181_v62  ;;  %21979 = vst [vmem:[#allocation415_spill] sm:$0xff] %v18187_v42  ;;  %21980 = vst [vmem:[#allocation416_spill] sm:$0xff] %v18193_v25  ;;  %v18199_v26 = vld [vmem:[%s20548_s7 + $0x140] sm:$0xff]  ;;  %v18205_v62 = vld [vmem:[%s20548_s7 + $0x150] sm:$0xff] }
0x105c   :  { %5824 = vmatprep.subr.mxu0 %v18187_v42  ;;  %5895 = vmatprep.subr.mxu1 %v18193_v25  ;;  %21981 = vst [vmem:[#allocation417_spill] sm:$0xff] %v18199_v26  ;;  %21982 = vst [vmem:[#allocation418_spill] sm:$0xff] %v18205_v62  ;;  %v18211_v42 = vld [vmem:[%s20548_s7 + $0x100] sm:$0xff]  ;;  %v18217_v25 = vld [vmem:[%s20548_s7 + $0x110] sm:$0xff] }
0x105d   :  { %5825 = vmatpush1.msra.mxu0 %v18199_v26  ;;  %5896 = vmatpush1.msra.mxu1 %v18205_v62  ;;  %21983 = vst [vmem:[#allocation419_spill] sm:$0xff] %v18211_v42  ;;  %21984 = vst [vmem:[#allocation420_spill] sm:$0xff] %v18217_v25  ;;  %v18223_v26 = vld [vmem:[%s20548_s7 + $0xf8] sm:$0xff]  ;;  %v18229_v62 = vld [vmem:[%s20548_s7 + $0x108] sm:$0xff] }
0x105e   :  { %5826 = vmatprep.subr.mxu0 %v18211_v42  ;;  %5897 = vmatprep.subr.mxu1 %v18217_v25  ;;  %21985 = vst [vmem:[#allocation421_spill] sm:$0xff] %v18223_v26  ;;  %21986 = vst [vmem:[#allocation422_spill] sm:$0xff] %v18229_v62  ;;  %v18235_v42 = vld [vmem:[%s20548_s7 + $0xb8] sm:$0xff]  ;;  %v18241_v25 = vld [vmem:[%s20548_s7 + $0xc8] sm:$0xff] }
0x105f   :  { %5827 = vmatpush1.msra.mxu0 %v18223_v26  ;;  %5898 = vmatpush1.msra.mxu1 %v18229_v62  ;;  %21987 = vst [vmem:[#allocation423_spill] sm:$0xff] %v18235_v42  ;;  %21988 = vst [vmem:[#allocation424_spill] sm:$0xff] %v18241_v25  ;;  %v18247_v26 = vld [vmem:[%s20548_s7 + $0xb0] sm:$0xff]  ;;  %v18253_v62 = vld [vmem:[%s20548_s7 + $0xc0] sm:$0xff] }
0x1060   :  { %5828 = vmatprep.subr.mxu0 %v18235_v42  ;;  %5899 = vmatprep.subr.mxu1 %v18241_v25  ;;  %21989 = vst [vmem:[#allocation425_spill] sm:$0xff] %v18247_v26  ;;  %21990 = vst [vmem:[#allocation426_spill] sm:$0xff] %v18253_v62  ;;  %v18259_v42 = vld [vmem:[%s20548_s7 + $0x70] sm:$0xff]  ;;  %v18265_v25 = vld [vmem:[%s20548_s7 + $0x80] sm:$0xff] }
0x1061   :  { %5829 = vmatpush1.msra.mxu0 %v18247_v26  ;;  %5900 = vmatpush1.msra.mxu1 %v18253_v62  ;;  %21991 = vst [vmem:[#allocation427_spill] sm:$0xff] %v18259_v42  ;;  %21992 = vst [vmem:[#allocation428_spill] sm:$0xff] %v18265_v25  ;;  %v18271_v26 = vld [vmem:[%s20548_s7 + $0x68] sm:$0xff]  ;;  %v18277_v62 = vld [vmem:[%s20548_s7 + $0x78] sm:$0xff] }
0x1062   :  { %5830 = vmatprep.subr.mxu0 %v18259_v42  ;;  %5901 = vmatprep.subr.mxu1 %v18265_v25  ;;  %21993 = vst [vmem:[#allocation429_spill] sm:$0xff] %v18271_v26  ;;  %21994 = vst [vmem:[#allocation430_spill] sm:$0xff] %v18277_v62  ;;  %v18283_v42 = vld [vmem:[%s20548_s7 + $0x28] sm:$0xff]  ;;  %v18289_v25 = vld [vmem:[%s20548_s7 + $0x38] sm:$0xff] }
0x1063   :  { %5831 = vmatpush1.msra.mxu0 %v18271_v26  ;;  %5902 = vmatpush1.msra.mxu1 %v18277_v62  ;;  %21995 = vst [vmem:[#allocation431_spill] sm:$0xff] %v18283_v42  ;;  %21996 = vst [vmem:[#allocation432_spill] sm:$0xff] %v18289_v25  ;;  %v18295_v26 = vld [vmem:[%s20548_s7 + $0x20] sm:$0xff] }
0x1064   :  { %5832 = vmatprep.subr.mxu0 %v18283_v42  ;;  %5903 = vmatprep.subr.mxu1 %v18289_v25  ;;  %21997 = vst [vmem:[#allocation433_spill] sm:$0xff] %v18295_v26  ;;  %v18302_v42 = vld [vmem:[%s20548_s7 + $0x30] sm:$0xff]  ;;  %v18327_v25 = vld [vmem:[%s20553_s12 + $0x78] sm:$0xff] }
0x1065   :  { %5833 = vmatpush1.msra.mxu0 %v18295_v26  ;;  %5866 = vmatprep.mubr.f32.mxu0 %v21819_v19  ;;  %21998 = vst [vmem:[#allocation434_spill] sm:$0xff] %v18302_v42  ;;  %v18314_v26 = vld [vmem:[%s20548_s7 + $0x478] sm:$0xff]  ;;  %22001 = vst [vmem:[#allocation437_spill] sm:$0xff] %v18327_v25 }
0x1066   :  { %5904 = vmatpush1.msra.mxu1 %v18302_v42  ;;  %5937 = vmatprep.mubr.f32.mxu1 %v21819_v19  ;;  %21999 = vst [vmem:[#allocation435_spill] sm:$0xff] %v18314_v26  ;;  %v18320_v42 = vld [vmem:[%s20553_s12 + $0xf8] sm:$0xff] }
0x1067   :  { %5867 = vmatmul.mubr.f32.vlgmr.msra.gmra.mxu0 %v17928_v3  ;;  %5938 = vmatmul.mubr.f32.vlgmr.msra.gmra.mxu1 %v17928_v3  ;;  %22000 = vst [vmem:[#allocation436_spill] sm:$0xff] %v18320_v42 }
0x1068   :  { %10079 = vmatprep.subr.mxu0 %v21819_v19  ;;  %10111 = vmatprep.mubr.msk.f32.mxu0 %vm11608_vm2, %v21819_v19 }
0x1069   :  { %10080 = vmatpush3.msra.mxu0 %v18314_v26  ;;  %9071 = vmatprep.subr.mxu1 %v18320_v42  ;;  %v18333_v26 = vld [vmem:[%s20548_s7 + $0x430] sm:$0xff] }
0x106a   :  { %10081 = vmatprep.subr.mxu0 %v21819_v19  ;;  %9072 = vmatpush3.msra.mxu1 %v18327_v25  ;;  %22002 = vst [vmem:[#allocation438_spill] sm:$0xff] %v18333_v26  ;;  %v18339_v42 = vld [vmem:[%s20553_s12 + $0xf0] sm:$0xff] }
0x106b   :  { %10082 = vmatpush3.msra.mxu0 %v18333_v26  ;;  %22003 = vst [vmem:[#allocation439_spill] sm:$0xff] %v18339_v42  ;;  %9073 = vmatprep.subr.mxu1 %v18339_v42  ;;  %v18346_v25 = vld [vmem:[%s20553_s12 + $0x70] sm:$0xff]  ;;  %v18352_v26 = vld [vmem:[%s20548_s7 + $0x3e8] sm:$0xff] }
0x106c   :  { %10083 = vmatprep.subr.mxu0 %v21819_v19  ;;  %22004 = vst [vmem:[#allocation440_spill] sm:$0xff] %v18346_v25  ;;  %9074 = vmatpush3.msra.mxu1 %v18346_v25  ;;  %22005 = vst [vmem:[#allocation441_spill] sm:$0xff] %v18352_v26  ;;  %v18358_v42 = vld [vmem:[%s20553_s12 + $0xe8] sm:$0xff] }
0x106d   :  { %10084 = vmatpush3.msra.mxu0 %v18352_v26  ;;  %22006 = vst [vmem:[#allocation442_spill] sm:$0xff] %v18358_v42  ;;  %9075 = vmatprep.subr.mxu1 %v18358_v42  ;;  %v18365_v25 = vld [vmem:[%s20553_s12 + $0x68] sm:$0xff]  ;;  %v18371_v26 = vld [vmem:[%s20548_s7 + $0x3a0] sm:$0xff] }
0x106e   :  { %10085 = vmatprep.subr.mxu0 %v21819_v19  ;;  %22007 = vst [vmem:[#allocation443_spill] sm:$0xff] %v18365_v25  ;;  %9076 = vmatpush3.msra.mxu1 %v18365_v25  ;;  %22008 = vst [vmem:[#allocation444_spill] sm:$0xff] %v18371_v26  ;;  %v18377_v42 = vld [vmem:[%s20553_s12 + $0xe0] sm:$0xff] }
0x106f   :  { %10086 = vmatpush3.msra.mxu0 %v18371_v26  ;;  %22009 = vst [vmem:[#allocation445_spill] sm:$0xff] %v18377_v42  ;;  %9077 = vmatprep.subr.mxu1 %v18377_v42  ;;  %v18384_v25 = vld [vmem:[%s20553_s12 + $0x60] sm:$0xff]  ;;  %v18390_v26 = vld [vmem:[%s20548_s7 + $0x358] sm:$0xff] }
0x1070   :  { %10087 = vmatprep.subr.mxu0 %v21819_v19  ;;  %22010 = vst [vmem:[#allocation446_spill] sm:$0xff] %v18384_v25  ;;  %9078 = vmatpush3.msra.mxu1 %v18384_v25  ;;  %22011 = vst [vmem:[#allocation447_spill] sm:$0xff] %v18390_v26  ;;  %v18396_v42 = vld [vmem:[%s20553_s12 + $0xd8] sm:$0xff] }
0x1071   :  { %10088 = vmatpush3.msra.mxu0 %v18390_v26  ;;  %22012 = vst [vmem:[#allocation448_spill] sm:$0xff] %v18396_v42  ;;  %9079 = vmatprep.subr.mxu1 %v18396_v42  ;;  %v18403_v25 = vld [vmem:[%s20553_s12 + $0x58] sm:$0xff]  ;;  %v18409_v26 = vld [vmem:[%s20548_s7 + $0x310] sm:$0xff] }
0x1072   :  { %10089 = vmatprep.subr.mxu0 %v21819_v19  ;;  %22013 = vst [vmem:[#allocation449_spill] sm:$0xff] %v18403_v25  ;;  %9080 = vmatpush3.msra.mxu1 %v18403_v25  ;;  %22014 = vst [vmem:[#allocation450_spill] sm:$0xff] %v18409_v26  ;;  %v18415_v42 = vld [vmem:[%s20553_s12 + $0xd0] sm:$0xff] }
0x1073   :  { %10090 = vmatpush3.msra.mxu0 %v18409_v26  ;;  %22015 = vst [vmem:[#allocation451_spill] sm:$0xff] %v18415_v42  ;;  %9081 = vmatprep.subr.mxu1 %v18415_v42  ;;  %v18422_v25 = vld [vmem:[%s20553_s12 + $0x50] sm:$0xff]  ;;  %v18428_v26 = vld [vmem:[%s20548_s7 + $0x2c8] sm:$0xff] }
0x1074   :  { %10091 = vmatprep.subr.mxu0 %v21819_v19  ;;  %22016 = vst [vmem:[#allocation452_spill] sm:$0xff] %v18422_v25  ;;  %9082 = vmatpush3.msra.mxu1 %v18422_v25  ;;  %22017 = vst [vmem:[#allocation453_spill] sm:$0xff] %v18428_v26  ;;  %v18434_v42 = vld [vmem:[%s20553_s12 + $0xc8] sm:$0xff] }
0x1075   :  { %10092 = vmatpush3.msra.mxu0 %v18428_v26  ;;  %22018 = vst [vmem:[#allocation454_spill] sm:$0xff] %v18434_v42  ;;  %9083 = vmatprep.subr.mxu1 %v18434_v42  ;;  %v18441_v25 = vld [vmem:[%s20553_s12 + $0x48] sm:$0xff]  ;;  %v18447_v26 = vld [vmem:[%s20548_s7 + $0x280] sm:$0xff] }
0x1076   :  { %10093 = vmatprep.subr.mxu0 %v21819_v19  ;;  %22019 = vst [vmem:[#allocation455_spill] sm:$0xff] %v18441_v25  ;;  %9084 = vmatpush3.msra.mxu1 %v18441_v25  ;;  %22020 = vst [vmem:[#allocation456_spill] sm:$0xff] %v18447_v26  ;;  %v18453_v42 = vld [vmem:[%s20553_s12 + $0xc0] sm:$0xff] }
0x1077   :  { %10094 = vmatpush3.msra.mxu0 %v18447_v26  ;;  %22021 = vst [vmem:[#allocation457_spill] sm:$0xff] %v18453_v42  ;;  %9085 = vmatprep.subr.mxu1 %v18453_v42  ;;  %v18460_v25 = vld [vmem:[%s20553_s12 + $0x40] sm:$0xff]  ;;  %v18466_v26 = vld [vmem:[%s20548_s7 + $0x238] sm:$0xff] }
0x1078   :  { %10095 = vmatprep.subr.mxu0 %v21819_v19  ;;  %22022 = vst [vmem:[#allocation458_spill] sm:$0xff] %v18460_v25  ;;  %9086 = vmatpush3.msra.mxu1 %v18460_v25  ;;  %22023 = vst [vmem:[#allocation459_spill] sm:$0xff] %v18466_v26  ;;  %v18472_v42 = vld [vmem:[%s20553_s12 + $0xb8] sm:$0xff] }
0x1079   :  { %10096 = vmatpush3.msra.mxu0 %v18466_v26  ;;  %22024 = vst [vmem:[#allocation460_spill] sm:$0xff] %v18472_v42  ;;  %9087 = vmatprep.subr.mxu1 %v18472_v42  ;;  %v18479_v25 = vld [vmem:[%s20553_s12 + $0x38] sm:$0xff]  ;;  %v18485_v26 = vld [vmem:[%s20548_s7 + $0x1f0] sm:$0xff] }
0x107a   :  { %10097 = vmatprep.subr.mxu0 %v21819_v19  ;;  %22025 = vst [vmem:[#allocation461_spill] sm:$0xff] %v18479_v25  ;;  %9088 = vmatpush3.msra.mxu1 %v18479_v25  ;;  %22026 = vst [vmem:[#allocation462_spill] sm:$0xff] %v18485_v26  ;;  %v18491_v42 = vld [vmem:[%s20553_s12 + $0xb0] sm:$0xff] }
0x107b   :  { %10098 = vmatpush3.msra.mxu0 %v18485_v26  ;;  %22027 = vst [vmem:[#allocation463_spill] sm:$0xff] %v18491_v42  ;;  %9089 = vmatprep.subr.mxu1 %v18491_v42  ;;  %v18498_v25 = vld [vmem:[%s20553_s12 + $0x30] sm:$0xff]  ;;  %v18504_v26 = vld [vmem:[%s20548_s7 + $0x1a8] sm:$0xff] }
0x107c   :  { %10099 = vmatprep.subr.mxu0 %v21819_v19  ;;  %22028 = vst [vmem:[#allocation464_spill] sm:$0xff] %v18498_v25  ;;  %9090 = vmatpush3.msra.mxu1 %v18498_v25  ;;  %22029 = vst [vmem:[#allocation465_spill] sm:$0xff] %v18504_v26  ;;  %v18510_v42 = vld [vmem:[%s20553_s12 + $0xa8] sm:$0xff] }
0x107d   :  { %10100 = vmatpush3.msra.mxu0 %v18504_v26  ;;  %22030 = vst [vmem:[#allocation466_spill] sm:$0xff] %v18510_v42  ;;  %9091 = vmatprep.subr.mxu1 %v18510_v42  ;;  %v18517_v25 = vld [vmem:[%s20553_s12 + $0x28] sm:$0xff]  ;;  %v18523_v26 = vld [vmem:[%s20548_s7 + $0x160] sm:$0xff] }
0x107e   :  { %10101 = vmatprep.subr.mxu0 %v21819_v19  ;;  %22031 = vst [vmem:[#allocation467_spill] sm:$0xff] %v18517_v25  ;;  %9092 = vmatpush3.msra.mxu1 %v18517_v25  ;;  %22032 = vst [vmem:[#allocation468_spill] sm:$0xff] %v18523_v26  ;;  %v18529_v42 = vld [vmem:[%s20553_s12 + $0xa0] sm:$0xff] }
0x107f   :  { %10102 = vmatpush3.msra.mxu0 %v18523_v26  ;;  %22033 = vst [vmem:[#allocation469_spill] sm:$0xff] %v18529_v42  ;;  %9093 = vmatprep.subr.mxu1 %v18529_v42  ;;  %v18536_v25 = vld [vmem:[%s20553_s12 + $0x20] sm:$0xff]  ;;  %v18542_v26 = vld [vmem:[%s20548_s7 + $0x118] sm:$0xff] }
0x1080   :  { %10103 = vmatprep.subr.mxu0 %v21819_v19  ;;  %22034 = vst [vmem:[#allocation470_spill] sm:$0xff] %v18536_v25  ;;  %9094 = vmatpush3.msra.mxu1 %v18536_v25  ;;  %22035 = vst [vmem:[#allocation471_spill] sm:$0xff] %v18542_v26  ;;  %v18548_v42 = vld [vmem:[%s20553_s12 + $0x98] sm:$0xff] }
0x1081   :  { %10104 = vmatpush3.msra.mxu0 %v18542_v26  ;;  %22036 = vst [vmem:[#allocation472_spill] sm:$0xff] %v18548_v42  ;;  %9095 = vmatprep.subr.mxu1 %v18548_v42  ;;  %v18555_v25 = vld [vmem:[%s20553_s12 + $0x18] sm:$0xff]  ;;  %v18561_v26 = vld [vmem:[%s20548_s7 + $0xd0] sm:$0xff] }
0x1082   :  { %10105 = vmatprep.subr.mxu0 %v21819_v19  ;;  %22037 = vst [vmem:[#allocation473_spill] sm:$0xff] %v18555_v25  ;;  %9096 = vmatpush3.msra.mxu1 %v18555_v25  ;;  %22038 = vst [vmem:[#allocation474_spill] sm:$0xff] %v18561_v26  ;;  %v18567_v42 = vld [vmem:[%s20553_s12 + $0x90] sm:$0xff] }
0x1083   :  { %10106 = vmatpush3.msra.mxu0 %v18561_v26  ;;  %22039 = vst [vmem:[#allocation475_spill] sm:$0xff] %v18567_v42  ;;  %9097 = vmatprep.subr.mxu1 %v18567_v42  ;;  %v18574_v25 = vld [vmem:[%s20553_s12 + $0x10] sm:$0xff]  ;;  %v18580_v26 = vld [vmem:[%s20548_s7 + $0x88] sm:$0xff] }
0x1084   :  { %10107 = vmatprep.subr.mxu0 %v21819_v19  ;;  %22040 = vst [vmem:[#allocation476_spill] sm:$0xff] %v18574_v25  ;;  %9098 = vmatpush3.msra.mxu1 %v18574_v25  ;;  %22041 = vst [vmem:[#allocation477_spill] sm:$0xff] %v18580_v26  ;;  %v18586_v42 = vld [vmem:[%s20553_s12 + $0x88] sm:$0xff] }
0x1085   :  { %10108 = vmatpush3.msra.mxu0 %v18580_v26  ;;  %22042 = vst [vmem:[#allocation478_spill] sm:$0xff] %v18586_v42  ;;  %9099 = vmatprep.subr.mxu1 %v18586_v42  ;;  %v18593_v25 = vld [vmem:[%s20553_s12 + $0x8] sm:$0xff]  ;;  %v18599_v26 = vld [vmem:[%s20548_s7 + $0x40] sm:$0xff] }
0x1086   :  { %10109 = vmatprep.subr.mxu0 %v21819_v19  ;;  %22043 = vst [vmem:[#allocation479_spill] sm:$0xff] %v18593_v25  ;;  %9100 = vmatpush3.msra.mxu1 %v18593_v25  ;;  %22044 = vst [vmem:[#allocation480_spill] sm:$0xff] %v18599_v26  ;;  %v18605_v42 = vld [vmem:[%s20553_s12 + $0x80] sm:$0xff]  ;;  %v18612_v25 = vld [vmem:[%s20553_s12 + $0x1f8] sm:$0xff] }
0x1087   :  { %10110 = vmatpush3.msra.mxu0 %v18599_v26  ;;  %22045 = vst [vmem:[#allocation481_spill] sm:$0xff] %v18605_v42  ;;  %9101 = vmatprep.subr.mxu1 %v18605_v42  ;;  %22046 = vst [vmem:[#allocation482_spill] sm:$0xff] %v18612_v25  ;;  %v18618_v26 = vld [vmem:[%s20553_s12 + $0x178] sm:$0xff]  ;;  %v18624_v42 = vld [vmem:[%s20553_s12] sm:$0xff] }
0x1088   :  { %10112 = vmatmul.mubr.f32.vlgmr.msra.gmra.mxu0 %v17928_v3  ;;  %9106 = vmatprep.subr.mxu0 %v18612_v25  ;;  %22047 = vst [vmem:[#allocation483_spill] sm:$0xff] %v18618_v26  ;;  %22048 = vst [vmem:[#allocation484_spill] sm:$0xff] %v18624_v42  ;;  %v18630_v3 = vld [vmem:[%s20553_s12 + $0x1f0] sm:$0xff]  ;;  %v18636_v25 = vld [vmem:[%s20553_s12 + $0x2f8] sm:$0xff] }
0x1089   :  { %9107 = vmatpush3.msra.mxu0 %v18618_v26  ;;  %9102 = vmatpush3.msra.mxu1 %v18624_v42  ;;  %22049 = vst [vmem:[#allocation485_spill] sm:$0xff] %v18630_v3  ;;  %22050 = vst [vmem:[#allocation486_spill] sm:$0xff] %v18636_v25  ;;  %v18642_v26 = vld [vmem:[%s20553_s12 + $0x170] sm:$0xff]  ;;  %v18648_v42 = vld [vmem:[%s20553_s12 + $0x1e8] sm:$0xff] }
0x108a   :  { %9108 = vmatprep.subr.mxu0 %v18630_v3  ;;  %9141 = vmatprep.subr.mxu1 %v18636_v25  ;;  %22051 = vst [vmem:[#allocation487_spill] sm:$0xff] %v18642_v26  ;;  %22052 = vst [vmem:[#allocation488_spill] sm:$0xff] %v18648_v42  ;;  %v18654_v3 = vld [vmem:[%s20553_s12 + $0x168] sm:$0xff]  ;;  %v18660_v25 = vld [vmem:[%s20553_s12 + $0x1e0] sm:$0xff] }
0x108b   :  { %9109 = vmatpush3.msra.mxu0 %v18642_v26  ;;  %22053 = vst [vmem:[#allocation489_spill] sm:$0xff] %v18654_v3  ;;  %22054 = vst [vmem:[#allocation490_spill] sm:$0xff] %v18660_v25  ;;  %v18666_v26 = vld [vmem:[%s20553_s12 + $0x160] sm:$0xff] }
0x108c   :  { %9110 = vmatprep.subr.mxu0 %v18648_v42  ;;  %22055 = vst [vmem:[#allocation491_spill] sm:$0xff] %v18666_v26  ;;  %v18672_v42 = vld [vmem:[%s20553_s12 + $0x1d8] sm:$0xff] }
0x108d   :  { %9111 = vmatpush3.msra.mxu0 %v18654_v3  ;;  %22056 = vst [vmem:[#allocation492_spill] sm:$0xff] %v18672_v42  ;;  %v18678_v3 = vld [vmem:[%s20553_s12 + $0x158] sm:$0xff] }
0x108e   :  { %9112 = vmatprep.subr.mxu0 %v18660_v25  ;;  %22057 = vst [vmem:[#allocation493_spill] sm:$0xff] %v18678_v3  ;;  %v18684_v25 = vld [vmem:[%s20553_s12 + $0x1d0] sm:$0xff] }
0x108f   :  { %9113 = vmatpush3.msra.mxu0 %v18666_v26  ;;  %22058 = vst [vmem:[#allocation494_spill] sm:$0xff] %v18684_v25  ;;  %v18690_v26 = vld [vmem:[%s20553_s12 + $0x150] sm:$0xff] }
0x1090   :  { %9114 = vmatprep.subr.mxu0 %v18672_v42  ;;  %22059 = vst [vmem:[#allocation495_spill] sm:$0xff] %v18690_v26  ;;  %v18696_v42 = vld [vmem:[%s20553_s12 + $0x1c8] sm:$0xff] }
0x1091   :  { %9115 = vmatpush3.msra.mxu0 %v18678_v3  ;;  %22060 = vst [vmem:[#allocation496_spill] sm:$0xff] %v18696_v42  ;;  %v18702_v3 = vld [vmem:[%s20553_s12 + $0x148] sm:$0xff] }
0x1092   :  { %9116 = vmatprep.subr.mxu0 %v18684_v25  ;;  %22061 = vst [vmem:[#allocation497_spill] sm:$0xff] %v18702_v3  ;;  %v18708_v25 = vld [vmem:[%s20553_s12 + $0x1c0] sm:$0xff] }
0x1093   :  { %9117 = vmatpush3.msra.mxu0 %v18690_v26  ;;  %22062 = vst [vmem:[#allocation498_spill] sm:$0xff] %v18708_v25  ;;  %v18714_v26 = vld [vmem:[%s20553_s12 + $0x140] sm:$0xff] }
0x1094   :  { %9118 = vmatprep.subr.mxu0 %v18696_v42  ;;  %22063 = vst [vmem:[#allocation499_spill] sm:$0xff] %v18714_v26  ;;  %v18720_v42 = vld [vmem:[%s20553_s12 + $0x1b8] sm:$0xff] }
0x1095   :  { %9119 = vmatpush3.msra.mxu0 %v18702_v3  ;;  %22064 = vst [vmem:[#allocation500_spill] sm:$0xff] %v18720_v42  ;;  %v18726_v3 = vld [vmem:[%s20553_s12 + $0x138] sm:$0xff] }
0x1096   :  { %9120 = vmatprep.subr.mxu0 %v18708_v25  ;;  %22065 = vst [vmem:[#allocation501_spill] sm:$0xff] %v18726_v3  ;;  %v18732_v25 = vld [vmem:[%s20553_s12 + $0x1b0] sm:$0xff] }
0x1097   :  { %9121 = vmatpush3.msra.mxu0 %v18714_v26  ;;  %22066 = vst [vmem:[#allocation502_spill] sm:$0xff] %v18732_v25  ;;  %v18738_v26 = vld [vmem:[%s20553_s12 + $0x130] sm:$0xff] }
0x1098   :  { %9122 = vmatprep.subr.mxu0 %v18720_v42  ;;  %22067 = vst [vmem:[#allocation503_spill] sm:$0xff] %v18738_v26  ;;  %v18744_v42 = vld [vmem:[%s20553_s12 + $0x1a8] sm:$0xff] }
0x1099   :  { %9123 = vmatpush3.msra.mxu0 %v18726_v3  ;;  %22068 = vst [vmem:[#allocation504_spill] sm:$0xff] %v18744_v42  ;;  %v18750_v3 = vld [vmem:[%s20553_s12 + $0x128] sm:$0xff] }
0x109a   :  { %9124 = vmatprep.subr.mxu0 %v18732_v25  ;;  %22069 = vst [vmem:[#allocation505_spill] sm:$0xff] %v18750_v3  ;;  %v18756_v25 = vld [vmem:[%s20553_s12 + $0x1a0] sm:$0xff] }
0x109b   :  { %9125 = vmatpush3.msra.mxu0 %v18738_v26  ;;  %22070 = vst [vmem:[#allocation506_spill] sm:$0xff] %v18756_v25  ;;  %v18762_v26 = vld [vmem:[%s20553_s12 + $0x120] sm:$0xff] }
0x109c   :  { %9126 = vmatprep.subr.mxu0 %v18744_v42  ;;  %22071 = vst [vmem:[#allocation507_spill] sm:$0xff] %v18762_v26  ;;  %v18768_v42 = vld [vmem:[%s20553_s12 + $0x198] sm:$0xff] }
0x109d   :  { %9127 = vmatpush3.msra.mxu0 %v18750_v3  ;;  %22072 = vst [vmem:[#allocation508_spill] sm:$0xff] %v18768_v42  ;;  %v18774_v3 = vld [vmem:[%s20553_s12 + $0x118] sm:$0xff] }
0x109e   :  { %9128 = vmatprep.subr.mxu0 %v18756_v25  ;;  %22073 = vst [vmem:[#allocation509_spill] sm:$0xff] %v18774_v3  ;;  %v18780_v25 = vld [vmem:[%s20553_s12 + $0x190] sm:$0xff] }
0x109f   :  { %9129 = vmatpush3.msra.mxu0 %v18762_v26  ;;  %22074 = vst [vmem:[#allocation510_spill] sm:$0xff] %v18780_v25  ;;  %v18786_v26 = vld [vmem:[%s20553_s12 + $0x110] sm:$0xff] }
0x10a0   :  { %9130 = vmatprep.subr.mxu0 %v18768_v42  ;;  %22075 = vst [vmem:[#allocation511_spill] sm:$0xff] %v18786_v26  ;;  %v18792_v42 = vld [vmem:[%s20553_s12 + $0x188] sm:$0xff] }
0x10a1   :  { %9131 = vmatpush3.msra.mxu0 %v18774_v3  ;;  %22076 = vst [vmem:[#allocation512_spill] sm:$0xff] %v18792_v42  ;;  %v18798_v3 = vld [vmem:[%s20553_s12 + $0x108] sm:$0xff] }
0x10a2   :  { %9132 = vmatprep.subr.mxu0 %v18780_v25  ;;  %22077 = vst [vmem:[#allocation513_spill] sm:$0xff] %v18798_v3  ;;  %v18804_v25 = vld [vmem:[%s20553_s12 + $0x180] sm:$0xff] }
0x10a3   :  { %9133 = vmatpush3.msra.mxu0 %v18786_v26  ;;  %22078 = vst [vmem:[#allocation514_spill] sm:$0xff] %v18804_v25  ;;  %v18810_v26 = vld [vmem:[%s20553_s12 + $0x100] sm:$0xff] }
0x10a4   :  { %9134 = vmatprep.subr.mxu0 %v18792_v42  ;;  %22079 = vst [vmem:[#allocation515_spill] sm:$0xff] %v18810_v26  ;;  %v18816_v42 = vld [vmem:[%s20553_s12 + $0x3f8] sm:$0xff] }
0x10a5   :  { %9135 = vmatpush3.msra.mxu0 %v18798_v3  ;;  %22080 = vst [vmem:[#allocation516_spill] sm:$0xff] %v18816_v42 }
0x10a6   :  { %9136 = vmatprep.subr.mxu0 %v18804_v25 }
0x10a7   :  { %9137 = vmatpush3.msra.mxu0 %v18810_v26 }
0x10a8   :  { %9176 = vmatprep.subr.mxu0 %v18816_v42 }
0x1106   :  { %v5726_v3 = vpop.f32.mrf.mxu0  ;;  %v5797_v62 = vpop.f32.mrf.mxu1 }
0x1107   :  { %v5727_v10 = vadd.f32 %v5726_v3, %v16997_v37  ;;  %v5798_v25 = vadd.f32 %v5797_v62, %v17000_v61 }
0x1108   :  { %v5728_v15 = vpop.f32.mrf.mxu0  ;;  %v5799_v27 = vpop.f32.mrf.mxu1 }
0x1109   :  { %10984 = vtanh.f32 %v5727_v10  ;;  %v5729_v48 = vadd.f32 %v5728_v15, %v17005_v45  ;;  %v5800_v26 = vadd.f32 %v5799_v27, %v17008_v51  ;;  %v18829_v15 = vld [vmem:[%s20553_s12 + $0x278] sm:$0xff]  ;;  %v18871_v27 = vld [vmem:[%s20553_s12 + $0x3e8] sm:$0xff] }
0x110a   :  { %10986 = vtanh.f32 %v5798_v25  ;;  %v18877_v10 = vld [vmem:[%s20553_s12 + $0x268] sm:$0xff] }
0x110b   :  { %10988 = vtanh.f32 %v5729_v48  ;;  %v18865_v48 = vld [vmem:[%s20553_s12 + $0x2e8] sm:$0xff] }
0x110c   :  { %10990 = vtanh.f32 %v5800_v26  ;;  %v22097_v25 = vld [vmem:[#allocation287_spill] sm:$0xff]  ;;  %v22098_v26 = vld [vmem:[#allocation288_spill] sm:$0xff] }
0x1116   :  { %v10985_v12 = vpop.eup %10984 }
0x1117   :  { %v10987_v17 = vpop.eup %10986  ;;  %v6023_v16 = vmul.f32 0.0, %v10985_v12  ;;  %v18859_v12 = vld [vmem:[%s20553_s12 + $0x370] sm:$0xff] }
0x1118   :  { %v10989_v59 = vpop.eup %10988  ;;  %v6025_v62 = vmul.f32 %v10987_v17, %v16513_v13  ;;  %v18853_v17 = vld [vmem:[%s20553_s12 + $0x270] sm:$0xff] }
0x1119   :  { %v10991_v42 = vpop.eup %10990  ;;  %v6024_v63 = vmul.f32 %v10989_v59, %v16509_v8  ;;  %v18835_v59 = vld [vmem:[%s20553_s12 + $0x378] sm:$0xff] }
0x111a   :  { %v6026_v3 = vmul.f32 %v10991_v42, %v16986_v9 }
0x111b   :  { %6096 = vmatprep.mubr.f32.mxu1 %v6024_v63  ;;  %v18841_v63 = vld [vmem:[%s20553_s12 + $0x2f0] sm:$0xff] }
0x111c   :  { %6166 = vmatprep.mubr.f32.mxu0 %v6026_v3  ;;  %6097 = vmatmul.mubr.f32.vlgmr.msra.gmra.mxu1 %v6023_v16  ;;  %v18847_v16 = vld [vmem:[%s20553_s12 + $0x3f0] sm:$0xff] }
0x111d   :  { %6167 = vmatmul.mubr.f32.vlgmr.msra.gmra.mxu0 %v6025_v62  ;;  %9142 = vmatpush3.msra.mxu1 %v18829_v15  ;;  %v22099_v3 = vld [vmem:[#allocation289_spill] sm:$0xff] }
0x111e   :  { %9177 = vmatpush3.msra.mxu0 %v18835_v59  ;;  %9143 = vmatprep.subr.mxu1 %v18841_v63 }
0x111f   :  { %9178 = vmatprep.subr.mxu0 %v18847_v16  ;;  %9144 = vmatpush3.msra.mxu1 %v18853_v17 }
0x1120   :  { %9179 = vmatpush3.msra.mxu0 %v18859_v12  ;;  %9145 = vmatprep.subr.mxu1 %v18865_v48 }
0x1121   :  { %9180 = vmatprep.subr.mxu0 %v18871_v27  ;;  %9146 = vmatpush3.msra.mxu1 %v18877_v10 }
0x1122   :  { %9181 = vmatpush3.msra.mxu0 %v17047_v24  ;;  %9147 = vmatprep.subr.mxu1 %v17052_v1 }
0x1123   :  { %9182 = vmatprep.subr.mxu0 %v17057_v28  ;;  %9148 = vmatpush3.msra.mxu1 %v17062_v31 }
0x1124   :  { %9183 = vmatpush3.msra.mxu0 %v17069_v40  ;;  %9149 = vmatprep.subr.mxu1 %v17074_v54 }
0x1125   :  { %9184 = vmatprep.subr.mxu0 %v17081_v2  ;;  %9150 = vmatpush3.msra.mxu1 %v17086_v20  ;;  %v22081_v20 = vld [vmem:[#allocation271_spill] sm:$0xff] }
0x1126   :  { %9185 = vmatpush3.msra.mxu0 %v17095_v23  ;;  %9151 = vmatprep.subr.mxu1 %v17100_v38  ;;  %v22082_v23 = vld [vmem:[#allocation272_spill] sm:$0xff]  ;;  %v22083_v38 = vld [vmem:[#allocation273_spill] sm:$0xff] }
0x1127   :  { %v5868_v42 = vpop.f32.mrf.mxu0  ;;  %v5939_v24 = vpop.f32.mrf.mxu1  ;;  %9186 = vmatprep.subr.mxu0 %v17113_v4  ;;  %9152 = vmatpush3.msra.mxu1 %v17118_v52  ;;  %v22084_v4 = vld [vmem:[#allocation274_spill] sm:$0xff]  ;;  %v22085_v52 = vld [vmem:[#allocation275_spill] sm:$0xff] }
0x1128   :  { %v5869_v1 = vadd.f32 %v5868_v42, %v17105_v11  ;;  %v5940_v28 = vadd.f32 %v5939_v24, %v17108_v50  ;;  %9187 = vmatpush3.msra.mxu0 %v17125_v6  ;;  %9153 = vmatprep.subr.mxu1 %v17130_v7  ;;  %v22086_v6 = vld [vmem:[#allocation276_spill] sm:$0xff]  ;;  %v22087_v7 = vld [vmem:[#allocation277_spill] sm:$0xff]  ;;  %v22100_v42 = vld [vmem:[#allocation290_spill] sm:$0xff] }
0x1129   :  { %v5870_v31 = vpop.f32.mrf.mxu0  ;;  %v5941_v40 = vpop.f32.mrf.mxu1  ;;  %9188 = vmatprep.subr.mxu0 %v17143_v55  ;;  %9154 = vmatpush3.msra.mxu1 %v17148_v46  ;;  %v22088_v55 = vld [vmem:[#allocation278_spill] sm:$0xff]  ;;  %v22089_v46 = vld [vmem:[#allocation279_spill] sm:$0xff] }
0x112a   :  { %10992 = vtanh.f32 %v5869_v1  ;;  %v5871_v54 = vadd.f32 %v5870_v31, %v17135_v32  ;;  %v5942_v2 = vadd.f32 %v5941_v40, %v17138_v60  ;;  %9189 = vmatpush3.msra.mxu0 %v17155_v41  ;;  %9155 = vmatprep.subr.mxu1 %v17160_v47  ;;  %v22090_v41 = vld [vmem:[#allocation280_spill] sm:$0xff]  ;;  %v22091_v47 = vld [vmem:[#allocation281_spill] sm:$0xff]  ;;  %v22101_v24 = vld [vmem:[#allocation291_spill] sm:$0xff] }
0x112b   :  { %10994 = vtanh.f32 %v5940_v28  ;;  %9190 = vmatprep.subr.mxu0 %v17169_v33  ;;  %9156 = vmatpush3.msra.mxu1 %v17174_v22  ;;  %v22092_v33 = vld [vmem:[#allocation282_spill] sm:$0xff]  ;;  %v22093_v22 = vld [vmem:[#allocation283_spill] sm:$0xff]  ;;  %v22102_v28 = vld [vmem:[#allocation292_spill] sm:$0xff] }
0x112c   :  { %10996 = vtanh.f32 %v5871_v54  ;;  %9191 = vmatpush3.msra.mxu0 %v17181_v36  ;;  %9157 = vmatprep.subr.mxu1 %v17186_v21  ;;  %v22094_v36 = vld [vmem:[#allocation284_spill] sm:$0xff]  ;;  %v22095_v21 = vld [vmem:[#allocation285_spill] sm:$0xff]  ;;  %v22104_v54 = vld [vmem:[#allocation294_spill] sm:$0xff] }
0x112d   :  { %10998 = vtanh.f32 %v5942_v2  ;;  %9192 = vmatprep.subr.mxu0 %v17195_v53  ;;  %9158 = vmatpush3.msra.mxu1 %v22081_v20  ;;  %v22096_v53 = vld [vmem:[#allocation286_spill] sm:$0xff]  ;;  %v22103_v31 = vld [vmem:[#allocation293_spill] sm:$0xff]  ;;  %v22105_v2 = vld [vmem:[#allocation295_spill] sm:$0xff] }
0x112e   :  { %9193 = vmatpush3.msra.mxu0 %v22082_v23  ;;  %9159 = vmatprep.subr.mxu1 %v22083_v38  ;;  %v22106_v23 = vld [vmem:[#allocation296_spill] sm:$0xff] }
0x112f   :  { %9194 = vmatprep.subr.mxu0 %v22084_v4  ;;  %9160 = vmatpush3.msra.mxu1 %v22085_v52 }
0x1130   :  { %9195 = vmatpush3.msra.mxu0 %v22086_v6  ;;  %9161 = vmatprep.subr.mxu1 %v22087_v7  ;;  %v22107_v6 = vld [vmem:[#allocation270_spill] sm:$0xff] }
0x1131   :  { %9196 = vmatprep.subr.mxu0 %v22088_v55  ;;  %9162 = vmatpush3.msra.mxu1 %v22089_v46  ;;  %v22112_v55 = vld [vmem:[#allocation15_spill] sm:$0xff]  ;;  %v22113_v46 = vld [vmem:[#allocation300_spill] sm:$0xff] }
0x1132   :  { %9197 = vmatpush3.msra.mxu0 %v22090_v41  ;;  %9163 = vmatprep.subr.mxu1 %v22091_v47  ;;  %v22114_v41 = vld [vmem:[#allocation14_spill] sm:$0xff]  ;;  %v22115_v47 = vld [vmem:[#allocation301_spill] sm:$0xff] }
0x1133   :  { %9198 = vmatprep.subr.mxu0 %v22092_v33  ;;  %9164 = vmatpush3.msra.mxu1 %v22093_v22  ;;  %v22116_v33 = vld [vmem:[#allocation13_spill] sm:$0xff] }
0x1134   :  { %9199 = vmatpush3.msra.mxu0 %v22094_v36  ;;  %9165 = vmatprep.subr.mxu1 %v22095_v21  ;;  %v22117_v36 = vld [vmem:[#allocation19_spill] sm:$0xff] }
0x1135   :  { %9200 = vmatprep.subr.mxu0 %v22096_v53  ;;  %9166 = vmatpush3.msra.mxu1 %v22097_v25  ;;  %v22118_v53 = vld [vmem:[#allocation302_spill] sm:$0xff] }
0x1136   :  { %9201 = vmatpush3.msra.mxu0 %v22098_v26  ;;  %9167 = vmatprep.subr.mxu1 %v22099_v3  ;;  %v22119_v25 = vld [vmem:[#allocation12_spill] sm:$0xff]  ;;  %v22120_v3 = vld [vmem:[#allocation303_spill] sm:$0xff] }
0x1137   :  { %v10993_v62 = vpop.eup %10992  ;;  %9202 = vmatprep.subr.mxu0 %v22100_v42  ;;  %9168 = vmatpush3.msra.mxu1 %v22101_v24  ;;  %v22122_v42 = vld [vmem:[#allocation304_spill] sm:$0xff] }
0x1138   :  { %v10995_v1 = vpop.eup %10994  ;;  %9203 = vmatpush3.msra.mxu0 %v22102_v28  ;;  %9169 = vmatprep.subr.mxu1 %v22103_v31  ;;  %v6027_v52 = vmul.f32 %v10993_v62, %v16988_v43  ;;  %v22121_v62 = vld [vmem:[#allocation11_spill] sm:$0xff]  ;;  %v22123_v24 = vld [vmem:[#allocation10_spill] sm:$0xff]  ;;  %v22125_v28 = vld [vmem:[#allocation9_spill] sm:$0xff] }
0x1139   :  { %v10997_v40 = vpop.eup %10996  ;;  %9204 = vmatprep.subr.mxu0 %v22104_v54  ;;  %9170 = vmatpush3.msra.mxu1 %v22105_v2  ;;  %v6029_v7 = vmul.f32 %v10995_v1, %v22107_v6  ;;  %v22124_v1 = vld [vmem:[#allocation305_spill] sm:$0xff]  ;;  %v22126_v31 = vld [vmem:[#allocation306_spill] sm:$0xff]  ;;  %v22128_v54 = vld [vmem:[#allocation307_spill] sm:$0xff] }
0x113a   :  { %v10999_v20 = vpop.eup %10998  ;;  %9205 = vmatpush3.msra.mxu0 %v22106_v23  ;;  %9171 = vmatprep.subr.mxu1 %v17356_v58  ;;  %v6028_v38 = vmul.f32 %v10997_v40, %v16518_v14  ;;  %v22108_v58 = vld [vmem:[#allocation297_spill] sm:$0xff]  ;;  %v22127_v40 = vld [vmem:[#allocation308_spill] sm:$0xff] }
0x113b   :  { %9206 = vmatprep.subr.mxu0 %v17363_v44  ;;  %9172 = vmatpush3.msra.mxu1 %v17368_v49  ;;  %v6030_v4 = vmul.f32 %v10999_v20, %v16991_v57  ;;  %v22109_v44 = vld [vmem:[#allocation298_spill] sm:$0xff]  ;;  %v22129_v2 = vld [vmem:[#allocation309_spill] sm:$0xff] }
0x113c   :  { %6236 = vmatprep.mubr.f32.mxu1 %v6028_v38  ;;  %9207 = vmatpush3.msra.mxu0 %v17375_v0  ;;  %v22110_v49 = vld [vmem:[#allocation16_spill] sm:$0xff]  ;;  %v22111_v0 = vld [vmem:[#allocation299_spill] sm:$0xff] }
0x113d   :  { %6306 = vmatprep.mubr.f32.mxu0 %v6030_v4  ;;  %6237 = vmatmul.mubr.f32.vlgmr.msra.gmra.mxu1 %v6027_v52  ;;  %v22130_v20 = vld [vmem:[#allocation310_spill] sm:$0xff]  ;;  %v22131_v38 = vld [vmem:[#allocation311_spill] sm:$0xff]  ;;  %v22132_v4 = vld [vmem:[#allocation312_spill] sm:$0xff] }
0x113e   :  { %6307 = vmatmul.mubr.f32.vlgmr.msra.gmra.mxu0 %v6029_v7  ;;  %10114 = vmatprep.subr.mxu1 %v21819_v19  ;;  %v22133_v52 = vld [vmem:[#allocation18_spill] sm:$0xff] }
0x113f   :  { %10115 = vmatpush3.msra.mxu1 %v22108_v58  ;;  %10146 = vmatprep.mubr.msk.f32.mxu1 %vm11608_vm2, %v21819_v19  ;;  %v22134_v58 = vld [vmem:[#allocation313_spill] sm:$0xff] }
0x1140   :  { %10116 = vmatprep.subr.mxu1 %v21819_v19  ;;  %10149 = vmatprep.subr.mxu0 %v21819_v19 }
0x1141   :  { %10117 = vmatpush3.msra.mxu1 %v22109_v44  ;;  %10150 = vmatpush3.msra.mxu0 %v22110_v49  ;;  %v22135_v44 = vld [vmem:[#allocation314_spill] sm:$0xff] }
0x1142   :  { %10118 = vmatprep.subr.mxu1 %v21819_v19  ;;  %10151 = vmatprep.subr.mxu0 %v21819_v19 }
0x1143   :  { %10119 = vmatpush3.msra.mxu1 %v22111_v0  ;;  %10152 = vmatpush3.msra.mxu0 %v22112_v55  ;;  %v22136_v0 = vld [vmem:[#allocation315_spill] sm:$0xff] }
0x1144   :  { %10120 = vmatprep.subr.mxu1 %v21819_v19  ;;  %10153 = vmatprep.subr.mxu0 %v21819_v19 }
0x1145   :  { %10121 = vmatpush3.msra.mxu1 %v22113_v46  ;;  %10154 = vmatpush3.msra.mxu0 %v22114_v41  ;;  %v22137_v46 = vld [vmem:[#allocation316_spill] sm:$0xff] }
0x1146   :  { %10122 = vmatprep.subr.mxu1 %v21819_v19  ;;  %10155 = vmatprep.subr.mxu0 %v21819_v19 }
0x1147   :  { %10123 = vmatpush3.msra.mxu1 %v22115_v47  ;;  %10156 = vmatpush3.msra.mxu0 %v22116_v33  ;;  %v22138_v47 = vld [vmem:[#allocation317_spill] sm:$0xff] }
0x1148   :  { %v6010_v22 = vpop.f32.mrf.mxu0  ;;  %10124 = vmatprep.subr.mxu1 %v21819_v19  ;;  %10157 = vmatprep.subr.mxu0 %v21819_v19 }
0x1149   :  { %v6011_v21 = vadd.f32 %v6010_v22, %v22117_v36  ;;  %10125 = vmatpush3.msra.mxu1 %v22118_v53  ;;  %10158 = vmatpush3.msra.mxu0 %v22119_v25  ;;  %v22139_v22 = vld [vmem:[#allocation318_spill] sm:$0xff]  ;;  %v22141_v53 = vld [vmem:[#allocation320_spill] sm:$0xff] }
0x114a   :  { %v10113_v26 = vpop.f32.mrf.mxu0  ;;  %10126 = vmatprep.subr.mxu1 %v21819_v19  ;;  %10159 = vmatprep.subr.mxu0 %v21819_v19 }
0x114b   :  { %10127 = vmatpush3.msra.mxu1 %v22120_v3  ;;  %10160 = vmatpush3.msra.mxu0 %v22121_v62  ;;  %11000 = vtanh.f32 %v6011_v21  ;;  %v22140_v21 = vld [vmem:[#allocation319_spill] sm:$0xff]  ;;  %v22142_v26 = vld [vmem:[#allocation321_spill] sm:$0xff]  ;;  %v22143_v3 = vld [vmem:[#allocation322_spill] sm:$0xff] }
0x114c   :  { %10128 = vmatprep.subr.mxu1 %v21819_v19  ;;  %10161 = vmatprep.subr.mxu0 %v21819_v19 }
0x114d   :  { %10129 = vmatpush3.msra.mxu1 %v22122_v42  ;;  %10162 = vmatpush3.msra.mxu0 %v22123_v24  ;;  %v22144_v42 = vld [vmem:[#allocation323_spill] sm:$0xff] }
0x114e   :  { %10130 = vmatprep.subr.mxu1 %v21819_v19  ;;  %10163 = vmatprep.subr.mxu0 %v21819_v19 }
0x114f   :  { %10131 = vmatpush3.msra.mxu1 %v22124_v1  ;;  %10164 = vmatpush3.msra.mxu0 %v22125_v28  ;;  %v22145_v1 = vld [vmem:[#allocation324_spill] sm:$0xff] }
0x1150   :  { %10132 = vmatprep.subr.mxu1 %v21819_v19  ;;  %10165 = vmatprep.mubr.msk.f32.mxu0 %vm11608_vm2, %v21819_v19 }
0x1151   :  { %10133 = vmatpush3.msra.mxu1 %v22126_v31  ;;  %6529 = vmatprep.subr.mxu0 %v22127_v40  ;;  %v22146_v31 = vld [vmem:[#allocation325_spill] sm:$0xff]  ;;  %v22147_v40 = vld [vmem:[#allocation326_spill] sm:$0xff] }
0x1152   :  { %10134 = vmatprep.subr.mxu1 %v21819_v19 }
0x1153   :  { %10135 = vmatpush3.msra.mxu1 %v22128_v54  ;;  %v22148_v54 = vld [vmem:[#allocation327_spill] sm:$0xff] }
0x1154   :  { %10136 = vmatprep.subr.mxu1 %v21819_v19 }
0x1155   :  { %10137 = vmatpush3.msra.mxu1 %v22129_v2  ;;  %v22149_v2 = vld [vmem:[#allocation328_spill] sm:$0xff] }
0x1156   :  { %10138 = vmatprep.subr.mxu1 %v21819_v19 }
0x1157   :  { %10139 = vmatpush3.msra.mxu1 %v22130_v20  ;;  %v22150_v20 = vld [vmem:[#allocation329_spill] sm:$0xff] }
0x1158   :  { %10140 = vmatprep.subr.mxu1 %v21819_v19  ;;  %v11001_v23 = vpop.eup %11000 }
0x1159   :  { %10141 = vmatpush3.msra.mxu1 %v22131_v38  ;;  %v6031_v7 = vmul.f32 %v11001_v23, %v22133_v52  ;;  %v22151_v23 = vld [vmem:[#allocation330_spill] sm:$0xff]  ;;  %v22152_v38 = vld [vmem:[#allocation331_spill] sm:$0xff] }
0x115a   :  { %10142 = vmatprep.subr.mxu1 %v21819_v19 }
0x115b   :  { %10143 = vmatpush3.msra.mxu1 %v22132_v4  ;;  %v22153_v4 = vld [vmem:[#allocation332_spill] sm:$0xff] }
0x115c   :  { %10144 = vmatprep.subr.mxu1 %v21819_v19 }
0x115d   :  { %10145 = vmatpush3.msra.mxu1 %v22134_v58  ;;  %v22155_v58 = vld [vmem:[#allocation334_spill] sm:$0xff] }
0x115e   :  { %10147 = vmatmul.mubr.f32.vlgmr.msra.gmra.mxu1 %v6031_v7  ;;  %6458 = vmatprep.subr.mxu1 %v22135_v44  ;;  %v22154_v7 = vld [vmem:[#allocation333_spill] sm:$0xff]  ;;  %v22156_v44 = vld [vmem:[#allocation335_spill] sm:$0xff] }
0x115f   :  { %6459 = vmatpush1.msra.mxu1 %v22136_v0  ;;  %6522 = vmatprep.mubr.f32.mxu1 %v21819_v19  ;;  %v22157_v0 = vld [vmem:[#allocation336_spill] sm:$0xff] }
0x1160   :  { %6460 = vmatprep.subr.mxu1 %v22137_v46  ;;  %v22158_v46 = vld [vmem:[#allocation337_spill] sm:$0xff] }
0x1161   :  { %6461 = vmatpush1.msra.mxu1 %v22138_v47  ;;  %v22159_v47 = vld [vmem:[#allocation338_spill] sm:$0xff] }
0x1162   :  { %6462 = vmatprep.subr.mxu1 %v22139_v22  ;;  %v22160_v22 = vld [vmem:[#allocation339_spill] sm:$0xff] }
0x1163   :  { %6463 = vmatpush1.msra.mxu1 %v22140_v21  ;;  %v22161_v21 = vld [vmem:[#allocation340_spill] sm:$0xff] }
0x1164   :  { %6464 = vmatprep.subr.mxu1 %v22141_v53  ;;  %v22162_v53 = vld [vmem:[#allocation341_spill] sm:$0xff] }
0x1165   :  { %6465 = vmatpush1.msra.mxu1 %v22142_v26  ;;  %v22163_v26 = vld [vmem:[#allocation342_spill] sm:$0xff] }
0x1166   :  { %6466 = vmatprep.subr.mxu1 %v22143_v3  ;;  %v22164_v3 = vld [vmem:[#allocation343_spill] sm:$0xff] }
0x1167   :  { %6467 = vmatpush1.msra.mxu1 %v22144_v42  ;;  %v22165_v42 = vld [vmem:[#allocation344_spill] sm:$0xff] }
0x1168   :  { %6468 = vmatprep.subr.mxu1 %v22145_v1  ;;  %v22166_v1 = vld [vmem:[#allocation345_spill] sm:$0xff] }
0x1169   :  { %6469 = vmatpush1.msra.mxu1 %v22146_v31  ;;  %v22167_v31 = vld [vmem:[#allocation346_spill] sm:$0xff] }
0x116a   :  { %6470 = vmatprep.subr.mxu1 %v22147_v40 }
0x116b   :  { %6471 = vmatpush1.msra.mxu1 %v22148_v54 }
0x116c   :  { %6472 = vmatprep.subr.mxu1 %v22149_v2 }
0x116d   :  { %6473 = vmatpush1.msra.mxu1 %v22150_v20 }
0x116e   :  { %6474 = vmatprep.subr.mxu1 %v22151_v23 }
0x116f   :  { %6475 = vmatpush1.msra.mxu1 %v22152_v38 }
0x1170   :  { %6476 = vmatprep.subr.mxu1 %v22153_v4 }
0x1171   :  { %6477 = vmatpush1.msra.mxu1 %v22154_v7 }
0x1172   :  { %6478 = vmatprep.subr.mxu1 %v22155_v58 }
0x1173   :  { %6479 = vmatpush1.msra.mxu1 %v22156_v44 }
0x1174   :  { %6480 = vmatprep.subr.mxu1 %v22157_v0 }
0x1175   :  { %6481 = vmatpush1.msra.mxu1 %v22158_v46 }
0x1176   :  { %6482 = vmatprep.subr.mxu1 %v22159_v47 }
0x1177   :  { %6483 = vmatpush1.msra.mxu1 %v22160_v22 }
0x1178   :  { %6484 = vmatprep.subr.mxu1 %v22161_v21 }
0x1179   :  { %6485 = vmatpush1.msra.mxu1 %v22162_v53 }
0x117a   :  { %6486 = vmatprep.subr.mxu1 %v22163_v26 }
0x117b   :  { %6487 = vmatpush1.msra.mxu1 %v22164_v3 }
0x117c   :  { %6488 = vmatprep.subr.mxu1 %v22165_v42 }
0x117d   :  { %6489 = vmatpush1.msra.mxu1 %v22166_v1 }
0x117e   :  { %6600 = vmatprep.subr.mxu1 %v22167_v31  ;;  %v22169_v31 = vld [vmem:[#allocation348_spill] sm:$0xff] }
0x11dc   :  { %v9103_v40 = vpop.f32.mrf.mxu1 }
0x11dd   :  { %v9138_v54 = vpop.f32.mrf.mxu0 }
0x11de   :  { %v9104_v2 = vpop.f32.mrf.mxu1 }
0x11df   :  { %v9139_v23 = vpop.f32.mrf.mxu0  ;;  %v9105_v4 = vadd.f32 %v9104_v2, %v9103_v40  ;;  %v22170_v40 = vld [vmem:[#allocation349_spill] sm:$0xff]  ;;  %v22173_v2 = vld [vmem:[#allocation352_spill] sm:$0xff] }
0x11e0   :  { %v9140_v7 = vadd.f32 %v9139_v23, %v9138_v54  ;;  %v22171_v54 = vld [vmem:[#allocation350_spill] sm:$0xff]  ;;  %v22181_v23 = vld [vmem:[#allocation360_spill] sm:$0xff] }
0x11e2   :  { %v6169_v0 = vadd.f32 %v9140_v7, %v9105_v4  ;;  %v22183_v4 = vld [vmem:[#allocation362_spill] sm:$0xff]  ;;  %v22184_v7 = vld [vmem:[#allocation363_spill] sm:$0xff] }
0x11fd   :  { %v9173_v20 = vpop.f32.mrf.mxu1 }
0x11fe   :  { %v9208_v58 = vpop.f32.mrf.mxu0 }
0x11ff   :  { %v9174_v38 = vpop.f32.mrf.mxu1 }
0x1200   :  { %v9175_v44 = vadd.f32 %v9174_v38, %v9173_v20  ;;  %v9209_v46 = vpop.f32.mrf.mxu0  ;;  %v22180_v20 = vld [vmem:[#allocation359_spill] sm:$0xff]  ;;  %v22182_v38 = vld [vmem:[#allocation361_spill] sm:$0xff] }
0x1201   :  { %v9210_v22 = vadd.f32 %v9209_v46, %v9208_v58  ;;  %v22185_v58 = vld [vmem:[#allocation364_spill] sm:$0xff]  ;;  %v22188_v46 = vld [vmem:[#allocation367_spill] sm:$0xff] }
0x1202   :  { %v6239_v47 = vadd.f32 %v9175_v44, %v6169_v0  ;;  %v22186_v44 = vld [vmem:[#allocation365_spill] sm:$0xff]  ;;  %v22187_v0 = vld [vmem:[#allocation366_spill] sm:$0xff] }
0x1204   :  { %v6309_v21 = vadd.f32 %v9210_v22, %v6239_v47  ;;  %v22189_v47 = vld [vmem:[#allocation368_spill] sm:$0xff]  ;;  %v22190_v22 = vld [vmem:[#allocation369_spill] sm:$0xff] }
0x121e   :  { %v6378_v53 = vpop.f32.mrf.mxu1 }
0x121f   :  { %v19030_v26 = vadd.f32 %v6378_v53, %v6309_v21  ;;  %v22191_v21 = vld [vmem:[#allocation370_spill] sm:$0xff]  ;;  %v22192_v53 = vld [vmem:[#allocation371_spill] sm:$0xff] }
0x1220   :  { %v10148_v3 = vpop.f32.mrf.mxu1 }
0x1221   :  { %22168 = vst [vmem:[#allocation271_spill] sm:$0xff] %v19030_v26  ;;  %v6382_v42 = vmul.f32 0.5, %v19030_v26  ;;  %v22193_v3 = vld [vmem:[#allocation372_spill] sm:$0xff]  ;;  %v19473_v26 = vld [vmem:[%s20553_s12 + $0x220] sm:$0xff] }
0x1222   :  { %22347 = vst [vmem:[#allocation280_spill] sm:$0xff] %v19473_v26 }
0x1223   :  { %v6383_v1 = vadd.f32 %v11605_v30, %v6382_v42 }
0x1225   :  { %10166 = vmatmul.mubr.msk.f32.vlgmr.msra.gmra.mxu0 %vm4452_vm9, %v6383_v1  ;;  %v22194_v1 = vld [vmem:[#allocation17_spill] sm:$0xff] }
0x1226   :  { %6530 = vmatpush1.msra.mxu0 %v17737_v18  ;;  %6593 = vmatprep.mubr.f32.mxu0 %v21819_v19  ;;  %v22172_v18 = vld [vmem:[#allocation351_spill] sm:$0xff] }
0x1227   :  { %6531 = vmatprep.subr.mxu0 %v17744_v34  ;;  %v22174_v34 = vld [vmem:[#allocation353_spill] sm:$0xff] }
0x1228   :  { %6532 = vmatpush1.msra.mxu0 %v17750_v56  ;;  %v22175_v56 = vld [vmem:[#allocation354_spill] sm:$0xff] }
0x1229   :  { %6533 = vmatprep.subr.mxu0 %v17756_v5  ;;  %v22176_v5 = vld [vmem:[#allocation355_spill] sm:$0xff] }
0x122a   :  { %6534 = vmatpush1.msra.mxu0 %v17762_v39  ;;  %v22177_v39 = vld [vmem:[#allocation356_spill] sm:$0xff] }
0x122b   :  { %6535 = vmatprep.subr.mxu0 %v17768_v29  ;;  %v22178_v29 = vld [vmem:[#allocation357_spill] sm:$0xff] }
0x122c   :  { %6536 = vmatpush1.msra.mxu0 %v17774_v35  ;;  %v22179_v35 = vld [vmem:[#allocation358_spill] sm:$0xff] }
0x122d   :  { %6537 = vmatprep.subr.mxu0 %v22169_v31 }
0x122e   :  { %6538 = vmatpush1.msra.mxu0 %v22170_v40 }
0x122f   :  { %6539 = vmatprep.subr.mxu0 %v22171_v54 }
0x1230   :  { %6540 = vmatpush1.msra.mxu0 %v22172_v18  ;;  %v22195_v18 = vld [vmem:[#allocation373_spill] sm:$0xff] }
0x1231   :  { %6541 = vmatprep.subr.mxu0 %v22173_v2  ;;  %v22196_v2 = vld [vmem:[#allocation374_spill] sm:$0xff] }
0x1232   :  { %6542 = vmatpush1.msra.mxu0 %v22174_v34  ;;  %v22197_v34 = vld [vmem:[#allocation375_spill] sm:$0xff] }
0x1233   :  { %6543 = vmatprep.subr.mxu0 %v22175_v56  ;;  %v22198_v56 = vld [vmem:[#allocation376_spill] sm:$0xff] }
0x1234   :  { %6544 = vmatpush1.msra.mxu0 %v22176_v5  ;;  %v22199_v5 = vld [vmem:[#allocation377_spill] sm:$0xff] }
0x1235   :  { %6545 = vmatprep.subr.mxu0 %v22177_v39  ;;  %v22200_v39 = vld [vmem:[#allocation378_spill] sm:$0xff] }
0x1236   :  { %6546 = vmatpush1.msra.mxu0 %v22178_v29  ;;  %v22201_v29 = vld [vmem:[#allocation379_spill] sm:$0xff] }
0x1237   :  { %6547 = vmatprep.subr.mxu0 %v22179_v35  ;;  %v22202_v35 = vld [vmem:[#allocation380_spill] sm:$0xff] }
0x1238   :  { %6548 = vmatpush1.msra.mxu0 %v22180_v20  ;;  %v22203_v20 = vld [vmem:[#allocation381_spill] sm:$0xff] }
0x1239   :  { %6549 = vmatprep.subr.mxu0 %v22181_v23  ;;  %v22204_v23 = vld [vmem:[#allocation382_spill] sm:$0xff] }
0x123a   :  { %6550 = vmatpush1.msra.mxu0 %v22182_v38  ;;  %v22205_v38 = vld [vmem:[#allocation383_spill] sm:$0xff] }
0x123b   :  { %6551 = vmatprep.subr.mxu0 %v22183_v4  ;;  %v22206_v4 = vld [vmem:[#allocation384_spill] sm:$0xff] }
0x123c   :  { %6552 = vmatpush1.msra.mxu0 %v22184_v7  ;;  %v22207_v7 = vld [vmem:[#allocation385_spill] sm:$0xff] }
0x123d   :  { %6553 = vmatprep.subr.mxu0 %v22185_v58  ;;  %v22208_v58 = vld [vmem:[#allocation386_spill] sm:$0xff] }
0x123e   :  { %6554 = vmatpush1.msra.mxu0 %v22186_v44  ;;  %v22209_v44 = vld [vmem:[#allocation387_spill] sm:$0xff] }
0x123f   :  { %6555 = vmatprep.subr.mxu0 %v22187_v0  ;;  %v22210_v0 = vld [vmem:[#allocation388_spill] sm:$0xff] }
0x1240   :  { %6556 = vmatpush1.msra.mxu0 %v22188_v46  ;;  %v22211_v46 = vld [vmem:[#allocation389_spill] sm:$0xff] }
0x1241   :  { %6557 = vmatprep.subr.mxu0 %v22189_v47  ;;  %v22212_v47 = vld [vmem:[#allocation390_spill] sm:$0xff] }
0x1242   :  { %6558 = vmatpush1.msra.mxu0 %v22190_v22  ;;  %v22213_v22 = vld [vmem:[#allocation391_spill] sm:$0xff] }
0x1243   :  { %6559 = vmatprep.subr.mxu0 %v22191_v21  ;;  %v22214_v21 = vld [vmem:[#allocation392_spill] sm:$0xff] }
0x1244   :  { %6560 = vmatpush1.msra.mxu0 %v22192_v53  ;;  %v22215_v53 = vld [vmem:[#allocation393_spill] sm:$0xff] }
0x1245   :  { %6671 = vmatprep.subr.mxu0 %v22193_v3  ;;  %v22216_v3 = vld [vmem:[#allocation394_spill] sm:$0xff] }
0x12e5   :  { %v6453_v42 = vpop.f32.mrf.mxu0 }
0x12e6   :  { %v6454_v31 = vadd.f32 %v6453_v42, %v22194_v1  ;;  %v22217_v42 = vld [vmem:[#allocation395_spill] sm:$0xff] }
0x12e7   :  { %v10167_v40 = vpop.f32.mrf.mxu0 }
0x12e8   :  { %v19069_v54 = vmax.f32 %v6454_v31, 0.0  ;;  %v22218_v31 = vld [vmem:[#allocation396_spill] sm:$0xff]  ;;  %v22219_v40 = vld [vmem:[#allocation397_spill] sm:$0xff] }
0x12ea   :  { %6523 = vmatmul.mubr.f32.vlgmr.msra.gmra.mxu1 %v19069_v54  ;;  %6594 = vmatmul.mubr.f32.vlgmr.msra.gmra.mxu0 %v19069_v54 }
0x12eb   :  { %6601 = vmatpush1.msra.mxu1 %v22195_v18  ;;  %6672 = vmatpush1.msra.mxu0 %v22196_v2  ;;  %v22220_v18 = vld [vmem:[#allocation398_spill] sm:$0xff]  ;;  %v22221_v2 = vld [vmem:[#allocation399_spill] sm:$0xff] }
0x12ec   :  { %6602 = vmatprep.subr.mxu1 %v22197_v34  ;;  %6673 = vmatprep.subr.mxu0 %v22198_v56  ;;  %v22222_v34 = vld [vmem:[#allocation400_spill] sm:$0xff]  ;;  %v22223_v56 = vld [vmem:[#allocation401_spill] sm:$0xff] }
0x12ed   :  { %6603 = vmatpush1.msra.mxu1 %v22199_v5  ;;  %6674 = vmatpush1.msra.mxu0 %v22200_v39  ;;  %v22224_v5 = vld [vmem:[#allocation402_spill] sm:$0xff]  ;;  %v22225_v39 = vld [vmem:[#allocation403_spill] sm:$0xff] }
0x12ee   :  { %6604 = vmatprep.subr.mxu1 %v22201_v29  ;;  %6675 = vmatprep.subr.mxu0 %v22202_v35  ;;  %v22226_v29 = vld [vmem:[#allocation404_spill] sm:$0xff]  ;;  %v22227_v35 = vld [vmem:[#allocation405_spill] sm:$0xff] }
0x12ef   :  { %6605 = vmatpush1.msra.mxu1 %v22203_v20  ;;  %6676 = vmatpush1.msra.mxu0 %v22204_v23  ;;  %v22228_v20 = vld [vmem:[#allocation406_spill] sm:$0xff]  ;;  %v22229_v23 = vld [vmem:[#allocation407_spill] sm:$0xff] }
0x12f0   :  { %6606 = vmatprep.subr.mxu1 %v22205_v38  ;;  %6677 = vmatprep.subr.mxu0 %v22206_v4  ;;  %v22230_v38 = vld [vmem:[#allocation408_spill] sm:$0xff]  ;;  %v22231_v4 = vld [vmem:[#allocation409_spill] sm:$0xff] }
0x12f1   :  { %6607 = vmatpush1.msra.mxu1 %v22207_v7  ;;  %6678 = vmatpush1.msra.mxu0 %v22208_v58  ;;  %v22232_v7 = vld [vmem:[#allocation410_spill] sm:$0xff]  ;;  %v22233_v58 = vld [vmem:[#allocation411_spill] sm:$0xff] }
0x12f2   :  { %6608 = vmatprep.subr.mxu1 %v22209_v44  ;;  %6679 = vmatprep.subr.mxu0 %v22210_v0  ;;  %v22234_v44 = vld [vmem:[#allocation412_spill] sm:$0xff]  ;;  %v22235_v0 = vld [vmem:[#allocation413_spill] sm:$0xff] }
0x12f3   :  { %6609 = vmatpush1.msra.mxu1 %v22211_v46  ;;  %6680 = vmatpush1.msra.mxu0 %v22212_v47  ;;  %v22236_v46 = vld [vmem:[#allocation414_spill] sm:$0xff]  ;;  %v22237_v47 = vld [vmem:[#allocation415_spill] sm:$0xff] }
0x12f4   :  { %6610 = vmatprep.subr.mxu1 %v22213_v22  ;;  %6681 = vmatprep.subr.mxu0 %v22214_v21  ;;  %v22238_v22 = vld [vmem:[#allocation416_spill] sm:$0xff]  ;;  %v22239_v21 = vld [vmem:[#allocation417_spill] sm:$0xff] }
0x12f5   :  { %6611 = vmatpush1.msra.mxu1 %v22215_v53  ;;  %6682 = vmatpush1.msra.mxu0 %v22216_v3  ;;  %v22240_v53 = vld [vmem:[#allocation418_spill] sm:$0xff]  ;;  %v22241_v3 = vld [vmem:[#allocation419_spill] sm:$0xff] }
0x12f6   :  { %6612 = vmatprep.subr.mxu1 %v22217_v42  ;;  %6683 = vmatprep.subr.mxu0 %v22218_v31  ;;  %v22242_v42 = vld [vmem:[#allocation420_spill] sm:$0xff]  ;;  %v22243_v31 = vld [vmem:[#allocation421_spill] sm:$0xff] }
0x12f7   :  { %6613 = vmatpush1.msra.mxu1 %v22219_v40  ;;  %6684 = vmatpush1.msra.mxu0 %v22220_v18  ;;  %v22244_v40 = vld [vmem:[#allocation422_spill] sm:$0xff]  ;;  %v22245_v18 = vld [vmem:[#allocation423_spill] sm:$0xff] }
0x12f8   :  { %6614 = vmatprep.subr.mxu1 %v22221_v2  ;;  %6685 = vmatprep.subr.mxu0 %v22222_v34  ;;  %v22246_v2 = vld [vmem:[#allocation424_spill] sm:$0xff]  ;;  %v22247_v34 = vld [vmem:[#allocation425_spill] sm:$0xff] }
0x12f9   :  { %6615 = vmatpush1.msra.mxu1 %v22223_v56  ;;  %6686 = vmatpush1.msra.mxu0 %v22224_v5  ;;  %v22248_v56 = vld [vmem:[#allocation426_spill] sm:$0xff]  ;;  %v22249_v5 = vld [vmem:[#allocation427_spill] sm:$0xff] }
0x12fa   :  { %6616 = vmatprep.subr.mxu1 %v22225_v39  ;;  %6687 = vmatprep.subr.mxu0 %v22226_v29  ;;  %v22250_v39 = vld [vmem:[#allocation428_spill] sm:$0xff]  ;;  %v22251_v29 = vld [vmem:[#allocation429_spill] sm:$0xff] }
0x12fb   :  { %6617 = vmatpush1.msra.mxu1 %v22227_v35  ;;  %6688 = vmatpush1.msra.mxu0 %v22228_v20  ;;  %v22252_v35 = vld [vmem:[#allocation430_spill] sm:$0xff]  ;;  %v22253_v20 = vld [vmem:[#allocation431_spill] sm:$0xff] }
0x12fc   :  { %6618 = vmatprep.subr.mxu1 %v22229_v23  ;;  %6689 = vmatprep.subr.mxu0 %v22230_v38  ;;  %v22254_v23 = vld [vmem:[#allocation432_spill] sm:$0xff]  ;;  %v22255_v38 = vld [vmem:[#allocation433_spill] sm:$0xff] }
0x12fd   :  { %6619 = vmatpush1.msra.mxu1 %v22231_v4  ;;  %6690 = vmatpush1.msra.mxu0 %v22232_v7  ;;  %v22256_v4 = vld [vmem:[#allocation434_spill] sm:$0xff]  ;;  %v22257_v7 = vld [vmem:[#allocation435_spill] sm:$0xff] }
0x12fe   :  { %6620 = vmatprep.subr.mxu1 %v22233_v58  ;;  %6691 = vmatprep.subr.mxu0 %v22234_v44  ;;  %v22258_v58 = vld [vmem:[#allocation436_spill] sm:$0xff]  ;;  %v22259_v44 = vld [vmem:[#allocation437_spill] sm:$0xff] }
0x12ff   :  { %6621 = vmatpush1.msra.mxu1 %v22235_v0  ;;  %6692 = vmatpush1.msra.mxu0 %v22236_v46  ;;  %v22260_v0 = vld [vmem:[#allocation438_spill] sm:$0xff]  ;;  %v22261_v46 = vld [vmem:[#allocation439_spill] sm:$0xff] }
0x1300   :  { %6622 = vmatprep.subr.mxu1 %v22237_v47  ;;  %6693 = vmatprep.subr.mxu0 %v22238_v22  ;;  %v22262_v47 = vld [vmem:[#allocation440_spill] sm:$0xff]  ;;  %v22263_v22 = vld [vmem:[#allocation441_spill] sm:$0xff] }
0x1301   :  { %6623 = vmatpush1.msra.mxu1 %v22239_v21  ;;  %6694 = vmatpush1.msra.mxu0 %v22240_v53  ;;  %v22264_v21 = vld [vmem:[#allocation442_spill] sm:$0xff]  ;;  %v22265_v53 = vld [vmem:[#allocation443_spill] sm:$0xff] }
0x1302   :  { %6624 = vmatprep.subr.mxu1 %v22241_v3  ;;  %6695 = vmatprep.subr.mxu0 %v22242_v42  ;;  %v22266_v3 = vld [vmem:[#allocation444_spill] sm:$0xff]  ;;  %v22267_v42 = vld [vmem:[#allocation445_spill] sm:$0xff] }
0x1303   :  { %6625 = vmatpush1.msra.mxu1 %v22243_v31  ;;  %6696 = vmatpush1.msra.mxu0 %v22244_v40  ;;  %v22268_v31 = vld [vmem:[#allocation446_spill] sm:$0xff]  ;;  %v22269_v40 = vld [vmem:[#allocation447_spill] sm:$0xff] }
0x1304   :  { %6626 = vmatprep.subr.mxu1 %v22245_v18  ;;  %6697 = vmatprep.subr.mxu0 %v22246_v2  ;;  %v22270_v18 = vld [vmem:[#allocation448_spill] sm:$0xff]  ;;  %v22271_v2 = vld [vmem:[#allocation449_spill] sm:$0xff] }
0x1305   :  { %6627 = vmatpush1.msra.mxu1 %v22247_v34  ;;  %6698 = vmatpush1.msra.mxu0 %v22248_v56  ;;  %v22272_v34 = vld [vmem:[#allocation450_spill] sm:$0xff]  ;;  %v22273_v56 = vld [vmem:[#allocation451_spill] sm:$0xff] }
0x1306   :  { %6628 = vmatprep.subr.mxu1 %v22249_v5  ;;  %6699 = vmatprep.subr.mxu0 %v22250_v39  ;;  %v22274_v5 = vld [vmem:[#allocation452_spill] sm:$0xff]  ;;  %v22275_v39 = vld [vmem:[#allocation453_spill] sm:$0xff] }
0x1307   :  { %6629 = vmatpush1.msra.mxu1 %v22251_v29  ;;  %6700 = vmatpush1.msra.mxu0 %v22252_v35  ;;  %v22276_v29 = vld [vmem:[#allocation454_spill] sm:$0xff]  ;;  %v22277_v35 = vld [vmem:[#allocation455_spill] sm:$0xff] }
0x1308   :  { %6630 = vmatprep.subr.mxu1 %v22253_v20  ;;  %6701 = vmatprep.subr.mxu0 %v22254_v23  ;;  %v22278_v20 = vld [vmem:[#allocation456_spill] sm:$0xff]  ;;  %v22279_v23 = vld [vmem:[#allocation457_spill] sm:$0xff] }
0x1309   :  { %6631 = vmatpush1.msra.mxu1 %v22255_v38  ;;  %6664 = vmatprep.mubr.f32.mxu1 %v21819_v19  ;;  %v22280_v38 = vld [vmem:[#allocation458_spill] sm:$0xff] }
0x130a   :  { %6702 = vmatpush1.msra.mxu0 %v22256_v4  ;;  %6735 = vmatprep.mubr.f32.mxu0 %v21819_v19  ;;  %v22281_v4 = vld [vmem:[#allocation459_spill] sm:$0xff] }
0x130b   :  { %6665 = vmatmul.mubr.f32.vlgmr.msra.gmra.mxu1 %v19069_v54  ;;  %6736 = vmatmul.mubr.f32.vlgmr.msra.gmra.mxu0 %v19069_v54 }
0x130c   :  { %10168 = vmatprep.subr.mxu1 %v21819_v19  ;;  %10200 = vmatprep.mubr.msk.f32.mxu1 %vm11608_vm2, %v21819_v19 }
0x130d   :  { %10169 = vmatpush3.msra.mxu1 %v22257_v7  ;;  %9254 = vmatprep.subr.mxu0 %v22258_v58  ;;  %v22282_v7 = vld [vmem:[#allocation460_spill] sm:$0xff]  ;;  %v22283_v58 = vld [vmem:[#allocation461_spill] sm:$0xff] }
0x130e   :  { %10170 = vmatprep.subr.mxu1 %v21819_v19  ;;  %9255 = vmatpush3.msra.mxu0 %v22259_v44  ;;  %v22284_v44 = vld [vmem:[#allocation462_spill] sm:$0xff] }
0x130f   :  { %10171 = vmatpush3.msra.mxu1 %v22260_v0  ;;  %9256 = vmatprep.subr.mxu0 %v22261_v46  ;;  %v22285_v0 = vld [vmem:[#allocation463_spill] sm:$0xff]  ;;  %v22286_v46 = vld [vmem:[#allocation464_spill] sm:$0xff] }
0x1310   :  { %10172 = vmatprep.subr.mxu1 %v21819_v19  ;;  %9257 = vmatpush3.msra.mxu0 %v22262_v47  ;;  %v22287_v47 = vld [vmem:[#allocation465_spill] sm:$0xff] }
0x1311   :  { %10173 = vmatpush3.msra.mxu1 %v22263_v22  ;;  %9258 = vmatprep.subr.mxu0 %v22264_v21  ;;  %v22288_v22 = vld [vmem:[#allocation466_spill] sm:$0xff]  ;;  %v22289_v21 = vld [vmem:[#allocation467_spill] sm:$0xff] }
0x1312   :  { %10174 = vmatprep.subr.mxu1 %v21819_v19  ;;  %9259 = vmatpush3.msra.mxu0 %v22265_v53  ;;  %v22290_v53 = vld [vmem:[#allocation468_spill] sm:$0xff] }
0x1313   :  { %10175 = vmatpush3.msra.mxu1 %v22266_v3  ;;  %9260 = vmatprep.subr.mxu0 %v22267_v42  ;;  %v22291_v3 = vld [vmem:[#allocation469_spill] sm:$0xff]  ;;  %v22292_v42 = vld [vmem:[#allocation470_spill] sm:$0xff] }
0x1314   :  { %10176 = vmatprep.subr.mxu1 %v21819_v19  ;;  %9261 = vmatpush3.msra.mxu0 %v22268_v31  ;;  %v22293_v31 = vld [vmem:[#allocation471_spill] sm:$0xff] }
0x1315   :  { %10177 = vmatpush3.msra.mxu1 %v22269_v40  ;;  %9262 = vmatprep.subr.mxu0 %v22270_v18  ;;  %v22294_v40 = vld [vmem:[#allocation472_spill] sm:$0xff]  ;;  %v22295_v18 = vld [vmem:[#allocation473_spill] sm:$0xff] }
0x1316   :  { %10178 = vmatprep.subr.mxu1 %v21819_v19  ;;  %9263 = vmatpush3.msra.mxu0 %v22271_v2  ;;  %v22296_v2 = vld [vmem:[#allocation474_spill] sm:$0xff] }
0x1317   :  { %10179 = vmatpush3.msra.mxu1 %v22272_v34  ;;  %9264 = vmatprep.subr.mxu0 %v22273_v56  ;;  %v22297_v34 = vld [vmem:[#allocation475_spill] sm:$0xff]  ;;  %v22298_v56 = vld [vmem:[#allocation476_spill] sm:$0xff] }
0x1318   :  { %10180 = vmatprep.subr.mxu1 %v21819_v19  ;;  %9265 = vmatpush3.msra.mxu0 %v22274_v5  ;;  %v22299_v5 = vld [vmem:[#allocation477_spill] sm:$0xff] }
0x1319   :  { %10181 = vmatpush3.msra.mxu1 %v22275_v39  ;;  %9266 = vmatprep.subr.mxu0 %v22276_v29  ;;  %v22300_v39 = vld [vmem:[#allocation478_spill] sm:$0xff]  ;;  %v22301_v29 = vld [vmem:[#allocation479_spill] sm:$0xff] }
0x131a   :  { %10182 = vmatprep.subr.mxu1 %v21819_v19  ;;  %9267 = vmatpush3.msra.mxu0 %v22277_v35  ;;  %v22302_v35 = vld [vmem:[#allocation480_spill] sm:$0xff] }
0x131b   :  { %10183 = vmatpush3.msra.mxu1 %v22278_v20  ;;  %9268 = vmatprep.subr.mxu0 %v22279_v23  ;;  %v22303_v20 = vld [vmem:[#allocation481_spill] sm:$0xff]  ;;  %v22304_v23 = vld [vmem:[#allocation482_spill] sm:$0xff] }
0x131c   :  { %10184 = vmatprep.subr.mxu1 %v21819_v19  ;;  %9269 = vmatpush3.msra.mxu0 %v22280_v38  ;;  %v22305_v38 = vld [vmem:[#allocation483_spill] sm:$0xff] }
0x131d   :  { %10185 = vmatpush3.msra.mxu1 %v22281_v4  ;;  %9270 = vmatprep.subr.mxu0 %v22282_v7  ;;  %v22306_v4 = vld [vmem:[#allocation484_spill] sm:$0xff]  ;;  %v22307_v7 = vld [vmem:[#allocation485_spill] sm:$0xff] }
0x131e   :  { %10186 = vmatprep.subr.mxu1 %v21819_v19  ;;  %9271 = vmatpush3.msra.mxu0 %v22283_v58  ;;  %v22308_v58 = vld [vmem:[#allocation486_spill] sm:$0xff] }
0x131f   :  { %10187 = vmatpush3.msra.mxu1 %v22284_v44  ;;  %9272 = vmatprep.subr.mxu0 %v22285_v0  ;;  %v22309_v44 = vld [vmem:[#allocation487_spill] sm:$0xff]  ;;  %v22310_v0 = vld [vmem:[#allocation488_spill] sm:$0xff] }
0x1320   :  { %10188 = vmatprep.subr.mxu1 %v21819_v19  ;;  %9273 = vmatpush3.msra.mxu0 %v22286_v46  ;;  %v22311_v46 = vld [vmem:[#allocation489_spill] sm:$0xff] }
0x1321   :  { %10189 = vmatpush3.msra.mxu1 %v22287_v47  ;;  %9274 = vmatprep.subr.mxu0 %v22288_v22  ;;  %v22312_v47 = vld [vmem:[#allocation490_spill] sm:$0xff]  ;;  %v22313_v22 = vld [vmem:[#allocation491_spill] sm:$0xff] }
0x1322   :  { %10190 = vmatprep.subr.mxu1 %v21819_v19  ;;  %9275 = vmatpush3.msra.mxu0 %v22289_v21  ;;  %v22315_v21 = vld [vmem:[#allocation493_spill] sm:$0xff] }
0x1323   :  { %10191 = vmatpush3.msra.mxu1 %v22290_v53  ;;  %9276 = vmatprep.subr.mxu0 %v22291_v3  ;;  %v22316_v53 = vld [vmem:[#allocation494_spill] sm:$0xff]  ;;  %v22317_v3 = vld [vmem:[#allocation495_spill] sm:$0xff] }
0x1324   :  { %10192 = vmatprep.subr.mxu1 %v21819_v19  ;;  %9277 = vmatpush3.msra.mxu0 %v22292_v42  ;;  %v22318_v42 = vld [vmem:[#allocation496_spill] sm:$0xff] }
0x1325   :  { %10193 = vmatpush3.msra.mxu1 %v22293_v31  ;;  %9278 = vmatprep.subr.mxu0 %v22294_v40  ;;  %v22319_v31 = vld [vmem:[#allocation497_spill] sm:$0xff]  ;;  %v22320_v40 = vld [vmem:[#allocation498_spill] sm:$0xff] }
0x1326   :  { %10194 = vmatprep.subr.mxu1 %v21819_v19  ;;  %9279 = vmatpush3.msra.mxu0 %v22295_v18  ;;  %v22321_v18 = vld [vmem:[#allocation499_spill] sm:$0xff] }
0x1327   :  { %10195 = vmatpush3.msra.mxu1 %v22296_v2  ;;  %9280 = vmatprep.subr.mxu0 %v22297_v34  ;;  %v22322_v2 = vld [vmem:[#allocation500_spill] sm:$0xff]  ;;  %v22323_v34 = vld [vmem:[#allocation501_spill] sm:$0xff] }
0x1328   :  { %10196 = vmatprep.subr.mxu1 %v21819_v19  ;;  %9281 = vmatpush3.msra.mxu0 %v22298_v56  ;;  %v22324_v56 = vld [vmem:[#allocation502_spill] sm:$0xff] }
0x1329   :  { %10197 = vmatpush3.msra.mxu1 %v22299_v5  ;;  %9282 = vmatprep.subr.mxu0 %v22300_v39  ;;  %v22325_v5 = vld [vmem:[#allocation503_spill] sm:$0xff]  ;;  %v22326_v39 = vld [vmem:[#allocation504_spill] sm:$0xff] }
0x132a   :  { %10198 = vmatprep.subr.mxu1 %v21819_v19  ;;  %9283 = vmatpush3.msra.mxu0 %v22301_v29  ;;  %v22327_v29 = vld [vmem:[#allocation505_spill] sm:$0xff] }
0x132b   :  { %10199 = vmatpush3.msra.mxu1 %v22302_v35  ;;  %9284 = vmatprep.subr.mxu0 %v22303_v20  ;;  %v22328_v35 = vld [vmem:[#allocation506_spill] sm:$0xff]  ;;  %v22329_v20 = vld [vmem:[#allocation507_spill] sm:$0xff] }
0x132c   :  { %10201 = vmatmul.mubr.f32.vlgmr.msra.gmra.mxu1 %v19069_v54  ;;  %9289 = vmatprep.subr.mxu1 %v22304_v23  ;;  %v22314_v54 = vld [vmem:[#allocation492_spill] sm:$0xff] }
0x132d   :  { %9290 = vmatpush3.msra.mxu1 %v22305_v38  ;;  %9285 = vmatpush3.msra.mxu0 %v22306_v4  ;;  %v22330_v23 = vld [vmem:[#allocation508_spill] sm:$0xff]  ;;  %v22331_v38 = vld [vmem:[#allocation509_spill] sm:$0xff]  ;;  %v22332_v4 = vld [vmem:[#allocation510_spill] sm:$0xff] }
0x132e   :  { %9291 = vmatprep.subr.mxu1 %v22307_v7  ;;  %9324 = vmatprep.subr.mxu0 %v22308_v58  ;;  %v22333_v7 = vld [vmem:[#allocation511_spill] sm:$0xff]  ;;  %v22334_v58 = vld [vmem:[#allocation512_spill] sm:$0xff] }
0x132f   :  { %9292 = vmatpush3.msra.mxu1 %v22309_v44  ;;  %v22335_v44 = vld [vmem:[#allocation513_spill] sm:$0xff] }
0x1330   :  { %9293 = vmatprep.subr.mxu1 %v22310_v0  ;;  %v22336_v0 = vld [vmem:[#allocation514_spill] sm:$0xff] }
0x1331   :  { %9294 = vmatpush3.msra.mxu1 %v22311_v46  ;;  %v22337_v46 = vld [vmem:[#allocation515_spill] sm:$0xff] }
0x1332   :  { %9295 = vmatprep.subr.mxu1 %v22312_v47  ;;  %v22338_v47 = vld [vmem:[#allocation516_spill] sm:$0xff] }
0x1333   :  { %9296 = vmatpush3.msra.mxu1 %v22313_v22 }
0x1334   :  { %9297 = vmatprep.subr.mxu1 %v22314_v54 }
0x1335   :  { %9298 = vmatpush3.msra.mxu1 %v22315_v21 }
0x1336   :  { %9299 = vmatprep.subr.mxu1 %v22316_v53 }
0x1337   :  { %9300 = vmatpush3.msra.mxu1 %v22317_v3 }
0x1338   :  { %9301 = vmatprep.subr.mxu1 %v22318_v42 }
0x1339   :  { %9302 = vmatpush3.msra.mxu1 %v22319_v31 }
0x133a   :  { %9303 = vmatprep.subr.mxu1 %v22320_v40 }
0x133b   :  { %9304 = vmatpush3.msra.mxu1 %v22321_v18 }
0x133c   :  { %9305 = vmatprep.subr.mxu1 %v22322_v2 }
0x133d   :  { %9306 = vmatpush3.msra.mxu1 %v22323_v34 }
0x133e   :  { %9307 = vmatprep.subr.mxu1 %v22324_v56 }
0x133f   :  { %9308 = vmatpush3.msra.mxu1 %v22325_v5 }
0x1340   :  { %9309 = vmatprep.subr.mxu1 %v22326_v39 }
0x1341   :  { %9310 = vmatpush3.msra.mxu1 %v22327_v29 }
0x1342   :  { %9311 = vmatprep.subr.mxu1 %v22328_v35 }
0x1343   :  { %9312 = vmatpush3.msra.mxu1 %v22329_v20  ;;  %v19313_v20 = vld [vmem:[%s20553_s12 + $0x2d0] sm:$0xff] }
0x1344   :  { %9313 = vmatprep.subr.mxu1 %v22330_v23 }
0x1345   :  { %9314 = vmatpush3.msra.mxu1 %v22331_v38 }
0x1346   :  { %9315 = vmatprep.subr.mxu1 %v22332_v4  ;;  %v19319_v4 = vld [vmem:[%s20553_s12 + $0x3d0] sm:$0xff] }
0x1347   :  { %9316 = vmatpush3.msra.mxu1 %v22333_v7  ;;  %v19325_v7 = vld [vmem:[%s20553_s12 + $0x250] sm:$0xff] }
0x1348   :  { %9317 = vmatprep.subr.mxu1 %v22334_v58 }
0x1349   :  { %9318 = vmatpush3.msra.mxu1 %v22335_v44 }
0x134a   :  { %9319 = vmatprep.subr.mxu1 %v22336_v0  ;;  %v19333_v0 = vld [vmem:[%s20553_s12 + $0x350] sm:$0xff] }
0x134b   :  { %9320 = vmatpush3.msra.mxu1 %v22337_v46  ;;  %v19339_v46 = vld [vmem:[%s20553_s12 + $0x2c8] sm:$0xff] }
0x134c   :  { %9359 = vmatprep.subr.mxu1 %v22338_v47 }
0x13aa   :  { %v6524_v22 = vpop.f32.mrf.mxu1  ;;  %v6595_v54 = vpop.f32.mrf.mxu0 }
0x13ab   :  { %v6525_v21 = vadd.f32 %v6524_v22, %v16997_v37  ;;  %v6596_v53 = vadd.f32 %v6595_v54, %v17000_v61  ;;  %v19345_v54 = vld [vmem:[%s20553_s12 + $0x3c8] sm:$0xff] }
0x13ac   :  { %v6526_v3 = vpop.f32.mrf.mxu1  ;;  %v6597_v42 = vpop.f32.mrf.mxu0 }
0x13ad   :  { %11002 = vtanh.f32 %v6525_v21  ;;  %v6527_v31 = vadd.f32 %v6526_v3, %v17005_v45  ;;  %v6598_v40 = vadd.f32 %v6597_v42, %v17008_v51  ;;  %v19351_v21 = vld [vmem:[%s20553_s12 + $0x248] sm:$0xff] }
0x13ae   :  { %11004 = vtanh.f32 %v6596_v53  ;;  %v19359_v42 = vld [vmem:[%s20553_s12 + $0x348] sm:$0xff] }
0x13af   :  { %11006 = vtanh.f32 %v6527_v31  ;;  %v19365_v31 = vld [vmem:[%s20553_s12 + $0x2c0] sm:$0xff] }
0x13b0   :  { %11008 = vtanh.f32 %v6598_v40  ;;  %v19371_v40 = vld [vmem:[%s20553_s12 + $0x3c0] sm:$0xff] }
0x13ba   :  { %v11003_v18 = vpop.eup %11002 }
0x13bb   :  { %v11005_v2 = vpop.eup %11004  ;;  %v6821_v39 = vmul.f32 0.0, %v11003_v18  ;;  %v19377_v18 = vld [vmem:[%s20553_s12 + $0x240] sm:$0xff] }
0x13bc   :  { %v11007_v34 = vpop.eup %11006  ;;  %v6823_v35 = vmul.f32 %v11005_v2, %v16513_v13  ;;  %v19383_v2 = vld [vmem:[%s20553_s12 + $0x340] sm:$0xff] }
0x13bd   :  { %v11009_v56 = vpop.eup %11008  ;;  %v6822_v5 = vmul.f32 %v11007_v34, %v16509_v8  ;;  %v19389_v34 = vld [vmem:[%s20553_s12 + $0x2b8] sm:$0xff] }
0x13be   :  { %v6824_v29 = vmul.f32 %v11009_v56, %v16986_v9  ;;  %v19395_v56 = vld [vmem:[%s20553_s12 + $0x3b8] sm:$0xff] }
0x13bf   :  { %6894 = vmatprep.mubr.f32.mxu0 %v6822_v5  ;;  %v19401_v5 = vld [vmem:[%s20553_s12 + $0x238] sm:$0xff] }
0x13c0   :  { %6964 = vmatprep.mubr.f32.mxu1 %v6824_v29  ;;  %6895 = vmatmul.mubr.f32.vlgmr.msra.gmra.mxu0 %v6821_v39  ;;  %v19407_v39 = vld [vmem:[%s20553_s12 + $0x338] sm:$0xff]  ;;  %v19413_v29 = vld [vmem:[%s20553_s12 + $0x2b0] sm:$0xff] }
0x13c1   :  { %6965 = vmatmul.mubr.f32.vlgmr.msra.gmra.mxu1 %v6823_v35  ;;  %9325 = vmatpush3.msra.mxu0 %v18829_v15  ;;  %v19259_v15 = vld [vmem:[%s20553_s12 + $0x368] sm:$0xff]  ;;  %v19419_v35 = vld [vmem:[%s20553_s12 + $0x3b0] sm:$0xff] }
0x13c2   :  { %9360 = vmatpush3.msra.mxu1 %v18835_v59  ;;  %9326 = vmatprep.subr.mxu0 %v18841_v63  ;;  %v19265_v59 = vld [vmem:[%s20553_s12 + $0x2e0] sm:$0xff] }
0x13c3   :  { %9361 = vmatprep.subr.mxu1 %v18847_v16  ;;  %9327 = vmatpush3.msra.mxu0 %v18853_v17  ;;  %v19271_v63 = vld [vmem:[%s20553_s12 + $0x3e0] sm:$0xff] }
0x13c4   :  { %9362 = vmatpush3.msra.mxu1 %v18859_v12  ;;  %9328 = vmatprep.subr.mxu0 %v18865_v48  ;;  %v19277_v16 = vld [vmem:[%s20553_s12 + $0x260] sm:$0xff]  ;;  %v19289_v12 = vld [vmem:[%s20553_s12 + $0x2d8] sm:$0xff] }
0x13c5   :  { %9363 = vmatprep.subr.mxu1 %v18871_v27  ;;  %9329 = vmatpush3.msra.mxu0 %v18877_v10  ;;  %v19283_v17 = vld [vmem:[%s20553_s12 + $0x360] sm:$0xff]  ;;  %v19295_v48 = vld [vmem:[%s20553_s12 + $0x3d8] sm:$0xff] }
0x13c6   :  { %9364 = vmatpush3.msra.mxu1 %v19259_v15  ;;  %9330 = vmatprep.subr.mxu0 %v19265_v59  ;;  %v19301_v27 = vld [vmem:[%s20553_s12 + $0x258] sm:$0xff] }
0x13c7   :  { %9365 = vmatprep.subr.mxu1 %v19271_v63  ;;  %9331 = vmatpush3.msra.mxu0 %v19277_v16  ;;  %v19307_v10 = vld [vmem:[%s20553_s12 + $0x358] sm:$0xff] }
0x13c8   :  { %9366 = vmatpush3.msra.mxu1 %v19283_v17  ;;  %9332 = vmatprep.subr.mxu0 %v19289_v12 }
0x13c9   :  { %9367 = vmatprep.subr.mxu1 %v19295_v48  ;;  %9333 = vmatpush3.msra.mxu0 %v19301_v27 }
0x13ca   :  { %9368 = vmatpush3.msra.mxu1 %v19307_v10  ;;  %9334 = vmatprep.subr.mxu0 %v19313_v20 }
0x13cb   :  { %v6666_v23 = vpop.f32.mrf.mxu1  ;;  %v6737_v38 = vpop.f32.mrf.mxu0  ;;  %9369 = vmatprep.subr.mxu1 %v19319_v4  ;;  %9335 = vmatpush3.msra.mxu0 %v19325_v7 }
0x13cc   :  { %v6667_v58 = vadd.f32 %v6666_v23, %v17105_v11  ;;  %v6738_v44 = vadd.f32 %v6737_v38, %v17108_v50  ;;  %9370 = vmatpush3.msra.mxu1 %v19333_v0  ;;  %9336 = vmatprep.subr.mxu0 %v19339_v46  ;;  %v19425_v23 = vld [vmem:[%s20553_s12 + $0x230] sm:$0xff] }
0x13cd   :  { %v6668_v47 = vpop.f32.mrf.mxu1  ;;  %v6739_v22 = vpop.f32.mrf.mxu0  ;;  %9371 = vmatprep.subr.mxu1 %v19345_v54  ;;  %9337 = vmatpush3.msra.mxu0 %v19351_v21  ;;  %22339 = vst [vmem:[#allocation272_spill] sm:$0xff] %v19425_v23  ;;  %v19431_v38 = vld [vmem:[%s20553_s12 + $0x330] sm:$0xff] }
0x13ce   :  { %11010 = vtanh.f32 %v6667_v58  ;;  %v6669_v53 = vadd.f32 %v6668_v47, %v17135_v32  ;;  %v6740_v3 = vadd.f32 %v6739_v22, %v17138_v60  ;;  %9372 = vmatpush3.msra.mxu1 %v19359_v42  ;;  %9338 = vmatprep.subr.mxu0 %v19365_v31  ;;  %22340 = vst [vmem:[#allocation273_spill] sm:$0xff] %v19431_v38  ;;  %v19437_v58 = vld [vmem:[%s20553_s12 + $0x2a8] sm:$0xff] }
0x13cf   :  { %11012 = vtanh.f32 %v6738_v44  ;;  %9373 = vmatprep.subr.mxu1 %v19371_v40  ;;  %9339 = vmatpush3.msra.mxu0 %v19377_v18  ;;  %22341 = vst [vmem:[#allocation274_spill] sm:$0xff] %v19437_v58  ;;  %v19443_v44 = vld [vmem:[%s20553_s12 + $0x3a8] sm:$0xff] }
0x13d0   :  { %11014 = vtanh.f32 %v6669_v53  ;;  %9374 = vmatpush3.msra.mxu1 %v19383_v2  ;;  %9340 = vmatprep.subr.mxu0 %v19389_v34  ;;  %22342 = vst [vmem:[#allocation275_spill] sm:$0xff] %v19443_v44  ;;  %v19449_v47 = vld [vmem:[%s20553_s12 + $0x228] sm:$0xff]  ;;  %v19461_v53 = vld [vmem:[%s20553_s12 + $0x2a0] sm:$0xff] }
0x13d1   :  { %11016 = vtanh.f32 %v6740_v3  ;;  %9375 = vmatprep.subr.mxu1 %v19395_v56  ;;  %9341 = vmatpush3.msra.mxu0 %v19401_v5  ;;  %22343 = vst [vmem:[#allocation276_spill] sm:$0xff] %v19449_v47  ;;  %v19455_v22 = vld [vmem:[%s20553_s12 + $0x328] sm:$0xff]  ;;  %22345 = vst [vmem:[#allocation278_spill] sm:$0xff] %v19461_v53  ;;  %v19467_v3 = vld [vmem:[%s20553_s12 + $0x3a0] sm:$0xff] }
0x13d2   :  { %9376 = vmatpush3.msra.mxu1 %v19407_v39  ;;  %9342 = vmatprep.subr.mxu0 %v19413_v29  ;;  %22344 = vst [vmem:[#allocation277_spill] sm:$0xff] %v19455_v22  ;;  %22346 = vst [vmem:[#allocation279_spill] sm:$0xff] %v19467_v3 }
0x13d3   :  { %9377 = vmatprep.subr.mxu1 %v19419_v35  ;;  %9343 = vmatpush3.msra.mxu0 %v19425_v23 }
0x13d4   :  { %9378 = vmatpush3.msra.mxu1 %v19431_v38  ;;  %9344 = vmatprep.subr.mxu0 %v19437_v58  ;;  %v19545_v58 = vld [vmem:[%s20553_s12 + $0x208] sm:$0xff]  ;;  %v19557_v38 = vld [vmem:[%s20553_s12 + $0x280] sm:$0xff] }
0x13d5   :  { %9379 = vmatprep.subr.mxu1 %v19443_v44  ;;  %9345 = vmatpush3.msra.mxu0 %v19449_v47  ;;  %v19515_v47 = vld [vmem:[%s20553_s12 + $0x390] sm:$0xff]  ;;  %v19533_v44 = vld [vmem:[%s20553_s12 + $0x288] sm:$0xff]  ;;  %22359 = vst [vmem:[#allocation292_spill] sm:$0xff] %v19545_v58  ;;  %22361 = vst [vmem:[#allocation294_spill] sm:$0xff] %v19557_v38 }
0x13d6   :  { %9380 = vmatpush3.msra.mxu1 %v19455_v22  ;;  %9346 = vmatprep.subr.mxu0 %v19461_v53  ;;  %v19479_v22 = vld [vmem:[%s20553_s12 + $0x320] sm:$0xff]  ;;  %v19485_v53 = vld [vmem:[%s20553_s12 + $0x298] sm:$0xff]  ;;  %22354 = vst [vmem:[#allocation287_spill] sm:$0xff] %v19515_v47  ;;  %22357 = vst [vmem:[#allocation290_spill] sm:$0xff] %v19533_v44 }
0x13d7   :  { %9381 = vmatprep.subr.mxu1 %v19467_v3  ;;  %9347 = vmatpush3.msra.mxu0 %v19473_v26  ;;  %22348 = vst [vmem:[#allocation281_spill] sm:$0xff] %v19479_v22  ;;  %22349 = vst [vmem:[#allocation282_spill] sm:$0xff] %v19485_v53  ;;  %v19491_v3 = vld [vmem:[%s20553_s12 + $0x398] sm:$0xff] }
0x13d8   :  { %9382 = vmatpush3.msra.mxu1 %v19479_v22  ;;  %9348 = vmatprep.subr.mxu0 %v19485_v53  ;;  %22350 = vst [vmem:[#allocation283_spill] sm:$0xff] %v19491_v3  ;;  %v19497_v26 = vld [vmem:[%s20553_s12 + $0x218] sm:$0xff]  ;;  %v19509_v53 = vld [vmem:[%s20553_s12 + $0x290] sm:$0xff] }
0x13d9   :  { %9383 = vmatprep.subr.mxu1 %v19491_v3  ;;  %22351 = vst [vmem:[#allocation284_spill] sm:$0xff] %v19497_v26  ;;  %9349 = vmatpush3.msra.mxu0 %v19497_v26  ;;  %v19503_v22 = vld [vmem:[%s20553_s12 + $0x318] sm:$0xff]  ;;  %22353 = vst [vmem:[#allocation286_spill] sm:$0xff] %v19509_v53  ;;  %v19521_v26 = vld [vmem:[%s20553_s12 + $0x210] sm:$0xff] }
0x13da   :  { %22352 = vst [vmem:[#allocation285_spill] sm:$0xff] %v19503_v22  ;;  %9384 = vmatpush3.msra.mxu1 %v19503_v22  ;;  %9350 = vmatprep.subr.mxu0 %v19509_v53  ;;  %22355 = vst [vmem:[#allocation288_spill] sm:$0xff] %v19521_v26  ;;  %v19527_v53 = vld [vmem:[%s20553_s12 + $0x310] sm:$0xff] }
0x13db   :  { %v11011_v3 = vpop.eup %11010  ;;  %9385 = vmatprep.subr.mxu1 %v19515_v47  ;;  %9351 = vmatpush3.msra.mxu0 %v19521_v26  ;;  %22356 = vst [vmem:[#allocation289_spill] sm:$0xff] %v19527_v53  ;;  %v19539_v26 = vld [vmem:[%s20553_s12 + $0x388] sm:$0xff] }
0x13dc   :  { %v11013_v22 = vpop.eup %11012  ;;  %9386 = vmatpush3.msra.mxu1 %v19527_v53  ;;  %9352 = vmatprep.subr.mxu0 %v19533_v44  ;;  %22358 = vst [vmem:[#allocation291_spill] sm:$0xff] %v19539_v26  ;;  %v19551_v44 = vld [vmem:[%s20553_s12 + $0x308] sm:$0xff] }
0x13dd   :  { %v11015_v47 = vpop.eup %11014  ;;  %9387 = vmatprep.subr.mxu1 %v19539_v26  ;;  %9353 = vmatpush3.msra.mxu0 %v19545_v58  ;;  %22360 = vst [vmem:[#allocation293_spill] sm:$0xff] %v19551_v44  ;;  %v19564_v58 = vld [vmem:[%s20553_s12 + $0x380] sm:$0xff] }
0x13de   :  { %v11017_v53 = vpop.eup %11016  ;;  %9388 = vmatpush3.msra.mxu1 %v19551_v44  ;;  %9354 = vmatprep.subr.mxu0 %v19557_v38  ;;  %v6826_v26 = vmul.f32 %v11015_v47, %v16518_v14  ;;  %22362 = vst [vmem:[#allocation295_spill] sm:$0xff] %v19564_v58  ;;  %v19570_v44 = vld [vmem:[%s20553_s12 + $0x200] sm:$0xff]  ;;  %v6825_v38 = vmul.f32 %v11011_v3, %v16988_v43  ;;  %v11320_v3 = vld [vmem:[%s20548_s7 + $0x450] sm:$0xff] }
0x13df   :  { %9389 = vmatprep.subr.mxu1 %v19564_v58  ;;  %9355 = vmatpush3.msra.mxu0 %v19570_v44  ;;  %v6828_v23 = vmul.f32 %v11017_v53, %v16991_v57  ;;  %v19578_v47 = vld [vmem:[%s20553_s12 + $0x300] sm:$0xff]  ;;  %v6827_v58 = vmul.f32 %v11013_v22, %v22107_v6  ;;  %v19586_v53 = vld [vmem:[%s20553_s12 + $0x478] sm:$0xff] }
0x13e0   :  { %7034 = vmatprep.mubr.f32.mxu0 %v6826_v26  ;;  %22363 = vst [vmem:[#allocation296_spill] sm:$0xff] %v19578_v47  ;;  %9390 = vmatpush3.msra.mxu1 %v19578_v47  ;;  %22364 = vst [vmem:[#allocation297_spill] sm:$0xff] %v19586_v53  ;;  %v19596_v26 = vld [vmem:[%s20553_s12 + $0x470] sm:$0xff] }
0x13e1   :  { %7104 = vmatprep.mubr.f32.mxu1 %v6828_v23  ;;  %7035 = vmatmul.mubr.f32.vlgmr.msra.gmra.mxu0 %v6825_v38  ;;  %22365 = vst [vmem:[#allocation298_spill] sm:$0xff] %v19596_v26  ;;  %v19605_v23 = vld [vmem:[%s20553_s12 + $0x468] sm:$0xff] }
0x13e2   :  { %7105 = vmatmul.mubr.f32.vlgmr.msra.gmra.mxu1 %v6827_v58  ;;  %10203 = vmatprep.subr.mxu0 %v21819_v19  ;;  %22366 = vst [vmem:[#allocation16_spill] sm:$0xff] %v19605_v23  ;;  %v19633_v58 = vld [vmem:[%s20553_s12 + $0x450] sm:$0xff] }
0x13e3   :  { %10204 = vmatpush3.msra.mxu0 %v19586_v53  ;;  %10235 = vmatprep.mubr.msk.f32.mxu0 %vm11608_vm2, %v21819_v19  ;;  %22369 = vst [vmem:[#allocation300_spill] sm:$0xff] %v19633_v58 }
0x13e4   :  { %10205 = vmatprep.subr.mxu0 %v21819_v19  ;;  %10238 = vmatprep.subr.mxu1 %v21819_v19 }
0x13e5   :  { %10206 = vmatpush3.msra.mxu0 %v19596_v26  ;;  %10239 = vmatpush3.msra.mxu1 %v22110_v49  ;;  %v19614_v49 = vld [vmem:[%s20553_s12 + $0x460] sm:$0xff] }
0x13e6   :  { %10207 = vmatprep.subr.mxu0 %v21819_v19  ;;  %10240 = vmatprep.subr.mxu1 %v21819_v19  ;;  %22367 = vst [vmem:[#allocation299_spill] sm:$0xff] %v19614_v49 }
0x13e7   :  { %10208 = vmatpush3.msra.mxu0 %v19605_v23  ;;  %10241 = vmatpush3.msra.mxu1 %v22112_v55  ;;  %v19623_v55 = vld [vmem:[%s20553_s12 + $0x458] sm:$0xff] }
0x13e8   :  { %10209 = vmatprep.subr.mxu0 %v21819_v19  ;;  %10242 = vmatprep.subr.mxu1 %v21819_v19  ;;  %22368 = vst [vmem:[#allocation15_spill] sm:$0xff] %v19623_v55 }
0x13e9   :  { %10210 = vmatpush3.msra.mxu0 %v19614_v49  ;;  %10243 = vmatpush3.msra.mxu1 %v22114_v41 }
0x13ea   :  { %10211 = vmatprep.subr.mxu0 %v21819_v19  ;;  %10244 = vmatprep.subr.mxu1 %v21819_v19 }
0x13eb   :  { %10212 = vmatpush3.msra.mxu0 %v19623_v55  ;;  %10245 = vmatpush3.msra.mxu1 %v22116_v33  ;;  %v19642_v33 = vld [vmem:[%s20553_s12 + $0x448] sm:$0xff] }
0x13ec   :  { %v6808_v38 = vpop.f32.mrf.mxu1  ;;  %10213 = vmatprep.subr.mxu0 %v21819_v19  ;;  %10246 = vmatprep.subr.mxu1 %v21819_v19  ;;  %22370 = vst [vmem:[#allocation14_spill] sm:$0xff] %v19642_v33 }
0x13ed   :  { %v6809_v41 = vadd.f32 %v6808_v38, %v22117_v36  ;;  %10214 = vmatpush3.msra.mxu0 %v19633_v58  ;;  %10247 = vmatpush3.msra.mxu1 %v22119_v25  ;;  %v19651_v25 = vld [vmem:[%s20553_s12 + $0x440] sm:$0xff] }
0x13ee   :  { %v10202_v22 = vpop.f32.mrf.mxu1  ;;  %10215 = vmatprep.subr.mxu0 %v21819_v19  ;;  %10248 = vmatprep.subr.mxu1 %v21819_v19  ;;  %22371 = vst [vmem:[#allocation301_spill] sm:$0xff] %v19651_v25  ;;  %v19687_v38 = vld [vmem:[%s20553_s12 + $0x420] sm:$0xff] }
0x13ef   :  { %10216 = vmatpush3.msra.mxu0 %v19642_v33  ;;  %10249 = vmatpush3.msra.mxu1 %v22121_v62  ;;  %11018 = vtanh.f32 %v6809_v41  ;;  %v19660_v62 = vld [vmem:[%s20553_s12 + $0x438] sm:$0xff]  ;;  %22375 = vst [vmem:[#allocation303_spill] sm:$0xff] %v19687_v38 }
0x13f0   :  { %10217 = vmatprep.subr.mxu0 %v21819_v19  ;;  %10250 = vmatprep.subr.mxu1 %v21819_v19  ;;  %22372 = vst [vmem:[#allocation13_spill] sm:$0xff] %v19660_v62  ;;  %v19694_v41 = vld [vmem:[%s20553_s12 + $0x418] sm:$0xff] }
0x13f1   :  { %10218 = vmatpush3.msra.mxu0 %v19651_v25  ;;  %10251 = vmatpush3.msra.mxu1 %v22123_v24  ;;  %v19670_v24 = vld [vmem:[%s20553_s12 + $0x430] sm:$0xff]  ;;  %22376 = vst [vmem:[#allocation11_spill] sm:$0xff] %v19694_v41 }
0x13f2   :  { %10219 = vmatprep.subr.mxu0 %v21819_v19  ;;  %10252 = vmatprep.subr.mxu1 %v21819_v19  ;;  %22373 = vst [vmem:[#allocation302_spill] sm:$0xff] %v19670_v24 }
0x13f3   :  { %10220 = vmatpush3.msra.mxu0 %v19660_v62  ;;  %10253 = vmatpush3.msra.mxu1 %v22125_v28  ;;  %v19680_v28 = vld [vmem:[%s20553_s12 + $0x428] sm:$0xff] }
0x13f4   :  { %10221 = vmatprep.subr.mxu0 %v21819_v19  ;;  %10254 = vmatprep.mubr.msk.f32.mxu1 %vm11608_vm2, %v21819_v19  ;;  %22374 = vst [vmem:[#allocation12_spill] sm:$0xff] %v19680_v28 }
0x13f5   :  { %10222 = vmatpush3.msra.mxu0 %v19670_v24  ;;  %7326 = vmatprep.subr.mxu1 %v11320_v3  ;;  %v19701_v3 = vld [vmem:[%s20553_s12 + $0x410] sm:$0xff] }
0x13f6   :  { %10223 = vmatprep.subr.mxu0 %v21819_v19  ;;  %22377 = vst [vmem:[#allocation304_spill] sm:$0xff] %v19701_v3 }
0x13f7   :  { %10224 = vmatpush3.msra.mxu0 %v19680_v28  ;;  %v19716_v28 = vld [vmem:[%s20553_s12 + $0x400] sm:$0xff] }
0x13f8   :  { %10225 = vmatprep.subr.mxu0 %v21819_v19  ;;  %22379 = vst [vmem:[#allocation305_spill] sm:$0xff] %v19716_v28 }
0x13f9   :  { %10226 = vmatpush3.msra.mxu0 %v19687_v38  ;;  %v19708_v38 = vld [vmem:[%s20553_s12 + $0x408] sm:$0xff] }
0x13fa   :  { %10227 = vmatprep.subr.mxu0 %v21819_v19  ;;  %22378 = vst [vmem:[#allocation10_spill] sm:$0xff] %v19708_v38 }
0x13fb   :  { %10228 = vmatpush3.msra.mxu0 %v19694_v41 }
0x13fc   :  { %10229 = vmatprep.subr.mxu0 %v21819_v19  ;;  %v11019_v22 = vpop.eup %11018 }
0x13fd   :  { %10230 = vmatpush3.msra.mxu0 %v19701_v3  ;;  %v6829_v41 = vmul.f32 %v11019_v22, %v22133_v52  ;;  %v11327_v3 = vld [vmem:[%s20548_s7 + $0x440] sm:$0xff]  ;;  %v11329_v22 = vld [vmem:[%s20548_s7 + $0x3f8] sm:$0xff] }
0x13fe   :  { %10231 = vmatprep.subr.mxu0 %v21819_v19 }
0x13ff   :  { %10232 = vmatpush3.msra.mxu0 %v19708_v38  ;;  %v11328_v38 = vld [vmem:[%s20548_s7 + $0x438] sm:$0xff] }
0x1400   :  { %10233 = vmatprep.subr.mxu0 %v21819_v19 }
0x1401   :  { %10234 = vmatpush3.msra.mxu0 %v19716_v28  ;;  %v11333_v28 = vld [vmem:[%s20548_s7 + $0x368] sm:$0xff] }
0x1402   :  { %10236 = vmatmul.mubr.f32.vlgmr.msra.gmra.mxu0 %v6829_v41  ;;  %7255 = vmatprep.subr.mxu0 %v11327_v3  ;;  %v11330_v41 = vld [vmem:[%s20548_s7 + $0x3f0] sm:$0xff] }
0x1403   :  { %7256 = vmatpush1.msra.mxu0 %v11328_v38  ;;  %7319 = vmatprep.mubr.f32.mxu0 %v21819_v19  ;;  %v11331_v3 = vld [vmem:[%s20548_s7 + $0x3b0] sm:$0xff]  ;;  %v11332_v38 = vld [vmem:[%s20548_s7 + $0x3a8] sm:$0xff] }
0x1404   :  { %7257 = vmatprep.subr.mxu0 %v11329_v22  ;;  %v11334_v22 = vld [vmem:[%s20548_s7 + $0x360] sm:$0xff] }
0x1405   :  { %7258 = vmatpush1.msra.mxu0 %v11330_v41  ;;  %v11335_v41 = vld [vmem:[%s20548_s7 + $0x320] sm:$0xff] }
0x1406   :  { %7259 = vmatprep.subr.mxu0 %v11331_v3  ;;  %v11336_v3 = vld [vmem:[%s20548_s7 + $0x318] sm:$0xff] }
0x1407   :  { %7260 = vmatpush1.msra.mxu0 %v11332_v38  ;;  %v11337_v38 = vld [vmem:[%s20548_s7 + $0x2d8] sm:$0xff] }
0x1408   :  { %7261 = vmatprep.subr.mxu0 %v11333_v28  ;;  %v11338_v28 = vld [vmem:[%s20548_s7 + $0x2d0] sm:$0xff] }
0x1409   :  { %7262 = vmatpush1.msra.mxu0 %v11334_v22  ;;  %v11339_v22 = vld [vmem:[%s20548_s7 + $0x290] sm:$0xff] }
0x140a   :  { %7263 = vmatprep.subr.mxu0 %v11335_v41  ;;  %v11340_v41 = vld [vmem:[%s20548_s7 + $0x288] sm:$0xff] }
0x140b   :  { %7264 = vmatpush1.msra.mxu0 %v11336_v3  ;;  %v11341_v3 = vld [vmem:[%s20548_s7 + $0x248] sm:$0xff] }
0x140c   :  { %7265 = vmatprep.subr.mxu0 %v11337_v38  ;;  %v11342_v38 = vld [vmem:[%s20548_s7 + $0x240] sm:$0xff] }
0x140d   :  { %7266 = vmatpush1.msra.mxu0 %v11338_v28  ;;  %v11343_v28 = vld [vmem:[%s20548_s7 + $0x200] sm:$0xff] }
0x140e   :  { %7267 = vmatprep.subr.mxu0 %v11339_v22  ;;  %v11344_v22 = vld [vmem:[%s20548_s7 + $0x1f8] sm:$0xff] }
0x140f   :  { %7268 = vmatpush1.msra.mxu0 %v11340_v41  ;;  %v11345_v41 = vld [vmem:[%s20548_s7 + $0x1b8] sm:$0xff] }
0x1410   :  { %7269 = vmatprep.subr.mxu0 %v11341_v3  ;;  %v11346_v3 = vld [vmem:[%s20548_s7 + $0x1b0] sm:$0xff] }
0x1411   :  { %7270 = vmatpush1.msra.mxu0 %v11342_v38  ;;  %v11347_v38 = vld [vmem:[%s20548_s7 + $0x170] sm:$0xff] }
0x1412   :  { %7271 = vmatprep.subr.mxu0 %v11343_v28  ;;  %v11348_v28 = vld [vmem:[%s20548_s7 + $0x168] sm:$0xff] }
0x1413   :  { %7272 = vmatpush1.msra.mxu0 %v11344_v22  ;;  %v11349_v22 = vld [vmem:[%s20548_s7 + $0x128] sm:$0xff] }
0x1414   :  { %7273 = vmatprep.subr.mxu0 %v11345_v41  ;;  %v11350_v41 = vld [vmem:[%s20548_s7 + $0x120] sm:$0xff] }
0x1415   :  { %7274 = vmatpush1.msra.mxu0 %v11346_v3  ;;  %v11351_v3 = vld [vmem:[%s20548_s7 + $0xe0] sm:$0xff] }
0x1416   :  { %7275 = vmatprep.subr.mxu0 %v11347_v38  ;;  %v11352_v38 = vld [vmem:[%s20548_s7 + $0xd8] sm:$0xff] }
0x1417   :  { %7276 = vmatpush1.msra.mxu0 %v11348_v28  ;;  %v11353_v28 = vld [vmem:[%s20548_s7 + $0x98] sm:$0xff] }
0x1418   :  { %7277 = vmatprep.subr.mxu0 %v11349_v22  ;;  %v11354_v22 = vld [vmem:[%s20548_s7 + $0x90] sm:$0xff] }
0x1419   :  { %7278 = vmatpush1.msra.mxu0 %v11350_v41  ;;  %v11355_v41 = vld [vmem:[%s20548_s7 + $0x50] sm:$0xff] }
0x141a   :  { %7279 = vmatprep.subr.mxu0 %v11351_v3  ;;  %v11356_v3 = vld [vmem:[%s20548_s7 + $0x48] sm:$0xff] }
0x141b   :  { %7280 = vmatpush1.msra.mxu0 %v11352_v38  ;;  %v11357_v38 = vld [vmem:[%s20548_s7 + $0x8] sm:$0xff] }
0x141c   :  { %7281 = vmatprep.subr.mxu0 %v11353_v28  ;;  %v11358_v28 = vld [vmem:[%s20548_s7] sm:$0xff] }
0x141d   :  { %7282 = vmatpush1.msra.mxu0 %v11354_v22  ;;  %v11359_v22 = vld [vmem:[%s20548_s7 + $0x460] sm:$0xff] }
0x141e   :  { %7283 = vmatprep.subr.mxu0 %v11355_v41 }
0x141f   :  { %7284 = vmatpush1.msra.mxu0 %v11356_v3 }
0x1420   :  { %7285 = vmatprep.subr.mxu0 %v11357_v38 }
0x1421   :  { %7286 = vmatpush1.msra.mxu0 %v11358_v28 }
0x1422   :  { %7397 = vmatprep.subr.mxu0 %v11359_v22 }
0x1480   :  { %v9286_v41 = vpop.f32.mrf.mxu0 }
0x1481   :  { %v9321_v52 = vpop.f32.mrf.mxu1 }
0x1482   :  { %v9287_v24 = vpop.f32.mrf.mxu0 }
0x1483   :  { %v9322_v3 = vpop.f32.mrf.mxu1  ;;  %v9288_v33 = vadd.f32 %v9287_v24, %v9286_v41  ;;  %v11372_v24 = vld [vmem:[%s20548_s7 + $0x298] sm:$0xff] }
0x1484   :  { %v9323_v58 = vadd.f32 %v9322_v3, %v9321_v52  ;;  %v11360_v52 = vld [vmem:[%s20548_s7 + $0x448] sm:$0xff]  ;;  %v11373_v41 = vld [vmem:[%s20548_s7 + $0x258] sm:$0xff]  ;;  %v11374_v3 = vld [vmem:[%s20548_s7 + $0x250] sm:$0xff] }
0x1486   :  { %v6967_v55 = vadd.f32 %v9323_v58, %v9288_v33  ;;  %v11368_v58 = vld [vmem:[%s20548_s7 + $0x328] sm:$0xff] }
0x1487   :  { %v11369_v33 = vld [vmem:[%s20548_s7 + $0x2e8] sm:$0xff] }
0x14a1   :  { %v9356_v62 = vpop.f32.mrf.mxu0 }
0x14a2   :  { %v9391_v36 = vpop.f32.mrf.mxu1 }
0x14a3   :  { %v9357_v25 = vpop.f32.mrf.mxu0 }
0x14a4   :  { %v9358_v38 = vadd.f32 %v9357_v25, %v9356_v62  ;;  %v9392_v49 = vpop.f32.mrf.mxu1  ;;  %v11370_v25 = vld [vmem:[%s20548_s7 + $0x2e0] sm:$0xff] }
0x14a5   :  { %v9393_v26 = vadd.f32 %v9392_v49, %v9391_v36  ;;  %v11361_v36 = vld [vmem:[%s20548_s7 + $0x408] sm:$0xff]  ;;  %v11366_v49 = vld [vmem:[%s20548_s7 + $0x370] sm:$0xff]  ;;  %v11371_v62 = vld [vmem:[%s20548_s7 + $0x2a0] sm:$0xff] }
0x14a6   :  { %v7037_v23 = vadd.f32 %v9358_v38, %v6967_v55  ;;  %v11367_v55 = vld [vmem:[%s20548_s7 + $0x330] sm:$0xff] }
0x14a7   :  { %v11375_v38 = vld [vmem:[%s20548_s7 + $0x210] sm:$0xff] }
0x14a8   :  { %v7107_v28 = vadd.f32 %v9393_v26, %v7037_v23  ;;  %v11364_v26 = vld [vmem:[%s20548_s7 + $0x3b8] sm:$0xff] }
0x14a9   :  { %v11365_v23 = vld [vmem:[%s20548_s7 + $0x378] sm:$0xff] }
0x14c2   :  { %v7176_v53 = vpop.f32.mrf.mxu0 }
0x14c3   :  { %v19819_v6 = vadd.f32 %v7176_v53, %v7107_v28  ;;  %v11363_v53 = vld [vmem:[%s20548_s7 + $0x3c0] sm:$0xff]  ;;  %v11376_v28 = vld [vmem:[%s20548_s7 + $0x208] sm:$0xff] }
0x14c4   :  { %v10237_v47 = vpop.f32.mrf.mxu0 }
0x14c5   :  { %v7180_v22 = vadd.f32 %v11605_v30, %v19819_v6  ;;  %v11362_v47 = vld [vmem:[%s20548_s7 + $0x400] sm:$0xff] }
0x14c7   :  { %10255 = vmatmul.mubr.msk.f32.vlgmr.msra.gmra.mxu1 %vm4452_vm9, %v7180_v22  ;;  %v11377_v22 = vld [vmem:[%s20548_s7 + $0x1c8] sm:$0xff] }
0x14c8   :  { %7327 = vmatpush1.msra.mxu1 %v11360_v52  ;;  %7390 = vmatprep.mubr.f32.mxu1 %v21819_v19  ;;  %v11378_v52 = vld [vmem:[%s20548_s7 + $0x1c0] sm:$0xff] }
0x14c9   :  { %7328 = vmatprep.subr.mxu1 %v11361_v36  ;;  %v11379_v36 = vld [vmem:[%s20548_s7 + $0x180] sm:$0xff] }
0x14ca   :  { %7329 = vmatpush1.msra.mxu1 %v11362_v47  ;;  %v11380_v47 = vld [vmem:[%s20548_s7 + $0x178] sm:$0xff] }
0x14cb   :  { %7330 = vmatprep.subr.mxu1 %v11363_v53  ;;  %v11381_v53 = vld [vmem:[%s20548_s7 + $0x138] sm:$0xff] }
0x14cc   :  { %7331 = vmatpush1.msra.mxu1 %v11364_v26  ;;  %v11382_v26 = vld [vmem:[%s20548_s7 + $0x130] sm:$0xff] }
0x14cd   :  { %7332 = vmatprep.subr.mxu1 %v11365_v23  ;;  %v11383_v23 = vld [vmem:[%s20548_s7 + $0xf0] sm:$0xff] }
0x14ce   :  { %7333 = vmatpush1.msra.mxu1 %v11366_v49  ;;  %v11384_v49 = vld [vmem:[%s20548_s7 + $0xe8] sm:$0xff] }
0x14cf   :  { %7334 = vmatprep.subr.mxu1 %v11367_v55  ;;  %v11385_v55 = vld [vmem:[%s20548_s7 + $0xa8] sm:$0xff] }
0x14d0   :  { %7335 = vmatpush1.msra.mxu1 %v11368_v58  ;;  %v11386_v58 = vld [vmem:[%s20548_s7 + $0xa0] sm:$0xff] }
0x14d1   :  { %7336 = vmatprep.subr.mxu1 %v11369_v33  ;;  %v11387_v33 = vld [vmem:[%s20548_s7 + $0x60] sm:$0xff] }
0x14d2   :  { %7337 = vmatpush1.msra.mxu1 %v11370_v25  ;;  %v11388_v25 = vld [vmem:[%s20548_s7 + $0x58] sm:$0xff] }
0x14d3   :  { %7338 = vmatprep.subr.mxu1 %v11371_v62  ;;  %v11389_v62 = vld [vmem:[%s20548_s7 + $0x18] sm:$0xff] }
0x14d4   :  { %7339 = vmatpush1.msra.mxu1 %v11372_v24  ;;  %v11390_v24 = vld [vmem:[%s20548_s7 + $0x10] sm:$0xff] }
0x14d5   :  { %7340 = vmatprep.subr.mxu1 %v11373_v41  ;;  %v11391_v41 = vld [vmem:[%s20548_s7 + $0x470] sm:$0xff] }
0x14d6   :  { %7341 = vmatpush1.msra.mxu1 %v11374_v3 }
0x14d7   :  { %7342 = vmatprep.subr.mxu1 %v11375_v38 }
0x14d8   :  { %7343 = vmatpush1.msra.mxu1 %v11376_v28 }
0x14d9   :  { %7344 = vmatprep.subr.mxu1 %v11377_v22 }
0x14da   :  { %7345 = vmatpush1.msra.mxu1 %v11378_v52  ;;  %v11392_v52 = vld [vmem:[%s20548_s7 + $0x458] sm:$0xff] }
0x14db   :  { %7346 = vmatprep.subr.mxu1 %v11379_v36  ;;  %v11393_v36 = vld [vmem:[%s20548_s7 + $0x468] sm:$0xff] }
0x14dc   :  { %7347 = vmatpush1.msra.mxu1 %v11380_v47  ;;  %v11395_v47 = vld [vmem:[%s20548_s7 + $0x428] sm:$0xff] }
0x14dd   :  { %7348 = vmatprep.subr.mxu1 %v11381_v53  ;;  %v11396_v53 = vld [vmem:[%s20548_s7 + $0x410] sm:$0xff] }
0x14de   :  { %7349 = vmatpush1.msra.mxu1 %v11382_v26  ;;  %v11397_v26 = vld [vmem:[%s20548_s7 + $0x420] sm:$0xff] }
0x14df   :  { %7350 = vmatprep.subr.mxu1 %v11383_v23  ;;  %v11398_v23 = vld [vmem:[%s20548_s7 + $0x3d0] sm:$0xff] }
0x14e0   :  { %7351 = vmatpush1.msra.mxu1 %v11384_v49  ;;  %v11399_v49 = vld [vmem:[%s20548_s7 + $0x3e0] sm:$0xff] }
0x14e1   :  { %7352 = vmatprep.subr.mxu1 %v11385_v55  ;;  %v11400_v55 = vld [vmem:[%s20548_s7 + $0x3c8] sm:$0xff] }
0x14e2   :  { %7353 = vmatpush1.msra.mxu1 %v11386_v58  ;;  %v11401_v58 = vld [vmem:[%s20548_s7 + $0x3d8] sm:$0xff] }
0x14e3   :  { %7354 = vmatprep.subr.mxu1 %v11387_v33  ;;  %v11402_v33 = vld [vmem:[%s20548_s7 + $0x388] sm:$0xff] }
0x14e4   :  { %7355 = vmatpush1.msra.mxu1 %v11388_v25  ;;  %v11403_v25 = vld [vmem:[%s20548_s7 + $0x398] sm:$0xff] }
0x14e5   :  { %7356 = vmatprep.subr.mxu1 %v11389_v62  ;;  %v11404_v62 = vld [vmem:[%s20548_s7 + $0x380] sm:$0xff] }
0x14e6   :  { %7357 = vmatpush1.msra.mxu1 %v11390_v24  ;;  %v11405_v24 = vld [vmem:[%s20548_s7 + $0x390] sm:$0xff] }
0x14e7   :  { %7468 = vmatprep.subr.mxu1 %v11391_v41  ;;  %v11406_v41 = vld [vmem:[%s20548_s7 + $0x340] sm:$0xff] }
0x1587   :  { %v7250_v3 = vpop.f32.mrf.mxu1 }
0x1588   :  { %v7251_v38 = vadd.f32 %v7250_v3, %v22194_v1  ;;  %v11394_v1 = vld [vmem:[%s20548_s7 + $0x418] sm:$0xff]  ;;  %v11407_v3 = vld [vmem:[%s20548_s7 + $0x350] sm:$0xff] }
0x1589   :  { %v10256_v28 = vpop.f32.mrf.mxu1 }
0x158a   :  { %v19922_v22 = vmax.f32 %v7251_v38, 0.0  ;;  %v11408_v38 = vld [vmem:[%s20548_s7 + $0x338] sm:$0xff]  ;;  %v11409_v28 = vld [vmem:[%s20548_s7 + $0x348] sm:$0xff] }
0x158c   :  { %7320 = vmatmul.mubr.f32.vlgmr.msra.gmra.mxu0 %v19922_v22  ;;  %7391 = vmatmul.mubr.f32.vlgmr.msra.gmra.mxu1 %v19922_v22 }
0x158d   :  { %7398 = vmatpush1.msra.mxu0 %v11392_v52  ;;  %7469 = vmatpush1.msra.mxu1 %v11393_v36  ;;  %v11410_v52 = vld [vmem:[%s20548_s7 + $0x2f8] sm:$0xff]  ;;  %v11411_v36 = vld [vmem:[%s20548_s7 + $0x308] sm:$0xff] }
0x158e   :  { %7399 = vmatprep.subr.mxu0 %v11394_v1  ;;  %7470 = vmatprep.subr.mxu1 %v11395_v47  ;;  %v11412_v1 = vld [vmem:[%s20548_s7 + $0x2f0] sm:$0xff]  ;;  %v11413_v47 = vld [vmem:[%s20548_s7 + $0x300] sm:$0xff] }
0x158f   :  { %7400 = vmatpush1.msra.mxu0 %v11396_v53  ;;  %7471 = vmatpush1.msra.mxu1 %v11397_v26  ;;  %v11414_v53 = vld [vmem:[%s20548_s7 + $0x2b0] sm:$0xff]  ;;  %v11415_v26 = vld [vmem:[%s20548_s7 + $0x2c0] sm:$0xff] }
0x1590   :  { %7401 = vmatprep.subr.mxu0 %v11398_v23  ;;  %7472 = vmatprep.subr.mxu1 %v11399_v49  ;;  %v11416_v23 = vld [vmem:[%s20548_s7 + $0x2a8] sm:$0xff]  ;;  %v11417_v49 = vld [vmem:[%s20548_s7 + $0x2b8] sm:$0xff] }
0x1591   :  { %7402 = vmatpush1.msra.mxu0 %v11400_v55  ;;  %7473 = vmatpush1.msra.mxu1 %v11401_v58  ;;  %v11418_v55 = vld [vmem:[%s20548_s7 + $0x268] sm:$0xff]  ;;  %v11419_v58 = vld [vmem:[%s20548_s7 + $0x278] sm:$0xff] }
0x1592   :  { %7403 = vmatprep.subr.mxu0 %v11402_v33  ;;  %7474 = vmatprep.subr.mxu1 %v11403_v25  ;;  %v11420_v33 = vld [vmem:[%s20548_s7 + $0x260] sm:$0xff]  ;;  %v11421_v25 = vld [vmem:[%s20548_s7 + $0x270] sm:$0xff] }
0x1593   :  { %7404 = vmatpush1.msra.mxu0 %v11404_v62  ;;  %7475 = vmatpush1.msra.mxu1 %v11405_v24  ;;  %v11422_v62 = vld [vmem:[%s20548_s7 + $0x220] sm:$0xff]  ;;  %v11423_v24 = vld [vmem:[%s20548_s7 + $0x230] sm:$0xff] }
0x1594   :  { %7405 = vmatprep.subr.mxu0 %v11406_v41  ;;  %7476 = vmatprep.subr.mxu1 %v11407_v3  ;;  %v11424_v41 = vld [vmem:[%s20548_s7 + $0x218] sm:$0xff]  ;;  %v11425_v3 = vld [vmem:[%s20548_s7 + $0x228] sm:$0xff] }
0x1595   :  { %7406 = vmatpush1.msra.mxu0 %v11408_v38  ;;  %7477 = vmatpush1.msra.mxu1 %v11409_v28  ;;  %v11426_v38 = vld [vmem:[%s20548_s7 + $0x1d8] sm:$0xff]  ;;  %v11427_v28 = vld [vmem:[%s20548_s7 + $0x1e8] sm:$0xff] }
0x1596   :  { %7407 = vmatprep.subr.mxu0 %v11410_v52  ;;  %7478 = vmatprep.subr.mxu1 %v11411_v36  ;;  %v11428_v52 = vld [vmem:[%s20548_s7 + $0x1d0] sm:$0xff]  ;;  %v11429_v36 = vld [vmem:[%s20548_s7 + $0x1e0] sm:$0xff] }
0x1597   :  { %7408 = vmatpush1.msra.mxu0 %v11412_v1  ;;  %7479 = vmatpush1.msra.mxu1 %v11413_v47  ;;  %v11430_v1 = vld [vmem:[%s20548_s7 + $0x190] sm:$0xff]  ;;  %v11431_v47 = vld [vmem:[%s20548_s7 + $0x1a0] sm:$0xff] }
0x1598   :  { %7409 = vmatprep.subr.mxu0 %v11414_v53  ;;  %7480 = vmatprep.subr.mxu1 %v11415_v26  ;;  %v11432_v53 = vld [vmem:[%s20548_s7 + $0x188] sm:$0xff]  ;;  %v11433_v26 = vld [vmem:[%s20548_s7 + $0x198] sm:$0xff] }
0x1599   :  { %7410 = vmatpush1.msra.mxu0 %v11416_v23  ;;  %7481 = vmatpush1.msra.mxu1 %v11417_v49  ;;  %v11434_v23 = vld [vmem:[%s20548_s7 + $0x148] sm:$0xff]  ;;  %v11435_v49 = vld [vmem:[%s20548_s7 + $0x158] sm:$0xff] }
0x159a   :  { %7411 = vmatprep.subr.mxu0 %v11418_v55  ;;  %7482 = vmatprep.subr.mxu1 %v11419_v58  ;;  %v11436_v55 = vld [vmem:[%s20548_s7 + $0x140] sm:$0xff]  ;;  %v11437_v58 = vld [vmem:[%s20548_s7 + $0x150] sm:$0xff] }
0x159b   :  { %7412 = vmatpush1.msra.mxu0 %v11420_v33  ;;  %7483 = vmatpush1.msra.mxu1 %v11421_v25  ;;  %v11438_v33 = vld [vmem:[%s20548_s7 + $0x100] sm:$0xff]  ;;  %v11439_v25 = vld [vmem:[%s20548_s7 + $0x110] sm:$0xff] }
0x159c   :  { %7413 = vmatprep.subr.mxu0 %v11422_v62  ;;  %7484 = vmatprep.subr.mxu1 %v11423_v24  ;;  %v11440_v62 = vld [vmem:[%s20548_s7 + $0xf8] sm:$0xff]  ;;  %v11441_v24 = vld [vmem:[%s20548_s7 + $0x108] sm:$0xff] }
0x159d   :  { %7414 = vmatpush1.msra.mxu0 %v11424_v41  ;;  %7485 = vmatpush1.msra.mxu1 %v11425_v3  ;;  %v11442_v41 = vld [vmem:[%s20548_s7 + $0xb8] sm:$0xff]  ;;  %v11443_v3 = vld [vmem:[%s20548_s7 + $0xc8] sm:$0xff] }
0x159e   :  { %7415 = vmatprep.subr.mxu0 %v11426_v38  ;;  %7486 = vmatprep.subr.mxu1 %v11427_v28  ;;  %v11444_v38 = vld [vmem:[%s20548_s7 + $0xb0] sm:$0xff]  ;;  %v11445_v28 = vld [vmem:[%s20548_s7 + $0xc0] sm:$0xff] }
0x159f   :  { %7416 = vmatpush1.msra.mxu0 %v11428_v52  ;;  %7487 = vmatpush1.msra.mxu1 %v11429_v36  ;;  %v11446_v52 = vld [vmem:[%s20548_s7 + $0x70] sm:$0xff]  ;;  %v11447_v36 = vld [vmem:[%s20548_s7 + $0x80] sm:$0xff] }
0x15a0   :  { %7417 = vmatprep.subr.mxu0 %v11430_v1  ;;  %7488 = vmatprep.subr.mxu1 %v11431_v47  ;;  %v11448_v1 = vld [vmem:[%s20548_s7 + $0x68] sm:$0xff]  ;;  %v11449_v47 = vld [vmem:[%s20548_s7 + $0x78] sm:$0xff] }
0x15a1   :  { %7418 = vmatpush1.msra.mxu0 %v11432_v53  ;;  %7489 = vmatpush1.msra.mxu1 %v11433_v26  ;;  %v11450_v53 = vld [vmem:[%s20548_s7 + $0x28] sm:$0xff]  ;;  %v11451_v26 = vld [vmem:[%s20548_s7 + $0x38] sm:$0xff] }
0x15a2   :  { %7419 = vmatprep.subr.mxu0 %v11434_v23  ;;  %7490 = vmatprep.subr.mxu1 %v11435_v49  ;;  %v11452_v23 = vld [vmem:[%s20548_s7 + $0x20] sm:$0xff]  ;;  %v11453_v49 = vld [vmem:[%s20548_s7 + $0x30] sm:$0xff] }
0x15a3   :  { %7420 = vmatpush1.msra.mxu0 %v11436_v55  ;;  %7491 = vmatpush1.msra.mxu1 %v11437_v58  ;;  %v11454_v55 = vld [vmem:[%s20548_s7 + $0x478] sm:$0xff] }
0x15a4   :  { %7421 = vmatprep.subr.mxu0 %v11438_v33  ;;  %7492 = vmatprep.subr.mxu1 %v11439_v25  ;;  %v11455_v58 = vld [vmem:[%s20553_s12 + $0xf8] sm:$0xff]  ;;  %v11457_v25 = vld [vmem:[%s20548_s7 + $0x430] sm:$0xff] }
0x15a5   :  { %7422 = vmatpush1.msra.mxu0 %v11440_v62  ;;  %7493 = vmatpush1.msra.mxu1 %v11441_v24  ;;  %v11456_v33 = vld [vmem:[%s20553_s12 + $0x78] sm:$0xff]  ;;  %v11458_v62 = vld [vmem:[%s20553_s12 + $0xf0] sm:$0xff] }
0x15a6   :  { %7423 = vmatprep.subr.mxu0 %v11442_v41  ;;  %7494 = vmatprep.subr.mxu1 %v11443_v3  ;;  %v11459_v24 = vld [vmem:[%s20553_s12 + $0x70] sm:$0xff]  ;;  %v11460_v41 = vld [vmem:[%s20548_s7 + $0x3e8] sm:$0xff] }
0x15a7   :  { %7424 = vmatpush1.msra.mxu0 %v11444_v38  ;;  %7495 = vmatpush1.msra.mxu1 %v11445_v28  ;;  %v11461_v3 = vld [vmem:[%s20553_s12 + $0xe8] sm:$0xff]  ;;  %v11463_v28 = vld [vmem:[%s20548_s7 + $0x3a0] sm:$0xff] }
0x15a8   :  { %7425 = vmatprep.subr.mxu0 %v11446_v52  ;;  %7496 = vmatprep.subr.mxu1 %v11447_v36  ;;  %v11462_v38 = vld [vmem:[%s20553_s12 + $0x68] sm:$0xff]  ;;  %v11464_v52 = vld [vmem:[%s20553_s12 + $0xe0] sm:$0xff] }
0x15a9   :  { %7426 = vmatpush1.msra.mxu0 %v11448_v1  ;;  %7497 = vmatpush1.msra.mxu1 %v11449_v47  ;;  %v11465_v36 = vld [vmem:[%s20553_s12 + $0x60] sm:$0xff]  ;;  %v11466_v1 = vld [vmem:[%s20548_s7 + $0x358] sm:$0xff] }
0x15aa   :  { %7427 = vmatprep.subr.mxu0 %v11450_v53  ;;  %7498 = vmatprep.subr.mxu1 %v11451_v26  ;;  %v11467_v47 = vld [vmem:[%s20553_s12 + $0xd8] sm:$0xff]  ;;  %v11469_v26 = vld [vmem:[%s20548_s7 + $0x310] sm:$0xff] }
0x15ab   :  { %7428 = vmatpush1.msra.mxu0 %v11452_v23  ;;  %7461 = vmatprep.mubr.f32.mxu0 %v21819_v19  ;;  %v11468_v53 = vld [vmem:[%s20553_s12 + $0x58] sm:$0xff]  ;;  %v11470_v23 = vld [vmem:[%s20553_s12 + $0xd0] sm:$0xff] }
0x15ac   :  { %7499 = vmatpush1.msra.mxu1 %v11453_v49  ;;  %7532 = vmatprep.mubr.f32.mxu1 %v21819_v19  ;;  %v11471_v49 = vld [vmem:[%s20553_s12 + $0x50] sm:$0xff] }
0x15ad   :  { %7462 = vmatmul.mubr.f32.vlgmr.msra.gmra.mxu0 %v19922_v22  ;;  %7533 = vmatmul.mubr.f32.vlgmr.msra.gmra.mxu1 %v19922_v22 }
0x15ae   :  { %10257 = vmatprep.subr.mxu0 %v21819_v19  ;;  %10289 = vmatprep.mubr.msk.f32.mxu0 %vm11608_vm2, %v21819_v19 }
0x15af   :  { %10258 = vmatpush3.msra.mxu0 %v11454_v55  ;;  %9437 = vmatprep.subr.mxu1 %v11455_v58  ;;  %v11472_v55 = vld [vmem:[%s20548_s7 + $0x2c8] sm:$0xff] }
0x15b0   :  { %10259 = vmatprep.subr.mxu0 %v21819_v19  ;;  %9438 = vmatpush3.msra.mxu1 %v11456_v33  ;;  %v11473_v58 = vld [vmem:[%s20553_s12 + $0xc8] sm:$0xff] }
0x15b1   :  { %10260 = vmatpush3.msra.mxu0 %v11457_v25  ;;  %9439 = vmatprep.subr.mxu1 %v11458_v62  ;;  %v11474_v33 = vld [vmem:[%s20553_s12 + $0x48] sm:$0xff]  ;;  %v11475_v25 = vld [vmem:[%s20548_s7 + $0x280] sm:$0xff] }
0x15b2   :  { %10261 = vmatprep.subr.mxu0 %v21819_v19  ;;  %9440 = vmatpush3.msra.mxu1 %v11459_v24  ;;  %v11476_v62 = vld [vmem:[%s20553_s12 + $0xc0] sm:$0xff] }
0x15b3   :  { %10262 = vmatpush3.msra.mxu0 %v11460_v41  ;;  %9441 = vmatprep.subr.mxu1 %v11461_v3  ;;  %v11477_v24 = vld [vmem:[%s20553_s12 + $0x40] sm:$0xff]  ;;  %v11478_v41 = vld [vmem:[%s20548_s7 + $0x238] sm:$0xff] }
0x15b4   :  { %10263 = vmatprep.subr.mxu0 %v21819_v19  ;;  %9442 = vmatpush3.msra.mxu1 %v11462_v38  ;;  %v11479_v3 = vld [vmem:[%s20553_s12 + $0xb8] sm:$0xff] }
0x15b5   :  { %10264 = vmatpush3.msra.mxu0 %v11463_v28  ;;  %9443 = vmatprep.subr.mxu1 %v11464_v52  ;;  %v11480_v38 = vld [vmem:[%s20553_s12 + $0x38] sm:$0xff]  ;;  %v11481_v28 = vld [vmem:[%s20548_s7 + $0x1f0] sm:$0xff] }
0x15b6   :  { %10265 = vmatprep.subr.mxu0 %v21819_v19  ;;  %9444 = vmatpush3.msra.mxu1 %v11465_v36  ;;  %v11482_v52 = vld [vmem:[%s20553_s12 + $0xb0] sm:$0xff] }
0x15b7   :  { %10266 = vmatpush3.msra.mxu0 %v11466_v1  ;;  %9445 = vmatprep.subr.mxu1 %v11467_v47  ;;  %v11483_v36 = vld [vmem:[%s20553_s12 + $0x30] sm:$0xff]  ;;  %v11484_v1 = vld [vmem:[%s20548_s7 + $0x1a8] sm:$0xff] }
0x15b8   :  { %10267 = vmatprep.subr.mxu0 %v21819_v19  ;;  %9446 = vmatpush3.msra.mxu1 %v11468_v53  ;;  %v11485_v47 = vld [vmem:[%s20553_s12 + $0xa8] sm:$0xff] }
0x15b9   :  { %10268 = vmatpush3.msra.mxu0 %v11469_v26  ;;  %9447 = vmatprep.subr.mxu1 %v11470_v23  ;;  %v11486_v53 = vld [vmem:[%s20553_s12 + $0x28] sm:$0xff]  ;;  %v11487_v26 = vld [vmem:[%s20548_s7 + $0x160] sm:$0xff] }
0x15ba   :  { %10269 = vmatprep.subr.mxu0 %v21819_v19  ;;  %9448 = vmatpush3.msra.mxu1 %v11471_v49  ;;  %v11488_v23 = vld [vmem:[%s20553_s12 + $0xa0] sm:$0xff] }
0x15bb   :  { %10270 = vmatpush3.msra.mxu0 %v11472_v55  ;;  %9449 = vmatprep.subr.mxu1 %v11473_v58  ;;  %v11489_v49 = vld [vmem:[%s20553_s12 + $0x20] sm:$0xff]  ;;  %v11490_v55 = vld [vmem:[%s20548_s7 + $0x118] sm:$0xff] }
0x15bc   :  { %10271 = vmatprep.subr.mxu0 %v21819_v19  ;;  %9450 = vmatpush3.msra.mxu1 %v11474_v33  ;;  %v11491_v58 = vld [vmem:[%s20553_s12 + $0x98] sm:$0xff] }
0x15bd   :  { %10272 = vmatpush3.msra.mxu0 %v11475_v25  ;;  %9451 = vmatprep.subr.mxu1 %v11476_v62  ;;  %v11492_v33 = vld [vmem:[%s20553_s12 + $0x18] sm:$0xff]  ;;  %v11493_v25 = vld [vmem:[%s20548_s7 + $0xd0] sm:$0xff] }
0x15be   :  { %10273 = vmatprep.subr.mxu0 %v21819_v19  ;;  %9452 = vmatpush3.msra.mxu1 %v11477_v24  ;;  %v11494_v62 = vld [vmem:[%s20553_s12 + $0x90] sm:$0xff] }
0x15bf   :  { %10274 = vmatpush3.msra.mxu0 %v11478_v41  ;;  %9453 = vmatprep.subr.mxu1 %v11479_v3  ;;  %v11495_v24 = vld [vmem:[%s20553_s12 + $0x10] sm:$0xff]  ;;  %v11496_v41 = vld [vmem:[%s20548_s7 + $0x88] sm:$0xff] }
0x15c0   :  { %10275 = vmatprep.subr.mxu0 %v21819_v19  ;;  %9454 = vmatpush3.msra.mxu1 %v11480_v38  ;;  %v11497_v3 = vld [vmem:[%s20553_s12 + $0x88] sm:$0xff] }
0x15c1   :  { %10276 = vmatpush3.msra.mxu0 %v11481_v28  ;;  %9455 = vmatprep.subr.mxu1 %v11482_v52  ;;  %v11498_v38 = vld [vmem:[%s20553_s12 + $0x8] sm:$0xff]  ;;  %v11499_v28 = vld [vmem:[%s20548_s7 + $0x40] sm:$0xff] }
0x15c2   :  { %10277 = vmatprep.subr.mxu0 %v21819_v19  ;;  %9456 = vmatpush3.msra.mxu1 %v11483_v36  ;;  %v11500_v52 = vld [vmem:[%s20553_s12 + $0x80] sm:$0xff]  ;;  %v11501_v36 = vld [vmem:[%s20553_s12 + $0x1f8] sm:$0xff] }
0x15c3   :  { %10278 = vmatpush3.msra.mxu0 %v11484_v1  ;;  %9457 = vmatprep.subr.mxu1 %v11485_v47  ;;  %v11502_v1 = vld [vmem:[%s20553_s12 + $0x178] sm:$0xff]  ;;  %v11503_v47 = vld [vmem:[%s20553_s12] sm:$0xff] }
0x15c4   :  { %10279 = vmatprep.subr.mxu0 %v21819_v19  ;;  %9458 = vmatpush3.msra.mxu1 %v11486_v53  ;;  %v11504_v53 = vld [vmem:[%s20553_s12 + $0x1f0] sm:$0xff] }
0x15c5   :  { %10280 = vmatpush3.msra.mxu0 %v11487_v26  ;;  %9459 = vmatprep.subr.mxu1 %v11488_v23  ;;  %v11506_v26 = vld [vmem:[%s20553_s12 + $0x170] sm:$0xff]  ;;  %v11507_v23 = vld [vmem:[%s20553_s12 + $0x1e8] sm:$0xff] }
0x15c6   :  { %10281 = vmatprep.subr.mxu0 %v21819_v19  ;;  %9460 = vmatpush3.msra.mxu1 %v11489_v49  ;;  %v11508_v49 = vld [vmem:[%s20553_s12 + $0x168] sm:$0xff] }
0x15c7   :  { %10282 = vmatpush3.msra.mxu0 %v11490_v55  ;;  %9461 = vmatprep.subr.mxu1 %v11491_v58  ;;  %v11509_v55 = vld [vmem:[%s20553_s12 + $0x1e0] sm:$0xff] }
0x15c8   :  { %10283 = vmatprep.subr.mxu0 %v21819_v19  ;;  %9462 = vmatpush3.msra.mxu1 %v11492_v33  ;;  %v11510_v58 = vld [vmem:[%s20553_s12 + $0x160] sm:$0xff]  ;;  %v11511_v33 = vld [vmem:[%s20553_s12 + $0x1d8] sm:$0xff] }
0x15c9   :  { %10284 = vmatpush3.msra.mxu0 %v11493_v25  ;;  %9463 = vmatprep.subr.mxu1 %v11494_v62  ;;  %v11512_v25 = vld [vmem:[%s20553_s12 + $0x158] sm:$0xff]  ;;  %v11513_v62 = vld [vmem:[%s20553_s12 + $0x1d0] sm:$0xff] }
0x15ca   :  { %10285 = vmatprep.subr.mxu0 %v21819_v19  ;;  %9464 = vmatpush3.msra.mxu1 %v11495_v24  ;;  %v11514_v24 = vld [vmem:[%s20553_s12 + $0x150] sm:$0xff] }
0x15cb   :  { %10286 = vmatpush3.msra.mxu0 %v11496_v41  ;;  %9465 = vmatprep.subr.mxu1 %v11497_v3  ;;  %v11515_v41 = vld [vmem:[%s20553_s12 + $0x1c8] sm:$0xff] }
0x15cc   :  { %10287 = vmatprep.subr.mxu0 %v21819_v19  ;;  %9466 = vmatpush3.msra.mxu1 %v11498_v38  ;;  %v11516_v3 = vld [vmem:[%s20553_s12 + $0x148] sm:$0xff]  ;;  %v11517_v38 = vld [vmem:[%s20553_s12 + $0x1c0] sm:$0xff] }
0x15cd   :  { %10288 = vmatpush3.msra.mxu0 %v11499_v28  ;;  %9467 = vmatprep.subr.mxu1 %v11500_v52  ;;  %v11518_v28 = vld [vmem:[%s20553_s12 + $0x140] sm:$0xff]  ;;  %v11519_v52 = vld [vmem:[%s20553_s12 + $0x1b8] sm:$0xff] }
0x15ce   :  { %10290 = vmatmul.mubr.f32.vlgmr.msra.gmra.mxu0 %v19922_v22  ;;  %9472 = vmatprep.subr.mxu0 %v11501_v36  ;;  %v11505_v22 = vld [vmem:[%s20553_s12 + $0x2f8] sm:$0xff] }
0x15cf   :  { %9473 = vmatpush3.msra.mxu0 %v11502_v1  ;;  %9468 = vmatpush3.msra.mxu1 %v11503_v47  ;;  %v11520_v36 = vld [vmem:[%s20553_s12 + $0x138] sm:$0xff]  ;;  %v11521_v1 = vld [vmem:[%s20553_s12 + $0x1b0] sm:$0xff] }
0x15d0   :  { %9474 = vmatprep.subr.mxu0 %v11504_v53  ;;  %9507 = vmatprep.subr.mxu1 %v11505_v22  ;;  %v11522_v47 = vld [vmem:[%s20553_s12 + $0x130] sm:$0xff]  ;;  %v11523_v53 = vld [vmem:[%s20553_s12 + $0x1a8] sm:$0xff] }
0x15d1   :  { %9475 = vmatpush3.msra.mxu0 %v11506_v26  ;;  %v11524_v22 = vld [vmem:[%s20553_s12 + $0x128] sm:$0xff]  ;;  %v11525_v26 = vld [vmem:[%s20553_s12 + $0x1a0] sm:$0xff] }
0x15d2   :  { %9476 = vmatprep.subr.mxu0 %v11507_v23  ;;  %v11526_v23 = vld [vmem:[%s20553_s12 + $0x120] sm:$0xff] }
0x15d3   :  { %9477 = vmatpush3.msra.mxu0 %v11508_v49  ;;  %v11527_v49 = vld [vmem:[%s20553_s12 + $0x198] sm:$0xff] }
0x15d4   :  { %9478 = vmatprep.subr.mxu0 %v11509_v55  ;;  %v11528_v55 = vld [vmem:[%s20553_s12 + $0x118] sm:$0xff] }
0x15d5   :  { %9479 = vmatpush3.msra.mxu0 %v11510_v58  ;;  %v11529_v58 = vld [vmem:[%s20553_s12 + $0x190] sm:$0xff] }
0x15d6   :  { %9480 = vmatprep.subr.mxu0 %v11511_v33  ;;  %v11530_v33 = vld [vmem:[%s20553_s12 + $0x110] sm:$0xff] }
0x15d7   :  { %9481 = vmatpush3.msra.mxu0 %v11512_v25  ;;  %v11531_v25 = vld [vmem:[%s20553_s12 + $0x188] sm:$0xff] }
0x15d8   :  { %9482 = vmatprep.subr.mxu0 %v11513_v62  ;;  %v11532_v62 = vld [vmem:[%s20553_s12 + $0x108] sm:$0xff] }
0x15d9   :  { %9483 = vmatpush3.msra.mxu0 %v11514_v24  ;;  %v11533_v24 = vld [vmem:[%s20553_s12 + $0x180] sm:$0xff] }
0x15da   :  { %9484 = vmatprep.subr.mxu0 %v11515_v41  ;;  %v11534_v41 = vld [vmem:[%s20553_s12 + $0x100] sm:$0xff] }
0x15db   :  { %9485 = vmatpush3.msra.mxu0 %v11516_v3  ;;  %v11535_v3 = vld [vmem:[%s20553_s12 + $0x3f8] sm:$0xff] }
0x15dc   :  { %9486 = vmatprep.subr.mxu0 %v11517_v38 }
0x15dd   :  { %9487 = vmatpush3.msra.mxu0 %v11518_v28 }
0x15de   :  { %9488 = vmatprep.subr.mxu0 %v11519_v52 }
0x15df   :  { %9489 = vmatpush3.msra.mxu0 %v11520_v36 }
0x15e0   :  { %9490 = vmatprep.subr.mxu0 %v11521_v1 }
0x15e1   :  { %9491 = vmatpush3.msra.mxu0 %v11522_v47 }
0x15e2   :  { %9492 = vmatprep.subr.mxu0 %v11523_v53 }
0x15e3   :  { %9493 = vmatpush3.msra.mxu0 %v11524_v22 }
0x15e4   :  { %9494 = vmatprep.subr.mxu0 %v11525_v26 }
0x15e5   :  { %9495 = vmatpush3.msra.mxu0 %v11526_v23 }
0x15e6   :  { %9496 = vmatprep.subr.mxu0 %v11527_v49 }
0x15e7   :  { %9497 = vmatpush3.msra.mxu0 %v11528_v55 }
0x15e8   :  { %9498 = vmatprep.subr.mxu0 %v11529_v58 }
0x15e9   :  { %9499 = vmatpush3.msra.mxu0 %v11530_v33 }
0x15ea   :  { %9500 = vmatprep.subr.mxu0 %v11531_v25  ;;  %v11541_v25 = vld [vmem:[%s20553_s12 + $0x370] sm:$0xff] }
0x15eb   :  { %9501 = vmatpush3.msra.mxu0 %v11532_v62  ;;  %v11542_v62 = vld [vmem:[%s20553_s12 + $0x2e8] sm:$0xff] }
0x15ec   :  { %9502 = vmatprep.subr.mxu0 %v11533_v24  ;;  %v11543_v24 = vld [vmem:[%s20553_s12 + $0x3e8] sm:$0xff] }
0x15ed   :  { %9503 = vmatpush3.msra.mxu0 %v11534_v41  ;;  %v11544_v41 = vld [vmem:[%s20553_s12 + $0x268] sm:$0xff] }
0x15ee   :  { %9542 = vmatprep.subr.mxu0 %v11535_v3 }
0x164c   :  { %v7321_v38 = vpop.f32.mrf.mxu0  ;;  %v7392_v28 = vpop.f32.mrf.mxu1 }
0x164d   :  { %v7322_v52 = vadd.f32 %v7321_v38, %v16997_v37  ;;  %v7393_v36 = vadd.f32 %v7392_v28, %v17000_v61  ;;  %v22401_v28 = vld [vmem:[#allocation293_spill] sm:$0xff] }
0x164e   :  { %v7323_v1 = vpop.f32.mrf.mxu0  ;;  %v7394_v47 = vpop.f32.mrf.mxu1 }
0x164f   :  { %11020 = vtanh.f32 %v7322_v52  ;;  %v7324_v53 = vadd.f32 %v7323_v1, %v17005_v45  ;;  %v7395_v22 = vadd.f32 %v7394_v47, %v17008_v51  ;;  %v11536_v45 = vld [vmem:[%s20553_s12 + $0x278] sm:$0xff]  ;;  %v22403_v1 = vld [vmem:[#allocation295_spill] sm:$0xff] }
0x1650   :  { %11022 = vtanh.f32 %v7393_v36  ;;  %v11537_v51 = vld [vmem:[%s20553_s12 + $0x378] sm:$0xff] }
0x1651   :  { %11024 = vtanh.f32 %v7324_v53  ;;  %v22402_v52 = vld [vmem:[#allocation294_spill] sm:$0xff] }
0x1652   :  { %11026 = vtanh.f32 %v7395_v22  ;;  %v22404_v22 = vld [vmem:[#allocation296_spill] sm:$0xff] }
0x165c   :  { %v11021_v26 = vpop.eup %11020 }
0x165d   :  { %v11023_v23 = vpop.eup %11022  ;;  %v7618_v33 = vmul.f32 0.0, %v11021_v26  ;;  %v22405_v26 = vld [vmem:[#allocation270_spill] sm:$0xff] }
0x165e   :  { %v11025_v49 = vpop.eup %11024  ;;  %v7620_v61 = vmul.f32 %v11023_v23, %v16513_v13  ;;  %v11539_v13 = vld [vmem:[%s20553_s12 + $0x3f0] sm:$0xff] }
0x165f   :  { %v11027_v55 = vpop.eup %11026  ;;  %v7619_v58 = vmul.f32 %v11025_v49, %v16509_v8  ;;  %v11538_v8 = vld [vmem:[%s20553_s12 + $0x2f0] sm:$0xff] }
0x1660   :  { %v7621_v37 = vmul.f32 %v11027_v55, %v16986_v9  ;;  %v11540_v9 = vld [vmem:[%s20553_s12 + $0x270] sm:$0xff] }
0x1661   :  { %7691 = vmatprep.mubr.f32.mxu1 %v7619_v58  ;;  %v22406_v49 = vld [vmem:[#allocation297_spill] sm:$0xff] }
0x1662   :  { %7761 = vmatprep.mubr.f32.mxu0 %v7621_v37  ;;  %7692 = vmatmul.mubr.f32.vlgmr.msra.gmra.mxu1 %v7618_v33  ;;  %v22411_v58 = vld [vmem:[#allocation19_spill] sm:$0xff]  ;;  %v22412_v37 = vld [vmem:[#allocation300_spill] sm:$0xff] }
0x1663   :  { %7762 = vmatmul.mubr.f32.vlgmr.msra.gmra.mxu0 %v7620_v61  ;;  %9508 = vmatpush3.msra.mxu1 %v11536_v45  ;;  %v22413_v45 = vld [vmem:[#allocation14_spill] sm:$0xff] }
0x1664   :  { %9543 = vmatpush3.msra.mxu0 %v11537_v51  ;;  %9509 = vmatprep.subr.mxu1 %v11538_v8  ;;  %v22414_v51 = vld [vmem:[#allocation301_spill] sm:$0xff]  ;;  %v22415_v8 = vld [vmem:[#allocation13_spill] sm:$0xff] }
0x1665   :  { %9544 = vmatprep.subr.mxu0 %v11539_v13  ;;  %9510 = vmatpush3.msra.mxu1 %v11540_v9  ;;  %v22416_v13 = vld [vmem:[#allocation302_spill] sm:$0xff] }
0x1666   :  { %9545 = vmatpush3.msra.mxu0 %v11541_v25  ;;  %9511 = vmatprep.subr.mxu1 %v11542_v62  ;;  %v22417_v9 = vld [vmem:[#allocation12_spill] sm:$0xff]  ;;  %v22418_v25 = vld [vmem:[#allocation303_spill] sm:$0xff]  ;;  %v22419_v62 = vld [vmem:[#allocation11_spill] sm:$0xff] }
0x1667   :  { %9546 = vmatprep.subr.mxu0 %v11543_v24  ;;  %9512 = vmatpush3.msra.mxu1 %v11544_v41  ;;  %v22420_v41 = vld [vmem:[#allocation304_spill] sm:$0xff] }
0x1668   :  { %9547 = vmatpush3.msra.mxu0 %v19259_v15  ;;  %9513 = vmatprep.subr.mxu1 %v19265_v59 }
0x1669   :  { %9548 = vmatprep.subr.mxu0 %v19271_v63  ;;  %9514 = vmatpush3.msra.mxu1 %v19277_v16 }
0x166a   :  { %9549 = vmatpush3.msra.mxu0 %v19283_v17  ;;  %9515 = vmatprep.subr.mxu1 %v19289_v12 }
0x166b   :  { %9550 = vmatprep.subr.mxu0 %v19295_v48  ;;  %9516 = vmatpush3.msra.mxu1 %v19301_v27  ;;  %v22384_v27 = vld [vmem:[#allocation276_spill] sm:$0xff] }
0x166c   :  { %9551 = vmatpush3.msra.mxu0 %v19307_v10  ;;  %9517 = vmatprep.subr.mxu1 %v19313_v20  ;;  %v22385_v10 = vld [vmem:[#allocation277_spill] sm:$0xff]  ;;  %v22386_v20 = vld [vmem:[#allocation278_spill] sm:$0xff] }
0x166d   :  { %v7463_v3 = vpop.f32.mrf.mxu0  ;;  %v7534_v15 = vpop.f32.mrf.mxu1  ;;  %9552 = vmatprep.subr.mxu0 %v19319_v4  ;;  %9518 = vmatpush3.msra.mxu1 %v19325_v7  ;;  %v22387_v4 = vld [vmem:[#allocation279_spill] sm:$0xff]  ;;  %v22388_v7 = vld [vmem:[#allocation280_spill] sm:$0xff] }
0x166e   :  { %v7464_v59 = vadd.f32 %v7463_v3, %v17105_v11  ;;  %v7535_v63 = vadd.f32 %v7534_v15, %v17108_v50  ;;  %9553 = vmatpush3.msra.mxu0 %v19333_v0  ;;  %9519 = vmatprep.subr.mxu1 %v19339_v46  ;;  %v22380_v11 = vld [vmem:[#allocation272_spill] sm:$0xff]  ;;  %v22381_v50 = vld [vmem:[#allocation273_spill] sm:$0xff]  ;;  %v22390_v46 = vld [vmem:[#allocation282_spill] sm:$0xff] }
0x166f   :  { %v7465_v16 = vpop.f32.mrf.mxu0  ;;  %v7536_v17 = vpop.f32.mrf.mxu1  ;;  %9554 = vmatprep.subr.mxu0 %v19345_v54  ;;  %9520 = vmatpush3.msra.mxu1 %v19351_v21  ;;  %v22389_v0 = vld [vmem:[#allocation281_spill] sm:$0xff]  ;;  %v22391_v54 = vld [vmem:[#allocation283_spill] sm:$0xff]  ;;  %v22392_v21 = vld [vmem:[#allocation284_spill] sm:$0xff] }
0x1670   :  { %11028 = vtanh.f32 %v7464_v59  ;;  %v7466_v12 = vadd.f32 %v7465_v16, %v17135_v32  ;;  %v7537_v48 = vadd.f32 %v7536_v17, %v17138_v60  ;;  %9555 = vmatpush3.msra.mxu0 %v19359_v42  ;;  %9521 = vmatprep.subr.mxu1 %v19365_v31  ;;  %v22382_v32 = vld [vmem:[#allocation274_spill] sm:$0xff]  ;;  %v22383_v60 = vld [vmem:[#allocation275_spill] sm:$0xff]  ;;  %v22393_v42 = vld [vmem:[#allocation285_spill] sm:$0xff] }
0x1671   :  { %11030 = vtanh.f32 %v7535_v63  ;;  %9556 = vmatprep.subr.mxu0 %v19371_v40  ;;  %9522 = vmatpush3.msra.mxu1 %v19377_v18  ;;  %v22394_v31 = vld [vmem:[#allocation286_spill] sm:$0xff]  ;;  %v22395_v18 = vld [vmem:[#allocation287_spill] sm:$0xff]  ;;  %v22421_v3 = vld [vmem:[#allocation10_spill] sm:$0xff] }
0x1672   :  { %11032 = vtanh.f32 %v7466_v12  ;;  %9557 = vmatpush3.msra.mxu0 %v19383_v2  ;;  %9523 = vmatprep.subr.mxu1 %v19389_v34  ;;  %v22396_v2 = vld [vmem:[#allocation288_spill] sm:$0xff]  ;;  %v22423_v63 = vld [vmem:[#allocation305_spill] sm:$0xff] }
0x1673   :  { %11034 = vtanh.f32 %v7537_v48  ;;  %9558 = vmatprep.subr.mxu0 %v19395_v56  ;;  %9524 = vmatpush3.msra.mxu1 %v19401_v5  ;;  %v22397_v56 = vld [vmem:[#allocation289_spill] sm:$0xff]  ;;  %v22398_v5 = vld [vmem:[#allocation290_spill] sm:$0xff]  ;;  %v22422_v15 = vld [vmem:[#allocation18_spill] sm:$0xff] }
0x1674   :  { %9559 = vmatpush3.msra.mxu0 %v19407_v39  ;;  %9525 = vmatprep.subr.mxu1 %v19413_v29  ;;  %v22399_v29 = vld [vmem:[#allocation291_spill] sm:$0xff]  ;;  %v7986_v16 = vld [vmem:[%s20554_s13 + $0x18] sm:$0xff]  ;;  %v7985_v17 = vld [vmem:[%s20554_s13 + $0x10] sm:$0xff] }
0x1675   :  { %9560 = vmatprep.subr.mxu0 %v19419_v35  ;;  %9526 = vmatpush3.msra.mxu1 %v22380_v11  ;;  %v22400_v35 = vld [vmem:[#allocation292_spill] sm:$0xff] }
0x1676   :  { %9561 = vmatpush3.msra.mxu0 %v22381_v50  ;;  %9527 = vmatprep.subr.mxu1 %v22382_v32  ;;  %v7984_v12 = vld [vmem:[%s20554_s13 + $0x8] sm:$0xff] }
0x1677   :  { %9562 = vmatprep.subr.mxu0 %v22383_v60  ;;  %9528 = vmatpush3.msra.mxu1 %v22384_v27 }
0x1678   :  { %9563 = vmatpush3.msra.mxu0 %v22385_v10  ;;  %9529 = vmatprep.subr.mxu1 %v22386_v20 }
0x1679   :  { %9564 = vmatprep.subr.mxu0 %v22387_v4  ;;  %9530 = vmatpush3.msra.mxu1 %v22388_v7 }
0x167a   :  { %9565 = vmatpush3.msra.mxu0 %v22389_v0  ;;  %9531 = vmatprep.subr.mxu1 %v22390_v46  ;;  %v22424_v0 = vld [vmem:[#allocation271_spill] sm:$0xff] }
0x167b   :  { %9566 = vmatprep.subr.mxu0 %v22391_v54  ;;  %9532 = vmatpush3.msra.mxu1 %v22392_v21  ;;  %v7977_v46 = vadd.f32 %v19819_v6, %v22424_v0 }
0x167c   :  { %9567 = vmatpush3.msra.mxu0 %v22393_v42  ;;  %9533 = vmatprep.subr.mxu1 %v22394_v31  ;;  %v7983_v42 = vld [vmem:[%s20554_s13] sm:$0xff] }
0x167d   :  { %v11029_v40 = vpop.eup %11028  ;;  %9568 = vmatprep.subr.mxu0 %v22395_v18  ;;  %9534 = vmatpush3.msra.mxu1 %v22396_v2  ;;  %v7978_v31 = vmul.f32 2.0, %v7977_v46 }
0x167e   :  { %v11031_v34 = vpop.eup %11030  ;;  %9569 = vmatpush3.msra.mxu0 %v22397_v56  ;;  %9535 = vmatprep.subr.mxu1 %v22398_v5  ;;  %v7622_v53 = vmul.f32 %v11029_v40, %v16988_v43  ;;  %v22408_v43 = vld [vmem:[#allocation16_spill] sm:$0xff]  ;;  %v22425_v56 = vld [vmem:[#allocation347_spill] sm:$0xff] }
0x167f   :  { %v11033_v39 = vpop.eup %11032  ;;  %9570 = vmatprep.subr.mxu0 %v22399_v29  ;;  %9536 = vmatpush3.msra.mxu1 %v22400_v35  ;;  %v7624_v23 = vmul.f32 %v11031_v34, %v22405_v26  ;;  %v7979_v5 = vadd.f32 %v7978_v31, %v22425_v56 }
0x1680   :  { %v11035_v38 = vpop.eup %11034  ;;  %9571 = vmatpush3.msra.mxu0 %v22401_v28  ;;  %9537 = vmatprep.subr.mxu1 %v22402_v52  ;;  %v7623_v36 = vmul.f32 %v11033_v39, %v16518_v14  ;;  %v22407_v14 = vld [vmem:[#allocation298_spill] sm:$0xff] }
0x1681   :  { %9572 = vmatprep.subr.mxu0 %v22403_v1  ;;  %9538 = vmatpush3.msra.mxu1 %v19570_v44  ;;  %v7625_v47 = vmul.f32 %v11035_v38, %v16991_v57  ;;  %v22409_v57 = vld [vmem:[#allocation299_spill] sm:$0xff]  ;;  %v22410_v44 = vld [vmem:[#allocation15_spill] sm:$0xff]  ;;  %v8121_v28 = vld [vmem:[%s20555_s14] ss:$0 sm:$0xff] }
0x1682   :  { %7831 = vmatprep.mubr.f32.mxu1 %v7623_v36  ;;  %9573 = vmatpush3.msra.mxu0 %v22404_v22 }
0x1683   :  { %7901 = vmatprep.mubr.f32.mxu0 %v7625_v47  ;;  %7832 = vmatmul.mubr.f32.vlgmr.msra.gmra.mxu1 %v7622_v53 }
0x1684   :  { %7902 = vmatmul.mubr.f32.vlgmr.msra.gmra.mxu0 %v7624_v23  ;;  %10292 = vmatprep.subr.mxu1 %v21819_v19 }
0x1685   :  { %10293 = vmatpush3.msra.mxu1 %v22406_v49  ;;  %10324 = vmatprep.mubr.msk.f32.mxu1 %vm11608_vm2, %v21819_v19 }
0x1686   :  { %10294 = vmatprep.subr.mxu1 %v21819_v19  ;;  %10327 = vmatprep.subr.mxu0 %v21819_v19 }
0x1687   :  { %10295 = vmatpush3.msra.mxu1 %v22407_v14  ;;  %10335 = vmatprep.mubr.msk.f32.mxu0 %vm11608_vm2, %v21819_v19 }
0x1688   :  { %10296 = vmatprep.subr.mxu1 %v21819_v19  ;;  %10328 = vmatpush3.msra.mxu0 %v7986_v16 }
0x1689   :  { %10297 = vmatpush3.msra.mxu1 %v22408_v43  ;;  %10329 = vmatprep.subr.mxu0 %v21819_v19 }
0x168a   :  { %10298 = vmatprep.subr.mxu1 %v21819_v19  ;;  %10330 = vmatpush3.msra.mxu0 %v7985_v17 }
0x168b   :  { %10299 = vmatpush3.msra.mxu1 %v22409_v57  ;;  %10331 = vmatprep.subr.mxu0 %v21819_v19 }
0x168c   :  { %10300 = vmatprep.subr.mxu1 %v21819_v19  ;;  %10332 = vmatpush3.msra.mxu0 %v7984_v12 }
0x168d   :  { %10301 = vmatpush3.msra.mxu1 %v22410_v44  ;;  %10333 = vmatprep.subr.mxu0 %v21819_v19 }
0x168e   :  { %v7605_v55 = vpop.f32.mrf.mxu0  ;;  %10302 = vmatprep.subr.mxu1 %v21819_v19  ;;  %10334 = vmatpush3.msra.mxu0 %v7983_v42 }
0x168f   :  { %v7606_v33 = vadd.f32 %v7605_v55, %v22411_v58  ;;  %10303 = vmatpush3.msra.mxu1 %v22412_v37 }
0x1690   :  { %v10291_v61 = vpop.f32.mrf.mxu0  ;;  %10304 = vmatprep.subr.mxu1 %v21819_v19 }
0x1691   :  { %10305 = vmatpush3.msra.mxu1 %v22413_v45  ;;  %11036 = vtanh.f32 %v7606_v33 }
0x1692   :  { %10306 = vmatprep.subr.mxu1 %v21819_v19 }
0x1693   :  { %10307 = vmatpush3.msra.mxu1 %v22414_v51 }
0x1694   :  { %10308 = vmatprep.subr.mxu1 %v21819_v19 }
0x1695   :  { %10309 = vmatpush3.msra.mxu1 %v22415_v8 }
0x1696   :  { %10310 = vmatprep.subr.mxu1 %v21819_v19 }
0x1697   :  { %10311 = vmatpush3.msra.mxu1 %v22416_v13 }
0x1698   :  { %10312 = vmatprep.subr.mxu1 %v21819_v19 }
0x1699   :  { %10313 = vmatpush3.msra.mxu1 %v22417_v9 }
0x169a   :  { %10314 = vmatprep.subr.mxu1 %v21819_v19 }
0x169b   :  { %10315 = vmatpush3.msra.mxu1 %v22418_v25 }
0x169c   :  { %10316 = vmatprep.subr.mxu1 %v21819_v19 }
0x169d   :  { %10317 = vmatpush3.msra.mxu1 %v22419_v62 }
0x169e   :  { %10318 = vmatprep.subr.mxu1 %v21819_v19  ;;  %v11037_v24 = vpop.eup %11036 }
0x169f   :  { %10319 = vmatpush3.msra.mxu1 %v22420_v41  ;;  %v7626_v59 = vmul.f32 %v11037_v24, %v22422_v15 }
0x16a0   :  { %10320 = vmatprep.subr.mxu1 %v21819_v19 }
0x16a1   :  { %10321 = vmatpush3.msra.mxu1 %v22421_v3 }
0x16a2   :  { %10322 = vmatprep.subr.mxu1 %v21819_v19 }
0x16a3   :  { %10323 = vmatpush3.msra.mxu1 %v22423_v63 }
0x16a4   :  { %10325 = vmatmul.mubr.f32.vlgmr.msra.gmra.mxu1 %v7626_v59 }
0x1722   :  { %v9469_v48 = vpop.f32.mrf.mxu1 }
0x1723   :  { %v9504_v11 = vpop.f32.mrf.mxu0 }
0x1724   :  { %v9470_v50 = vpop.f32.mrf.mxu1 }
0x1725   :  { %v9505_v60 = vpop.f32.mrf.mxu0  ;;  %v9471_v10 = vadd.f32 %v9470_v50, %v9469_v48 }
0x1726   :  { %v9506_v20 = vadd.f32 %v9505_v60, %v9504_v11 }
0x1728   :  { %v7764_v54 = vadd.f32 %v9506_v20, %v9471_v10 }
0x1743   :  { %v9539_v32 = vpop.f32.mrf.mxu1 }
0x1744   :  { %v9574_v4 = vpop.f32.mrf.mxu0 }
0x1745   :  { %v9540_v27 = vpop.f32.mrf.mxu1 }
0x1746   :  { %v9541_v7 = vadd.f32 %v9540_v27, %v9539_v32  ;;  %v9575_v21 = vpop.f32.mrf.mxu0 }
0x1747   :  { %v9576_v40 = vadd.f32 %v9575_v21, %v9574_v4 }
0x1748   :  { %v7834_v19 = vadd.f32 %v9541_v7, %v7764_v54 }
0x174a   :  { %v7904_v18 = vadd.f32 %v9576_v40, %v7834_v19 }
0x1764   :  { %v7973_v2 = vpop.f32.mrf.mxu1 }
0x1765   :  { %v7974_v34 = vadd.f32 %v7973_v2, %v7904_v18 }
0x1766   :  { %v10326_v39 = vpop.f32.mrf.mxu1 }
0x1767   :  { %v7980_v29 = vadd.f32 %v7979_v5, %v7974_v34 }
0x1769   :  { %v7981_v35 = vmul.f32 0.16666667, %v7980_v29 }
0x176b   :  { %v7982_v6 = vadd.f32 %v11605_v30, %v7981_v35 }
0x176d   :  { %7995 = vrot.lane.b32.xlu0 %v7982_v6, %s11612_s30 }
0x17df   :  { %v7996_v38 = vpop.permute.xlu0 %7995 }
0x17e0   :  { %10336 = vmatmul.mubr.msk.f32.vlgmr.msra.gmra.mxu0 %vm152_vm4, %v7996_v38 }
0x18a0   :  { %v8065_v52 = vpop.f32.mrf.mxu0 }
0x18a1   :  { %v8066_v36 = vadd.f32 %v8121_v28, %v8065_v52 }
0x18a2   :  { %v10337_v1 = vpop.f32.mrf.mxu0 }
0x18a3   :  { %8070 = vst.msk [vmem:[#allocation6] sm:$0x3] %vm8069_vm10, %v8066_v36 }
0x18a4   :  { %11556 = shalt.err (!%p11553_p6)
}
0x18a5   :  { %8080 = dma.vmem_to_hbm [thread:$0]  %s8078_s17, 32, %s20556_s15, [#allocation7]  }
0x18a6   :  { %11585 = dma.done.wait [#allocation7], 32  }
0x18a7   :  { %11586 = vsyncadd [#allocation7], 4294967264 }
0x18a8   :  { %8084 = vsyncpa [#allocation7], 1 }

</bundles_post_ra>
